<compile_context>
chip_gen: v7x
topology: tpu7x:2x2x1
jax: 0.10.0
libtpu: 0.0.40
codegen_flags: <defaults>
</compile_context>

<pallas_src>
import numpy as np

import jax
import jax.numpy as jnp
from jax.experimental import pallas as pl
from jax.experimental.pallas import tpu as pltpu

EPS = 1e-5          # BatchNorm3d default eps
NEG_SLOPE = 0.01    # LeakyReLU default negative_slope
N = 2               # batch size

# (stride, Din, Hin, Win, Cin, Dout, Hout, Wout, Cout) for the six conv layers.
LAYER_CFG = (
    (2, 16, 16, 16, 1, 8, 8, 8, 8),
    (1, 8, 8, 8, 8, 8, 8, 8, 8),
    (2, 8, 8, 8, 8, 4, 4, 4, 16),
    (1, 4, 4, 4, 16, 4, 4, 4, 16),
    (2, 4, 4, 4, 16, 2, 2, 2, 32),
    (1, 2, 2, 2, 32, 2, 2, 2, 32),
)
FINAL_D, FINAL_H, FINAL_W, FINAL_C = 2, 2, 2, 32
OUT_FEATURES = FINAL_C * FINAL_D * FINAL_H * FINAL_W      # 256

E_WIDTHS = (512, 256, 128)       # E slab lane widths (== Lout of the layers held)
SCOLS, RCOLS, BLANES = 32, 32, 512
MAX_LIN = max(c[2] * c[3] * c[4] for c in LAYER_CFG)      # 512


def _derive_layout():
    mpad, rows_in, e_slab, e_off = [], [], [], []
    e_rows = [0, 0, 0]
    s_off, r_off, b_off = [], [], []
    s_tot = r_tot = b_tot = 0
    prev_rows = N * LAYER_CFG[0][1]
    for cfg in LAYER_CFG:
        _, _, Hin, Win, Cin, Dout, Hout, Wout, Cout = cfg
        Lin, Lout = Hin * Win * Cin, Hout * Wout * Cout
        mp = -(-(N * Dout) // 8) * 8                       # Mout padded to x8
        mpad.append(mp); rows_in.append(prev_rows); prev_rows = mp
        slab = E_WIDTHS.index(Lout)
        e_slab.append(slab); e_off.append(e_rows[slab]); e_rows[slab] += 3 * Lin
        s_off.append(s_tot); s_tot += 3 * mp
        r_off.append(r_tot); r_tot += Lout
        b_off.append(b_tot); b_tot += Cout
    return (tuple(mpad), tuple(rows_in), tuple(e_slab), tuple(e_off),
            tuple(e_rows), tuple(s_off), s_tot, tuple(r_off), r_tot,
            tuple(b_off), b_tot)


(MPAD, ROWS_IN, E_SLAB, E_OFF, E_ROWS, S_OFF, S_ROWS, R_OFF, R_ROWS,
 B_OFF, B_ROWS) = _derive_layout()
OUT_ROWS = MPAD[-1]              # 8 (rows >= N*FINAL_D are alignment padding)


# ----------------------------------------------------------------------------
# The fused Pallas kernel: 6 x (Conv3d -> BatchNorm3d -> LeakyReLU).
# Activations stay as 2-D [rows=(n, d), lanes=(h, w, c)] matrices in VMEM.
# ----------------------------------------------------------------------------
def _encoder_kernel(x_ref, e512_ref, e256_ref, e128_ref, s_ref, r_ref, b_ref,
                    o_ref, pk_ref):
    e_refs = (e512_ref, e256_ref, e128_ref)
    act = x_ref[...].astype(jnp.float32)                          # [32, 256]
    for li, cfg in enumerate(LAYER_CFG):
        _, _, Hin, Win, Cin, Dout, Hout, Wout, Cout = cfg
        Lin, Lout = Hin * Win * Cin, Hout * Wout * Cout
        Mpad, rows_in = MPAD[li], ROWS_IN[li]

        # ---- Conv3d (bias dropped: exactly cancelled by training-mode BN) ----
        # One matmul selects all three depth taps (zero rows = depth zero-pad /
        # Mpad alignment pad); the H/W taps, stride, zero-padding and channel
        # contraction live inside the dense bf16 expanded-weight slab E.
        s = s_ref[S_OFF[li]:S_OFF[li] + 3 * Mpad, 0:rows_in]
        lhs = jnp.dot(s, act, preferred_element_type=jnp.float32)  # [3*Mpad, Lin]
        # Repack [3*Mpad, Lin] -> [Mpad, 3*Lin]; every lane offset is x128.
        for kd in range(3):
            pk_ref[0:Mpad, kd * Lin:(kd + 1) * Lin] = (
                lhs[kd * Mpad:(kd + 1) * Mpad, :])
        packed = pk_ref[0:Mpad, 0:3 * Lin]
        e = e_refs[E_SLAB[li]][E_OFF[li]:E_OFF[li] + 3 * Lin, :]
        y = jnp.dot(packed, e.astype(jnp.float32),
                    preferred_element_type=jnp.float32)            # [Mpad, Lout]

        # ---- BatchNorm3d (training mode: batch stats, biased variance) ----
        cs = jnp.concatenate([jnp.sum(y, axis=0, keepdims=True),
                              jnp.sum(y * y, axis=0, keepdims=True)],
                             axis=0)                                # [2, Lout]
        st = jnp.dot(cs, r_ref[R_OFF[li]:R_OFF[li] + Lout, 0:Cout],
                     preferred_element_type=jnp.float32)            # [2, Cout]
        mean = st[0:1, :]
        var = st[1:2, :] - mean * mean                              # biased var
        rstd = jax.lax.rsqrt(var + EPS)
        sb = jnp.dot(jnp.concatenate([rstd, mean * rstd], axis=0),
                     b_ref[B_OFF[li]:B_OFF[li] + Cout, 0:Lout],
                     preferred_element_type=jnp.float32)            # [2, Lout]
        # gamma folded into the broadcast slab; beta == 0 (BatchNorm default).
        yn = y * sb[0:1, :] - sb[1:2, :]
        act = jnp.maximum(yn, NEG_SLOPE * yn)                       # LeakyReLU
    o_ref[...] = act           # [8, 128]; rows >= N*FINAL_D are alignment pad


@jax.jit
def encoder3d_forward(x_ncdhw, operands):
    # NCDHW [N,1,16,16,16] -> rows (n, d), lanes (h, w); free reshape (Cin == 1).
    x0 = x_ncdhw.reshape(N * 16, 16 * 16).astype(jnp.bfloat16)
    args = (x0,) + tuple(operands)
    raw = pl.pallas_call(
        _encoder_kernel,
        out_shape=jax.ShapeDtypeStruct(
            (OUT_ROWS, FINAL_H * FINAL_W * FINAL_C), jnp.float32),
        grid=(1,),
        in_specs=[pl.BlockSpec(a.shape, lambda i, nd=a.ndim: (0,) * nd)
                  for a in args],
        out_specs=pl.BlockSpec((OUT_ROWS, FINAL_H * FINAL_W * FINAL_C),
                               lambda i: (0, 0)),
        scratch_shapes=[pltpu.VMEM((max(MPAD), 3 * MAX_LIN), jnp.float32)],
        compiler_params=pltpu.CompilerParams(
            dimension_semantics=("arbitrary",),
            vmem_limit_bytes=32 * 1024 * 1024),
    )(*args)
    # Flatten to PyTorch NCDHW order outside the kernel (free on ~2 KiB).
    act = raw[:N * FINAL_D].reshape(N, FINAL_D, FINAL_H, FINAL_W, FINAL_C)
    return act.transpose(0, 4, 1, 2, 3).reshape(N, OUT_FEATURES)


# ----------------------------------------------------------------------------
# Host-side (one-time) construction of the packed operand slabs.
# ----------------------------------------------------------------------------
def expand_conv_weight(w_oidhw, stride, Hin, Win, Hout, Wout):
    """Torch-layout [Cout, Cin, 3, 3, 3] -> E_cat [3*Hin*Win*Cin, Hout*Wout*Cout]."""
    w = np.asarray(w_oidhw, np.float32)
    Cout, Cin = w.shape[:2]
    Lin, Lout = Hin * Win * Cin, Hout * Wout * Cout
    e = np.zeros((3, Lin, Lout), np.float32)
    for kd in range(3):
        for oh in range(Hout):
            for kh in range(3):
                hi = stride * oh + kh - 1
                if hi < 0 or hi >= Hin:
                    continue
                for ow in range(Wout):
                    for kw in range(3):
                        wi = stride * ow + kw - 1
                        if wi < 0 or wi >= Win:
                            continue
                        r0 = (hi * Win + wi) * Cin
                        c0 = (oh * Wout + ow) * Cout
                        e[kd, r0:r0 + Cin, c0:c0 + Cout] = w[:, :, kd, kh, kw].T
    return e.reshape(3 * Lin, Lout)


def depth_shift_matrix(stride, Din, Dout, mpad, rows_in):
    """0/1 depth-tap selection (shift + stride + zero-pad), rows padded to x8."""
    s = np.zeros((3 * mpad, rows_in), np.float32)
    for kd in range(3):
        for n in range(N):
            for od in range(Dout):
                di = stride * od + kd - 1
                if 0 <= di < Din:
                    s[kd * mpad + n * Dout + od, n * Din + di] = 1.0
    return s


def bn_matrices(Dout, Hout, Wout, Cout, gamma):
    """R: lane->channel reduction with 1/count folded in; Bcast: channel->lane
    broadcast with gamma folded in."""
    Lout = Hout * Wout * Cout
    count = N * Dout * Hout * Wout
    r = np.zeros((Lout, Cout), np.float32)
    bc = np.zeros((Cout, Lout), np.float32)
    for hw in range(Hout * Wout):
        for c in range(Cout):
            r[hw * Cout + c, c] = 1.0 / count
            bc[c, hw * Cout + c] = gamma[c]
    return r, bc


def make_encoder_operands(key):
    keys = jax.random.split(key, len(LAYER_CFG))
    torch_weights = []
    e_slabs = [np.zeros((E_ROWS[j], E_WIDTHS[j]), np.float32) for j in range(3)]
    s_slab = np.zeros((S_ROWS, SCOLS), np.float32)
    r_slab = np.zeros((R_ROWS, RCOLS), np.float32)
    b_slab = np.zeros((B_ROWS, BLANES), np.float32)
    for li, (k, cfg) in enumerate(zip(keys, LAYER_CFG)):
        stride, Din, Hin, Win, Cin, Dout, Hout, Wout, Cout = cfg
        Lin, Lout = Hin * Win * Cin, Hout * Wout * Cout
        w = jax.random.normal(k, (Cout, Cin, 3, 3, 3), jnp.float32) * 0.1
        # Model weights are bf16 (the kernel storage dtype); the f32 reference
        # uses the exact same numerical values so the 1e-2 check stays strict.
        w = w.astype(jnp.bfloat16).astype(jnp.float32)
        torch_weights.append(w)
        # Conv bias intentionally omitted: cancelled by BN batch-mean subtraction.
        gamma = np.ones((Cout,), np.float32)     # BatchNorm3d default weight
        e_slabs[E_SLAB[li]][E_OFF[li]:E_OFF[li] + 3 * Lin, :] = expand_conv_weight(
            np.asarray(w), stride, Hin, Win, Hout, Wout)
        s_slab[S_OFF[li]:S_OFF[li] + 3 * MPAD[li], :ROWS_IN[li]] = (
            depth_shift_matrix(stride, Din, Dout, MPAD[li], ROWS_IN[li]))
        r, bc = bn_matrices(Dout, Hout, Wout, Cout, gamma)
        r_slab[R_OFF[li]:R_OFF[li] + Lout, :Cout] = r
        b_slab[B_OFF[li]:B_OFF[li] + Cout, :Lout] = bc
    operands = tuple(jnp.asarray(es, jnp.bfloat16) for es in e_slabs) + (
        jnp.asarray(s_slab), jnp.asarray(r_slab), jnp.asarray(b_slab))
    return operands, torch_weights


# ----------------------------------------------------------------------------
# Pure-JAX reference (matches the PyTorch module semantics) for verification.
# ----------------------------------------------------------------------------
def reference_forward(x_ncdhw, torch_weights):
    x = x_ncdhw.astype(jnp.float32)
    for w, cfg in zip(torch_weights, LAYER_CFG):
        stride = cfg[0]
        y = jax.lax.conv_general_dilated(
            x, w, window_strides=(stride,) * 3, padding=((1, 1),) * 3,
            dimension_numbers=("NCDHW", "OIDHW", "NCDHW"),
            precision=jax.lax.Precision.HIGHEST)
        mean = jnp.mean(y, axis=(0, 2, 3, 4), keepdims=True)
        var = jnp.mean(jnp.square(y - mean), axis=(0, 2, 3, 4), keepdims=True)
        yn = (y - mean) * jax.lax.rsqrt(var + EPS)       # gamma=1, beta=0
        x = jnp.where(yn > 0, yn, NEG_SLOPE * yn)
    return x.reshape(x.shape[0], -1)


if __name__ == "__main__":
    key = jax.random.PRNGKey(0)
    pkey, xkey = jax.random.split(key)
    operands, torch_weights = make_encoder_operands(pkey)

    # Input consistent with the module: N=2, C=1, D=H=W=16.  Rounded to
    # bf16-representable values (the kernel transports x as bf16; the reference
    # consumes the identical values, so the comparison is exact).
    x = jax.random.normal(xkey, (N, 1, 16, 16, 16), jnp.float32)
    x = x.astype(jnp.bfloat16).astype(jnp.float32)

    out = jax.block_until_ready(encoder3d_forward(x, operands))

    assert out.shape == (N, OUT_FEATURES), out.shape
    assert bool(jnp.all(jnp.isfinite(out)))

    ref = reference_forward(x, torch_weights)
    max_err = float(jnp.max(jnp.abs(out - ref)))
    assert max_err < 1e-2, f"max abs error vs reference: {max_err}"

    print("KERNEL_OK")
</pallas_src>

<mosaic_0001>
module attributes {stable_mosaic.version = 11 : i64} {
  func.func @_encoder_kernel(%arg0: i32, %arg1: memref<32x256xbf16, #tpu.memory_space<vmem>>, %arg2: memref<2304x512xbf16, #tpu.memory_space<vmem>>, %arg3: memref<2304x256xbf16, #tpu.memory_space<vmem>>, %arg4: memref<1152x128xbf16, #tpu.memory_space<vmem>>, %arg5: memref<192x32xf32, #tpu.memory_space<vmem>>, %arg6: memref<1792x32xf32, #tpu.memory_space<vmem>>, %arg7: memref<112x512xf32, #tpu.memory_space<vmem>>, %arg8: memref<8x128xf32, #tpu.memory_space<vmem>>, %arg9: memref<16x1536xf32, #tpu.memory_space<vmem>>) attributes {dimension_semantics = [#tpu.dimension_semantics<arbitrary>], iteration_bounds = array<i64: 1>, scalar_prefetch = 0 : i64, scratch_operands = 1 : i64, tpu.core_type = #tpu.core_type<tc>, window_params = [{pipeline_mode = #tpu.pipeline_mode<synchronous>, transform_indices = @transform_0, window_bounds = array<i64: 32, 256>}, {pipeline_mode = #tpu.pipeline_mode<synchronous>, transform_indices = @transform_1, window_bounds = array<i64: 2304, 512>}, {pipeline_mode = #tpu.pipeline_mode<synchronous>, transform_indices = @transform_2, window_bounds = array<i64: 2304, 256>}, {pipeline_mode = #tpu.pipeline_mode<synchronous>, transform_indices = @transform_3, window_bounds = array<i64: 1152, 128>}, {pipeline_mode = #tpu.pipeline_mode<synchronous>, transform_indices = @transform_4, window_bounds = array<i64: 192, 32>}, {pipeline_mode = #tpu.pipeline_mode<synchronous>, transform_indices = @transform_5, window_bounds = array<i64: 1792, 32>}, {pipeline_mode = #tpu.pipeline_mode<synchronous>, transform_indices = @transform_6, window_bounds = array<i64: 112, 512>}, {pipeline_mode = #tpu.pipeline_mode<synchronous>, transform_indices = @transform_7, window_bounds = array<i64: 8, 128>}]} {
    %c0 = arith.constant 0 : index
    %c0_0 = arith.constant 0 : index
    %0 = vector.load %arg1[%c0, %c0_0] : memref<32x256xbf16, #tpu.memory_space<vmem>>, vector<32x256xbf16>
    %1 = arith.extf %0 : vector<32x256xbf16> to vector<32x256xf32>
    %c0_1 = arith.constant 0 : index
    %c0_2 = arith.constant 0 : index
    %2 = vector.load %arg5[%c0_1, %c0_2] : memref<192x32xf32, #tpu.memory_space<vmem>>, vector<48x32xf32>
    %cst = arith.constant dense<0.000000e+00> : vector<48x256xf32>
    %3 = tpu.matmul %2, %1, %cst {dimension_numbers = #tpu.dot_dimension_numbers<[1], [0], [0], [1], [0, 0, 1, 1], [], []>} : vector<48x32xf32>, vector<32x256xf32>, vector<48x256xf32> -> vector<48x256xf32>
    %4 = vector.extract_strided_slice %3 {offsets = [0, 0], sizes = [16, 256], strides = [1, 1]} : vector<48x256xf32> to vector<16x256xf32>
    %c0_3 = arith.constant 0 : index
    %c0_4 = arith.constant 0 : index
    %5 = vector.load %arg9[%c0_3, %c0_4] : memref<16x1536xf32, #tpu.memory_space<vmem>>, vector<16x256xf32>
    tpu.vector_store %arg9[%c0_3, %c0_4], %4 {strides = array<i32>} : memref<16x1536xf32, #tpu.memory_space<vmem>>, vector<16x256xf32>,
    %6 = vector.extract_strided_slice %3 {offsets = [16, 0], sizes = [16, 256], strides = [1, 1]} : vector<48x256xf32> to vector<16x256xf32>
    %c0_5 = arith.constant 0 : index
    %c256 = arith.constant 256 : index
    %7 = vector.load %arg9[%c0_5, %c256] : memref<16x1536xf32, #tpu.memory_space<vmem>>, vector<16x256xf32>
    tpu.vector_store %arg9[%c0_5, %c256], %6 {strides = array<i32>} : memref<16x1536xf32, #tpu.memory_space<vmem>>, vector<16x256xf32>,
    %8 = vector.extract_strided_slice %3 {offsets = [32, 0], sizes = [16, 256], strides = [1, 1]} : vector<48x256xf32> to vector<16x256xf32>
    %c0_6 = arith.constant 0 : index
    %c512 = arith.constant 512 : index
    %9 = vector.load %arg9[%c0_6, %c512] : memref<16x1536xf32, #tpu.memory_space<vmem>>, vector<16x256xf32>
    tpu.vector_store %arg9[%c0_6, %c512], %8 {strides = array<i32>} : memref<16x1536xf32, #tpu.memory_space<vmem>>, vector<16x256xf32>,
    %c0_7 = arith.constant 0 : index
    %c0_8 = arith.constant 0 : index
    %10 = vector.load %arg9[%c0_7, %c0_8] : memref<16x1536xf32, #tpu.memory_space<vmem>>, vector<16x768xf32>
    %c0_9 = arith.constant 0 : index
    %c0_10 = arith.constant 0 : index
    %11 = vector.load %arg2[%c0_9, %c0_10] : memref<2304x512xbf16, #tpu.memory_space<vmem>>, vector<768x512xbf16>
    %12 = arith.extf %11 : vector<768x512xbf16> to vector<768x512xf32>
    %cst_11 = arith.constant dense<0.000000e+00> : vector<16x512xf32>
    %13 = tpu.matmul %10, %12, %cst_11 {dimension_numbers = #tpu.dot_dimension_numbers<[1], [0], [0], [1], [0, 0, 1, 1], [], []>} : vector<16x768xf32>, vector<768x512xf32>, vector<16x512xf32> -> vector<16x512xf32>
    %cst_12 = arith.constant dense<0.000000e+00> : vector<512xf32>
    %14 = vector.multi_reduction <add>, %13, %cst_12 [0] : vector<16x512xf32> to vector<512xf32>
    %15 = vector.shape_cast %14 : vector<512xf32> to vector<1x512xf32>
    %16 = arith.mulf %13, %13 : vector<16x512xf32>
    %cst_13 = arith.constant dense<0.000000e+00> : vector<512xf32>
    %17 = vector.multi_reduction <add>, %16, %cst_13 [0] : vector<16x512xf32> to vector<512xf32>
    %18 = vector.shape_cast %17 : vector<512xf32> to vector<1x512xf32>
    %19 = tpu.concatenate %15, %18 in 0 : vector<1x512xf32>, vector<1x512xf32> -> vector<2x512xf32>
    %c0_14 = arith.constant 0 : index
    %c0_15 = arith.constant 0 : index
    %20 = vector.load %arg6[%c0_14, %c0_15] : memref<1792x32xf32, #tpu.memory_space<vmem>>, vector<512x8xf32>
    %cst_16 = arith.constant dense<0.000000e+00> : vector<2x8xf32>
    %21 = tpu.matmul %19, %20, %cst_16 {dimension_numbers = #tpu.dot_dimension_numbers<[1], [0], [0], [1], [0, 0, 1, 1], [], []>} : vector<2x512xf32>, vector<512x8xf32>, vector<2x8xf32> -> vector<2x8xf32>
    %22 = vector.extract_strided_slice %21 {offsets = [0, 0], sizes = [1, 8], strides = [1, 1]} : vector<2x8xf32> to vector<1x8xf32>
    %23 = vector.extract_strided_slice %21 {offsets = [1, 0], sizes = [1, 8], strides = [1, 1]} : vector<2x8xf32> to vector<1x8xf32>
    %24 = arith.mulf %22, %22 : vector<1x8xf32>
    %25 = arith.subf %23, %24 : vector<1x8xf32>
    %cst_17 = arith.constant 9.99999974E-6 : f32
    %26 = vector.broadcast %cst_17 : f32 to vector<1x8xf32>
    %27 = arith.addf %25, %26 : vector<1x8xf32>
    %28 = math.rsqrt %27 : vector<1x8xf32>
    %29 = arith.mulf %22, %28 : vector<1x8xf32>
    %30 = tpu.concatenate %28, %29 in 0 : vector<1x8xf32>, vector<1x8xf32> -> vector<2x8xf32>
    %c0_18 = arith.constant 0 : index
    %c0_19 = arith.constant 0 : index
    %31 = vector.load %arg7[%c0_18, %c0_19] : memref<112x512xf32, #tpu.memory_space<vmem>>, vector<8x512xf32>
    %cst_20 = arith.constant dense<0.000000e+00> : vector<2x512xf32>
    %32 = tpu.matmul %30, %31, %cst_20 {dimension_numbers = #tpu.dot_dimension_numbers<[1], [0], [0], [1], [0, 0, 1, 1], [], []>} : vector<2x8xf32>, vector<8x512xf32>, vector<2x512xf32> -> vector<2x512xf32>
    %33 = vector.extract_strided_slice %32 {offsets = [0, 0], sizes = [1, 512], strides = [1, 1]} : vector<2x512xf32> to vector<1x512xf32>
    %34 = vector.broadcast %33 : vector<1x512xf32> to vector<16x512xf32>
    %35 = arith.mulf %13, %34 : vector<16x512xf32>
    %36 = vector.extract_strided_slice %32 {offsets = [1, 0], sizes = [1, 512], strides = [1, 1]} : vector<2x512xf32> to vector<1x512xf32>
    %37 = vector.broadcast %36 : vector<1x512xf32> to vector<16x512xf32>
    %38 = arith.subf %35, %37 : vector<16x512xf32>
    %cst_21 = arith.constant 0.00999999977 : f32
    %39 = vector.broadcast %cst_21 : f32 to vector<16x512xf32>
    %40 = arith.mulf %39, %38 : vector<16x512xf32>
    %41 = arith.maximumf %38, %40 : vector<16x512xf32>
    %c48 = arith.constant 48 : index
    %c0_22 = arith.constant 0 : index
    %42 = vector.load %arg5[%c48, %c0_22] : memref<192x32xf32, #tpu.memory_space<vmem>>, vector<48x16xf32>
    %cst_23 = arith.constant dense<0.000000e+00> : vector<48x512xf32>
    %43 = tpu.matmul %42, %41, %cst_23 {dimension_numbers = #tpu.dot_dimension_numbers<[1], [0], [0], [1], [0, 0, 1, 1], [], []>} : vector<48x16xf32>, vector<16x512xf32>, vector<48x512xf32> -> vector<48x512xf32>
    %44 = vector.extract_strided_slice %43 {offsets = [0, 0], sizes = [16, 512], strides = [1, 1]} : vector<48x512xf32> to vector<16x512xf32>
    %c0_24 = arith.constant 0 : index
    %c0_25 = arith.constant 0 : index
    %45 = vector.load %arg9[%c0_24, %c0_25] : memref<16x1536xf32, #tpu.memory_space<vmem>>, vector<16x512xf32>
    tpu.vector_store %arg9[%c0_24, %c0_25], %44 {strides = array<i32>} : memref<16x1536xf32, #tpu.memory_space<vmem>>, vector<16x512xf32>,
    %46 = vector.extract_strided_slice %43 {offsets = [16, 0], sizes = [16, 512], strides = [1, 1]} : vector<48x512xf32> to vector<16x512xf32>
    %c0_26 = arith.constant 0 : index
    %c512_27 = arith.constant 512 : index
    %47 = vector.load %arg9[%c0_26, %c512_27] : memref<16x1536xf32, #tpu.memory_space<vmem>>, vector<16x512xf32>
    tpu.vector_store %arg9[%c0_26, %c512_27], %46 {strides = array<i32>} : memref<16x1536xf32, #tpu.memory_space<vmem>>, vector<16x512xf32>,
    %48 = vector.extract_strided_slice %43 {offsets = [32, 0], sizes = [16, 512], strides = [1, 1]} : vector<48x512xf32> to vector<16x512xf32>
    %c0_28 = arith.constant 0 : index
    %c1024 = arith.constant 1024 : index
    %49 = vector.load %arg9[%c0_28, %c1024] : memref<16x1536xf32, #tpu.memory_space<vmem>>, vector<16x512xf32>
    tpu.vector_store %arg9[%c0_28, %c1024], %48 {strides = array<i32>} : memref<16x1536xf32, #tpu.memory_space<vmem>>, vector<16x512xf32>,
    %c0_29 = arith.constant 0 : index
    %c0_30 = arith.constant 0 : index
    %50 = vector.load %arg9[%c0_29, %c0_30] : memref<16x1536xf32, #tpu.memory_space<vmem>>, vector<16x1536xf32>
    %c768 = arith.constant 768 : index
    %c0_31 = arith.constant 0 : index
    %51 = vector.load %arg2[%c768, %c0_31] : memref<2304x512xbf16, #tpu.memory_space<vmem>>, vector<1536x512xbf16>
    %52 = arith.extf %51 : vector<1536x512xbf16> to vector<1536x512xf32>
    %cst_32 = arith.constant dense<0.000000e+00> : vector<16x512xf32>
    %53 = tpu.matmul %50, %52, %cst_32 {dimension_numbers = #tpu.dot_dimension_numbers<[1], [0], [0], [1], [0, 0, 1, 1], [], []>} : vector<16x1536xf32>, vector<1536x512xf32>, vector<16x512xf32> -> vector<16x512xf32>
    %cst_33 = arith.constant dense<0.000000e+00> : vector<512xf32>
    %54 = vector.multi_reduction <add>, %53, %cst_33 [0] : vector<16x512xf32> to vector<512xf32>
    %55 = vector.shape_cast %54 : vector<512xf32> to vector<1x512xf32>
    %56 = arith.mulf %53, %53 : vector<16x512xf32>
    %cst_34 = arith.constant dense<0.000000e+00> : vector<512xf32>
    %57 = vector.multi_reduction <add>, %56, %cst_34 [0] : vector<16x512xf32> to vector<512xf32>
    %58 = vector.shape_cast %57 : vector<512xf32> to vector<1x512xf32>
    %59 = tpu.concatenate %55, %58 in 0 : vector<1x512xf32>, vector<1x512xf32> -> vector<2x512xf32>
    %c512_35 = arith.constant 512 : index
    %c0_36 = arith.constant 0 : index
    %60 = vector.load %arg6[%c512_35, %c0_36] : memref<1792x32xf32, #tpu.memory_space<vmem>>, vector<512x8xf32>
    %cst_37 = arith.constant dense<0.000000e+00> : vector<2x8xf32>
    %61 = tpu.matmul %59, %60, %cst_37 {dimension_numbers = #tpu.dot_dimension_numbers<[1], [0], [0], [1], [0, 0, 1, 1], [], []>} : vector<2x512xf32>, vector<512x8xf32>, vector<2x8xf32> -> vector<2x8xf32>
    %62 = vector.extract_strided_slice %61 {offsets = [0, 0], sizes = [1, 8], strides = [1, 1]} : vector<2x8xf32> to vector<1x8xf32>
    %63 = vector.extract_strided_slice %61 {offsets = [1, 0], sizes = [1, 8], strides = [1, 1]} : vector<2x8xf32> to vector<1x8xf32>
    %64 = arith.mulf %62, %62 : vector<1x8xf32>
    %65 = arith.subf %63, %64 : vector<1x8xf32>
    %cst_38 = arith.constant 9.99999974E-6 : f32
    %66 = vector.broadcast %cst_38 : f32 to vector<1x8xf32>
    %67 = arith.addf %65, %66 : vector<1x8xf32>
    %68 = math.rsqrt %67 : vector<1x8xf32>
    %69 = arith.mulf %62, %68 : vector<1x8xf32>
    %70 = tpu.concatenate %68, %69 in 0 : vector<1x8xf32>, vector<1x8xf32> -> vector<2x8xf32>
    %c8 = arith.constant 8 : index
    %c0_39 = arith.constant 0 : index
    %71 = vector.load %arg7[%c8, %c0_39] : memref<112x512xf32, #tpu.memory_space<vmem>>, vector<8x512xf32>
    %cst_40 = arith.constant dense<0.000000e+00> : vector<2x512xf32>
    %72 = tpu.matmul %70, %71, %cst_40 {dimension_numbers = #tpu.dot_dimension_numbers<[1], [0], [0], [1], [0, 0, 1, 1], [], []>} : vector<2x8xf32>, vector<8x512xf32>, vector<2x512xf32> -> vector<2x512xf32>
    %73 = vector.extract_strided_slice %72 {offsets = [0, 0], sizes = [1, 512], strides = [1, 1]} : vector<2x512xf32> to vector<1x512xf32>
    %74 = vector.broadcast %73 : vector<1x512xf32> to vector<16x512xf32>
    %75 = arith.mulf %53, %74 : vector<16x512xf32>
    %76 = vector.extract_strided_slice %72 {offsets = [1, 0], sizes = [1, 512], strides = [1, 1]} : vector<2x512xf32> to vector<1x512xf32>
    %77 = vector.broadcast %76 : vector<1x512xf32> to vector<16x512xf32>
    %78 = arith.subf %75, %77 : vector<16x512xf32>
    %cst_41 = arith.constant 0.00999999977 : f32
    %79 = vector.broadcast %cst_41 : f32 to vector<16x512xf32>
    %80 = arith.mulf %79, %78 : vector<16x512xf32>
    %81 = arith.maximumf %78, %80 : vector<16x512xf32>
    %c96 = arith.constant 96 : index
    %c0_42 = arith.constant 0 : index
    %82 = vector.load %arg5[%c96, %c0_42] : memref<192x32xf32, #tpu.memory_space<vmem>>, vector<24x16xf32>
    %cst_43 = arith.constant dense<0.000000e+00> : vector<24x512xf32>
    %83 = tpu.matmul %82, %81, %cst_43 {dimension_numbers = #tpu.dot_dimension_numbers<[1], [0], [0], [1], [0, 0, 1, 1], [], []>} : vector<24x16xf32>, vector<16x512xf32>, vector<24x512xf32> -> vector<24x512xf32>
    %84 = vector.extract_strided_slice %83 {offsets = [0, 0], sizes = [8, 512], strides = [1, 1]} : vector<24x512xf32> to vector<8x512xf32>
    %c0_44 = arith.constant 0 : index
    %c0_45 = arith.constant 0 : index
    %85 = vector.load %arg9[%c0_44, %c0_45] : memref<16x1536xf32, #tpu.memory_space<vmem>>, vector<8x512xf32>
    tpu.vector_store %arg9[%c0_44, %c0_45], %84 {strides = array<i32>} : memref<16x1536xf32, #tpu.memory_space<vmem>>, vector<8x512xf32>,
    %86 = vector.extract_strided_slice %83 {offsets = [8, 0], sizes = [8, 512], strides = [1, 1]} : vector<24x512xf32> to vector<8x512xf32>
    %c0_46 = arith.constant 0 : index
    %c512_47 = arith.constant 512 : index
    %87 = vector.load %arg9[%c0_46, %c512_47] : memref<16x1536xf32, #tpu.memory_space<vmem>>, vector<8x512xf32>
    tpu.vector_store %arg9[%c0_46, %c512_47], %86 {strides = array<i32>} : memref<16x1536xf32, #tpu.memory_space<vmem>>, vector<8x512xf32>,
    %88 = vector.extract_strided_slice %83 {offsets = [16, 0], sizes = [8, 512], strides = [1, 1]} : vector<24x512xf32> to vector<8x512xf32>
    %c0_48 = arith.constant 0 : index
    %c1024_49 = arith.constant 1024 : index
    %89 = vector.load %arg9[%c0_48, %c1024_49] : memref<16x1536xf32, #tpu.memory_space<vmem>>, vector<8x512xf32>
    tpu.vector_store %arg9[%c0_48, %c1024_49], %88 {strides = array<i32>} : memref<16x1536xf32, #tpu.memory_space<vmem>>, vector<8x512xf32>,
    %c0_50 = arith.constant 0 : index
    %c0_51 = arith.constant 0 : index
    %90 = vector.load %arg9[%c0_50, %c0_51] : memref<16x1536xf32, #tpu.memory_space<vmem>>, vector<8x1536xf32>
    %c0_52 = arith.constant 0 : index
    %c0_53 = arith.constant 0 : index
    %91 = vector.load %arg3[%c0_52, %c0_53] : memref<2304x256xbf16, #tpu.memory_space<vmem>>, vector<1536x256xbf16>
    %92 = arith.extf %91 : vector<1536x256xbf16> to vector<1536x256xf32>
    %cst_54 = arith.constant dense<0.000000e+00> : vector<8x256xf32>
    %93 = tpu.matmul %90, %92, %cst_54 {dimension_numbers = #tpu.dot_dimension_numbers<[1], [0], [0], [1], [0, 0, 1, 1], [], []>} : vector<8x1536xf32>, vector<1536x256xf32>, vector<8x256xf32> -> vector<8x256xf32>
    %cst_55 = arith.constant dense<0.000000e+00> : vector<256xf32>
    %94 = vector.multi_reduction <add>, %93, %cst_55 [0] : vector<8x256xf32> to vector<256xf32>
    %95 = vector.shape_cast %94 : vector<256xf32> to vector<1x256xf32>
    %96 = arith.mulf %93, %93 : vector<8x256xf32>
    %cst_56 = arith.constant dense<0.000000e+00> : vector<256xf32>
    %97 = vector.multi_reduction <add>, %96, %cst_56 [0] : vector<8x256xf32> to vector<256xf32>
    %98 = vector.shape_cast %97 : vector<256xf32> to vector<1x256xf32>
    %99 = tpu.concatenate %95, %98 in 0 : vector<1x256xf32>, vector<1x256xf32> -> vector<2x256xf32>
    %c1024_57 = arith.constant 1024 : index
    %c0_58 = arith.constant 0 : index
    %100 = vector.load %arg6[%c1024_57, %c0_58] : memref<1792x32xf32, #tpu.memory_space<vmem>>, vector<256x16xf32>
    %cst_59 = arith.constant dense<0.000000e+00> : vector<2x16xf32>
    %101 = tpu.matmul %99, %100, %cst_59 {dimension_numbers = #tpu.dot_dimension_numbers<[1], [0], [0], [1], [0, 0, 1, 1], [], []>} : vector<2x256xf32>, vector<256x16xf32>, vector<2x16xf32> -> vector<2x16xf32>
    %102 = vector.extract_strided_slice %101 {offsets = [0, 0], sizes = [1, 16], strides = [1, 1]} : vector<2x16xf32> to vector<1x16xf32>
    %103 = vector.extract_strided_slice %101 {offsets = [1, 0], sizes = [1, 16], strides = [1, 1]} : vector<2x16xf32> to vector<1x16xf32>
    %104 = arith.mulf %102, %102 : vector<1x16xf32>
    %105 = arith.subf %103, %104 : vector<1x16xf32>
    %cst_60 = arith.constant 9.99999974E-6 : f32
    %106 = vector.broadcast %cst_60 : f32 to vector<1x16xf32>
    %107 = arith.addf %105, %106 : vector<1x16xf32>
    %108 = math.rsqrt %107 : vector<1x16xf32>
    %109 = arith.mulf %102, %108 : vector<1x16xf32>
    %110 = tpu.concatenate %108, %109 in 0 : vector<1x16xf32>, vector<1x16xf32> -> vector<2x16xf32>
    %c16 = arith.constant 16 : index
    %c0_61 = arith.constant 0 : index
    %111 = vector.load %arg7[%c16, %c0_61] : memref<112x512xf32, #tpu.memory_space<vmem>>, vector<16x256xf32>
    %cst_62 = arith.constant dense<0.000000e+00> : vector<2x256xf32>
    %112 = tpu.matmul %110, %111, %cst_62 {dimension_numbers = #tpu.dot_dimension_numbers<[1], [0], [0], [1], [0, 0, 1, 1], [], []>} : vector<2x16xf32>, vector<16x256xf32>, vector<2x256xf32> -> vector<2x256xf32>
    %113 = vector.extract_strided_slice %112 {offsets = [0, 0], sizes = [1, 256], strides = [1, 1]} : vector<2x256xf32> to vector<1x256xf32>
    %114 = vector.broadcast %113 : vector<1x256xf32> to vector<8x256xf32>
    %115 = arith.mulf %93, %114 : vector<8x256xf32>
    %116 = vector.extract_strided_slice %112 {offsets = [1, 0], sizes = [1, 256], strides = [1, 1]} : vector<2x256xf32> to vector<1x256xf32>
    %117 = vector.broadcast %116 : vector<1x256xf32> to vector<8x256xf32>
    %118 = arith.subf %115, %117 : vector<8x256xf32>
    %cst_63 = arith.constant 0.00999999977 : f32
    %119 = vector.broadcast %cst_63 : f32 to vector<8x256xf32>
    %120 = arith.mulf %119, %118 : vector<8x256xf32>
    %121 = arith.maximumf %118, %120 : vector<8x256xf32>
    %c120 = arith.constant 120 : index
    %c0_64 = arith.constant 0 : index
    %122 = vector.load %arg5[%c120, %c0_64] : memref<192x32xf32, #tpu.memory_space<vmem>>, vector<24x8xf32>
    %cst_65 = arith.constant dense<0.000000e+00> : vector<24x256xf32>
    %123 = tpu.matmul %122, %121, %cst_65 {dimension_numbers = #tpu.dot_dimension_numbers<[1], [0], [0], [1], [0, 0, 1, 1], [], []>} : vector<24x8xf32>, vector<8x256xf32>, vector<24x256xf32> -> vector<24x256xf32>
    %124 = vector.extract_strided_slice %123 {offsets = [0, 0], sizes = [8, 256], strides = [1, 1]} : vector<24x256xf32> to vector<8x256xf32>
    %c0_66 = arith.constant 0 : index
    %c0_67 = arith.constant 0 : index
    %125 = vector.load %arg9[%c0_66, %c0_67] : memref<16x1536xf32, #tpu.memory_space<vmem>>, vector<8x256xf32>
    tpu.vector_store %arg9[%c0_66, %c0_67], %124 {strides = array<i32>} : memref<16x1536xf32, #tpu.memory_space<vmem>>, vector<8x256xf32>,
    %126 = vector.extract_strided_slice %123 {offsets = [8, 0], sizes = [8, 256], strides = [1, 1]} : vector<24x256xf32> to vector<8x256xf32>
    %c0_68 = arith.constant 0 : index
    %c256_69 = arith.constant 256 : index
    %127 = vector.load %arg9[%c0_68, %c256_69] : memref<16x1536xf32, #tpu.memory_space<vmem>>, vector<8x256xf32>
    tpu.vector_store %arg9[%c0_68, %c256_69], %126 {strides = array<i32>} : memref<16x1536xf32, #tpu.memory_space<vmem>>, vector<8x256xf32>,
    %128 = vector.extract_strided_slice %123 {offsets = [16, 0], sizes = [8, 256], strides = [1, 1]} : vector<24x256xf32> to vector<8x256xf32>
    %c0_70 = arith.constant 0 : index
    %c512_71 = arith.constant 512 : index
    %129 = vector.load %arg9[%c0_70, %c512_71] : memref<16x1536xf32, #tpu.memory_space<vmem>>, vector<8x256xf32>
    tpu.vector_store %arg9[%c0_70, %c512_71], %128 {strides = array<i32>} : memref<16x1536xf32, #tpu.memory_space<vmem>>, vector<8x256xf32>,
    %c0_72 = arith.constant 0 : index
    %c0_73 = arith.constant 0 : index
    %130 = vector.load %arg9[%c0_72, %c0_73] : memref<16x1536xf32, #tpu.memory_space<vmem>>, vector<8x768xf32>
    %c1536 = arith.constant 1536 : index
    %c0_74 = arith.constant 0 : index
    %131 = vector.load %arg3[%c1536, %c0_74] : memref<2304x256xbf16, #tpu.memory_space<vmem>>, vector<768x256xbf16>
    %132 = arith.extf %131 : vector<768x256xbf16> to vector<768x256xf32>
    %cst_75 = arith.constant dense<0.000000e+00> : vector<8x256xf32>
    %133 = tpu.matmul %130, %132, %cst_75 {dimension_numbers = #tpu.dot_dimension_numbers<[1], [0], [0], [1], [0, 0, 1, 1], [], []>} : vector<8x768xf32>, vector<768x256xf32>, vector<8x256xf32> -> vector<8x256xf32>
    %cst_76 = arith.constant dense<0.000000e+00> : vector<256xf32>
    %134 = vector.multi_reduction <add>, %133, %cst_76 [0] : vector<8x256xf32> to vector<256xf32>
    %135 = vector.shape_cast %134 : vector<256xf32> to vector<1x256xf32>
    %136 = arith.mulf %133, %133 : vector<8x256xf32>
    %cst_77 = arith.constant dense<0.000000e+00> : vector<256xf32>
    %137 = vector.multi_reduction <add>, %136, %cst_77 [0] : vector<8x256xf32> to vector<256xf32>
    %138 = vector.shape_cast %137 : vector<256xf32> to vector<1x256xf32>
    %139 = tpu.concatenate %135, %138 in 0 : vector<1x256xf32>, vector<1x256xf32> -> vector<2x256xf32>
    %c1280 = arith.constant 1280 : index
    %c0_78 = arith.constant 0 : index
    %140 = vector.load %arg6[%c1280, %c0_78] : memref<1792x32xf32, #tpu.memory_space<vmem>>, vector<256x16xf32>
    %cst_79 = arith.constant dense<0.000000e+00> : vector<2x16xf32>
    %141 = tpu.matmul %139, %140, %cst_79 {dimension_numbers = #tpu.dot_dimension_numbers<[1], [0], [0], [1], [0, 0, 1, 1], [], []>} : vector<2x256xf32>, vector<256x16xf32>, vector<2x16xf32> -> vector<2x16xf32>
    %142 = vector.extract_strided_slice %141 {offsets = [0, 0], sizes = [1, 16], strides = [1, 1]} : vector<2x16xf32> to vector<1x16xf32>
    %143 = vector.extract_strided_slice %141 {offsets = [1, 0], sizes = [1, 16], strides = [1, 1]} : vector<2x16xf32> to vector<1x16xf32>
    %144 = arith.mulf %142, %142 : vector<1x16xf32>
    %145 = arith.subf %143, %144 : vector<1x16xf32>
    %cst_80 = arith.constant 9.99999974E-6 : f32
    %146 = vector.broadcast %cst_80 : f32 to vector<1x16xf32>
    %147 = arith.addf %145, %146 : vector<1x16xf32>
    %148 = math.rsqrt %147 : vector<1x16xf32>
    %149 = arith.mulf %142, %148 : vector<1x16xf32>
    %150 = tpu.concatenate %148, %149 in 0 : vector<1x16xf32>, vector<1x16xf32> -> vector<2x16xf32>
    %c32 = arith.constant 32 : index
    %c0_81 = arith.constant 0 : index
    %151 = vector.load %arg7[%c32, %c0_81] : memref<112x512xf32, #tpu.memory_space<vmem>>, vector<16x256xf32>
    %cst_82 = arith.constant dense<0.000000e+00> : vector<2x256xf32>
    %152 = tpu.matmul %150, %151, %cst_82 {dimension_numbers = #tpu.dot_dimension_numbers<[1], [0], [0], [1], [0, 0, 1, 1], [], []>} : vector<2x16xf32>, vector<16x256xf32>, vector<2x256xf32> -> vector<2x256xf32>
    %153 = vector.extract_strided_slice %152 {offsets = [0, 0], sizes = [1, 256], strides = [1, 1]} : vector<2x256xf32> to vector<1x256xf32>
    %154 = vector.broadcast %153 : vector<1x256xf32> to vector<8x256xf32>
    %155 = arith.mulf %133, %154 : vector<8x256xf32>
    %156 = vector.extract_strided_slice %152 {offsets = [1, 0], sizes = [1, 256], strides = [1, 1]} : vector<2x256xf32> to vector<1x256xf32>
    %157 = vector.broadcast %156 : vector<1x256xf32> to vector<8x256xf32>
    %158 = arith.subf %155, %157 : vector<8x256xf32>
    %cst_83 = arith.constant 0.00999999977 : f32
    %159 = vector.broadcast %cst_83 : f32 to vector<8x256xf32>
    %160 = arith.mulf %159, %158 : vector<8x256xf32>
    %161 = arith.maximumf %158, %160 : vector<8x256xf32>
    %c144 = arith.constant 144 : index
    %c0_84 = arith.constant 0 : index
    %162 = vector.load %arg5[%c144, %c0_84] : memref<192x32xf32, #tpu.memory_space<vmem>>, vector<24x8xf32>
    %cst_85 = arith.constant dense<0.000000e+00> : vector<24x256xf32>
    %163 = tpu.matmul %162, %161, %cst_85 {dimension_numbers = #tpu.dot_dimension_numbers<[1], [0], [0], [1], [0, 0, 1, 1], [], []>} : vector<24x8xf32>, vector<8x256xf32>, vector<24x256xf32> -> vector<24x256xf32>
    %164 = vector.extract_strided_slice %163 {offsets = [0, 0], sizes = [8, 256], strides = [1, 1]} : vector<24x256xf32> to vector<8x256xf32>
    %c0_86 = arith.constant 0 : index
    %c0_87 = arith.constant 0 : index
    %165 = vector.load %arg9[%c0_86, %c0_87] : memref<16x1536xf32, #tpu.memory_space<vmem>>, vector<8x256xf32>
    tpu.vector_store %arg9[%c0_86, %c0_87], %164 {strides = array<i32>} : memref<16x1536xf32, #tpu.memory_space<vmem>>, vector<8x256xf32>,
    %166 = vector.extract_strided_slice %163 {offsets = [8, 0], sizes = [8, 256], strides = [1, 1]} : vector<24x256xf32> to vector<8x256xf32>
    %c0_88 = arith.constant 0 : index
    %c256_89 = arith.constant 256 : index
    %167 = vector.load %arg9[%c0_88, %c256_89] : memref<16x1536xf32, #tpu.memory_space<vmem>>, vector<8x256xf32>
    tpu.vector_store %arg9[%c0_88, %c256_89], %166 {strides = array<i32>} : memref<16x1536xf32, #tpu.memory_space<vmem>>, vector<8x256xf32>,
    %168 = vector.extract_strided_slice %163 {offsets = [16, 0], sizes = [8, 256], strides = [1, 1]} : vector<24x256xf32> to vector<8x256xf32>
    %c0_90 = arith.constant 0 : index
    %c512_91 = arith.constant 512 : index
    %169 = vector.load %arg9[%c0_90, %c512_91] : memref<16x1536xf32, #tpu.memory_space<vmem>>, vector<8x256xf32>
    tpu.vector_store %arg9[%c0_90, %c512_91], %168 {strides = array<i32>} : memref<16x1536xf32, #tpu.memory_space<vmem>>, vector<8x256xf32>,
    %c0_92 = arith.constant 0 : index
    %c0_93 = arith.constant 0 : index
    %170 = vector.load %arg9[%c0_92, %c0_93] : memref<16x1536xf32, #tpu.memory_space<vmem>>, vector<8x768xf32>
    %c0_94 = arith.constant 0 : index
    %c0_95 = arith.constant 0 : index
    %171 = vector.load %arg4[%c0_94, %c0_95] : memref<1152x128xbf16, #tpu.memory_space<vmem>>, vector<768x128xbf16>
    %172 = arith.extf %171 : vector<768x128xbf16> to vector<768x128xf32>
    %cst_96 = arith.constant dense<0.000000e+00> : vector<8x128xf32>
    %173 = tpu.matmul %170, %172, %cst_96 {dimension_numbers = #tpu.dot_dimension_numbers<[1], [0], [0], [1], [0, 0, 1, 1], [], []>} : vector<8x768xf32>, vector<768x128xf32>, vector<8x128xf32> -> vector<8x128xf32>
    %cst_97 = arith.constant dense<0.000000e+00> : vector<128xf32>
    %174 = vector.multi_reduction <add>, %173, %cst_97 [0] : vector<8x128xf32> to vector<128xf32>
    %175 = vector.shape_cast %174 : vector<128xf32> to vector<1x128xf32>
    %176 = arith.mulf %173, %173 : vector<8x128xf32>
    %cst_98 = arith.constant dense<0.000000e+00> : vector<128xf32>
    %177 = vector.multi_reduction <add>, %176, %cst_98 [0] : vector<8x128xf32> to vector<128xf32>
    %178 = vector.shape_cast %177 : vector<128xf32> to vector<1x128xf32>
    %179 = tpu.concatenate %175, %178 in 0 : vector<1x128xf32>, vector<1x128xf32> -> vector<2x128xf32>
    %c1536_99 = arith.constant 1536 : index
    %c0_100 = arith.constant 0 : index
    %180 = vector.load %arg6[%c1536_99, %c0_100] : memref<1792x32xf32, #tpu.memory_space<vmem>>, vector<128x32xf32>
    %cst_101 = arith.constant dense<0.000000e+00> : vector<2x32xf32>
    %181 = tpu.matmul %179, %180, %cst_101 {dimension_numbers = #tpu.dot_dimension_numbers<[1], [0], [0], [1], [0, 0, 1, 1], [], []>} : vector<2x128xf32>, vector<128x32xf32>, vector<2x32xf32> -> vector<2x32xf32>
    %182 = vector.extract_strided_slice %181 {offsets = [0, 0], sizes = [1, 32], strides = [1, 1]} : vector<2x32xf32> to vector<1x32xf32>
    %183 = vector.extract_strided_slice %181 {offsets = [1, 0], sizes = [1, 32], strides = [1, 1]} : vector<2x32xf32> to vector<1x32xf32>
    %184 = arith.mulf %182, %182 : vector<1x32xf32>
    %185 = arith.subf %183, %184 : vector<1x32xf32>
    %cst_102 = arith.constant 9.99999974E-6 : f32
    %186 = vector.broadcast %cst_102 : f32 to vector<1x32xf32>
    %187 = arith.addf %185, %186 : vector<1x32xf32>
    %188 = math.rsqrt %187 : vector<1x32xf32>
    %189 = arith.mulf %182, %188 : vector<1x32xf32>
    %190 = tpu.concatenate %188, %189 in 0 : vector<1x32xf32>, vector<1x32xf32> -> vector<2x32xf32>
    %c48_103 = arith.constant 48 : index
    %c0_104 = arith.constant 0 : index
    %191 = vector.load %arg7[%c48_103, %c0_104] : memref<112x512xf32, #tpu.memory_space<vmem>>, vector<32x128xf32>
    %cst_105 = arith.constant dense<0.000000e+00> : vector<2x128xf32>
    %192 = tpu.matmul %190, %191, %cst_105 {dimension_numbers = #tpu.dot_dimension_numbers<[1], [0], [0], [1], [0, 0, 1, 1], [], []>} : vector<2x32xf32>, vector<32x128xf32>, vector<2x128xf32> -> vector<2x128xf32>
    %193 = vector.extract_strided_slice %192 {offsets = [0, 0], sizes = [1, 128], strides = [1, 1]} : vector<2x128xf32> to vector<1x128xf32>
    %194 = vector.broadcast %193 : vector<1x128xf32> to vector<8x128xf32>
    %195 = arith.mulf %173, %194 : vector<8x128xf32>
    %196 = vector.extract_strided_slice %192 {offsets = [1, 0], sizes = [1, 128], strides = [1, 1]} : vector<2x128xf32> to vector<1x128xf32>
    %197 = vector.broadcast %196 : vector<1x128xf32> to vector<8x128xf32>
    %198 = arith.subf %195, %197 : vector<8x128xf32>
    %cst_106 = arith.constant 0.00999999977 : f32
    %199 = vector.broadcast %cst_106 : f32 to vector<8x128xf32>
    %200 = arith.mulf %199, %198 : vector<8x128xf32>
    %201 = arith.maximumf %198, %200 : vector<8x128xf32>
    %c168 = arith.constant 168 : index
    %c0_107 = arith.constant 0 : index
    %202 = vector.load %arg5[%c168, %c0_107] : memref<192x32xf32, #tpu.memory_space<vmem>>, vector<24x8xf32>
    %cst_108 = arith.constant dense<0.000000e+00> : vector<24x128xf32>
    %203 = tpu.matmul %202, %201, %cst_108 {dimension_numbers = #tpu.dot_dimension_numbers<[1], [0], [0], [1], [0, 0, 1, 1], [], []>} : vector<24x8xf32>, vector<8x128xf32>, vector<24x128xf32> -> vector<24x128xf32>
    %204 = vector.extract_strided_slice %203 {offsets = [0, 0], sizes = [8, 128], strides = [1, 1]} : vector<24x128xf32> to vector<8x128xf32>
    %c0_109 = arith.constant 0 : index
    %c0_110 = arith.constant 0 : index
    %205 = vector.load %arg9[%c0_109, %c0_110] : memref<16x1536xf32, #tpu.memory_space<vmem>>, vector<8x128xf32>
    tpu.vector_store %arg9[%c0_109, %c0_110], %204 {strides = array<i32>} : memref<16x1536xf32, #tpu.memory_space<vmem>>, vector<8x128xf32>,
    %206 = vector.extract_strided_slice %203 {offsets = [8, 0], sizes = [8, 128], strides = [1, 1]} : vector<24x128xf32> to vector<8x128xf32>
    %c0_111 = arith.constant 0 : index
    %c128 = arith.constant 128 : index
    %207 = vector.load %arg9[%c0_111, %c128] : memref<16x1536xf32, #tpu.memory_space<vmem>>, vector<8x128xf32>
    tpu.vector_store %arg9[%c0_111, %c128], %206 {strides = array<i32>} : memref<16x1536xf32, #tpu.memory_space<vmem>>, vector<8x128xf32>,
    %208 = vector.extract_strided_slice %203 {offsets = [16, 0], sizes = [8, 128], strides = [1, 1]} : vector<24x128xf32> to vector<8x128xf32>
    %c0_112 = arith.constant 0 : index
    %c256_113 = arith.constant 256 : index
    %209 = vector.load %arg9[%c0_112, %c256_113] : memref<16x1536xf32, #tpu.memory_space<vmem>>, vector<8x128xf32>
    tpu.vector_store %arg9[%c0_112, %c256_113], %208 {strides = array<i32>} : memref<16x1536xf32, #tpu.memory_space<vmem>>, vector<8x128xf32>,
    %c0_114 = arith.constant 0 : index
    %c0_115 = arith.constant 0 : index
    %210 = vector.load %arg9[%c0_114, %c0_115] : memref<16x1536xf32, #tpu.memory_space<vmem>>, vector<8x384xf32>
    %c768_116 = arith.constant 768 : index
    %c0_117 = arith.constant 0 : index
    %211 = vector.load %arg4[%c768_116, %c0_117] : memref<1152x128xbf16, #tpu.memory_space<vmem>>, vector<384x128xbf16>
    %212 = arith.extf %211 : vector<384x128xbf16> to vector<384x128xf32>
    %cst_118 = arith.constant dense<0.000000e+00> : vector<8x128xf32>
    %213 = tpu.matmul %210, %212, %cst_118 {dimension_numbers = #tpu.dot_dimension_numbers<[1], [0], [0], [1], [0, 0, 1, 1], [], []>} : vector<8x384xf32>, vector<384x128xf32>, vector<8x128xf32> -> vector<8x128xf32>
    %cst_119 = arith.constant dense<0.000000e+00> : vector<128xf32>
    %214 = vector.multi_reduction <add>, %213, %cst_119 [0] : vector<8x128xf32> to vector<128xf32>
    %215 = vector.shape_cast %214 : vector<128xf32> to vector<1x128xf32>
    %216 = arith.mulf %213, %213 : vector<8x128xf32>
    %cst_120 = arith.constant dense<0.000000e+00> : vector<128xf32>
    %217 = vector.multi_reduction <add>, %216, %cst_120 [0] : vector<8x128xf32> to vector<128xf32>
    %218 = vector.shape_cast %217 : vector<128xf32> to vector<1x128xf32>
    %219 = tpu.concatenate %215, %218 in 0 : vector<1x128xf32>, vector<1x128xf32> -> vector<2x128xf32>
    %c1664 = arith.constant 1664 : index
    %c0_121 = arith.constant 0 : index
    %220 = vector.load %arg6[%c1664, %c0_121] : memref<1792x32xf32, #tpu.memory_space<vmem>>, vector<128x32xf32>
    %cst_122 = arith.constant dense<0.000000e+00> : vector<2x32xf32>
    %221 = tpu.matmul %219, %220, %cst_122 {dimension_numbers = #tpu.dot_dimension_numbers<[1], [0], [0], [1], [0, 0, 1, 1], [], []>} : vector<2x128xf32>, vector<128x32xf32>, vector<2x32xf32> -> vector<2x32xf32>
    %222 = vector.extract_strided_slice %221 {offsets = [0, 0], sizes = [1, 32], strides = [1, 1]} : vector<2x32xf32> to vector<1x32xf32>
    %223 = vector.extract_strided_slice %221 {offsets = [1, 0], sizes = [1, 32], strides = [1, 1]} : vector<2x32xf32> to vector<1x32xf32>
    %224 = arith.mulf %222, %222 : vector<1x32xf32>
    %225 = arith.subf %223, %224 : vector<1x32xf32>
    %cst_123 = arith.constant 9.99999974E-6 : f32
    %226 = vector.broadcast %cst_123 : f32 to vector<1x32xf32>
    %227 = arith.addf %225, %226 : vector<1x32xf32>
    %228 = math.rsqrt %227 : vector<1x32xf32>
    %229 = arith.mulf %222, %228 : vector<1x32xf32>
    %230 = tpu.concatenate %228, %229 in 0 : vector<1x32xf32>, vector<1x32xf32> -> vector<2x32xf32>
    %c80 = arith.constant 80 : index
    %c0_124 = arith.constant 0 : index
    %231 = vector.load %arg7[%c80, %c0_124] : memref<112x512xf32, #tpu.memory_space<vmem>>, vector<32x128xf32>
    %cst_125 = arith.constant dense<0.000000e+00> : vector<2x128xf32>
    %232 = tpu.matmul %230, %231, %cst_125 {dimension_numbers = #tpu.dot_dimension_numbers<[1], [0], [0], [1], [0, 0, 1, 1], [], []>} : vector<2x32xf32>, vector<32x128xf32>, vector<2x128xf32> -> vector<2x128xf32>
    %233 = vector.extract_strided_slice %232 {offsets = [0, 0], sizes = [1, 128], strides = [1, 1]} : vector<2x128xf32> to vector<1x128xf32>
    %234 = vector.broadcast %233 : vector<1x128xf32> to vector<8x128xf32>
    %235 = arith.mulf %213, %234 : vector<8x128xf32>
    %236 = vector.extract_strided_slice %232 {offsets = [1, 0], sizes = [1, 128], strides = [1, 1]} : vector<2x128xf32> to vector<1x128xf32>
    %237 = vector.broadcast %236 : vector<1x128xf32> to vector<8x128xf32>
    %238 = arith.subf %235, %237 : vector<8x128xf32>
    %cst_126 = arith.constant 0.00999999977 : f32
    %239 = vector.broadcast %cst_126 : f32 to vector<8x128xf32>
    %240 = arith.mulf %239, %238 : vector<8x128xf32>
    %241 = arith.maximumf %238, %240 : vector<8x128xf32>
    %c0_127 = arith.constant 0 : index
    %c0_128 = arith.constant 0 : index
    %242 = vector.load %arg8[%c0_127, %c0_128] : memref<8x128xf32, #tpu.memory_space<vmem>>, vector<8x128xf32>
    tpu.vector_store %arg8[%c0_127, %c0_128], %241 {strides = array<i32>} : memref<8x128xf32, #tpu.memory_space<vmem>>, vector<8x128xf32>,
    return
  }
  func.func @transform_0(%arg0: i32) -> (i32, i32) {
    %c0_i32 = arith.constant 0 : i32
    %c0_i32_0 = arith.constant 0 : i32
    %c0_i32_1 = arith.constant 0 : i32
    return %c0_i32, %c0_i32_0 : i32, i32
  }
  func.func @transform_1(%arg0: i32) -> (i32, i32) {
    %c0_i32 = arith.constant 0 : i32
    %c0_i32_0 = arith.constant 0 : i32
    %c0_i32_1 = arith.constant 0 : i32
    return %c0_i32, %c0_i32_0 : i32, i32
  }
  func.func @transform_2(%arg0: i32) -> (i32, i32) {
    %c0_i32 = arith.constant 0 : i32
    %c0_i32_0 = arith.constant 0 : i32
    %c0_i32_1 = arith.constant 0 : i32
    return %c0_i32, %c0_i32_0 : i32, i32
  }
  func.func @transform_3(%arg0: i32) -> (i32, i32) {
    %c0_i32 = arith.constant 0 : i32
    %c0_i32_0 = arith.constant 0 : i32
    %c0_i32_1 = arith.constant 0 : i32
    return %c0_i32, %c0_i32_0 : i32, i32
  }
  func.func @transform_4(%arg0: i32) -> (i32, i32) {
    %c0_i32 = arith.constant 0 : i32
    %c0_i32_0 = arith.constant 0 : i32
    %c0_i32_1 = arith.constant 0 : i32
    return %c0_i32, %c0_i32_0 : i32, i32
  }
  func.func @transform_5(%arg0: i32) -> (i32, i32) {
    %c0_i32 = arith.constant 0 : i32
    %c0_i32_0 = arith.constant 0 : i32
    %c0_i32_1 = arith.constant 0 : i32
    return %c0_i32, %c0_i32_0 : i32, i32
  }
  func.func @transform_6(%arg0: i32) -> (i32, i32) {
    %c0_i32 = arith.constant 0 : i32
    %c0_i32_0 = arith.constant 0 : i32
    %c0_i32_1 = arith.constant 0 : i32
    return %c0_i32, %c0_i32_0 : i32, i32
  }
  func.func @transform_7(%arg0: i32) -> (i32, i32) {
    %c0_i32 = arith.constant 0 : i32
    %c0_i32_0 = arith.constant 0 : i32
    %c0_i32_1 = arith.constant 0 : i32
    return %c0_i32, %c0_i32_0 : i32, i32
  }
}

</mosaic_0001>

<bundles_post_ra>
// kernel: encoder3d_forward.1
= control target key start
LH: loop header
LB: loop body
LE: loop exit
PB: predicated region body
PF: predicated region fallthrough
CT: control target
= control target key end

     0   :  { %12 = vsyncpa [#allocation4], 0  ;;  %s15753_s0 = inlined_call_operand.vmem [shape: bf16[32,256], index: 0, kind: input, shape index: {}]   ;;  %s15754_s1 = inlined_call_operand.hbm [shape: bf16[2304,512], index: 1, kind: input, shape index: {}]   ;;  %s15755_s2 = inlined_call_operand.vmem [shape: bf16[2304,256], index: 2, kind: input, shape index: {}]   ;;  %s15756_s3 = inlined_call_operand.hbm [shape: bf16[1152,128], index: 3, kind: input, shape index: {}]   ;;  %s15757_s4 = inlined_call_operand.vmem [shape: f32[192,32], index: 4, kind: input, shape index: {}]   ;;  %s15758_s5 = inlined_call_operand.vmem [shape: f32[1792,32], index: 5, kind: input, shape index: {}]   ;;  %s15759_s6 = inlined_call_operand.hbm [shape: f32[112,512], index: 6, kind: input, shape index: {}]   ;;  %s15760_s7 = inlined_call_operand.vmem [shape: f32[8,128], index: 7, kind: output, shape index: {}]  }
   0x1   :  { %13 = vsyncpa [#allocation6], 0  ;;  %s13635_s24 = smov [#allocation5]   ;;  %s13565_s28 = scalar_lea.hbm %s15756_s3, 9216 }
   0x2   :  { %s35_s25 = sshll.u32 %s13635_s24, 4  ;;  %p13566_p0 = scmp.ne.s32.totalorder %s15756_s3, %s13565_s28  ;;  %s36_s25 = int_to_ptr.vmem [resolvable:$true] %s35_s25 }
   0x3   :  { %p13569_p1 = scmp.lt.u32.totalorder %s13565_s28, %s15756_s3 }
   0x5   :  { %p13571_p2 = pnand %p13569_p1, %p13566_p0 }
   0x7   :  { %13574 = shalt.err (!%p13571_p2)
}
   0x8   :  { %s13575_s10 = scalar_lea.vmem %s36_s25, 9216  ;;  %p13580_p4 = scmp.lt.s32.totalorder %s36_s25, %s36_s25 }
   0x9   :  { %p13576_p3 = scmp.ne.s32.totalorder %s36_s25, %s13575_s10  ;;  %p13581_p5 = scmp.lt.s32.totalorder %s13575_s10, %s13575_s10 }
   0xb   :  { %p13582_p6 = por %p13581_p5, %p13580_p4 }
   0xd   :  { %p13583_p7 = pnand %p13582_p6, %p13576_p3 }
   0xf   :  { %13586 = shalt.err (!%p13583_p7)
}
  0x10   :  { %s13636_s11 = smov 64   ;;  %s13637_s12 = smov 4  }
  0x11   :  { %41 = dma.hbm_to_vmem [thread:$0]  %s15756_s3, 9216, %s36_s25, [#allocation6], %s13636_s11, %s13636_s11, %s13637_s12  }
  0x12   :  { %s13638_s15 = smov [#allocation3]   ;;  %s13587_s19 = scalar_lea.hbm %s15754_s1, 73728 }
  0x13   :  { %s21_s16 = sshll.u32 %s13638_s15, 4  ;;  %p13588_p8 = scmp.ne.s32.totalorder %s15754_s1, %s13587_s19  ;;  %s22_s16 = int_to_ptr.vmem [resolvable:$true] %s21_s16 }
  0x14   :  { %p13591_p9 = scmp.lt.u32.totalorder %s13587_s19, %s15754_s1 }
  0x16   :  { %p13593_p10 = pnand %p13591_p9, %p13588_p8 }
  0x18   :  { %13596 = shalt.err (!%p13593_p10)
}
  0x19   :  { %s13597_s24 = scalar_lea.vmem %s22_s16, 73728  ;;  %p13602_p12 = scmp.lt.s32.totalorder %s22_s16, %s22_s16 }
  0x1a   :  { %p13598_p11 = scmp.ne.s32.totalorder %s22_s16, %s13597_s24  ;;  %p13603_p13 = scmp.lt.s32.totalorder %s13597_s24, %s13597_s24 }
  0x1c   :  { %p13604_p0 = por %p13603_p13, %p13602_p12 }
  0x1e   :  { %p13605_p1 = pnand %p13604_p0, %p13598_p11 }
  0x20   :  { %13608 = shalt.err (!%p13605_p1)
}
  0x21   :  { %s13639_s3 = smov 256   ;;  %s13640_s25 = smov 16  }
  0x22   :  { %27 = dma.hbm_to_vmem [thread:$0]  %s15754_s1, 73728, %s22_s16, [#allocation4], %s13639_s3, %s13639_s3, %s13640_s25  }
  0x23   :  { %s13641_s28 = smov [#allocation7]   ;;  %s13609_s9 = scalar_lea.hbm %s15759_s6, 7168 }
  0x24   :  { %s51_s29 = sshll.u32 %s13641_s28, 4  ;;  %p13610_p2 = scmp.ne.s32.totalorder %s15759_s6, %s13609_s9  ;;  %s52_s29 = int_to_ptr.vmem [resolvable:$true] %s51_s29 }
  0x25   :  { %p13613_p3 = scmp.lt.u32.totalorder %s13609_s9, %s15759_s6 }
  0x27   :  { %p13615_p4 = pnand %p13613_p3, %p13610_p2 }
  0x29   :  { %13618 = shalt.err (!%p13615_p4)
}
  0x2a   :  { %s13619_s14 = scalar_lea.vmem %s52_s29, 7168  ;;  %p13624_p6 = scmp.lt.s32.totalorder %s52_s29, %s52_s29 }
  0x2b   :  { %p13620_p5 = scmp.ne.s32.totalorder %s52_s29, %s13619_s14  ;;  %p13625_p7 = scmp.lt.s32.totalorder %s13619_s14, %s13619_s14 }
  0x2d   :  { %p13626_p8 = por %p13625_p7, %p13624_p6 }
  0x2f   :  { %p13627_p9 = pnand %p13626_p8, %p13620_p5 }
  0x31   :  { %13630 = shalt.err (!%p13627_p9)
}
  0x32   :  { %s13642_s1 = smov 512   ;;  %s13643_s15 = smov 32  }
  0x33   :  { %57 = dma.hbm_to_vmem [thread:$0]  %s15759_s6, 7168, %s52_s29, [#allocation6], %s13642_s1, %s13642_s1, %s13643_s15  }
  0x34   :  { %13631 = dma.done.wait [#allocation4], 73728  }
  0x35   :  { %13632 = vsyncadd [#allocation4], 4294893568 }
  0x36   :  { %13633 = dma.done.wait [#allocation6], 16384  }
  0x37   :  { %13634 = vsyncadd [#allocation6], 4294950912  ;;  %v13644_v0 = vmov 0.0   ;;  %v12251_v1 = vld [vmem:[%s15753_s0 + $0x4] ss:$8 sps:$4 sm:$0xff]   ;;  %vm85_vm0 = vcmask 261120  }
  0x38   :  { %168 = vmatprep.mubr.f32.mxu1 %v13644_v0  ;;  %v12253_v2 = vld [vmem:[%s15753_s0] ss:$8 sps:$4 sm:$0xff]   ;;  %9138 = vmatprep.subr.bf16.mxu1 %v12251_v1  ;;  %v12254_v3 = vld [vmem:[%s15753_s0 + $0x14] ss:$8 sps:$4 sm:$0xff]   ;;  %v12256_v4 = vld [vmem:[%s15753_s0 + $0x10] ss:$8 sps:$4 sm:$0xff]  }
  0x39   :  { %9140 = vmatpush1.bf16.msra.mxu1 %v12253_v2  ;;  %v79_v5 = vld [vmem:[%s15757_s4] sm:$0xff]  ;;  %v12260_v8 = vld [vmem:[#allocation3 + $0xc] ss:$16 sps:$4 sm:$0xff]   ;;  %v12262_v9 = vld [vmem:[#allocation3 + $0x8] ss:$16 sps:$4 sm:$0xff]   ;;  %vm1331_vm1 = vcmask 1040384  }
  0x3a   :  { %9142 = vmatprep.subr.bf16.mxu1 %v12254_v3  ;;  %v12257_v6 = vld [vmem:[#allocation3 + $0x4] ss:$16 sps:$4 sm:$0xff]   ;;  %v12259_v7 = vld [vmem:[#allocation3] ss:$16 sps:$4 sm:$0xff]   ;;  %9338 = vmatprep.subr.bf16.mxu0 %v12260_v8  ;;  %v12266_v11 = vld [vmem:[#allocation3 + $0x2c] ss:$16 sps:$4 sm:$0xff]  }
  0x3b   :  { %v12263_v10 = vld [vmem:[#allocation3 + $0x24] ss:$16 sps:$4 sm:$0xff]   ;;  %9340 = vmatpush1.bf16.msra.mxu0 %v12262_v9  ;;  %v12268_v12 = vld [vmem:[#allocation3 + $0x28] ss:$16 sps:$4 sm:$0xff]   ;;  %v12265_v14 = vld [vmem:[#allocation3 + $0x20] ss:$16 sps:$4 sm:$0xff]  }
  0x3c   :  { %v80_v13 = vld [vmem:[%s15757_s4 + $0x8] sm:$0xff]  ;;  %9342 = vmatprep.subr.bf16.mxu0 %v12266_v11  ;;  %v12269_v15 = vld [vmem:[#allocation3 + $0x44] ss:$16 sps:$4 sm:$0xff]   ;;  %v12271_v20 = vld [vmem:[#allocation3 + $0x40] ss:$16 sps:$4 sm:$0xff]   ;;  %vm1559_vm2 = vcmask 64512  }
  0x3d   :  { %9144 = vmatpush1.bf16.msra.mxu1 %v12256_v4  ;;  %v12272_v16 = vld [vmem:[#allocation3 + $0x4c] ss:$16 sps:$4 sm:$0xff]   ;;  %v81_v17 = vld [vmem:[%s15757_s4 + $0x10] sm:$0xff]  ;;  %v12274_v18 = vld [vmem:[#allocation3 + $0x48] ss:$16 sps:$4 sm:$0xff]   ;;  %vm1775_vm3 = vcmask 130048  }
  0x3e   :  { %9146 = vmatprep.subr.bf16.mxu1 %v12257_v6  ;;  %v12278_v19 = vld [vmem:[#allocation3 + $0x6c] ss:$16 sps:$4 sm:$0xff]   ;;  %v12275_v21 = vld [vmem:[#allocation3 + $0x64] ss:$16 sps:$4 sm:$0xff]   ;;  %v12280_v23 = vld [vmem:[#allocation3 + $0x68] ss:$16 sps:$4 sm:$0xff]  }
  0x3f   :  { %9344 = vmatpush1.bf16.msra.mxu0 %v12268_v12  ;;  %v82_v22 = vld [vmem:[%s15757_s4 + $0x18] sm:$0xff]  ;;  %v12277_v25 = vld [vmem:[#allocation3 + $0x60] ss:$16 sps:$4 sm:$0xff]   ;;  %v12281_v26 = vld [vmem:[#allocation3 + $0x84] ss:$16 sps:$4 sm:$0xff]   ;;  %vm13646_vm4 = vmmov 0  }
  0x40   :  { %8184 = vmatmul.mubr.msk.f32.vlgmr.msra.gmra.mrb[0].mxu1 %vm85_vm0, %v79_v5  ;;  %9346 = vmatprep.subr.bf16.mxu0 %v12272_v16  ;;  %v12284_v24 = vld [vmem:[#allocation3 + $0x8c] ss:$16 sps:$4 sm:$0xff]   ;;  %v83_v27 = vld [vmem:[%s15757_s4 + $0x20] sm:$0xff]  ;;  %v12286_v28 = vld [vmem:[#allocation3 + $0x88] ss:$16 sps:$4 sm:$0xff]  }
  0x41   :  { %174 = vmatprep.mubr.f32.mxu1 %v13644_v0  ;;  %9148 = vmatpush1.bf16.msra.mxu1 %v12259_v7  ;;  %v12290_v29 = vld [vmem:[#allocation3 + $0xac] ss:$16 sps:$4 sm:$0xff]   ;;  %v12283_v30 = vld [vmem:[#allocation3 + $0x80] ss:$16 sps:$4 sm:$0xff]   ;;  %v12287_v31 = vld [vmem:[#allocation3 + $0xa4] ss:$16 sps:$4 sm:$0xff]  }
  0x42   :  { %9150 = vmatprep.subr.bf16.mxu1 %v12263_v10  ;;  %v84_v32 = vld [vmem:[%s15757_s4 + $0x28] sm:$0xff]  ;;  %v12289_v35 = vld [vmem:[#allocation3 + $0xa0] ss:$16 sps:$4 sm:$0xff]   ;;  %v12293_v36 = vld [vmem:[#allocation3 + $0xc4] ss:$16 sps:$4 sm:$0xff]  }
  0x43   :  { %9348 = vmatpush1.bf16.msra.mxu0 %v12274_v18  ;;  %v12292_v33 = vld [vmem:[#allocation3 + $0xa8] ss:$16 sps:$4 sm:$0xff]   ;;  %v12296_v34 = vld [vmem:[#allocation3 + $0xcc] ss:$16 sps:$4 sm:$0xff]   ;;  %v12295_v39 = vld [vmem:[#allocation3 + $0xc0] ss:$16 sps:$4 sm:$0xff]  }
  0x44   :  { %8185 = vmatmul.mubr.msk.f32.gmra.mrb[2].mxu1 %vm85_vm0, %v80_v13  ;;  %9350 = vmatprep.subr.bf16.mxu0 %v12278_v19  ;;  %v12298_v37 = vld [vmem:[#allocation3 + $0xc8] ss:$16 sps:$4 sm:$0xff]   ;;  %v12302_v38 = vld [vmem:[#allocation3 + $0xec] ss:$16 sps:$4 sm:$0xff]   ;;  %v12299_v40 = vld [vmem:[#allocation3 + $0xe4] ss:$16 sps:$4 sm:$0xff]  }
  0x45   :  { %180 = vmatprep.mubr.f32.mxu1 %v13644_v0  ;;  %9152 = vmatpush1.bf16.msra.mxu1 %v12265_v14  ;;  %v12304_v41 = vld [vmem:[#allocation3 + $0xe8] ss:$16 sps:$4 sm:$0xff]   ;;  %v12308_v42 = vld [vmem:[#allocation3 + $0x10c] ss:$16 sps:$4 sm:$0xff]   ;;  %v12301_v43 = vld [vmem:[#allocation3 + $0xe0] ss:$16 sps:$4 sm:$0xff]  }
  0x46   :  { %9154 = vmatprep.subr.bf16.mxu1 %v12269_v15  ;;  %v12305_v44 = vld [vmem:[#allocation3 + $0x104] ss:$16 sps:$4 sm:$0xff]   ;;  %v12310_v45 = vld [vmem:[#allocation3 + $0x108] ss:$16 sps:$4 sm:$0xff]   ;;  %v12314_v46 = vld [vmem:[#allocation3 + $0x12c] ss:$16 sps:$4 sm:$0xff]  }
  0x47   :  { %9352 = vmatpush1.bf16.msra.mxu0 %v12280_v23  ;;  %v12307_v47 = vld [vmem:[#allocation3 + $0x100] ss:$16 sps:$4 sm:$0xff]   ;;  %v12311_v48 = vld [vmem:[#allocation3 + $0x124] ss:$16 sps:$4 sm:$0xff]   ;;  %v12316_v49 = vld [vmem:[#allocation3 + $0x128] ss:$16 sps:$4 sm:$0xff]  }
  0x48   :  { %8186 = vmatmul.mubr.msk.f32.gmra.mrb[4].mxu1 %vm85_vm0, %v81_v17  ;;  %9354 = vmatprep.subr.bf16.mxu0 %v12284_v24  ;;  %v12320_v50 = vld [vmem:[#allocation3 + $0x14c] ss:$16 sps:$4 sm:$0xff]   ;;  %v12313_v51 = vld [vmem:[#allocation3 + $0x120] ss:$16 sps:$4 sm:$0xff]   ;;  %v12317_v52 = vld [vmem:[#allocation3 + $0x144] ss:$16 sps:$4 sm:$0xff]  }
  0x49   :  { %186 = vmatprep.mubr.f32.mxu1 %v13644_v0  ;;  %9156 = vmatpush1.bf16.msra.mxu1 %v12271_v20  ;;  %v12319_v53 = vld [vmem:[#allocation3 + $0x140] ss:$16 sps:$4 sm:$0xff]   ;;  %v12322_v54 = vld [vmem:[#allocation3 + $0x148] ss:$16 sps:$4 sm:$0xff]   ;;  %v12323_v55 = vld [vmem:[#allocation3 + $0x164] ss:$16 sps:$4 sm:$0xff]  }
  0x4a   :  { %9158 = vmatprep.subr.bf16.mxu1 %v12275_v21  ;;  %v12326_v56 = vld [vmem:[#allocation3 + $0x16c] ss:$16 sps:$4 sm:$0xff]   ;;  %v12328_v57 = vld [vmem:[#allocation3 + $0x168] ss:$16 sps:$4 sm:$0xff]   ;;  %v12325_v59 = vld [vmem:[#allocation3 + $0x160] ss:$16 sps:$4 sm:$0xff]  }
  0x4b   :  { %9356 = vmatpush1.bf16.msra.mxu0 %v12286_v28  ;;  %v12332_v58 = vld [vmem:[#allocation3 + $0x18c] ss:$16 sps:$4 sm:$0xff]   ;;  %v12329_v60 = vld [vmem:[#allocation3 + $0x184] ss:$16 sps:$4 sm:$0xff]   ;;  %v12334_v61 = vld [vmem:[#allocation3 + $0x188] ss:$16 sps:$4 sm:$0xff]  }
  0x4c   :  { %8187 = vmatmul.mubr.msk.f32.gmra.mrb[6].mxu1 %vm85_vm0, %v82_v22  ;;  %9358 = vmatprep.subr.bf16.mxu0 %v12290_v29  ;;  %v12338_v62 = vld [vmem:[#allocation3 + $0x1ac] ss:$16 sps:$4 sm:$0xff]   ;;  %v12331_v63 = vld [vmem:[#allocation3 + $0x180] ss:$16 sps:$4 sm:$0xff]   ;;  %v12335_v1 = vld [vmem:[#allocation3 + $0x1a4] ss:$16 sps:$4 sm:$0xff]  }
  0x4d   :  { %192 = vmatprep.mubr.f32.mxu1 %v13644_v0  ;;  %9160 = vmatpush1.bf16.msra.mxu1 %v12277_v25  ;;  %v12340_v2 = vld [vmem:[#allocation3 + $0x1a8] ss:$16 sps:$4 sm:$0xff]   ;;  %v12344_v3 = vld [vmem:[#allocation3 + $0x1cc] ss:$16 sps:$4 sm:$0xff]   ;;  %v12337_v4 = vld [vmem:[#allocation3 + $0x1a0] ss:$16 sps:$4 sm:$0xff]  }
  0x4e   :  { %9162 = vmatprep.subr.bf16.mxu1 %v12281_v26  ;;  %v12341_v5 = vld [vmem:[#allocation3 + $0x1c4] ss:$16 sps:$4 sm:$0xff]   ;;  %v12346_v6 = vld [vmem:[#allocation3 + $0x1c8] ss:$16 sps:$4 sm:$0xff]   ;;  %v12350_v7 = vld [vmem:[#allocation3 + $0x1ec] ss:$16 sps:$4 sm:$0xff]  }
  0x4f   :  { %9360 = vmatpush1.bf16.msra.mxu0 %v12292_v33  ;;  %v12343_v8 = vld [vmem:[#allocation3 + $0x1c0] ss:$16 sps:$4 sm:$0xff]   ;;  %v12347_v9 = vld [vmem:[#allocation3 + $0x1e4] ss:$16 sps:$4 sm:$0xff]   ;;  %v12352_v10 = vld [vmem:[#allocation3 + $0x1e8] ss:$16 sps:$4 sm:$0xff]  }
  0x50   :  { %8188 = vmatmul.mubr.msk.f32.gmra.mrb[8].mxu1 %vm85_vm0, %v83_v27  ;;  %9362 = vmatprep.subr.bf16.mxu0 %v12296_v34  ;;  %v12349_v11 = vld [vmem:[#allocation3 + $0x1e0] ss:$16 sps:$4 sm:$0xff]   ;;  %v12353_v12 = vld [vmem:[#allocation3 + $0x204] ss:$16 sps:$4 sm:$0xff]   ;;  %v12356_v13 = vld [vmem:[#allocation3 + $0x20c] ss:$16 sps:$4 sm:$0xff]  }
  0x51   :  { %198 = vmatprep.mubr.f32.mxu1 %v13644_v0  ;;  %9164 = vmatpush1.bf16.msra.mxu1 %v12283_v30  ;;  %v12355_v14 = vld [vmem:[#allocation3 + $0x200] ss:$16 sps:$4 sm:$0xff]   ;;  %v12358_v15 = vld [vmem:[#allocation3 + $0x208] ss:$16 sps:$4 sm:$0xff]   ;;  %v12359_v16 = vld [vmem:[#allocation3 + $0x224] ss:$16 sps:$4 sm:$0xff]  }
  0x52   :  { %9166 = vmatprep.subr.bf16.mxu1 %v12287_v31  ;;  %v12362_v17 = vld [vmem:[#allocation3 + $0x22c] ss:$16 sps:$4 sm:$0xff]   ;;  %v12361_v20 = vld [vmem:[#allocation3 + $0x220] ss:$16 sps:$4 sm:$0xff]   ;;  %v12364_v21 = vld [vmem:[#allocation3 + $0x228] ss:$16 sps:$4 sm:$0xff]  }
  0x53   :  { %9364 = vmatpush1.bf16.msra.mxu0 %v12298_v37  ;;  %v12365_v22 = vld [vmem:[#allocation3 + $0x244] ss:$16 sps:$4 sm:$0xff]   ;;  %v12368_v23 = vld [vmem:[#allocation3 + $0x24c] ss:$16 sps:$4 sm:$0xff]   ;;  %v12367_v26 = vld [vmem:[#allocation3 + $0x240] ss:$16 sps:$4 sm:$0xff]  }
  0x54   :  { %8189 = vmatmul.mubr.msk.f32.gmra.mrb[10].mxu1 %vm85_vm0, %v84_v32  ;;  %9366 = vmatprep.subr.bf16.mxu0 %v12302_v38  ;;  %v12370_v27 = vld [vmem:[#allocation3 + $0x248] ss:$16 sps:$4 sm:$0xff]   ;;  %v12371_v29 = vld [vmem:[#allocation3 + $0x264] ss:$16 sps:$4 sm:$0xff]   ;;  %v12374_v30 = vld [vmem:[#allocation3 + $0x26c] ss:$16 sps:$4 sm:$0xff]  }
  0x55   :  { %9168 = vmatpush1.bf16.msra.mxu1 %v12289_v35  ;;  %v12373_v32 = vld [vmem:[#allocation3 + $0x260] ss:$16 sps:$4 sm:$0xff]   ;;  %v12376_v33 = vld [vmem:[#allocation3 + $0x268] ss:$16 sps:$4 sm:$0xff]   ;;  %v12377_v34 = vld [vmem:[#allocation3 + $0x284] ss:$16 sps:$4 sm:$0xff]  }
  0x56   :  { %9170 = vmatprep.subr.bf16.mxu1 %v12293_v36  ;;  %v12380_v35 = vld [vmem:[#allocation3 + $0x28c] ss:$16 sps:$4 sm:$0xff]   ;;  %v12379_v38 = vld [vmem:[#allocation3 + $0x280] ss:$16 sps:$4 sm:$0xff]  }
  0x57   :  { %9368 = vmatpush1.bf16.msra.mxu0 %v12304_v41  ;;  %v12386_v41 = vld [vmem:[#allocation3 + $0x2ac] ss:$16 sps:$4 sm:$0xff]  }
  0x58   :  { %9370 = vmatprep.subr.bf16.mxu0 %v12308_v42 }
  0x59   :  { %9172 = vmatpush1.bf16.msra.mxu1 %v12295_v39  ;;  %v12382_v39 = vld [vmem:[#allocation3 + $0x288] ss:$16 sps:$4 sm:$0xff]  }
  0x5a   :  { %9174 = vmatprep.subr.bf16.mxu1 %v12299_v40  ;;  %v12383_v40 = vld [vmem:[#allocation3 + $0x2a4] ss:$16 sps:$4 sm:$0xff]  }
  0x5b   :  { %9372 = vmatpush1.bf16.msra.mxu0 %v12310_v45  ;;  %v12388_v45 = vld [vmem:[#allocation3 + $0x2a8] ss:$16 sps:$4 sm:$0xff]  }
  0x5c   :  { %9374 = vmatprep.subr.bf16.mxu0 %v12314_v46  ;;  %v12389_v46 = vld [vmem:[#allocation3 + $0x2c4] ss:$16 sps:$4 sm:$0xff]  }
  0x5d   :  { %9176 = vmatpush1.bf16.msra.mxu1 %v12301_v43 }
  0x5e   :  { %9178 = vmatprep.subr.bf16.mxu1 %v12305_v44  ;;  %v12385_v44 = vld [vmem:[#allocation3 + $0x2a0] ss:$16 sps:$4 sm:$0xff]  }
  0x5f   :  { %9376 = vmatpush1.bf16.msra.mxu0 %v12316_v49 }
  0x60   :  { %9378 = vmatprep.subr.bf16.mxu0 %v12320_v50  ;;  %v12391_v50 = vld [vmem:[#allocation3 + $0x2c0] ss:$16 sps:$4 sm:$0xff]  }
  0x61   :  { %9180 = vmatpush1.bf16.msra.mxu1 %v12307_v47  ;;  %v12392_v47 = vld [vmem:[#allocation3 + $0x2cc] ss:$16 sps:$4 sm:$0xff]  }
  0x62   :  { %9182 = vmatprep.subr.bf16.mxu1 %v12311_v48 }
  0x63   :  { %9380 = vmatpush1.bf16.msra.mxu0 %v12322_v54  ;;  %v12397_v54 = vld [vmem:[#allocation3 + $0x2e0] ss:$16 sps:$4 sm:$0xff]  }
  0x64   :  { %9382 = vmatprep.subr.bf16.mxu0 %v12326_v56  ;;  %v12401_v56 = vld [vmem:[#allocation3 + $0x304] ss:$16 sps:$4 sm:$0xff]  }
  0x65   :  { %9184 = vmatpush1.bf16.msra.mxu1 %v12313_v51  ;;  %v12394_v51 = vld [vmem:[#allocation3 + $0x2c8] ss:$16 sps:$4 sm:$0xff]  }
  0x66   :  { %9186 = vmatprep.subr.bf16.mxu1 %v12317_v52  ;;  %v12395_v52 = vld [vmem:[#allocation3 + $0x2e4] ss:$16 sps:$4 sm:$0xff]  }
  0x67   :  { %9384 = vmatpush1.bf16.msra.mxu0 %v12328_v57  ;;  %v12404_v57 = vld [vmem:[#allocation3 + $0x30c] ss:$16 sps:$4 sm:$0xff]  }
  0x68   :  { %9386 = vmatprep.subr.bf16.mxu0 %v12332_v58  ;;  %v12403_v58 = vld [vmem:[#allocation3 + $0x300] ss:$16 sps:$4 sm:$0xff]  }
  0x69   :  { %9188 = vmatpush1.bf16.msra.mxu1 %v12319_v53  ;;  %v12398_v53 = vld [vmem:[#allocation3 + $0x2ec] ss:$16 sps:$4 sm:$0xff]  }
  0x6a   :  { %9190 = vmatprep.subr.bf16.mxu1 %v12323_v55  ;;  %v12400_v55 = vld [vmem:[#allocation3 + $0x2e8] ss:$16 sps:$4 sm:$0xff]  }
  0x6b   :  { %9388 = vmatpush1.bf16.msra.mxu0 %v12334_v61  ;;  %v12410_v61 = vld [vmem:[#allocation3 + $0x32c] ss:$16 sps:$4 sm:$0xff]  }
  0x6c   :  { %9390 = vmatprep.subr.bf16.mxu0 %v12338_v62  ;;  %v12409_v62 = vld [vmem:[#allocation3 + $0x320] ss:$16 sps:$4 sm:$0xff]  }
  0x6d   :  { %9192 = vmatpush1.bf16.msra.mxu1 %v12325_v59  ;;  %v12406_v59 = vld [vmem:[#allocation3 + $0x308] ss:$16 sps:$4 sm:$0xff]  }
  0x6e   :  { %9194 = vmatprep.subr.bf16.mxu1 %v12329_v60  ;;  %v12407_v60 = vld [vmem:[#allocation3 + $0x324] ss:$16 sps:$4 sm:$0xff]  }
  0x6f   :  { %9392 = vmatpush1.bf16.msra.mxu0 %v12340_v2  ;;  %v12416_v2 = vld [vmem:[#allocation3 + $0x34c] ss:$16 sps:$4 sm:$0xff]  }
  0x70   :  { %9394 = vmatprep.subr.bf16.mxu0 %v12344_v3  ;;  %v12415_v3 = vld [vmem:[#allocation3 + $0x340] ss:$16 sps:$4 sm:$0xff]  }
  0x71   :  { %9196 = vmatpush1.bf16.msra.mxu1 %v12331_v63  ;;  %v12412_v63 = vld [vmem:[#allocation3 + $0x328] ss:$16 sps:$4 sm:$0xff]  }
  0x72   :  { %9198 = vmatprep.subr.bf16.mxu1 %v12335_v1  ;;  %v12413_v1 = vld [vmem:[#allocation3 + $0x344] ss:$16 sps:$4 sm:$0xff]  }
  0x73   :  { %9396 = vmatpush1.bf16.msra.mxu0 %v12346_v6  ;;  %v12422_v6 = vld [vmem:[#allocation3 + $0x36c] ss:$16 sps:$4 sm:$0xff]  }
  0x74   :  { %9398 = vmatprep.subr.bf16.mxu0 %v12350_v7  ;;  %v12421_v7 = vld [vmem:[#allocation3 + $0x360] ss:$16 sps:$4 sm:$0xff]  }
  0x75   :  { %9200 = vmatpush1.bf16.msra.mxu1 %v12337_v4  ;;  %v12418_v4 = vld [vmem:[#allocation3 + $0x348] ss:$16 sps:$4 sm:$0xff]  }
  0x76   :  { %9202 = vmatprep.subr.bf16.mxu1 %v12341_v5  ;;  %v12419_v5 = vld [vmem:[#allocation3 + $0x364] ss:$16 sps:$4 sm:$0xff]  }
  0x77   :  { %9400 = vmatpush1.bf16.msra.mxu0 %v12352_v10  ;;  %v12428_v10 = vld [vmem:[#allocation3 + $0x38c] ss:$16 sps:$4 sm:$0xff]  }
  0x78   :  { %9402 = vmatprep.subr.bf16.mxu0 %v12356_v13  ;;  %v12431_v13 = vld [vmem:[#allocation3 + $0x3a4] ss:$16 sps:$4 sm:$0xff]  }
  0x79   :  { %9204 = vmatpush1.bf16.msra.mxu1 %v12343_v8  ;;  %v12424_v8 = vld [vmem:[#allocation3 + $0x368] ss:$16 sps:$4 sm:$0xff]  }
  0x7a   :  { %9206 = vmatprep.subr.bf16.mxu1 %v12347_v9  ;;  %v12425_v9 = vld [vmem:[#allocation3 + $0x384] ss:$16 sps:$4 sm:$0xff]  }
  0x7d   :  { %9208 = vmatpush1.bf16.msra.mxu1 %v12349_v11  ;;  %v12427_v11 = vld [vmem:[#allocation3 + $0x380] ss:$16 sps:$4 sm:$0xff]  }
  0x7e   :  { %9210 = vmatprep.subr.bf16.mxu1 %v12353_v12  ;;  %v12430_v12 = vld [vmem:[#allocation3 + $0x388] ss:$16 sps:$4 sm:$0xff]  }
 0x113   :  { %v170_v18 = vpop.f32.mrb[0].mxu1 }
 0x114   :  { %v172_v19 = vpop.f32.mrb[1].mxu1 }
 0x115   :  { %869 = vmatprep.mubr.f32.mxu1 %v172_v19  ;;  %1100 = vmatprep.mubr.f32.mxu0 %v172_v19  ;;  %v12439_v19 = vld [vmem:[#allocation3 + $0x3c0] ss:$16 sps:$4 sm:$0xff]  }
 0x116   :  { %870 = vmatmul.mubr.f32.vlgmr.msra.gmra.mrb[12].mxu1 %v170_v18  ;;  %1101 = vmatmul.mubr.f32.vlgmr.msra.gmra.mrb[0].mxu0 %v170_v18  ;;  %v12440_v18 = vld [vmem:[#allocation3 + $0x3cc] ss:$16 sps:$4 sm:$0xff]  }
 0x117   :  { %9212 = vmatpush1.bf16.msra.mxu1 %v12355_v14  ;;  %9404 = vmatpush1.bf16.msra.mxu0 %v12358_v15  ;;  %v176_v24 = vpop.f32.mrb[2].mxu1  ;;  %v12434_v14 = vld [vmem:[#allocation3 + $0x3ac] ss:$16 sps:$4 sm:$0xff]   ;;  %v12433_v15 = vld [vmem:[#allocation3 + $0x3a0] ss:$16 sps:$4 sm:$0xff]  }
 0x118   :  { %9214 = vmatprep.subr.bf16.mxu1 %v12359_v16  ;;  %9406 = vmatprep.subr.bf16.mxu0 %v12362_v17  ;;  %v178_v25 = vpop.f32.mrb[3].mxu1  ;;  %v12436_v16 = vld [vmem:[#allocation3 + $0x3a8] ss:$16 sps:$4 sm:$0xff]   ;;  %v12437_v17 = vld [vmem:[#allocation3 + $0x3c4] ss:$16 sps:$4 sm:$0xff]  }
 0x119   :  { %875 = vmatprep.mubr.f32.mxu1 %v178_v25  ;;  %1106 = vmatprep.mubr.f32.mxu0 %v178_v25  ;;  %v12449_v25 = vld [vmem:[#allocation3 + $0x404] ss:$16 sps:$4 sm:$0xff]  }
 0x11a   :  { %876 = vmatmul.mubr.f32.gmra.mrb[14].mxu1 %v176_v24  ;;  %1107 = vmatmul.mubr.f32.gmra.mrb[2].mxu0 %v176_v24  ;;  %v12448_v24 = vld [vmem:[#allocation3 + $0x3e8] ss:$16 sps:$4 sm:$0xff]  }
 0x11b   :  { %9216 = vmatpush1.bf16.msra.mxu1 %v12361_v20  ;;  %9408 = vmatpush1.bf16.msra.mxu0 %v12364_v21  ;;  %v13765_v28 = vpop.f32.mrb[4].mxu1  ;;  %v12442_v20 = vld [vmem:[#allocation3 + $0x3c8] ss:$16 sps:$4 sm:$0xff]   ;;  %v12443_v21 = vld [vmem:[#allocation3 + $0x3e4] ss:$16 sps:$4 sm:$0xff]  }
 0x11c   :  { %9218 = vmatprep.subr.bf16.mxu1 %v12365_v22  ;;  %9410 = vmatprep.subr.bf16.mxu0 %v12368_v23  ;;  %v184_v31 = vpop.f32.mrb[5].mxu1  ;;  %v12446_v22 = vld [vmem:[#allocation3 + $0x3ec] ss:$16 sps:$4 sm:$0xff]   ;;  %v12445_v23 = vld [vmem:[#allocation3 + $0x3e0] ss:$16 sps:$4 sm:$0xff]  }
 0x11d   :  { %946 = vmatprep.mubr.f32.mxu1 %v184_v31  ;;  %1177 = vmatprep.mubr.f32.mxu0 %v184_v31  ;;  %v12458_v31 = vld [vmem:[#allocation3 + $0x42c] ss:$16 sps:$4 sm:$0xff]  }
 0x11f   :  { %9220 = vmatpush1.bf16.msra.mxu1 %v12367_v26  ;;  %9412 = vmatpush1.bf16.msra.mxu0 %v12370_v27  ;;  %v13767_v36 = vpop.f32.mrb[6].mxu1  ;;  %v12452_v26 = vld [vmem:[#allocation3 + $0x40c] ss:$16 sps:$4 sm:$0xff]   ;;  %v12451_v27 = vld [vmem:[#allocation3 + $0x400] ss:$16 sps:$4 sm:$0xff]  }
 0x120   :  { %9222 = vmatprep.subr.bf16.mxu1 %v12371_v29  ;;  %9414 = vmatprep.subr.bf16.mxu0 %v12374_v30  ;;  %v13769_v37 = vpop.f32.mrb[7].mxu1  ;;  %v12454_v29 = vld [vmem:[#allocation3 + $0x408] ss:$16 sps:$4 sm:$0xff]   ;;  %v12455_v30 = vld [vmem:[#allocation3 + $0x424] ss:$16 sps:$4 sm:$0xff]  }
 0x123   :  { %9224 = vmatpush1.bf16.msra.mxu1 %v12373_v32  ;;  %9416 = vmatpush1.bf16.msra.mxu0 %v12376_v33  ;;  %v13771_v42 = vpop.f32.mrb[8].mxu1  ;;  %v12457_v32 = vld [vmem:[#allocation3 + $0x420] ss:$16 sps:$4 sm:$0xff]   ;;  %v12460_v33 = vld [vmem:[#allocation3 + $0x428] ss:$16 sps:$4 sm:$0xff]  }
 0x124   :  { %9226 = vmatprep.subr.bf16.mxu1 %v12377_v34  ;;  %9418 = vmatprep.subr.bf16.mxu0 %v12380_v35  ;;  %v13773_v43 = vpop.f32.mrb[9].mxu1  ;;  %v12461_v34 = vld [vmem:[#allocation3 + $0x444] ss:$16 sps:$4 sm:$0xff]   ;;  %v12464_v35 = vld [vmem:[#allocation3 + $0x44c] ss:$16 sps:$4 sm:$0xff]  }
 0x127   :  { %9228 = vmatpush1.bf16.msra.mxu1 %v12379_v38  ;;  %9420 = vmatpush1.bf16.msra.mxu0 %v12382_v39  ;;  %v13775_v48 = vpop.f32.mrb[10].mxu1  ;;  %v12463_v38 = vld [vmem:[#allocation3 + $0x440] ss:$16 sps:$4 sm:$0xff]   ;;  %v12466_v39 = vld [vmem:[#allocation3 + $0x448] ss:$16 sps:$4 sm:$0xff]  }
 0x128   :  { %9230 = vmatprep.subr.bf16.mxu1 %v12383_v40  ;;  %9422 = vmatprep.subr.bf16.mxu0 %v12386_v41  ;;  %v13777_v49 = vpop.f32.mrb[11].mxu1  ;;  %v12467_v40 = vld [vmem:[#allocation3 + $0x464] ss:$16 sps:$4 sm:$0xff]   ;;  %v12470_v41 = vld [vmem:[#allocation3 + $0x46c] ss:$16 sps:$4 sm:$0xff]  }
 0x12b   :  { %9232 = vmatpush1.bf16.msra.mxu1 %v12385_v44  ;;  %9424 = vmatpush1.bf16.msra.mxu0 %v12388_v45  ;;  %v12472_v44 = vld [vmem:[#allocation3 + $0x468] ss:$16 sps:$4 sm:$0xff]   ;;  %v12473_v45 = vld [vmem:[#allocation3 + $0x484] ss:$16 sps:$4 sm:$0xff]  }
 0x12c   :  { %9234 = vmatprep.subr.bf16.mxu1 %v12389_v46  ;;  %9426 = vmatprep.subr.bf16.mxu0 %v12392_v47  ;;  %v12476_v46 = vld [vmem:[#allocation3 + $0x48c] ss:$16 sps:$4 sm:$0xff]   ;;  %v12478_v47 = vld [vmem:[#allocation3 + $0x488] ss:$16 sps:$4 sm:$0xff]  }
 0x12f   :  { %9236 = vmatpush1.bf16.msra.mxu1 %v12391_v50  ;;  %9428 = vmatpush1.bf16.msra.mxu0 %v12394_v51  ;;  %v12479_v50 = vld [vmem:[#allocation3 + $0x4a4] ss:$16 sps:$4 sm:$0xff]   ;;  %v12481_v51 = vld [vmem:[#allocation3 + $0x4a0] ss:$16 sps:$4 sm:$0xff]  }
 0x130   :  { %9238 = vmatprep.subr.bf16.mxu1 %v12395_v52  ;;  %9430 = vmatprep.subr.bf16.mxu0 %v12398_v53  ;;  %v12484_v52 = vld [vmem:[#allocation3 + $0x4a8] ss:$16 sps:$4 sm:$0xff]   ;;  %v12485_v53 = vld [vmem:[#allocation3 + $0x4c4] ss:$16 sps:$4 sm:$0xff]  }
 0x133   :  { %9240 = vmatpush1.bf16.msra.mxu1 %v12397_v54  ;;  %9432 = vmatpush1.bf16.msra.mxu0 %v12400_v55  ;;  %v12488_v54 = vld [vmem:[#allocation3 + $0x4cc] ss:$16 sps:$4 sm:$0xff]   ;;  %v12490_v55 = vld [vmem:[#allocation3 + $0x4c8] ss:$16 sps:$4 sm:$0xff]  }
 0x134   :  { %9242 = vmatprep.subr.bf16.mxu1 %v12401_v56  ;;  %9434 = vmatprep.subr.bf16.mxu0 %v12404_v57  ;;  %v12491_v56 = vld [vmem:[#allocation3 + $0x4e4] ss:$16 sps:$4 sm:$0xff]   ;;  %v12494_v57 = vld [vmem:[#allocation3 + $0x4ec] ss:$16 sps:$4 sm:$0xff]  }
 0x137   :  { %9244 = vmatpush1.bf16.msra.mxu1 %v12403_v58  ;;  %9436 = vmatpush1.bf16.msra.mxu0 %v12406_v59  ;;  %v12493_v58 = vld [vmem:[#allocation3 + $0x4e0] ss:$16 sps:$4 sm:$0xff]   ;;  %v12496_v59 = vld [vmem:[#allocation3 + $0x4e8] ss:$16 sps:$4 sm:$0xff]  }
 0x138   :  { %9246 = vmatprep.subr.bf16.mxu1 %v12407_v60  ;;  %9438 = vmatprep.subr.bf16.mxu0 %v12410_v61  ;;  %v12497_v60 = vld [vmem:[#allocation3 + $0x504] ss:$16 sps:$4 sm:$0xff]   ;;  %v12500_v61 = vld [vmem:[#allocation3 + $0x50c] ss:$16 sps:$4 sm:$0xff]  }
 0x13b   :  { %9248 = vmatpush1.bf16.msra.mxu1 %v12409_v62  ;;  %9440 = vmatpush1.bf16.msra.mxu0 %v12412_v63  ;;  %v12499_v62 = vld [vmem:[#allocation3 + $0x500] ss:$16 sps:$4 sm:$0xff]   ;;  %v12502_v63 = vld [vmem:[#allocation3 + $0x508] ss:$16 sps:$4 sm:$0xff]  }
 0x13c   :  { %9250 = vmatprep.subr.bf16.mxu1 %v12413_v1  ;;  %9442 = vmatprep.subr.bf16.mxu0 %v12416_v2  ;;  %v12503_v1 = vld [vmem:[#allocation3 + $0x524] ss:$16 sps:$4 sm:$0xff]   ;;  %v12506_v2 = vld [vmem:[#allocation3 + $0x52c] ss:$16 sps:$4 sm:$0xff]  }
 0x13f   :  { %9252 = vmatpush1.bf16.msra.mxu1 %v12415_v3  ;;  %9444 = vmatpush1.bf16.msra.mxu0 %v12418_v4  ;;  %v12505_v3 = vld [vmem:[#allocation3 + $0x520] ss:$16 sps:$4 sm:$0xff]   ;;  %v12508_v4 = vld [vmem:[#allocation3 + $0x528] ss:$16 sps:$4 sm:$0xff]  }
 0x140   :  { %9254 = vmatprep.subr.bf16.mxu1 %v12419_v5  ;;  %9446 = vmatprep.subr.bf16.mxu0 %v12422_v6  ;;  %v12509_v5 = vld [vmem:[#allocation3 + $0x544] ss:$16 sps:$4 sm:$0xff]   ;;  %v12512_v6 = vld [vmem:[#allocation3 + $0x54c] ss:$16 sps:$4 sm:$0xff]  }
 0x143   :  { %9256 = vmatpush1.bf16.msra.mxu1 %v12421_v7  ;;  %9448 = vmatpush1.bf16.msra.mxu0 %v12424_v8  ;;  %v12511_v7 = vld [vmem:[#allocation3 + $0x540] ss:$16 sps:$4 sm:$0xff]   ;;  %v12514_v8 = vld [vmem:[#allocation3 + $0x548] ss:$16 sps:$4 sm:$0xff]  }
 0x144   :  { %9258 = vmatprep.subr.bf16.mxu1 %v12425_v9  ;;  %9450 = vmatprep.subr.bf16.mxu0 %v12428_v10  ;;  %v12515_v9 = vld [vmem:[#allocation3 + $0x564] ss:$16 sps:$4 sm:$0xff]   ;;  %v12518_v10 = vld [vmem:[#allocation3 + $0x56c] ss:$16 sps:$4 sm:$0xff]  }
 0x147   :  { %9260 = vmatpush1.bf16.msra.mxu1 %v12427_v11  ;;  %9452 = vmatpush1.bf16.msra.mxu0 %v12430_v12  ;;  %v12517_v11 = vld [vmem:[#allocation3 + $0x560] ss:$16 sps:$4 sm:$0xff]   ;;  %v12520_v12 = vld [vmem:[#allocation3 + $0x568] ss:$16 sps:$4 sm:$0xff]  }
 0x148   :  { %9262 = vmatprep.subr.bf16.mxu1 %v12431_v13  ;;  %9454 = vmatprep.subr.bf16.mxu0 %v12434_v14  ;;  %v12521_v13 = vld [vmem:[#allocation3 + $0x584] ss:$16 sps:$4 sm:$0xff]   ;;  %v12524_v14 = vld [vmem:[#allocation3 + $0x58c] ss:$16 sps:$4 sm:$0xff]  }
 0x14b   :  { %9264 = vmatpush1.bf16.msra.mxu1 %v12433_v15  ;;  %9456 = vmatpush1.bf16.msra.mxu0 %v12436_v16  ;;  %v12523_v15 = vld [vmem:[#allocation3 + $0x580] ss:$16 sps:$4 sm:$0xff]   ;;  %v12526_v16 = vld [vmem:[#allocation3 + $0x588] ss:$16 sps:$4 sm:$0xff]  }
 0x14c   :  { %9266 = vmatprep.subr.bf16.mxu1 %v12437_v17  ;;  %9458 = vmatprep.subr.bf16.mxu0 %v12440_v18  ;;  %v12527_v17 = vld [vmem:[#allocation3 + $0x5a4] ss:$16 sps:$4 sm:$0xff]   ;;  %v12530_v18 = vld [vmem:[#allocation3 + $0x5ac] ss:$16 sps:$4 sm:$0xff]  }
 0x14f   :  { %9268 = vmatpush1.bf16.msra.mxu1 %v12439_v19  ;;  %9460 = vmatpush1.bf16.msra.mxu0 %v12442_v20  ;;  %v12529_v19 = vld [vmem:[#allocation3 + $0x5a0] ss:$16 sps:$4 sm:$0xff]   ;;  %v12532_v20 = vld [vmem:[#allocation3 + $0x5a8] ss:$16 sps:$4 sm:$0xff]  }
 0x150   :  { %9270 = vmatprep.subr.bf16.mxu1 %v12443_v21  ;;  %9462 = vmatprep.subr.bf16.mxu0 %v12446_v22  ;;  %v12533_v21 = vld [vmem:[#allocation3 + $0x5c4] ss:$16 sps:$4 sm:$0xff]   ;;  %v12536_v22 = vld [vmem:[#allocation3 + $0x5cc] ss:$16 sps:$4 sm:$0xff]  }
 0x153   :  { %9272 = vmatpush1.bf16.msra.mxu1 %v12445_v23  ;;  %9464 = vmatpush1.bf16.msra.mxu0 %v12448_v24  ;;  %v12535_v23 = vld [vmem:[#allocation3 + $0x5c0] ss:$16 sps:$4 sm:$0xff]   ;;  %v12538_v24 = vld [vmem:[#allocation3 + $0x5c8] ss:$16 sps:$4 sm:$0xff]  }
 0x154   :  { %9274 = vmatprep.subr.bf16.mxu1 %v12449_v25  ;;  %9466 = vmatprep.subr.bf16.mxu0 %v12452_v26  ;;  %v12539_v25 = vld [vmem:[#allocation3 + $0x5e4] ss:$16 sps:$4 sm:$0xff]   ;;  %v12542_v26 = vld [vmem:[#allocation3 + $0x5ec] ss:$16 sps:$4 sm:$0xff]  }
 0x156   :  { %947 = vmatmul.mubr.f32.vlgmr.msra.gmra.mrb[12].mxu1 %v13765_v28  ;;  %1178 = vmatmul.mubr.f32.vlgmr.msra.gmra.mrb[0].mxu0 %v13765_v28  ;;  %v12469_v28 = vld [vmem:[#allocation3 + $0x460] ss:$16 sps:$4 sm:$0xff]  }
 0x157   :  { %9276 = vmatpush1.bf16.msra.mxu1 %v12451_v27  ;;  %9468 = vmatpush1.bf16.msra.mxu0 %v12454_v29  ;;  %v1352_v27 = vld [vmem:[%s15758_s5 + $0x80] sm:$0xff]  ;;  %v1353_v29 = vld [vmem:[%s15758_s5 + $0x88] sm:$0xff] }
 0x158   :  { %9278 = vmatprep.subr.bf16.mxu1 %v12455_v30  ;;  %9470 = vmatprep.subr.bf16.mxu0 %v12458_v31  ;;  %v1384_v30 = vld [vmem:[%s15758_s5 + $0x180] sm:$0xff]  ;;  %v1385_v31 = vld [vmem:[%s15758_s5 + $0x188] sm:$0xff] }
 0x159   :  { %952 = vmatprep.mubr.f32.mxu1 %v13769_v37  ;;  %1183 = vmatprep.mubr.f32.mxu0 %v13769_v37  ;;  %v12475_v37 = vld [vmem:[#allocation3 + $0x480] ss:$16 sps:$4 sm:$0xff]  }
 0x15a   :  { %953 = vmatmul.mubr.f32.gmra.mrb[14].mxu1 %v13767_v36  ;;  %1184 = vmatmul.mubr.f32.gmra.mrb[2].mxu0 %v13767_v36  ;;  %v12482_v36 = vld [vmem:[#allocation3 + $0x4ac] ss:$16 sps:$4 sm:$0xff]  }
 0x15b   :  { %9280 = vmatpush1.bf16.msra.mxu1 %v12457_v32  ;;  %9472 = vmatpush1.bf16.msra.mxu0 %v12460_v33  ;;  %v12541_v32 = vld [vmem:[#allocation3 + $0x5e0] ss:$16 sps:$4 sm:$0xff]   ;;  %v12544_v33 = vld [vmem:[#allocation3 + $0x5e8] ss:$16 sps:$4 sm:$0xff]  }
 0x15c   :  { %9282 = vmatprep.subr.bf16.mxu1 %v12461_v34  ;;  %9474 = vmatprep.subr.bf16.mxu0 %v12464_v35  ;;  %v1336_v34 = vld [vmem:[%s15758_s5] sm:$0xff]  ;;  %v1337_v35 = vld [vmem:[%s15758_s5 + $0x8] sm:$0xff] }
 0x15d   :  { %1023 = vmatprep.mubr.f32.mxu1 %v13773_v43  ;;  %1254 = vmatprep.mubr.f32.mxu0 %v13773_v43  ;;  %v12487_v43 = vld [vmem:[#allocation3 + $0x4c0] ss:$16 sps:$4 sm:$0xff]  }
 0x15f   :  { %9284 = vmatpush1.bf16.msra.mxu1 %v12463_v38  ;;  %9476 = vmatpush1.bf16.msra.mxu0 %v12466_v39  ;;  %v1368_v38 = vld [vmem:[%s15758_s5 + $0x100] sm:$0xff]  ;;  %v1369_v39 = vld [vmem:[%s15758_s5 + $0x108] sm:$0xff] }
 0x160   :  { %9286 = vmatprep.subr.bf16.mxu1 %v12467_v40  ;;  %9478 = vmatprep.subr.bf16.mxu0 %v12470_v41  ;;  %v9529_v40 = vpack.c.bf16 %v1353_v29, %v1352_v27  ;;  %v9561_v41 = vpack.c.bf16 %v1385_v31, %v1384_v30  ;;  %v1363_v27 = vld [vmem:[%s15758_s5 + $0xd8] sm:$0xff]  ;;  %v1394_v29 = vld [vmem:[%s15758_s5 + $0x1d0] sm:$0xff] }
 0x161   :  { %v1395_v31 = vld [vmem:[%s15758_s5 + $0x1d8] sm:$0xff] }
 0x163   :  { %9288 = vmatpush1.bf16.msra.mxu1 %v12469_v28  ;;  %9480 = vmatpush1.bf16.msra.mxu0 %v12472_v44  ;;  %v1354_v28 = vld [vmem:[%s15758_s5 + $0x90] sm:$0xff]  ;;  %v1355_v44 = vld [vmem:[%s15758_s5 + $0x98] sm:$0xff] }
 0x164   :  { %9290 = vmatprep.subr.bf16.mxu1 %v12473_v45  ;;  %9482 = vmatprep.subr.bf16.mxu0 %v12476_v46  ;;  %v1386_v45 = vld [vmem:[%s15758_s5 + $0x190] sm:$0xff]  ;;  %v1387_v46 = vld [vmem:[%s15758_s5 + $0x198] sm:$0xff] }
 0x167   :  { %9292 = vmatpush1.bf16.msra.mxu1 %v12475_v37  ;;  %9484 = vmatpush1.bf16.msra.mxu0 %v12478_v47  ;;  %v1338_v37 = vld [vmem:[%s15758_s5 + $0x10] sm:$0xff]  ;;  %v1339_v47 = vld [vmem:[%s15758_s5 + $0x18] sm:$0xff] }
 0x168   :  { %9294 = vmatprep.subr.bf16.mxu1 %v12479_v50  ;;  %9486 = vmatprep.subr.bf16.mxu0 %v12482_v36  ;;  %v1370_v50 = vld [vmem:[%s15758_s5 + $0x110] sm:$0xff]  ;;  %v1371_v36 = vld [vmem:[%s15758_s5 + $0x118] sm:$0xff] }
 0x16b   :  { %9296 = vmatpush1.bf16.msra.mxu1 %v12481_v51  ;;  %9488 = vmatpush1.bf16.msra.mxu0 %v12484_v52  ;;  %v9531_v51 = vpack.c.bf16 %v1337_v35, %v1336_v34  ;;  %v9563_v52 = vpack.c.bf16 %v1369_v39, %v1368_v38  ;;  %v9581_v34 = vpack.c.bf16 %v1395_v31, %v1394_v29  ;;  %v1378_v38 = vld [vmem:[%s15758_s5 + $0x150] sm:$0xff]  ;;  %v1379_v39 = vld [vmem:[%s15758_s5 + $0x158] sm:$0xff] }
 0x16c   :  { %9298 = vmatprep.subr.bf16.mxu1 %v12485_v53  ;;  %9490 = vmatprep.subr.bf16.mxu0 %v12488_v54  ;;  %v9533_v53 = vpack.c.bf16 %v1355_v44, %v1354_v28  ;;  %v9565_v54 = vpack.c.bf16 %v1387_v46, %v1386_v45  ;;  %v1365_v28 = vld [vmem:[%s15758_s5 + $0xe8] sm:$0xff]  ;;  %v1396_v44 = vld [vmem:[%s15758_s5 + $0x1e0] sm:$0xff] }
 0x16d   :  { %v1397_v46 = vld [vmem:[%s15758_s5 + $0x1e8] sm:$0xff] }
 0x16f   :  { %9300 = vmatpush1.bf16.msra.mxu1 %v12487_v43  ;;  %9492 = vmatpush1.bf16.msra.mxu0 %v12490_v55  ;;  %v9535_v43 = vpack.c.bf16 %v1339_v47, %v1338_v37  ;;  %v9567_v55 = vpack.c.bf16 %v1371_v36, %v1370_v50  ;;  %v1348_v37 = vld [vmem:[%s15758_s5 + $0x60] sm:$0xff]  ;;  %v1349_v47 = vld [vmem:[%s15758_s5 + $0x68] sm:$0xff]  ;;  %v9585_v50 = vpack.c.bf16 %v1397_v46, %v1396_v44 }
 0x170   :  { %9302 = vmatprep.subr.bf16.mxu1 %v12491_v56  ;;  %9494 = vmatprep.subr.bf16.mxu0 %v12494_v57  ;;  %v1388_v56 = vld [vmem:[%s15758_s5 + $0x1a0] sm:$0xff]  ;;  %v9555_v36 = vpack.c.bf16 %v1349_v47, %v1348_v37 }
 0x173   :  { %9304 = vmatpush1.bf16.msra.mxu1 %v12493_v58  ;;  %9496 = vmatpush1.bf16.msra.mxu0 %v12496_v59  ;;  %v1389_v58 = vld [vmem:[%s15758_s5 + $0x1a8] sm:$0xff] }
 0x174   :  { %9306 = vmatprep.subr.bf16.mxu1 %v12497_v60  ;;  %9498 = vmatprep.subr.bf16.mxu0 %v12500_v61  ;;  %v1341_v59 = vld [vmem:[%s15758_s5 + $0x28] sm:$0xff]  ;;  %v9569_v60 = vpack.c.bf16 %v1389_v58, %v1388_v56  ;;  %v1350_v56 = vld [vmem:[%s15758_s5 + $0x70] sm:$0xff] }
 0x177   :  { %9308 = vmatpush1.bf16.msra.mxu1 %v12499_v62  ;;  %9500 = vmatpush1.bf16.msra.mxu0 %v12502_v63  ;;  %v1372_v62 = vld [vmem:[%s15758_s5 + $0x120] sm:$0xff]  ;;  %v1373_v63 = vld [vmem:[%s15758_s5 + $0x128] sm:$0xff] }
 0x178   :  { %9310 = vmatprep.subr.bf16.mxu1 %v12503_v1  ;;  %9502 = vmatprep.subr.bf16.mxu0 %v12506_v2  ;;  %v9571_v1 = vpack.c.bf16 %v1373_v63, %v1372_v62  ;;  %v1358_v2 = vld [vmem:[%s15758_s5 + $0xb0] sm:$0xff] }
 0x17b   :  { %9312 = vmatpush1.bf16.msra.mxu1 %v12505_v3  ;;  %9504 = vmatpush1.bf16.msra.mxu0 %v12508_v4  ;;  %v1359_v3 = vld [vmem:[%s15758_s5 + $0xb8] sm:$0xff]  ;;  %v1390_v4 = vld [vmem:[%s15758_s5 + $0x1b0] sm:$0xff] }
 0x17c   :  { %9314 = vmatprep.subr.bf16.mxu1 %v12509_v5  ;;  %9506 = vmatprep.subr.bf16.mxu0 %v12512_v6  ;;  %v9541_v5 = vpack.c.bf16 %v1359_v3, %v1358_v2  ;;  %v1391_v6 = vld [vmem:[%s15758_s5 + $0x1b8] sm:$0xff] }
 0x17f   :  { %9316 = vmatpush1.bf16.msra.mxu1 %v12511_v7  ;;  %9508 = vmatpush1.bf16.msra.mxu0 %v12514_v8  ;;  %v1342_v7 = vld [vmem:[%s15758_s5 + $0x30] sm:$0xff]  ;;  %v1343_v8 = vld [vmem:[%s15758_s5 + $0x38] sm:$0xff] }
 0x180   :  { %9318 = vmatprep.subr.bf16.mxu1 %v12515_v9  ;;  %9510 = vmatprep.subr.bf16.mxu0 %v12518_v10  ;;  %v9573_v9 = vpack.c.bf16 %v1391_v6, %v1390_v4  ;;  %v9543_v10 = vpack.c.bf16 %v1343_v8, %v1342_v7 }
 0x183   :  { %9320 = vmatpush1.bf16.msra.mxu1 %v12517_v11  ;;  %9512 = vmatpush1.bf16.msra.mxu0 %v12520_v12  ;;  %v1374_v11 = vld [vmem:[%s15758_s5 + $0x130] sm:$0xff]  ;;  %v1375_v12 = vld [vmem:[%s15758_s5 + $0x138] sm:$0xff] }
 0x184   :  { %9322 = vmatprep.subr.bf16.mxu1 %v12521_v13  ;;  %9514 = vmatprep.subr.bf16.mxu0 %v12524_v14  ;;  %v9575_v13 = vpack.c.bf16 %v1375_v12, %v1374_v11  ;;  %v1360_v14 = vld [vmem:[%s15758_s5 + $0xc0] sm:$0xff] }
 0x187   :  { %9324 = vmatpush1.bf16.msra.mxu1 %v12523_v15  ;;  %9516 = vmatpush1.bf16.msra.mxu0 %v12526_v16  ;;  %v1361_v15 = vld [vmem:[%s15758_s5 + $0xc8] sm:$0xff]  ;;  %v1392_v16 = vld [vmem:[%s15758_s5 + $0x1c0] sm:$0xff] }
 0x188   :  { %9326 = vmatprep.subr.bf16.mxu1 %v12527_v17  ;;  %9518 = vmatprep.subr.bf16.mxu0 %v12530_v18  ;;  %v9545_v17 = vpack.c.bf16 %v1361_v15, %v1360_v14  ;;  %v1393_v18 = vld [vmem:[%s15758_s5 + $0x1c8] sm:$0xff] }
 0x18b   :  { %9328 = vmatpush1.bf16.msra.mxu1 %v12529_v19  ;;  %9520 = vmatpush1.bf16.msra.mxu0 %v12532_v20  ;;  %v1344_v19 = vld [vmem:[%s15758_s5 + $0x40] sm:$0xff]  ;;  %v1345_v20 = vld [vmem:[%s15758_s5 + $0x48] sm:$0xff] }
 0x18c   :  { %9330 = vmatprep.subr.bf16.mxu1 %v12533_v21  ;;  %9522 = vmatprep.subr.bf16.mxu0 %v12536_v22  ;;  %v9577_v21 = vpack.c.bf16 %v1393_v18, %v1392_v16  ;;  %v9547_v22 = vpack.c.bf16 %v1345_v20, %v1344_v19 }
 0x18f   :  { %9332 = vmatpush1.bf16.msra.mxu1 %v12535_v23  ;;  %9524 = vmatpush1.bf16.msra.mxu0 %v12538_v24  ;;  %v1376_v23 = vld [vmem:[%s15758_s5 + $0x140] sm:$0xff]  ;;  %v1377_v24 = vld [vmem:[%s15758_s5 + $0x148] sm:$0xff] }
 0x190   :  { %9334 = vmatprep.subr.bf16.mxu1 %v12539_v25  ;;  %9526 = vmatprep.subr.bf16.mxu0 %v12542_v26  ;;  %v9579_v25 = vpack.c.bf16 %v1377_v24, %v1376_v23  ;;  %v1362_v26 = vld [vmem:[%s15758_s5 + $0xd0] sm:$0xff] }
 0x191   :  { %v9549_v30 = vpack.c.bf16 %v1363_v27, %v1362_v26 }
 0x193   :  { %9336 = vmatpush1.bf16.msra.mxu1 %v12541_v32  ;;  %9528 = vmatpush1.bf16.msra.mxu0 %v12544_v33  ;;  %v1346_v32 = vld [vmem:[%s15758_s5 + $0x50] sm:$0xff]  ;;  %v1347_v33 = vld [vmem:[%s15758_s5 + $0x58] sm:$0xff] }
 0x194   :  { %9530 = vmatprep.subr.bf16.mxu1 %v9529_v40  ;;  %9562 = vmatprep.subr.bf16.mxu0 %v9561_v41  ;;  %v9551_v35 = vpack.c.bf16 %v1347_v33, %v1346_v32  ;;  %v9583_v40 = vpack.c.bf16 %v1379_v39, %v1378_v38  ;;  %v1364_v41 = vld [vmem:[%s15758_s5 + $0xe0] sm:$0xff] }
 0x195   :  { %v9553_v45 = vpack.c.bf16 %v1365_v28, %v1364_v41 }
 0x196   :  { %1024 = vmatmul.mubr.f32.vlgmr.msra.gmra.mrb[12].mxu1 %v13771_v42  ;;  %1255 = vmatmul.mubr.f32.vlgmr.msra.gmra.mrb[0].mxu0 %v13771_v42  ;;  %v1356_v42 = vld [vmem:[%s15758_s5 + $0xa0] sm:$0xff] }
 0x197   :  { %1029 = vmatprep.mubr.f32.mxu1 %v13777_v49  ;;  %1260 = vmatprep.mubr.f32.mxu0 %v13777_v49  ;;  %v1357_v49 = vld [vmem:[%s15758_s5 + $0xa8] sm:$0xff] }
 0x198   :  { %9532 = vmatpush3.bf16.msra.mxu1 %v9531_v51  ;;  %9564 = vmatpush3.bf16.msra.mxu0 %v9563_v52  ;;  %v9537_v57 = vpack.c.bf16 %v1357_v49, %v1356_v42  ;;  %v1380_v51 = vld [vmem:[%s15758_s5 + $0x160] sm:$0xff]  ;;  %v1381_v52 = vld [vmem:[%s15758_s5 + $0x168] sm:$0xff]  ;;  %v1399_v49 = vld [vmem:[%s15758_s5 + $0x1f8] sm:$0xff] }
 0x199   :  { %9534 = vmatprep.subr.bf16.mxu1 %v9533_v53  ;;  %9566 = vmatprep.subr.bf16.mxu0 %v9565_v54  ;;  %v9587_v53 = vpack.c.bf16 %v1381_v52, %v1380_v51  ;;  %v1366_v54 = vld [vmem:[%s15758_s5 + $0xf0] sm:$0xff] }
 0x19a   :  { %1030 = vmatmul.mubr.f32.gmra.mrb[14].mxu1 %v13775_v48  ;;  %1261 = vmatmul.mubr.f32.gmra.mrb[2].mxu0 %v13775_v48  ;;  %v1340_v48 = vld [vmem:[%s15758_s5 + $0x20] sm:$0xff] }
 0x19b   :  { %v9539_v61 = vpack.c.bf16 %v1341_v59, %v1340_v48  ;;  %v1382_v59 = vld [vmem:[%s15758_s5 + $0x170] sm:$0xff] }
 0x19c   :  { %9536 = vmatpush3.bf16.msra.mxu1 %v9535_v43  ;;  %9568 = vmatpush3.bf16.msra.mxu0 %v9567_v55  ;;  %v1367_v43 = vld [vmem:[%s15758_s5 + $0xf8] sm:$0xff]  ;;  %v1398_v55 = vld [vmem:[%s15758_s5 + $0x1f0] sm:$0xff] }
 0x19d   :  { %9538 = vmatprep.subr.bf16.mxu1 %v9537_v57  ;;  %9570 = vmatprep.subr.bf16.mxu0 %v9569_v60  ;;  %v9557_v42 = vpack.c.bf16 %v1367_v43, %v1366_v54  ;;  %v1351_v57 = vld [vmem:[%s15758_s5 + $0x78] sm:$0xff]  ;;  %v9589_v58 = vpack.c.bf16 %v1399_v49, %v1398_v55 }
 0x19e   :  { %v9559_v48 = vpack.c.bf16 %v1351_v57, %v1350_v56  ;;  %v1383_v60 = vld [vmem:[%s15758_s5 + $0x178] sm:$0xff] }
 0x1a0   :  { %9540 = vmatpush3.bf16.msra.mxu1 %v9539_v61  ;;  %9572 = vmatpush3.bf16.msra.mxu0 %v9571_v1  ;;  %v9591_v61 = vpack.c.bf16 %v1383_v60, %v1382_v59 }
 0x1a1   :  { %9542 = vmatprep.subr.bf16.mxu1 %v9541_v5  ;;  %9574 = vmatprep.subr.bf16.mxu0 %v9573_v9 }
 0x1a4   :  { %9544 = vmatpush3.bf16.msra.mxu1 %v9543_v10  ;;  %9576 = vmatpush3.bf16.msra.mxu0 %v9575_v13 }
 0x1a5   :  { %9546 = vmatprep.subr.bf16.mxu1 %v9545_v17  ;;  %9578 = vmatprep.subr.bf16.mxu0 %v9577_v21 }
 0x1a8   :  { %9548 = vmatpush3.bf16.msra.mxu1 %v9547_v22  ;;  %9580 = vmatpush3.bf16.msra.mxu0 %v9579_v25 }
 0x1a9   :  { %9550 = vmatprep.subr.bf16.mxu1 %v9549_v30  ;;  %9582 = vmatprep.subr.bf16.mxu0 %v9581_v34 }
 0x1ac   :  { %9552 = vmatpush3.bf16.msra.mxu1 %v9551_v35  ;;  %9584 = vmatpush3.bf16.msra.mxu0 %v9583_v40 }
 0x1ad   :  { %9554 = vmatprep.subr.bf16.mxu1 %v9553_v45  ;;  %9586 = vmatprep.subr.bf16.mxu0 %v9585_v50 }
 0x1b0   :  { %9556 = vmatpush3.bf16.msra.mxu1 %v9555_v36  ;;  %9588 = vmatpush3.bf16.msra.mxu0 %v9587_v53 }
 0x1b1   :  { %9558 = vmatprep.subr.bf16.mxu1 %v9557_v42  ;;  %9590 = vmatprep.subr.bf16.mxu0 %v9589_v58 }
 0x1b4   :  { %9560 = vmatpush3.bf16.msra.mxu1 %v9559_v48  ;;  %9592 = vmatpush3.bf16.msra.mxu0 %v9591_v61 }
 0x269   :  { %v13985_v62 = vpop.f32.mrb[12].mxu1  ;;  %v13987_v63 = vpop.f32.mrb[0].mxu0 }
 0x26a   :  { %v13989_v1 = vpop.f32.mrb[13].mxu1  ;;  %v13991_v2 = vpop.f32.mrb[1].mxu0  ;;  %v1295_v3 = vmul.f32 %v13985_v62, %v13985_v62  ;;  %v1297_v4 = vmul.f32 %v13987_v63, %v13987_v63 }
 0x26b   :  { %v1296_v5 = vmul.f32 %v13989_v1, %v13989_v1  ;;  %v1298_v6 = vmul.f32 %v13991_v2, %v13991_v2 }
 0x26d   :  { %v14001_v7 = vpop.f32.mrb[14].mxu1  ;;  %v14003_v8 = vpop.f32.mrb[2].mxu0 }
 0x26e   :  { %v1267_v9 = vadd.f32 %v14001_v7, %v13985_v62  ;;  %v1299_v10 = vmul.f32 %v14001_v7, %v14001_v7  ;;  %v1281_v11 = vadd.f32 %v14003_v8, %v13987_v63  ;;  %v1301_v12 = vmul.f32 %v14003_v8, %v14003_v8  ;;  %v14013_v13 = vpop.f32.mrb[15].mxu1  ;;  %v14015_v14 = vpop.f32.mrb[3].mxu0 }
 0x26f   :  { %v1274_v15 = vadd.f32 %v14013_v13, %v13989_v1  ;;  %v1300_v16 = vmul.f32 %v14013_v13, %v14013_v13  ;;  %v1288_v17 = vadd.f32 %v14015_v14, %v13991_v2  ;;  %v1302_v18 = vmul.f32 %v14015_v14, %v14015_v14 }
 0x270   :  { %v1268_v19 = vrot.slane %v1267_v9, 4  ;;  %v1303_v20 = vadd.f32 %v1299_v10, %v1295_v3  ;;  %v1282_v21 = vrot.slane %v1281_v11, 4  ;;  %v1317_v22 = vadd.f32 %v1301_v12, %v1297_v4 }
 0x271   :  { %v1275_v23 = vrot.slane %v1274_v15, 4  ;;  %v1310_v24 = vadd.f32 %v1300_v16, %v1296_v5  ;;  %v1289_v25 = vrot.slane %v1288_v17, 4  ;;  %v1324_v26 = vadd.f32 %v1302_v18, %v1298_v6 }
 0x272   :  { %v1269_v27 = vadd.f32 %v1268_v19, %v1267_v9  ;;  %v1304_v29 = vrot.slane %v1303_v20, 4  ;;  %v1283_v30 = vadd.f32 %v1282_v21, %v1281_v11  ;;  %v1318_v31 = vrot.slane %v1317_v22, 4  ;;  %v1555_v21 = vld [vmem:[#allocation7] sm:$0xff] }
 0x273   :  { %v1276_v32 = vadd.f32 %v1275_v23, %v1274_v15  ;;  %v1311_v33 = vrot.slane %v1310_v24, 4  ;;  %v1290_v34 = vadd.f32 %v1289_v25, %v1288_v17  ;;  %v1325_v35 = vrot.slane %v1324_v26, 4 }
 0x274   :  { %v1270_v38 = vrot.slane %v1269_v27, 2  ;;  %v1305_v39 = vadd.f32 %v1304_v29, %v1303_v20  ;;  %v1284_v40 = vrot.slane %v1283_v30, 2  ;;  %v1319_v41 = vadd.f32 %v1318_v31, %v1317_v22  ;;  %v1556_v20 = vld [vmem:[#allocation7 + $0x8] sm:$0xff]  ;;  %v1558_v22 = vld [vmem:[#allocation7 + $0x18] sm:$0xff] }
 0x275   :  { %v1277_v28 = vrot.slane %v1276_v32, 2  ;;  %v1312_v44 = vadd.f32 %v1311_v33, %v1310_v24  ;;  %v1291_v45 = vrot.slane %v1290_v34, 2  ;;  %v1326_v46 = vadd.f32 %v1325_v35, %v1324_v26  ;;  %1563 = vmatprep.subr.mxu1 %v1556_v20 }
 0x276   :  { %v1271_v37 = vadd.f32 %v1270_v38, %v1269_v27  ;;  %v1306_v47 = vrot.slane %v1305_v39, 2  ;;  %v1285_v50 = vadd.f32 %v1284_v40, %v1283_v30  ;;  %v1320_v36 = vrot.slane %v1319_v41, 2 }
 0x277   :  { %v1278_v51 = vadd.f32 %v1277_v28, %v1276_v32  ;;  %v1313_v52 = vrot.slane %v1312_v44, 2  ;;  %v1292_v53 = vadd.f32 %v1291_v45, %v1290_v34  ;;  %v1327_v54 = vrot.slane %v1326_v46, 2 }
 0x278   :  { %v1272_v43 = vrot.slane %v1271_v37, 1  ;;  %v1307_v55 = vadd.f32 %v1306_v47, %v1305_v39  ;;  %v1286_v42 = vrot.slane %v1285_v50, 1  ;;  %v1321_v49 = vadd.f32 %v1320_v36, %v1319_v41  ;;  %v1557_v41 = vld [vmem:[#allocation7 + $0x10] sm:$0xff] }
 0x279   :  { %v1279_v56 = vrot.slane %v1278_v51, 1  ;;  %v1314_v57 = vadd.f32 %v1313_v52, %v1312_v44  ;;  %v1293_v58 = vrot.slane %v1292_v53, 1  ;;  %v1328_v48 = vadd.f32 %v1327_v54, %v1326_v46 }
 0x27a   :  { %v1308_v59 = vrot.slane %v1307_v55, 1  ;;  %v1322_v60 = vrot.slane %v1321_v49, 1  ;;  %v1273_v4 = vadd.f32 %v1272_v43, %v1271_v37  ;;  %v1287_v5 = vadd.f32 %v1286_v42, %v1285_v50 }
 0x27b   :  { %v1315_v61 = vrot.slane %v1314_v57, 1  ;;  %v1329_v3 = vrot.slane %v1328_v48, 1  ;;  %v1280_v10 = vadd.f32 %v1279_v56, %v1278_v51  ;;  %v1294_v12 = vadd.f32 %v1293_v58, %v1292_v53 }
 0x27c   :  { %v1309_v6 = vadd.f32 %v1308_v59, %v1307_v55  ;;  %v1323_v9 = vadd.f32 %v1322_v60, %v1321_v49  ;;  %v1705_v44 = vlaneseq }
 0x27d   :  { %v1316_v11 = vadd.f32 %v1315_v61, %v1314_v57  ;;  %v1330_v15 = vadd.f32 %v1329_v3, %v1328_v48 }
 0x27e   :  { %v1332_v16 = vsel %vm1331_vm1, %v1273_v4, %v1309_v6  ;;  %v1334_v17 = vsel %vm1331_vm1, %v1287_v5, %v1323_v9  ;;  %v1706_v45 = vshrl.u32 %v1705_v44, 7  ;;  %v12556_v44 = vld [vmem:[#allocation3 + $0x628] ss:$16 sps:$4 sm:$0xff]  }
 0x27f   :  { %v1333_v18 = vsel %vm1331_vm1, %v1280_v10, %v1316_v11  ;;  %v1335_v19 = vsel %vm1331_vm1, %v1294_v12, %v1330_v15 }
 0x280   :  { %1464 = vmatprep.mubr.f32.mxu1 %v1333_v18  ;;  %1534 = vmatprep.mubr.f32.mxu0 %v1335_v19  ;;  %v14036_v46 = vsub.s32 0, %v1706_v45  ;;  %v14038_v37 = vsub.s32 1, %v1706_v45  ;;  %v12559_v45 = vld [vmem:[#allocation3 + $0x640] ss:$16 sps:$4 sm:$0xff]  }
 0x281   :  { %1465 = vmatmul.mubr.f32.vlgmr.msra.gmra.mrb[16].mxu1 %v1332_v16  ;;  %1535 = vmatmul.mubr.f32.vlgmr.msra.gmra.mrb[4].mxu0 %v1334_v17 }
 0x282   :  { %1627 = vmatprep.mubr.f32.mxu1 %v13644_v0  ;;  %1858 = vmatprep.mubr.f32.mxu0 %v13644_v0 }
 0x283   :  { %1564 = vmatpush1.msra.mxu1 %v1555_v21 }
 0x284   :  { %1634 = vmatprep.subr.mxu1 %v1558_v22 }
 0x354   :  { %v8616_v23 = vpop.f32.mrb[16].mxu1  ;;  %v8651_v24 = vpop.f32.mrb[4].mxu0 }
 0x355   :  { %v8617_v25 = vpop.f32.mrb[17].mxu1  ;;  %v8652_v26 = vpop.f32.mrb[5].mxu0 }
 0x356   :  { %v8618_v27 = vadd.f32 %v8617_v25, %v8616_v23  ;;  %v8653_v29 = vadd.f32 %v8652_v26, %v8651_v24  ;;  %v12545_v25 = vld [vmem:[#allocation3 + $0x604] ss:$16 sps:$4 sm:$0xff]  }
 0x358   :  { %v1537_v30 = vadd.f32 %v8653_v29, %v8618_v27 }
 0x35a   :  { %v1540_v31 = vmul.f32 %v1537_v30, %v1537_v30 }
 0x35c   :  { %v1542_v32 = vrot.slane %v1540_v31, 7 }
 0x35e   :  { %v1544_v33 = vsub.f32 %v1537_v30, %v1542_v32  ;;  %v12547_v32 = vld [vmem:[#allocation3 + $0x600] ss:$16 sps:$4 sm:$0xff]  }
 0x360   :  { %v1545_v34 = vadd.f32 1e-05, %v1544_v33  ;;  %v12548_v33 = vld [vmem:[#allocation3 + $0x60c] ss:$16 sps:$4 sm:$0xff]  }
 0x362   :  { %13553 = vrsqrt.f32 %v1545_v34  ;;  %v12551_v34 = vld [vmem:[#allocation3 + $0x624] ss:$16 sps:$4 sm:$0xff]  }
 0x36c   :  { %v13554_v35 = vpop.eup %13553 }
 0x36d   :  { %v1548_v38 = vrot.slane %v13554_v35, 1  ;;  %v1770_v35 = vld [vmem:[%s15757_s4 + $0x38] sm:$0xff] }
 0x36f   :  { %v1550_v39 = vmul.f32 %v1548_v38, %v1537_v30 }
 0x371   :  { %v1552_v40 = vrot.slane %v1550_v39, 7  ;;  %v12553_v39 = vld [vmem:[#allocation3 + $0x620] ss:$16 sps:$4 sm:$0xff]  }
 0x373   :  { %v1554_v28 = vsel %vm1331_vm1, %v1548_v38, %v1552_v40  ;;  %v12550_v38 = vld [vmem:[#allocation3 + $0x608] ss:$16 sps:$4 sm:$0xff]   ;;  %v12554_v40 = vld [vmem:[#allocation3 + $0x62c] ss:$16 sps:$4 sm:$0xff]  }
 0x374   :  { %8190 = vmatmul.mubr.msk.f32.vlgmr.msra.gmra.mrb[18].mxu1 %vm1559_vm2, %v1554_v28 }
 0x375   :  { %1635 = vmatpush1.msra.mxu1 %v1557_v41  ;;  %1698 = vmatprep.mubr.f32.mxu1 %v13644_v0  ;;  %v12557_v41 = vld [vmem:[#allocation3 + $0x644] ss:$16 sps:$4 sm:$0xff]  }
 0x378   :  { %8191 = vmatmul.mubr.msk.f32.vlgmr.msra.gmra.mrb[20].mxu1 %vm1559_vm2, %v1554_v28  ;;  %v1771_v28 = vld [vmem:[%s15757_s4 + $0x40] sm:$0xff] }
 0x379   :  { %1959 = vmatprep.mubr.f32.mxu1 %v13644_v0 }
 0x447   :  { %v1629_v47 = vpop.f32.mrb[18].mxu1 }
 0x448   :  { %v1708_v50 = vrot.slane %v1629_v47, %v14036_v46  ;;  %v1631_v36 = vpop.f32.mrb[19].mxu1  ;;  %v1732_v54 = vrot.slane %v1629_v47, %v14038_v37  ;;  %v12560_v47 = vld [vmem:[#allocation3 + $0x64c] ss:$16 sps:$4 sm:$0xff]  }
 0x449   :  { %v1712_v51 = vrot.slane %v1631_v36, %v14036_v46  ;;  %v1736_v42 = vrot.slane %v1631_v36, %v14038_v37  ;;  %v1772_v36 = vld [vmem:[%s15757_s4 + $0x48] sm:$0xff] }
 0x44a   :  { %v1721_v52 = vmul.f32 %v1708_v50, %v13985_v62  ;;  %v1725_v53 = vmul.f32 %v1708_v50, %v14001_v7  ;;  %v12563_v50 = vld [vmem:[#allocation3 + $0x664] ss:$16 sps:$4 sm:$0xff]  }
 0x44b   :  { %v1722_v43 = vmul.f32 %v1712_v51, %v13989_v1  ;;  %v1726_v55 = vmul.f32 %v1712_v51, %v14013_v13  ;;  %v1700_v49 = vpop.f32.mrb[20].mxu1  ;;  %v12562_v51 = vld [vmem:[#allocation3 + $0x648] ss:$16 sps:$4 sm:$0xff]  }
 0x44c   :  { %v1745_v56 = vsub.f32 %v1721_v52, %v1732_v54  ;;  %v1749_v57 = vsub.f32 %v1725_v53, %v1732_v54  ;;  %v1716_v58 = vrot.slane %v1700_v49, %v14036_v46  ;;  %v1740_v48 = vrot.slane %v1700_v49, %v14038_v37  ;;  %v1702_v59 = vpop.f32.mrb[21].mxu1  ;;  %v12565_v52 = vld [vmem:[#allocation3 + $0x660] ss:$16 sps:$4 sm:$0xff]   ;;  %v12566_v53 = vld [vmem:[#allocation3 + $0x66c] ss:$16 sps:$4 sm:$0xff]  }
 0x44d   :  { %v1746_v60 = vsub.f32 %v1722_v43, %v1736_v42  ;;  %v1750_v62 = vsub.f32 %v1726_v55, %v1736_v42  ;;  %v1720_v7 = vrot.slane %v1702_v59, %v14036_v46  ;;  %v1744_v61 = vrot.slane %v1702_v59, %v14038_v37  ;;  %v12569_v54 = vld [vmem:[#allocation3 + $0x684] ss:$16 sps:$4 sm:$0xff]   ;;  %v12568_v55 = vld [vmem:[#allocation3 + $0x668] ss:$16 sps:$4 sm:$0xff]   ;;  %v12571_v42 = vld [vmem:[#allocation3 + $0x680] ss:$16 sps:$4 sm:$0xff]  }
 0x44e   :  { %v1753_v3 = vmul.f32 0.01, %v1745_v56  ;;  %v1757_v1 = vmul.f32 0.01, %v1749_v57  ;;  %v1723_v13 = vmul.f32 %v1716_v58, %v13987_v63  ;;  %v1727_v4 = vmul.f32 %v1716_v58, %v14003_v8  ;;  %v1773_v43 = vld [vmem:[%s15757_s4 + $0x50] sm:$0xff] }
 0x44f   :  { %v1754_v5 = vmul.f32 0.01, %v1746_v60  ;;  %v1758_v6 = vmul.f32 0.01, %v1750_v62  ;;  %v1724_v9 = vmul.f32 %v1720_v7, %v13991_v2  ;;  %v1728_v10 = vmul.f32 %v1720_v7, %v14015_v14  ;;  %v1769_v14 = vld [vmem:[%s15757_s4 + $0x30] sm:$0xff] }
 0x450   :  { %v1761_v11 = vmax.f32 %v1745_v56, %v1753_v3  ;;  %v1765_v12 = vmax.f32 %v1749_v57, %v1757_v1  ;;  %v1747_v15 = vsub.f32 %v1723_v13, %v1740_v48  ;;  %v1751_v16 = vsub.f32 %v1727_v4, %v1740_v48  ;;  %v12572_v49 = vld [vmem:[#allocation3 + $0x68c] ss:$16 sps:$4 sm:$0xff]   ;;  %v12575_v56 = vld [vmem:[#allocation3 + $0x6a4] ss:$16 sps:$4 sm:$0xff]   ;;  %v12574_v58 = vld [vmem:[#allocation3 + $0x688] ss:$16 sps:$4 sm:$0xff]  }
 0x451   :  { %v1762_v17 = vmax.f32 %v1746_v60, %v1754_v5  ;;  %v1766_v18 = vmax.f32 %v1750_v62, %v1758_v6  ;;  %v1748_v19 = vsub.f32 %v1724_v9, %v1744_v61  ;;  %v1752_v20 = vsub.f32 %v1728_v10, %v1744_v61  ;;  %v1774_v57 = vld [vmem:[%s15757_s4 + $0x58] sm:$0xff]  ;;  %v12577_v48 = vld [vmem:[#allocation3 + $0x6a0] ss:$16 sps:$4 sm:$0xff]   ;;  %v12581_v60 = vld [vmem:[#allocation3 + $0x6c4] ss:$16 sps:$4 sm:$0xff]  }
 0x452   :  { %v1755_v21 = vmul.f32 0.01, %v1747_v15  ;;  %v1759_v22 = vmul.f32 0.01, %v1751_v16  ;;  %v9595_v23 = vpack.c.bf16 %v1765_v12, %v1761_v11  ;;  %v12578_v59 = vld [vmem:[#allocation3 + $0x6ac] ss:$16 sps:$4 sm:$0xff]  }
 0x453   :  { %v1756_v63 = vmul.f32 0.01, %v1748_v19  ;;  %v1760_v24 = vmul.f32 0.01, %v1752_v20  ;;  %v9593_v8 = vpack.c.bf16 %v1766_v18, %v1762_v17  ;;  %v12580_v62 = vld [vmem:[#allocation3 + $0x6a8] ss:$16 sps:$4 sm:$0xff]  }
 0x454   :  { %v1763_v26 = vmax.f32 %v1747_v15, %v1755_v21  ;;  %v1767_v27 = vmax.f32 %v1751_v16, %v1759_v22  ;;  %v12583_v7 = vld [vmem:[#allocation3 + $0x6c0] ss:$16 sps:$4 sm:$0xff]   ;;  %v12584_v61 = vld [vmem:[#allocation3 + $0x6cc] ss:$16 sps:$4 sm:$0xff]   ;;  %v12587_v3 = vld [vmem:[#allocation3 + $0x6e4] ss:$16 sps:$4 sm:$0xff]  }
 0x455   :  { %v1764_v2 = vmax.f32 %v1748_v19, %v1756_v63  ;;  %v1768_v29 = vmax.f32 %v1752_v20, %v1760_v24  ;;  %9594 = vmatprep.subr.bf16.mxu0 %v9593_v8  ;;  %v12586_v1 = vld [vmem:[#allocation3 + $0x6c8] ss:$16 sps:$4 sm:$0xff]   ;;  %v12589_v13 = vld [vmem:[#allocation3 + $0x6e0] ss:$16 sps:$4 sm:$0xff]   ;;  %v12590_v4 = vld [vmem:[#allocation3 + $0x6ec] ss:$16 sps:$4 sm:$0xff]  }
 0x456   :  { %9596 = vmatpush1.bf16.msra.mxu0 %v9595_v23  ;;  %v9599_v30 = vpack.c.bf16 %v1767_v27, %v1763_v26  ;;  %v12593_v5 = vld [vmem:[#allocation3 + $0x704] ss:$16 sps:$4 sm:$0xff]   ;;  %v12592_v6 = vld [vmem:[#allocation3 + $0x6e8] ss:$16 sps:$4 sm:$0xff]   ;;  %v12595_v9 = vld [vmem:[#allocation3 + $0x700] ss:$16 sps:$4 sm:$0xff]  }
 0x457   :  { %v9597_v31 = vpack.c.bf16 %v1768_v29, %v1764_v2  ;;  %9602 = vmatprep.subr.bf16.mxu0 %v12545_v25  ;;  %v12596_v10 = vld [vmem:[#allocation3 + $0x70c] ss:$16 sps:$4 sm:$0xff]   ;;  %v12599_v11 = vld [vmem:[#allocation3 + $0x724] ss:$16 sps:$4 sm:$0xff]   ;;  %v12598_v12 = vld [vmem:[#allocation3 + $0x708] ss:$16 sps:$4 sm:$0xff]  }
 0x458   :  { %v12601_v15 = vld [vmem:[#allocation3 + $0x720] ss:$16 sps:$4 sm:$0xff]   ;;  %v12602_v16 = vld [vmem:[#allocation3 + $0x72c] ss:$16 sps:$4 sm:$0xff]   ;;  %v12605_v17 = vld [vmem:[#allocation3 + $0x744] ss:$16 sps:$4 sm:$0xff]  }
 0x459   :  { %8192 = vmatmul.mubr.msk.f32.vlgmr.msra.gmra.mrb[6].mxu0 %vm1775_vm3, %v1769_v14  ;;  %9598 = vmatprep.subr.bf16.mxu1 %v9597_v31  ;;  %v12604_v18 = vld [vmem:[#allocation3 + $0x728] ss:$16 sps:$4 sm:$0xff]   ;;  %v12607_v19 = vld [vmem:[#allocation3 + $0x740] ss:$16 sps:$4 sm:$0xff]   ;;  %v12608_v20 = vld [vmem:[#allocation3 + $0x74c] ss:$16 sps:$4 sm:$0xff]  }
 0x45a   :  { %9600 = vmatpush1.bf16.msra.mxu1 %v9599_v30  ;;  %1864 = vmatprep.mubr.f32.mxu0 %v13644_v0  ;;  %v12611_v21 = vld [vmem:[#allocation3 + $0x764] ss:$16 sps:$4 sm:$0xff]   ;;  %v12610_v22 = vld [vmem:[#allocation3 + $0x748] ss:$16 sps:$4 sm:$0xff]   ;;  %v12613_v23 = vld [vmem:[#allocation3 + $0x760] ss:$16 sps:$4 sm:$0xff]  }
 0x45b   :  { %9986 = vmatprep.subr.bf16.mxu1 %v12548_v33  ;;  %9604 = vmatpush1.bf16.msra.mxu0 %v12547_v32  ;;  %v12614_v63 = vld [vmem:[#allocation3 + $0x76c] ss:$16 sps:$4 sm:$0xff]   ;;  %v12617_v24 = vld [vmem:[#allocation3 + $0x784] ss:$16 sps:$4 sm:$0xff]   ;;  %v12616_v8 = vld [vmem:[#allocation3 + $0x768] ss:$16 sps:$4 sm:$0xff]  }
 0x45c   :  { %9606 = vmatprep.subr.bf16.mxu0 %v12551_v34  ;;  %v12619_v25 = vld [vmem:[#allocation3 + $0x780] ss:$16 sps:$4 sm:$0xff]   ;;  %v12620_v26 = vld [vmem:[#allocation3 + $0x78c] ss:$16 sps:$4 sm:$0xff]   ;;  %v12623_v27 = vld [vmem:[#allocation3 + $0x7a4] ss:$16 sps:$4 sm:$0xff]  }
 0x45d   :  { %8193 = vmatmul.mubr.msk.f32.gmra.mrb[8].mxu0 %vm1775_vm3, %v1770_v35  ;;  %8198 = vmatmul.mubr.msk.f32.vlgmr.msra.gmra.mrb[22].mxu1 %vm1775_vm3, %v1769_v14  ;;  %v12622_v2 = vld [vmem:[#allocation3 + $0x788] ss:$16 sps:$4 sm:$0xff]   ;;  %v12625_v29 = vld [vmem:[#allocation3 + $0x7a0] ss:$16 sps:$4 sm:$0xff]   ;;  %v12626_v14 = vld [vmem:[#allocation3 + $0x7ac] ss:$16 sps:$4 sm:$0xff]  }
 0x45e   :  { %1965 = vmatprep.mubr.f32.mxu1 %v13644_v0  ;;  %1870 = vmatprep.mubr.f32.mxu0 %v13644_v0  ;;  %v12629_v30 = vld [vmem:[#allocation3 + $0x7c4] ss:$16 sps:$4 sm:$0xff]   ;;  %v12628_v31 = vld [vmem:[#allocation3 + $0x7a8] ss:$16 sps:$4 sm:$0xff]   ;;  %v12631_v32 = vld [vmem:[#allocation3 + $0x7c0] ss:$16 sps:$4 sm:$0xff]  }
 0x45f   :  { %9988 = vmatpush1.bf16.msra.mxu1 %v12550_v38  ;;  %9608 = vmatpush1.bf16.msra.mxu0 %v12553_v39  ;;  %v12632_v33 = vld [vmem:[#allocation3 + $0x7cc] ss:$16 sps:$4 sm:$0xff]   ;;  %v12635_v34 = vld [vmem:[#allocation3 + $0x7e4] ss:$16 sps:$4 sm:$0xff]   ;;  %v12637_v38 = vld [vmem:[#allocation3 + $0x7e0] ss:$16 sps:$4 sm:$0xff]  }
 0x460   :  { %9990 = vmatprep.subr.bf16.mxu1 %v12554_v40  ;;  %9610 = vmatprep.subr.bf16.mxu0 %v12557_v41  ;;  %v12638_v39 = vld [vmem:[#allocation3 + $0x7ec] ss:$16 sps:$4 sm:$0xff]   ;;  %v12640_v40 = vld [vmem:[#allocation3 + $0x7e8] ss:$16 sps:$4 sm:$0xff]   ;;  %v12641_v41 = vld [vmem:[#allocation3 + $0x804] ss:$16 sps:$4 sm:$0xff]  }
 0x461   :  { %8199 = vmatmul.mubr.msk.f32.gmra.mrb[24].mxu1 %vm1775_vm3, %v1770_v35  ;;  %8194 = vmatmul.mubr.msk.f32.gmra.mrb[10].mxu0 %vm1775_vm3, %v1771_v28  ;;  %v12634_v35 = vld [vmem:[#allocation3 + $0x7c8] ss:$16 sps:$4 sm:$0xff]  }
 0x462   :  { %1876 = vmatprep.mubr.f32.mxu0 %v13644_v0  ;;  %1971 = vmatprep.mubr.f32.mxu1 %v13644_v0 }
 0x463   :  { %9992 = vmatpush1.bf16.msra.mxu1 %v12556_v44  ;;  %9612 = vmatpush1.bf16.msra.mxu0 %v12559_v45  ;;  %v12643_v45 = vld [vmem:[#allocation3 + $0x800] ss:$16 sps:$4 sm:$0xff]  }
 0x464   :  { %9994 = vmatprep.subr.bf16.mxu1 %v12560_v47  ;;  %9614 = vmatprep.subr.bf16.mxu0 %v12563_v50  ;;  %v12646_v47 = vld [vmem:[#allocation3 + $0x808] ss:$16 sps:$4 sm:$0xff]  }
 0x465   :  { %8195 = vmatmul.mubr.msk.f32.gmra.mrb[12].mxu0 %vm1775_vm3, %v1772_v36  ;;  %8200 = vmatmul.mubr.msk.f32.gmra.mrb[26].mxu1 %vm1775_vm3, %v1771_v28  ;;  %v12644_v28 = vld [vmem:[#allocation3 + $0x80c] ss:$16 sps:$4 sm:$0xff]  }
 0x466   :  { %1977 = vmatprep.mubr.f32.mxu1 %v13644_v0  ;;  %1882 = vmatprep.mubr.f32.mxu0 %v13644_v0 }
 0x467   :  { %9996 = vmatpush1.bf16.msra.mxu1 %v12562_v51  ;;  %9616 = vmatpush1.bf16.msra.mxu0 %v12565_v52  ;;  %v12650_v51 = vld [vmem:[#allocation3 + $0x82c] ss:$16 sps:$4 sm:$0xff]   ;;  %v12649_v52 = vld [vmem:[#allocation3 + $0x820] ss:$16 sps:$4 sm:$0xff]  }
 0x468   :  { %9998 = vmatprep.subr.bf16.mxu1 %v12566_v53  ;;  %9618 = vmatprep.subr.bf16.mxu0 %v12569_v54  ;;  %v12652_v53 = vld [vmem:[#allocation3 + $0x828] ss:$16 sps:$4 sm:$0xff]  }
 0x469   :  { %8201 = vmatmul.mubr.msk.f32.gmra.mrb[28].mxu1 %vm1775_vm3, %v1772_v36  ;;  %8196 = vmatmul.mubr.msk.f32.gmra.mrb[14].mxu0 %vm1775_vm3, %v1773_v43  ;;  %v12647_v36 = vld [vmem:[#allocation3 + $0x824] ss:$16 sps:$4 sm:$0xff]  }
 0x46a   :  { %1983 = vmatprep.mubr.f32.mxu1 %v13644_v0  ;;  %1888 = vmatprep.mubr.f32.mxu0 %v13644_v0 }
 0x46b   :  { %10000 = vmatpush1.bf16.msra.mxu1 %v12568_v55  ;;  %9620 = vmatpush1.bf16.msra.mxu0 %v12571_v42  ;;  %v12653_v55 = vld [vmem:[#allocation3 + $0x844] ss:$16 sps:$4 sm:$0xff]   ;;  %v12656_v42 = vld [vmem:[#allocation3 + $0x84c] ss:$16 sps:$4 sm:$0xff]  }
 0x46c   :  { %10002 = vmatprep.subr.bf16.mxu1 %v12572_v49  ;;  %9622 = vmatprep.subr.bf16.mxu0 %v12575_v56 }
 0x46d   :  { %8202 = vmatmul.mubr.msk.f32.gmra.mrb[30].mxu1 %vm1775_vm3, %v1773_v43  ;;  %8197 = vmatmul.mubr.msk.f32.gmra.mrb[16].mxu0 %vm1775_vm3, %v1774_v57 }
 0x46e   :  { %1989 = vmatprep.mubr.f32.mxu1 %v13644_v0 }
 0x46f   :  { %10004 = vmatpush1.bf16.msra.mxu1 %v12574_v58  ;;  %9624 = vmatpush1.bf16.msra.mxu0 %v12577_v48  ;;  %v12658_v58 = vld [vmem:[#allocation3 + $0x848] ss:$16 sps:$4 sm:$0xff]  }
 0x470   :  { %10006 = vmatprep.subr.bf16.mxu1 %v12578_v59  ;;  %9626 = vmatprep.subr.bf16.mxu0 %v12581_v60  ;;  %v12659_v60 = vld [vmem:[#allocation3 + $0x864] ss:$16 sps:$4 sm:$0xff]  }
 0x471   :  { %8203 = vmatmul.mubr.msk.f32.gmra.mrb[32].mxu1 %vm1775_vm3, %v1774_v57  ;;  %v12655_v57 = vld [vmem:[#allocation3 + $0x840] ss:$16 sps:$4 sm:$0xff]  }
 0x473   :  { %10008 = vmatpush1.bf16.msra.mxu1 %v12580_v62  ;;  %9628 = vmatpush1.bf16.msra.mxu0 %v12583_v7  ;;  %v12662_v62 = vld [vmem:[#allocation3 + $0x86c] ss:$16 sps:$4 sm:$0xff]  }
 0x474   :  { %10010 = vmatprep.subr.bf16.mxu1 %v12584_v61  ;;  %9630 = vmatprep.subr.bf16.mxu0 %v12587_v3  ;;  %v12661_v3 = vld [vmem:[#allocation3 + $0x860] ss:$16 sps:$4 sm:$0xff]  }
 0x477   :  { %10012 = vmatpush1.bf16.msra.mxu1 %v12586_v1  ;;  %9632 = vmatpush1.bf16.msra.mxu0 %v12589_v13  ;;  %v12664_v1 = vld [vmem:[#allocation3 + $0x868] ss:$16 sps:$4 sm:$0xff]   ;;  %v12665_v13 = vld [vmem:[#allocation3 + $0x884] ss:$16 sps:$4 sm:$0xff]  }
 0x478   :  { %10014 = vmatprep.subr.bf16.mxu1 %v12590_v4  ;;  %9634 = vmatprep.subr.bf16.mxu0 %v12593_v5  ;;  %v12668_v4 = vld [vmem:[#allocation3 + $0x88c] ss:$16 sps:$4 sm:$0xff]   ;;  %v12667_v5 = vld [vmem:[#allocation3 + $0x880] ss:$16 sps:$4 sm:$0xff]  }
 0x47b   :  { %10016 = vmatpush1.bf16.msra.mxu1 %v12592_v6  ;;  %9636 = vmatpush1.bf16.msra.mxu0 %v12595_v9  ;;  %v12670_v6 = vld [vmem:[#allocation3 + $0x888] ss:$16 sps:$4 sm:$0xff]   ;;  %v12671_v9 = vld [vmem:[#allocation3 + $0x8a4] ss:$16 sps:$4 sm:$0xff]  }
 0x47c   :  { %10018 = vmatprep.subr.bf16.mxu1 %v12596_v10  ;;  %9638 = vmatprep.subr.bf16.mxu0 %v12599_v11  ;;  %v12674_v10 = vld [vmem:[#allocation3 + $0x8ac] ss:$16 sps:$4 sm:$0xff]   ;;  %v12673_v11 = vld [vmem:[#allocation3 + $0x8a0] ss:$16 sps:$4 sm:$0xff]  }
 0x47f   :  { %10020 = vmatpush1.bf16.msra.mxu1 %v12598_v12  ;;  %9640 = vmatpush1.bf16.msra.mxu0 %v12601_v15  ;;  %v12676_v12 = vld [vmem:[#allocation3 + $0x8a8] ss:$16 sps:$4 sm:$0xff]   ;;  %v12677_v15 = vld [vmem:[#allocation3 + $0x8c4] ss:$16 sps:$4 sm:$0xff]  }
 0x480   :  { %10022 = vmatprep.subr.bf16.mxu1 %v12602_v16  ;;  %9642 = vmatprep.subr.bf16.mxu0 %v12605_v17  ;;  %v12680_v16 = vld [vmem:[#allocation3 + $0x8cc] ss:$16 sps:$4 sm:$0xff]   ;;  %v12679_v17 = vld [vmem:[#allocation3 + $0x8c0] ss:$16 sps:$4 sm:$0xff]  }
 0x483   :  { %10024 = vmatpush1.bf16.msra.mxu1 %v12604_v18  ;;  %9644 = vmatpush1.bf16.msra.mxu0 %v12607_v19  ;;  %v12682_v18 = vld [vmem:[#allocation3 + $0x8c8] ss:$16 sps:$4 sm:$0xff]   ;;  %v12683_v19 = vld [vmem:[#allocation3 + $0x8e4] ss:$16 sps:$4 sm:$0xff]  }
 0x484   :  { %10026 = vmatprep.subr.bf16.mxu1 %v12608_v20  ;;  %9646 = vmatprep.subr.bf16.mxu0 %v12611_v21  ;;  %v12686_v20 = vld [vmem:[#allocation3 + $0x8ec] ss:$16 sps:$4 sm:$0xff]   ;;  %v12685_v21 = vld [vmem:[#allocation3 + $0x8e0] ss:$16 sps:$4 sm:$0xff]  }
 0x487   :  { %10028 = vmatpush1.bf16.msra.mxu1 %v12610_v22  ;;  %9648 = vmatpush1.bf16.msra.mxu0 %v12613_v23  ;;  %v12688_v22 = vld [vmem:[#allocation3 + $0x8e8] ss:$16 sps:$4 sm:$0xff]   ;;  %v12689_v23 = vld [vmem:[#allocation3 + $0x904] ss:$16 sps:$4 sm:$0xff]  }
 0x488   :  { %10030 = vmatprep.subr.bf16.mxu1 %v12614_v63  ;;  %9650 = vmatprep.subr.bf16.mxu0 %v12617_v24  ;;  %v12692_v63 = vld [vmem:[#allocation3 + $0x90c] ss:$16 sps:$4 sm:$0xff]   ;;  %v12691_v24 = vld [vmem:[#allocation3 + $0x900] ss:$16 sps:$4 sm:$0xff]  }
 0x48b   :  { %10032 = vmatpush1.bf16.msra.mxu1 %v12616_v8  ;;  %9652 = vmatpush1.bf16.msra.mxu0 %v12619_v25  ;;  %v12694_v8 = vld [vmem:[#allocation3 + $0x908] ss:$16 sps:$4 sm:$0xff]   ;;  %v12695_v25 = vld [vmem:[#allocation3 + $0x924] ss:$16 sps:$4 sm:$0xff]  }
 0x48c   :  { %10034 = vmatprep.subr.bf16.mxu1 %v12620_v26  ;;  %9654 = vmatprep.subr.bf16.mxu0 %v12623_v27  ;;  %v12698_v26 = vld [vmem:[#allocation3 + $0x92c] ss:$16 sps:$4 sm:$0xff]   ;;  %v12697_v27 = vld [vmem:[#allocation3 + $0x920] ss:$16 sps:$4 sm:$0xff]  }
 0x48f   :  { %10036 = vmatpush1.bf16.msra.mxu1 %v12622_v2  ;;  %9656 = vmatpush1.bf16.msra.mxu0 %v12625_v29  ;;  %v12700_v2 = vld [vmem:[#allocation3 + $0x928] ss:$16 sps:$4 sm:$0xff]   ;;  %v12701_v29 = vld [vmem:[#allocation3 + $0x944] ss:$16 sps:$4 sm:$0xff]  }
 0x490   :  { %10038 = vmatprep.subr.bf16.mxu1 %v12626_v14  ;;  %9658 = vmatprep.subr.bf16.mxu0 %v12629_v30  ;;  %v12704_v14 = vld [vmem:[#allocation3 + $0x94c] ss:$16 sps:$4 sm:$0xff]   ;;  %v12703_v30 = vld [vmem:[#allocation3 + $0x940] ss:$16 sps:$4 sm:$0xff]  }
 0x493   :  { %10040 = vmatpush1.bf16.msra.mxu1 %v12628_v31  ;;  %9660 = vmatpush1.bf16.msra.mxu0 %v12631_v32  ;;  %v12706_v31 = vld [vmem:[#allocation3 + $0x948] ss:$16 sps:$4 sm:$0xff]   ;;  %v12707_v32 = vld [vmem:[#allocation3 + $0x964] ss:$16 sps:$4 sm:$0xff]  }
 0x494   :  { %10042 = vmatprep.subr.bf16.mxu1 %v12632_v33  ;;  %9662 = vmatprep.subr.bf16.mxu0 %v12635_v34  ;;  %v12710_v33 = vld [vmem:[#allocation3 + $0x96c] ss:$16 sps:$4 sm:$0xff]   ;;  %v12709_v34 = vld [vmem:[#allocation3 + $0x960] ss:$16 sps:$4 sm:$0xff]  }
 0x497   :  { %10044 = vmatpush1.bf16.msra.mxu1 %v12634_v35  ;;  %9664 = vmatpush1.bf16.msra.mxu0 %v12637_v38  ;;  %v12712_v35 = vld [vmem:[#allocation3 + $0x968] ss:$16 sps:$4 sm:$0xff]   ;;  %v12713_v38 = vld [vmem:[#allocation3 + $0x984] ss:$16 sps:$4 sm:$0xff]  }
 0x498   :  { %10046 = vmatprep.subr.bf16.mxu1 %v12638_v39  ;;  %9666 = vmatprep.subr.bf16.mxu0 %v12641_v41  ;;  %v12716_v39 = vld [vmem:[#allocation3 + $0x98c] ss:$16 sps:$4 sm:$0xff]   ;;  %v12718_v41 = vld [vmem:[#allocation3 + $0x988] ss:$16 sps:$4 sm:$0xff]  }
 0x49b   :  { %10048 = vmatpush1.bf16.msra.mxu1 %v12640_v40  ;;  %v12715_v40 = vld [vmem:[#allocation3 + $0x980] ss:$16 sps:$4 sm:$0xff]  }
 0x49c   :  { %10050 = vmatprep.subr.bf16.mxu1 %v12644_v28  ;;  %v12719_v28 = vld [vmem:[#allocation3 + $0x9a4] ss:$16 sps:$4 sm:$0xff]  }
 0x52c   :  { %v1860_v44 = vpop.f32.mrb[6].mxu0 }
 0x52d   :  { %v1862_v50 = vpop.f32.mrb[7].mxu0 }
 0x52e   :  { %3260 = vmatprep.mubr.f32.mxu0 %v1862_v50  ;;  %3722 = vmatprep.mubr.f32.mxu1 %v1862_v50  ;;  %v12725_v50 = vld [vmem:[#allocation3 + $0x9c4] ss:$16 sps:$4 sm:$0xff]  }
 0x52f   :  { %3261 = vmatmul.mubr.f32.vlgmr.msra.gmra.mrb[18].mxu0 %v1860_v44  ;;  %3723 = vmatmul.mubr.f32.vlgmr.msra.gmra.mrb[34].mxu1 %v1860_v44  ;;  %v12722_v44 = vld [vmem:[#allocation3 + $0x9ac] ss:$16 sps:$4 sm:$0xff]  }
 0x530   :  { %9668 = vmatpush1.bf16.msra.mxu0 %v12643_v45  ;;  %10052 = vmatpush1.bf16.msra.mxu1 %v12646_v47  ;;  %v1866_v54 = vpop.f32.mrb[8].mxu0  ;;  %v14096_v43 = vpop.f32.mrb[22].mxu1  ;;  %v12721_v45 = vld [vmem:[#allocation3 + $0x9a0] ss:$16 sps:$4 sm:$0xff]   ;;  %v12724_v47 = vld [vmem:[#allocation3 + $0x9a8] ss:$16 sps:$4 sm:$0xff]  }
 0x531   :  { %9670 = vmatprep.subr.bf16.mxu0 %v12647_v36  ;;  %10054 = vmatprep.subr.bf16.mxu1 %v12650_v51  ;;  %v1868_v49 = vpop.f32.mrb[9].mxu0  ;;  %v1963_v56 = vpop.f32.mrb[23].mxu1  ;;  %v12728_v36 = vld [vmem:[#allocation3 + $0x9cc] ss:$16 sps:$4 sm:$0xff]   ;;  %v12727_v51 = vld [vmem:[#allocation3 + $0x9c0] ss:$16 sps:$4 sm:$0xff]  }
 0x532   :  { %3266 = vmatprep.mubr.f32.mxu0 %v1868_v49  ;;  %3728 = vmatprep.mubr.f32.mxu1 %v1868_v49  ;;  %v12733_v49 = vld [vmem:[#allocation3 + $0x9e0] ss:$16 sps:$4 sm:$0xff]  }
 0x533   :  { %3267 = vmatmul.mubr.f32.gmra.mrb[20].mxu0 %v1866_v54  ;;  %3729 = vmatmul.mubr.f32.gmra.mrb[36].mxu1 %v1866_v54  ;;  %v12731_v54 = vld [vmem:[#allocation3 + $0x9e4] ss:$16 sps:$4 sm:$0xff]  }
 0x534   :  { %9672 = vmatpush1.bf16.msra.mxu0 %v12649_v52  ;;  %10056 = vmatpush1.bf16.msra.mxu1 %v12652_v53  ;;  %v14098_v48 = vpop.f32.mrb[24].mxu1  ;;  %v14100_v59 = vpop.f32.mrb[10].mxu0  ;;  %v12730_v52 = vld [vmem:[#allocation3 + $0x9c8] ss:$16 sps:$4 sm:$0xff]  }
 0x535   :  { %9674 = vmatprep.subr.bf16.mxu0 %v12653_v55  ;;  %10058 = vmatprep.subr.bf16.mxu1 %v12656_v42  ;;  %v14102_v7 = vpop.f32.mrb[25].mxu1  ;;  %v14104_v61 = vpop.f32.mrb[11].mxu0  ;;  %v12734_v55 = vld [vmem:[#allocation3 + $0x9ec] ss:$16 sps:$4 sm:$0xff]  }
 0x536   :  { %3337 = vmatprep.mubr.f32.mxu0 %v1963_v56  ;;  %3799 = vmatprep.mubr.f32.mxu1 %v1963_v56  ;;  %v12736_v56 = vld [vmem:[#allocation3 + $0x9e8] ss:$16 sps:$4 sm:$0xff]  }
 0x538   :  { %9676 = vmatpush1.bf16.msra.mxu0 %v12655_v57  ;;  %10060 = vmatpush1.bf16.msra.mxu1 %v12658_v58  ;;  %v14106_v53 = vpop.f32.mrb[12].mxu0  ;;  %v12737_v57 = vld [vmem:[#allocation3 + $0xa04] ss:$16 sps:$4 sm:$0xff]   ;;  %v12740_v58 = vld [vmem:[#allocation3 + $0xa0c] ss:$16 sps:$4 sm:$0xff]  }
 0x539   :  { %9678 = vmatprep.subr.bf16.mxu0 %v12659_v60  ;;  %10062 = vmatprep.subr.bf16.mxu1 %v12662_v62  ;;  %v14108_v42 = vpop.f32.mrb[13].mxu0  ;;  %v14110_v60 = vpop.f32.mrb[26].mxu1  ;;  %v12739_v62 = vld [vmem:[#allocation3 + $0xa00] ss:$16 sps:$4 sm:$0xff]  }
 0x53c   :  { %9680 = vmatpush1.bf16.msra.mxu0 %v12661_v3  ;;  %10064 = vmatpush1.bf16.msra.mxu1 %v12664_v1  ;;  %v12742_v3 = vld [vmem:[#allocation3 + $0xa08] ss:$16 sps:$4 sm:$0xff]   ;;  %v14112_v1 = vpop.f32.mrb[27].mxu1 }
 0x53d   :  { %9682 = vmatprep.subr.bf16.mxu0 %v12665_v13  ;;  %10066 = vmatprep.subr.bf16.mxu1 %v12668_v4  ;;  %v12743_v13 = vld [vmem:[#allocation3 + $0xa24] ss:$16 sps:$4 sm:$0xff]   ;;  %v12746_v4 = vld [vmem:[#allocation3 + $0xa2c] ss:$16 sps:$4 sm:$0xff]  }
 0x540   :  { %9684 = vmatpush1.bf16.msra.mxu0 %v12667_v5  ;;  %10068 = vmatpush1.bf16.msra.mxu1 %v12670_v6  ;;  %v12745_v5 = vld [vmem:[#allocation3 + $0xa20] ss:$16 sps:$4 sm:$0xff]   ;;  %v12748_v6 = vld [vmem:[#allocation3 + $0xa28] ss:$16 sps:$4 sm:$0xff]  }
 0x541   :  { %9686 = vmatprep.subr.bf16.mxu0 %v12671_v9  ;;  %10070 = vmatprep.subr.bf16.mxu1 %v12674_v10  ;;  %v12749_v9 = vld [vmem:[#allocation3 + $0xa44] ss:$16 sps:$4 sm:$0xff]   ;;  %v12752_v10 = vld [vmem:[#allocation3 + $0xa4c] ss:$16 sps:$4 sm:$0xff]  }
 0x544   :  { %9688 = vmatpush1.bf16.msra.mxu0 %v12673_v11  ;;  %10072 = vmatpush1.bf16.msra.mxu1 %v12676_v12  ;;  %v12751_v11 = vld [vmem:[#allocation3 + $0xa40] ss:$16 sps:$4 sm:$0xff]   ;;  %v14120_v12 = vpop.f32.mrb[28].mxu1 }
 0x545   :  { %9690 = vmatprep.subr.bf16.mxu0 %v12677_v15  ;;  %10074 = vmatprep.subr.bf16.mxu1 %v12680_v16  ;;  %v12755_v15 = vld [vmem:[#allocation3 + $0xa64] ss:$16 sps:$4 sm:$0xff]   ;;  %v12758_v16 = vld [vmem:[#allocation3 + $0xa6c] ss:$16 sps:$4 sm:$0xff]  }
 0x548   :  { %9692 = vmatpush1.bf16.msra.mxu0 %v12679_v17  ;;  %10076 = vmatpush1.bf16.msra.mxu1 %v12682_v18  ;;  %v14122_v17 = vpop.f32.mrb[29].mxu1  ;;  %v14126_v18 = vpop.f32.mrb[14].mxu0 }
 0x549   :  { %9694 = vmatprep.subr.bf16.mxu0 %v12683_v19  ;;  %10078 = vmatprep.subr.bf16.mxu1 %v12686_v20  ;;  %v14128_v19 = vpop.f32.mrb[30].mxu1  ;;  %v12761_v20 = vld [vmem:[#allocation3 + $0xa84] ss:$16 sps:$4 sm:$0xff]  }
 0x54c   :  { %9696 = vmatpush1.bf16.msra.mxu0 %v12685_v21  ;;  %10080 = vmatpush1.bf16.msra.mxu1 %v12688_v22  ;;  %v12764_v21 = vld [vmem:[#allocation3 + $0xa8c] ss:$16 sps:$4 sm:$0xff]   ;;  %v14130_v22 = vpop.f32.mrb[15].mxu0 }
 0x54d   :  { %9698 = vmatprep.subr.bf16.mxu0 %v12689_v23  ;;  %10082 = vmatprep.subr.bf16.mxu1 %v12692_v63  ;;  %v14132_v23 = vpop.f32.mrb[31].mxu1  ;;  %v12763_v63 = vld [vmem:[#allocation3 + $0xa80] ss:$16 sps:$4 sm:$0xff]  }
 0x550   :  { %9700 = vmatpush1.bf16.msra.mxu0 %v12691_v24  ;;  %10084 = vmatpush1.bf16.msra.mxu1 %v12694_v8  ;;  %v14134_v24 = vpop.f32.mrb[16].mxu0  ;;  %v14136_v8 = vpop.f32.mrb[32].mxu1 }
 0x551   :  { %9702 = vmatprep.subr.bf16.mxu0 %v12695_v25  ;;  %10086 = vmatprep.subr.bf16.mxu1 %v12698_v26  ;;  %v12767_v25 = vld [vmem:[#allocation3 + $0xaa4] ss:$16 sps:$4 sm:$0xff]   ;;  %v12770_v26 = vld [vmem:[#allocation3 + $0xaac] ss:$16 sps:$4 sm:$0xff]  }
 0x554   :  { %9704 = vmatpush1.bf16.msra.mxu0 %v12697_v27  ;;  %10088 = vmatpush1.bf16.msra.mxu1 %v12700_v2  ;;  %v14138_v27 = vpop.f32.mrb[17].mxu0  ;;  %v14140_v2 = vpop.f32.mrb[33].mxu1 }
 0x555   :  { %9706 = vmatprep.subr.bf16.mxu0 %v12701_v29  ;;  %10090 = vmatprep.subr.bf16.mxu1 %v12704_v14  ;;  %v12769_v29 = vld [vmem:[#allocation3 + $0xaa0] ss:$16 sps:$4 sm:$0xff]   ;;  %v12772_v14 = vld [vmem:[#allocation3 + $0xaa8] ss:$16 sps:$4 sm:$0xff]  }
 0x558   :  { %9708 = vmatpush1.bf16.msra.mxu0 %v12703_v30  ;;  %10092 = vmatpush1.bf16.msra.mxu1 %v12706_v31  ;;  %v12773_v30 = vld [vmem:[#allocation3 + $0xac4] ss:$16 sps:$4 sm:$0xff]   ;;  %v12776_v31 = vld [vmem:[#allocation3 + $0xacc] ss:$16 sps:$4 sm:$0xff]  }
 0x559   :  { %9710 = vmatprep.subr.bf16.mxu0 %v12707_v32  ;;  %10094 = vmatprep.subr.bf16.mxu1 %v12710_v33  ;;  %v12775_v32 = vld [vmem:[#allocation3 + $0xac0] ss:$16 sps:$4 sm:$0xff]   ;;  %v12778_v33 = vld [vmem:[#allocation3 + $0xac8] ss:$16 sps:$4 sm:$0xff]  }
 0x55c   :  { %9712 = vmatpush1.bf16.msra.mxu0 %v12709_v34  ;;  %10096 = vmatpush1.bf16.msra.mxu1 %v12712_v35  ;;  %v12779_v34 = vld [vmem:[#allocation3 + $0xae4] ss:$16 sps:$4 sm:$0xff]   ;;  %v12782_v35 = vld [vmem:[#allocation3 + $0xaec] ss:$16 sps:$4 sm:$0xff]  }
 0x55d   :  { %9714 = vmatprep.subr.bf16.mxu0 %v12713_v38  ;;  %10098 = vmatprep.subr.bf16.mxu1 %v12716_v39  ;;  %v12781_v38 = vld [vmem:[#allocation3 + $0xae0] ss:$16 sps:$4 sm:$0xff]   ;;  %v12784_v39 = vld [vmem:[#allocation3 + $0xae8] ss:$16 sps:$4 sm:$0xff]  }
 0x560   :  { %9716 = vmatpush1.bf16.msra.mxu0 %v12715_v40  ;;  %10100 = vmatpush1.bf16.msra.mxu1 %v12718_v41  ;;  %v12785_v40 = vld [vmem:[#allocation3 + $0xb04] ss:$16 sps:$4 sm:$0xff]   ;;  %v12788_v41 = vld [vmem:[#allocation3 + $0xb0c] ss:$16 sps:$4 sm:$0xff]  }
 0x561   :  { %9718 = vmatprep.subr.bf16.mxu0 %v12719_v28  ;;  %10102 = vmatprep.subr.bf16.mxu1 %v12722_v44  ;;  %v12787_v28 = vld [vmem:[#allocation3 + $0xb00] ss:$16 sps:$4 sm:$0xff]   ;;  %v12790_v44 = vld [vmem:[#allocation3 + $0xb08] ss:$16 sps:$4 sm:$0xff]  }
 0x564   :  { %9720 = vmatpush1.bf16.msra.mxu0 %v12721_v45  ;;  %10104 = vmatpush1.bf16.msra.mxu1 %v12724_v47  ;;  %v12791_v45 = vld [vmem:[#allocation3 + $0xb24] ss:$16 sps:$4 sm:$0xff]   ;;  %v12794_v47 = vld [vmem:[#allocation3 + $0xb2c] ss:$16 sps:$4 sm:$0xff]  }
 0x565   :  { %9722 = vmatprep.subr.bf16.mxu0 %v12725_v50  ;;  %10106 = vmatprep.subr.bf16.mxu1 %v12728_v36  ;;  %v12793_v50 = vld [vmem:[#allocation3 + $0xb20] ss:$16 sps:$4 sm:$0xff]   ;;  %v12796_v36 = vld [vmem:[#allocation3 + $0xb28] ss:$16 sps:$4 sm:$0xff]  }
 0x568   :  { %9724 = vmatpush1.bf16.msra.mxu0 %v12727_v51  ;;  %10108 = vmatpush1.bf16.msra.mxu1 %v12730_v52  ;;  %v12797_v51 = vld [vmem:[#allocation3 + $0xb44] ss:$16 sps:$4 sm:$0xff]   ;;  %v12800_v52 = vld [vmem:[#allocation3 + $0xb4c] ss:$16 sps:$4 sm:$0xff]  }
 0x569   :  { %9726 = vmatprep.subr.bf16.mxu0 %v12731_v54  ;;  %10110 = vmatprep.subr.bf16.mxu1 %v12734_v55  ;;  %v12799_v54 = vld [vmem:[#allocation3 + $0xb40] ss:$16 sps:$4 sm:$0xff]   ;;  %v12802_v55 = vld [vmem:[#allocation3 + $0xb48] ss:$16 sps:$4 sm:$0xff]  }
 0x56c   :  { %9728 = vmatpush1.bf16.msra.mxu0 %v12733_v49  ;;  %10112 = vmatpush1.bf16.msra.mxu1 %v12736_v56  ;;  %v12803_v49 = vld [vmem:[#allocation3 + $0xb64] ss:$16 sps:$4 sm:$0xff]   ;;  %v12806_v56 = vld [vmem:[#allocation3 + $0xb6c] ss:$16 sps:$4 sm:$0xff]  }
 0x56d   :  { %9730 = vmatprep.subr.bf16.mxu0 %v12737_v57  ;;  %10114 = vmatprep.subr.bf16.mxu1 %v12740_v58  ;;  %v12805_v57 = vld [vmem:[#allocation3 + $0xb60] ss:$16 sps:$4 sm:$0xff]   ;;  %v12808_v58 = vld [vmem:[#allocation3 + $0xb68] ss:$16 sps:$4 sm:$0xff]  }
 0x56f   :  { %3338 = vmatmul.mubr.f32.vlgmr.msra.gmra.mrb[18].mxu0 %v14096_v43  ;;  %3800 = vmatmul.mubr.f32.vlgmr.msra.gmra.mrb[34].mxu1 %v14096_v43  ;;  %v12754_v43 = vld [vmem:[#allocation3 + $0xa48] ss:$16 sps:$4 sm:$0xff]  }
 0x570   :  { %9732 = vmatpush1.bf16.msra.mxu0 %v12739_v62  ;;  %10116 = vmatpush1.bf16.msra.mxu1 %v12742_v3  ;;  %v12809_v62 = vld [vmem:[#allocation3 + $0xb84] ss:$16 sps:$4 sm:$0xff]   ;;  %v12812_v3 = vld [vmem:[#allocation3 + $0xb8c] ss:$16 sps:$4 sm:$0xff]  }
 0x571   :  { %9734 = vmatprep.subr.bf16.mxu0 %v12743_v13  ;;  %10118 = vmatprep.subr.bf16.mxu1 %v12746_v4  ;;  %v12811_v13 = vld [vmem:[#allocation3 + $0xb80] ss:$16 sps:$4 sm:$0xff]   ;;  %v12814_v4 = vld [vmem:[#allocation3 + $0xb88] ss:$16 sps:$4 sm:$0xff]  }
 0x572   :  { %3343 = vmatprep.mubr.f32.mxu0 %v14102_v7  ;;  %3805 = vmatprep.mubr.f32.mxu1 %v14102_v7  ;;  %v12757_v7 = vld [vmem:[#allocation3 + $0xa60] ss:$16 sps:$4 sm:$0xff]  }
 0x573   :  { %3344 = vmatmul.mubr.f32.gmra.mrb[20].mxu0 %v14098_v48  ;;  %3806 = vmatmul.mubr.f32.gmra.mrb[36].mxu1 %v14098_v48  ;;  %v12760_v48 = vld [vmem:[#allocation3 + $0xa68] ss:$16 sps:$4 sm:$0xff]  }
 0x574   :  { %9736 = vmatpush1.bf16.msra.mxu0 %v12745_v5  ;;  %10120 = vmatpush1.bf16.msra.mxu1 %v12748_v6  ;;  %v12815_v5 = vld [vmem:[#allocation3 + $0xba4] ss:$16 sps:$4 sm:$0xff]   ;;  %v12818_v6 = vld [vmem:[#allocation3 + $0xbac] ss:$16 sps:$4 sm:$0xff]  }
 0x575   :  { %9738 = vmatprep.subr.bf16.mxu0 %v12749_v9  ;;  %10122 = vmatprep.subr.bf16.mxu1 %v12752_v10  ;;  %v12817_v9 = vld [vmem:[#allocation3 + $0xba0] ss:$16 sps:$4 sm:$0xff]   ;;  %v12820_v10 = vld [vmem:[#allocation3 + $0xba8] ss:$16 sps:$4 sm:$0xff]  }
 0x576   :  { %3414 = vmatprep.mubr.f32.mxu0 %v14104_v61  ;;  %3876 = vmatprep.mubr.f32.mxu1 %v14104_v61  ;;  %v12766_v61 = vld [vmem:[#allocation3 + $0xa88] ss:$16 sps:$4 sm:$0xff]  }
 0x578   :  { %9740 = vmatpush1.bf16.msra.mxu0 %v12751_v11  ;;  %10124 = vmatpush1.bf16.msra.mxu1 %v12754_v43  ;;  %v12821_v11 = vld [vmem:[#allocation3 + $0xbc4] ss:$16 sps:$4 sm:$0xff]   ;;  %v12824_v43 = vld [vmem:[#allocation3 + $0xbcc] ss:$16 sps:$4 sm:$0xff]  }
 0x579   :  { %9742 = vmatprep.subr.bf16.mxu0 %v12755_v15  ;;  %10126 = vmatprep.subr.bf16.mxu1 %v12758_v16  ;;  %v12823_v15 = vld [vmem:[#allocation3 + $0xbc0] ss:$16 sps:$4 sm:$0xff]   ;;  %v12826_v16 = vld [vmem:[#allocation3 + $0xbc8] ss:$16 sps:$4 sm:$0xff]  }
 0x57c   :  { %9744 = vmatpush1.bf16.msra.mxu0 %v12757_v7  ;;  %10128 = vmatpush1.bf16.msra.mxu1 %v12760_v48  ;;  %v12827_v7 = vld [vmem:[#allocation3 + $0xbe4] ss:$16 sps:$4 sm:$0xff]   ;;  %v12830_v48 = vld [vmem:[#allocation3 + $0xbec] ss:$16 sps:$4 sm:$0xff]  }
 0x57d   :  { %9746 = vmatprep.subr.bf16.mxu0 %v12761_v20  ;;  %10130 = vmatprep.subr.bf16.mxu1 %v12764_v21  ;;  %v12829_v20 = vld [vmem:[#allocation3 + $0xbe0] ss:$16 sps:$4 sm:$0xff]   ;;  %v12832_v21 = vld [vmem:[#allocation3 + $0xbe8] ss:$16 sps:$4 sm:$0xff]  }
 0x580   :  { %9748 = vmatpush1.bf16.msra.mxu0 %v12763_v63  ;;  %10132 = vmatpush1.bf16.msra.mxu1 %v12766_v61  ;;  %v12833_v63 = vld [vmem:[#allocation3 + $0xc04] ss:$16 sps:$4 sm:$0xff]   ;;  %v12836_v61 = vld [vmem:[#allocation3 + $0xc0c] ss:$16 sps:$4 sm:$0xff]  }
 0x581   :  { %9750 = vmatprep.subr.bf16.mxu0 %v12767_v25  ;;  %10134 = vmatprep.subr.bf16.mxu1 %v12770_v26  ;;  %v12835_v25 = vld [vmem:[#allocation3 + $0xc00] ss:$16 sps:$4 sm:$0xff]   ;;  %v12838_v26 = vld [vmem:[#allocation3 + $0xc08] ss:$16 sps:$4 sm:$0xff]  }
 0x584   :  { %9752 = vmatpush1.bf16.msra.mxu0 %v12769_v29  ;;  %10136 = vmatpush1.bf16.msra.mxu1 %v12772_v14  ;;  %v12839_v29 = vld [vmem:[#allocation3 + $0xc24] ss:$16 sps:$4 sm:$0xff]   ;;  %v12842_v14 = vld [vmem:[#allocation3 + $0xc2c] ss:$16 sps:$4 sm:$0xff]  }
 0x585   :  { %9754 = vmatprep.subr.bf16.mxu0 %v12773_v30  ;;  %10138 = vmatprep.subr.bf16.mxu1 %v12776_v31  ;;  %v12841_v30 = vld [vmem:[#allocation3 + $0xc20] ss:$16 sps:$4 sm:$0xff]   ;;  %v12844_v31 = vld [vmem:[#allocation3 + $0xc28] ss:$16 sps:$4 sm:$0xff]  }
 0x588   :  { %9756 = vmatpush1.bf16.msra.mxu0 %v12775_v32  ;;  %10140 = vmatpush1.bf16.msra.mxu1 %v12778_v33  ;;  %v12845_v32 = vld [vmem:[#allocation3 + $0xc44] ss:$16 sps:$4 sm:$0xff]   ;;  %v12848_v33 = vld [vmem:[#allocation3 + $0xc4c] ss:$16 sps:$4 sm:$0xff]  }
 0x589   :  { %9758 = vmatprep.subr.bf16.mxu0 %v12779_v34  ;;  %10142 = vmatprep.subr.bf16.mxu1 %v12782_v35  ;;  %v12847_v34 = vld [vmem:[#allocation3 + $0xc40] ss:$16 sps:$4 sm:$0xff]   ;;  %v12851_v35 = vld [vmem:[#allocation3 + $0xc64] ss:$16 sps:$4 sm:$0xff]  }
 0x58c   :  { %9760 = vmatpush1.bf16.msra.mxu0 %v12781_v38  ;;  %10144 = vmatpush1.bf16.msra.mxu1 %v12784_v39  ;;  %v12854_v38 = vld [vmem:[#allocation3 + $0xc6c] ss:$16 sps:$4 sm:$0xff]   ;;  %v12853_v39 = vld [vmem:[#allocation3 + $0xc60] ss:$16 sps:$4 sm:$0xff]  }
 0x58d   :  { %9762 = vmatprep.subr.bf16.mxu0 %v12785_v40  ;;  %10146 = vmatprep.subr.bf16.mxu1 %v12788_v41  ;;  %v12857_v40 = vld [vmem:[#allocation3 + $0xc84] ss:$16 sps:$4 sm:$0xff]   ;;  %v12859_v41 = vld [vmem:[#allocation3 + $0xc80] ss:$16 sps:$4 sm:$0xff]  }
 0x590   :  { %9764 = vmatpush1.bf16.msra.mxu0 %v12787_v28  ;;  %10148 = vmatpush1.bf16.msra.mxu1 %v12790_v44  ;;  %v12862_v28 = vld [vmem:[#allocation3 + $0xc88] ss:$16 sps:$4 sm:$0xff]   ;;  %v12863_v44 = vld [vmem:[#allocation3 + $0xca4] ss:$16 sps:$4 sm:$0xff]  }
 0x591   :  { %9766 = vmatprep.subr.bf16.mxu0 %v12791_v45  ;;  %10150 = vmatprep.subr.bf16.mxu1 %v12794_v47  ;;  %v12866_v45 = vld [vmem:[#allocation3 + $0xcac] ss:$16 sps:$4 sm:$0xff]   ;;  %v12865_v47 = vld [vmem:[#allocation3 + $0xca0] ss:$16 sps:$4 sm:$0xff]  }
 0x594   :  { %9768 = vmatpush1.bf16.msra.mxu0 %v12793_v50  ;;  %10152 = vmatpush1.bf16.msra.mxu1 %v12796_v36  ;;  %v12869_v50 = vld [vmem:[#allocation3 + $0xcc4] ss:$16 sps:$4 sm:$0xff]   ;;  %v12872_v36 = vld [vmem:[#allocation3 + $0xccc] ss:$16 sps:$4 sm:$0xff]  }
 0x595   :  { %9770 = vmatprep.subr.bf16.mxu0 %v12797_v51  ;;  %10154 = vmatprep.subr.bf16.mxu1 %v12800_v52  ;;  %v12871_v51 = vld [vmem:[#allocation3 + $0xcc0] ss:$16 sps:$4 sm:$0xff]   ;;  %v12874_v52 = vld [vmem:[#allocation3 + $0xcc8] ss:$16 sps:$4 sm:$0xff]  }
 0x598   :  { %9772 = vmatpush1.bf16.msra.mxu0 %v12799_v54  ;;  %10156 = vmatpush1.bf16.msra.mxu1 %v12802_v55  ;;  %v12875_v54 = vld [vmem:[#allocation3 + $0xce4] ss:$16 sps:$4 sm:$0xff]   ;;  %v12878_v55 = vld [vmem:[#allocation3 + $0xcec] ss:$16 sps:$4 sm:$0xff]  }
 0x599   :  { %9774 = vmatprep.subr.bf16.mxu0 %v12803_v49  ;;  %10158 = vmatprep.subr.bf16.mxu1 %v12806_v56  ;;  %v12877_v49 = vld [vmem:[#allocation3 + $0xce0] ss:$16 sps:$4 sm:$0xff]   ;;  %v12880_v56 = vld [vmem:[#allocation3 + $0xce8] ss:$16 sps:$4 sm:$0xff]  }
 0x59c   :  { %9776 = vmatpush1.bf16.msra.mxu0 %v12805_v57  ;;  %10160 = vmatpush1.bf16.msra.mxu1 %v12808_v58  ;;  %v12881_v57 = vld [vmem:[#allocation3 + $0xd04] ss:$16 sps:$4 sm:$0xff]   ;;  %v12884_v58 = vld [vmem:[#allocation3 + $0xd0c] ss:$16 sps:$4 sm:$0xff]  }
 0x59d   :  { %9778 = vmatprep.subr.bf16.mxu0 %v12809_v62  ;;  %10162 = vmatprep.subr.bf16.mxu1 %v12812_v3  ;;  %v12883_v62 = vld [vmem:[#allocation3 + $0xd00] ss:$16 sps:$4 sm:$0xff]   ;;  %v12886_v3 = vld [vmem:[#allocation3 + $0xd08] ss:$16 sps:$4 sm:$0xff]  }
 0x5a0   :  { %9780 = vmatpush1.bf16.msra.mxu0 %v12811_v13  ;;  %10164 = vmatpush1.bf16.msra.mxu1 %v12814_v4  ;;  %v12887_v13 = vld [vmem:[#allocation3 + $0xd24] ss:$16 sps:$4 sm:$0xff]   ;;  %v12890_v4 = vld [vmem:[#allocation3 + $0xd2c] ss:$16 sps:$4 sm:$0xff]  }
 0x5a1   :  { %9782 = vmatprep.subr.bf16.mxu0 %v12815_v5  ;;  %10166 = vmatprep.subr.bf16.mxu1 %v12818_v6  ;;  %v12889_v5 = vld [vmem:[#allocation3 + $0xd20] ss:$16 sps:$4 sm:$0xff]   ;;  %v12892_v6 = vld [vmem:[#allocation3 + $0xd28] ss:$16 sps:$4 sm:$0xff]  }
 0x5a4   :  { %9784 = vmatpush1.bf16.msra.mxu0 %v12817_v9  ;;  %10168 = vmatpush1.bf16.msra.mxu1 %v12820_v10  ;;  %v12893_v9 = vld [vmem:[#allocation3 + $0xd44] ss:$16 sps:$4 sm:$0xff]   ;;  %v12896_v10 = vld [vmem:[#allocation3 + $0xd4c] ss:$16 sps:$4 sm:$0xff]  }
 0x5a5   :  { %9786 = vmatprep.subr.bf16.mxu0 %v12821_v11  ;;  %10170 = vmatprep.subr.bf16.mxu1 %v12824_v43  ;;  %v12895_v11 = vld [vmem:[#allocation3 + $0xd40] ss:$16 sps:$4 sm:$0xff]   ;;  %v12898_v43 = vld [vmem:[#allocation3 + $0xd48] ss:$16 sps:$4 sm:$0xff]  }
 0x5a8   :  { %9788 = vmatpush1.bf16.msra.mxu0 %v12823_v15  ;;  %10172 = vmatpush1.bf16.msra.mxu1 %v12826_v16  ;;  %v12899_v15 = vld [vmem:[#allocation3 + $0xd64] ss:$16 sps:$4 sm:$0xff]   ;;  %v12902_v16 = vld [vmem:[#allocation3 + $0xd6c] ss:$16 sps:$4 sm:$0xff]  }
 0x5a9   :  { %9790 = vmatprep.subr.bf16.mxu0 %v12827_v7  ;;  %10174 = vmatprep.subr.bf16.mxu1 %v12830_v48  ;;  %v12901_v7 = vld [vmem:[#allocation3 + $0xd60] ss:$16 sps:$4 sm:$0xff]   ;;  %v12904_v48 = vld [vmem:[#allocation3 + $0xd68] ss:$16 sps:$4 sm:$0xff]  }
 0x5ac   :  { %9792 = vmatpush1.bf16.msra.mxu0 %v12829_v20  ;;  %10176 = vmatpush1.bf16.msra.mxu1 %v12832_v21  ;;  %v12905_v20 = vld [vmem:[#allocation3 + $0xd84] ss:$16 sps:$4 sm:$0xff]   ;;  %v12908_v21 = vld [vmem:[#allocation3 + $0xd8c] ss:$16 sps:$4 sm:$0xff]  }
 0x5ad   :  { %9794 = vmatprep.subr.bf16.mxu0 %v12833_v63  ;;  %10178 = vmatprep.subr.bf16.mxu1 %v12836_v61  ;;  %v12907_v63 = vld [vmem:[#allocation3 + $0xd80] ss:$16 sps:$4 sm:$0xff]   ;;  %v12910_v61 = vld [vmem:[#allocation3 + $0xd88] ss:$16 sps:$4 sm:$0xff]  }
 0x5af   :  { %3415 = vmatmul.mubr.f32.vlgmr.msra.gmra.mrb[18].mxu0 %v14100_v59  ;;  %3877 = vmatmul.mubr.f32.vlgmr.msra.gmra.mrb[34].mxu1 %v14100_v59  ;;  %v12850_v59 = vld [vmem:[#allocation3 + $0xc48] ss:$16 sps:$4 sm:$0xff]  }
 0x5b0   :  { %9796 = vmatpush1.bf16.msra.mxu0 %v12835_v25  ;;  %10180 = vmatpush1.bf16.msra.mxu1 %v12838_v26  ;;  %v12911_v25 = vld [vmem:[#allocation3 + $0xda4] ss:$16 sps:$4 sm:$0xff]   ;;  %v12914_v26 = vld [vmem:[#allocation3 + $0xdac] ss:$16 sps:$4 sm:$0xff]  }
 0x5b1   :  { %9798 = vmatprep.subr.bf16.mxu0 %v12839_v29  ;;  %10182 = vmatprep.subr.bf16.mxu1 %v12842_v14  ;;  %v12913_v29 = vld [vmem:[#allocation3 + $0xda0] ss:$16 sps:$4 sm:$0xff]   ;;  %v12916_v14 = vld [vmem:[#allocation3 + $0xda8] ss:$16 sps:$4 sm:$0xff]  }
 0x5b2   :  { %3420 = vmatprep.mubr.f32.mxu0 %v14108_v42  ;;  %3882 = vmatprep.mubr.f32.mxu1 %v14108_v42  ;;  %v12856_v42 = vld [vmem:[#allocation3 + $0xc68] ss:$16 sps:$4 sm:$0xff]  }
 0x5b3   :  { %3421 = vmatmul.mubr.f32.gmra.mrb[20].mxu0 %v14106_v53  ;;  %3883 = vmatmul.mubr.f32.gmra.mrb[36].mxu1 %v14106_v53  ;;  %v12860_v53 = vld [vmem:[#allocation3 + $0xc8c] ss:$16 sps:$4 sm:$0xff]  }
 0x5b4   :  { %9800 = vmatpush1.bf16.msra.mxu0 %v12841_v30  ;;  %10184 = vmatpush1.bf16.msra.mxu1 %v12844_v31  ;;  %v12917_v30 = vld [vmem:[#allocation3 + $0xdc4] ss:$16 sps:$4 sm:$0xff]   ;;  %v12920_v31 = vld [vmem:[#allocation3 + $0xdcc] ss:$16 sps:$4 sm:$0xff]  }
 0x5b5   :  { %9802 = vmatprep.subr.bf16.mxu0 %v12845_v32  ;;  %10186 = vmatprep.subr.bf16.mxu1 %v12848_v33  ;;  %v12919_v32 = vld [vmem:[#allocation3 + $0xdc0] ss:$16 sps:$4 sm:$0xff]   ;;  %v12922_v33 = vld [vmem:[#allocation3 + $0xdc8] ss:$16 sps:$4 sm:$0xff]  }
 0x5b6   :  { %3491 = vmatprep.mubr.f32.mxu0 %v14112_v1  ;;  %3953 = vmatprep.mubr.f32.mxu1 %v14112_v1  ;;  %v12868_v1 = vld [vmem:[#allocation3 + $0xca8] ss:$16 sps:$4 sm:$0xff]  }
 0x5b8   :  { %9804 = vmatpush1.bf16.msra.mxu0 %v12847_v34  ;;  %10188 = vmatpush1.bf16.msra.mxu1 %v12850_v59  ;;  %v12923_v34 = vld [vmem:[#allocation3 + $0xde4] ss:$16 sps:$4 sm:$0xff]   ;;  %v12926_v59 = vld [vmem:[#allocation3 + $0xdec] ss:$16 sps:$4 sm:$0xff]  }
 0x5b9   :  { %9806 = vmatprep.subr.bf16.mxu0 %v12851_v35  ;;  %10190 = vmatprep.subr.bf16.mxu1 %v12854_v38  ;;  %v12925_v35 = vld [vmem:[#allocation3 + $0xde0] ss:$16 sps:$4 sm:$0xff]   ;;  %v12928_v38 = vld [vmem:[#allocation3 + $0xde8] ss:$16 sps:$4 sm:$0xff]  }
 0x5bc   :  { %9808 = vmatpush1.bf16.msra.mxu0 %v12853_v39  ;;  %10192 = vmatpush1.bf16.msra.mxu1 %v12856_v42  ;;  %v12929_v39 = vld [vmem:[#allocation3 + $0xe04] ss:$16 sps:$4 sm:$0xff]   ;;  %v12932_v42 = vld [vmem:[#allocation3 + $0xe0c] ss:$16 sps:$4 sm:$0xff]  }
 0x5bd   :  { %9810 = vmatprep.subr.bf16.mxu0 %v12857_v40  ;;  %10194 = vmatprep.subr.bf16.mxu1 %v12860_v53  ;;  %v12931_v40 = vld [vmem:[#allocation3 + $0xe00] ss:$16 sps:$4 sm:$0xff]   ;;  %v12934_v53 = vld [vmem:[#allocation3 + $0xe08] ss:$16 sps:$4 sm:$0xff]  }
 0x5c0   :  { %9812 = vmatpush1.bf16.msra.mxu0 %v12859_v41  ;;  %10196 = vmatpush1.bf16.msra.mxu1 %v12862_v28  ;;  %v12935_v41 = vld [vmem:[#allocation3 + $0xe24] ss:$16 sps:$4 sm:$0xff]   ;;  %v12938_v28 = vld [vmem:[#allocation3 + $0xe2c] ss:$16 sps:$4 sm:$0xff]  }
 0x5c1   :  { %9814 = vmatprep.subr.bf16.mxu0 %v12863_v44  ;;  %10198 = vmatprep.subr.bf16.mxu1 %v12866_v45  ;;  %v12937_v44 = vld [vmem:[#allocation3 + $0xe20] ss:$16 sps:$4 sm:$0xff]   ;;  %v12940_v45 = vld [vmem:[#allocation3 + $0xe28] ss:$16 sps:$4 sm:$0xff]  }
 0x5c4   :  { %9816 = vmatpush1.bf16.msra.mxu0 %v12865_v47  ;;  %10200 = vmatpush1.bf16.msra.mxu1 %v12868_v1  ;;  %v12941_v47 = vld [vmem:[#allocation3 + $0xe44] ss:$16 sps:$4 sm:$0xff]   ;;  %v12944_v1 = vld [vmem:[#allocation3 + $0xe4c] ss:$16 sps:$4 sm:$0xff]  }
 0x5c5   :  { %9818 = vmatprep.subr.bf16.mxu0 %v12869_v50  ;;  %10202 = vmatprep.subr.bf16.mxu1 %v12872_v36  ;;  %v12943_v50 = vld [vmem:[#allocation3 + $0xe40] ss:$16 sps:$4 sm:$0xff]   ;;  %v12947_v36 = vld [vmem:[#allocation3 + $0xe64] ss:$16 sps:$4 sm:$0xff]  }
 0x5c8   :  { %9820 = vmatpush1.bf16.msra.mxu0 %v12871_v51  ;;  %10204 = vmatpush1.bf16.msra.mxu1 %v12874_v52  ;;  %v12950_v51 = vld [vmem:[#allocation3 + $0xe6c] ss:$16 sps:$4 sm:$0xff]   ;;  %v12949_v52 = vld [vmem:[#allocation3 + $0xe60] ss:$16 sps:$4 sm:$0xff]  }
 0x5c9   :  { %9822 = vmatprep.subr.bf16.mxu0 %v12875_v54  ;;  %10206 = vmatprep.subr.bf16.mxu1 %v12878_v55  ;;  %v12953_v54 = vld [vmem:[#allocation3 + $0xe84] ss:$16 sps:$4 sm:$0xff]   ;;  %v12955_v55 = vld [vmem:[#allocation3 + $0xe80] ss:$16 sps:$4 sm:$0xff]  }
 0x5cc   :  { %9824 = vmatpush1.bf16.msra.mxu0 %v12877_v49  ;;  %10208 = vmatpush1.bf16.msra.mxu1 %v12880_v56  ;;  %v12958_v49 = vld [vmem:[#allocation3 + $0xe88] ss:$16 sps:$4 sm:$0xff]   ;;  %v12959_v56 = vld [vmem:[#allocation3 + $0xea4] ss:$16 sps:$4 sm:$0xff]  }
 0x5cd   :  { %9826 = vmatprep.subr.bf16.mxu0 %v12881_v57  ;;  %10210 = vmatprep.subr.bf16.mxu1 %v12884_v58  ;;  %v12962_v57 = vld [vmem:[#allocation3 + $0xeac] ss:$16 sps:$4 sm:$0xff]   ;;  %v12961_v58 = vld [vmem:[#allocation3 + $0xea0] ss:$16 sps:$4 sm:$0xff]  }
 0x5d0   :  { %9828 = vmatpush1.bf16.msra.mxu0 %v12883_v62  ;;  %10212 = vmatpush1.bf16.msra.mxu1 %v12886_v3  ;;  %v12965_v62 = vld [vmem:[#allocation3 + $0xec4] ss:$16 sps:$4 sm:$0xff]   ;;  %v12968_v3 = vld [vmem:[#allocation3 + $0xecc] ss:$16 sps:$4 sm:$0xff]  }
 0x5d1   :  { %9830 = vmatprep.subr.bf16.mxu0 %v12887_v13  ;;  %10214 = vmatprep.subr.bf16.mxu1 %v12890_v4  ;;  %v12967_v13 = vld [vmem:[#allocation3 + $0xec0] ss:$16 sps:$4 sm:$0xff]   ;;  %v12970_v4 = vld [vmem:[#allocation3 + $0xec8] ss:$16 sps:$4 sm:$0xff]  }
 0x5d4   :  { %9832 = vmatpush1.bf16.msra.mxu0 %v12889_v5  ;;  %10216 = vmatpush1.bf16.msra.mxu1 %v12892_v6  ;;  %v12971_v5 = vld [vmem:[#allocation3 + $0xee4] ss:$16 sps:$4 sm:$0xff]   ;;  %v12974_v6 = vld [vmem:[#allocation3 + $0xeec] ss:$16 sps:$4 sm:$0xff]  }
 0x5d5   :  { %9834 = vmatprep.subr.bf16.mxu0 %v12893_v9  ;;  %10218 = vmatprep.subr.bf16.mxu1 %v12896_v10  ;;  %v12973_v9 = vld [vmem:[#allocation3 + $0xee0] ss:$16 sps:$4 sm:$0xff]   ;;  %v12976_v10 = vld [vmem:[#allocation3 + $0xee8] ss:$16 sps:$4 sm:$0xff]  }
 0x5d8   :  { %9836 = vmatpush1.bf16.msra.mxu0 %v12895_v11  ;;  %10220 = vmatpush1.bf16.msra.mxu1 %v12898_v43  ;;  %v12977_v11 = vld [vmem:[#allocation3 + $0xf04] ss:$16 sps:$4 sm:$0xff]   ;;  %v12980_v43 = vld [vmem:[#allocation3 + $0xf0c] ss:$16 sps:$4 sm:$0xff]  }
 0x5d9   :  { %9838 = vmatprep.subr.bf16.mxu0 %v12899_v15  ;;  %10222 = vmatprep.subr.bf16.mxu1 %v12902_v16  ;;  %v12979_v15 = vld [vmem:[#allocation3 + $0xf00] ss:$16 sps:$4 sm:$0xff]   ;;  %v12982_v16 = vld [vmem:[#allocation3 + $0xf08] ss:$16 sps:$4 sm:$0xff]  }
 0x5dc   :  { %9840 = vmatpush1.bf16.msra.mxu0 %v12901_v7  ;;  %10224 = vmatpush1.bf16.msra.mxu1 %v12904_v48  ;;  %v12983_v7 = vld [vmem:[#allocation3 + $0xf24] ss:$16 sps:$4 sm:$0xff]   ;;  %v12986_v48 = vld [vmem:[#allocation3 + $0xf2c] ss:$16 sps:$4 sm:$0xff]  }
 0x5dd   :  { %9842 = vmatprep.subr.bf16.mxu0 %v12905_v20  ;;  %10226 = vmatprep.subr.bf16.mxu1 %v12908_v21  ;;  %v12985_v20 = vld [vmem:[#allocation3 + $0xf20] ss:$16 sps:$4 sm:$0xff]   ;;  %v12988_v21 = vld [vmem:[#allocation3 + $0xf28] ss:$16 sps:$4 sm:$0xff]  }
 0x5e0   :  { %9844 = vmatpush1.bf16.msra.mxu0 %v12907_v63  ;;  %10228 = vmatpush1.bf16.msra.mxu1 %v12910_v61  ;;  %v12989_v63 = vld [vmem:[#allocation3 + $0xf44] ss:$16 sps:$4 sm:$0xff]   ;;  %v12992_v61 = vld [vmem:[#allocation3 + $0xf4c] ss:$16 sps:$4 sm:$0xff]  }
 0x5e1   :  { %9846 = vmatprep.subr.bf16.mxu0 %v12911_v25  ;;  %10230 = vmatprep.subr.bf16.mxu1 %v12914_v26  ;;  %v12991_v25 = vld [vmem:[#allocation3 + $0xf40] ss:$16 sps:$4 sm:$0xff]   ;;  %v12994_v26 = vld [vmem:[#allocation3 + $0xf48] ss:$16 sps:$4 sm:$0xff]  }
 0x5e4   :  { %9848 = vmatpush1.bf16.msra.mxu0 %v12913_v29  ;;  %10232 = vmatpush1.bf16.msra.mxu1 %v12916_v14  ;;  %v12995_v29 = vld [vmem:[#allocation3 + $0xf64] ss:$16 sps:$4 sm:$0xff]   ;;  %v12998_v14 = vld [vmem:[#allocation3 + $0xf6c] ss:$16 sps:$4 sm:$0xff]  }
 0x5e5   :  { %9850 = vmatprep.subr.bf16.mxu0 %v12917_v30  ;;  %10234 = vmatprep.subr.bf16.mxu1 %v12920_v31  ;;  %v12997_v30 = vld [vmem:[#allocation3 + $0xf60] ss:$16 sps:$4 sm:$0xff]   ;;  %v13000_v31 = vld [vmem:[#allocation3 + $0xf68] ss:$16 sps:$4 sm:$0xff]  }
 0x5e8   :  { %9852 = vmatpush1.bf16.msra.mxu0 %v12919_v32  ;;  %10236 = vmatpush1.bf16.msra.mxu1 %v12922_v33  ;;  %v13001_v32 = vld [vmem:[#allocation3 + $0xf84] ss:$16 sps:$4 sm:$0xff]   ;;  %v13004_v33 = vld [vmem:[#allocation3 + $0xf8c] ss:$16 sps:$4 sm:$0xff]  }
 0x5e9   :  { %9854 = vmatprep.subr.bf16.mxu0 %v12923_v34  ;;  %10238 = vmatprep.subr.bf16.mxu1 %v12926_v59  ;;  %v13003_v34 = vld [vmem:[#allocation3 + $0xf80] ss:$16 sps:$4 sm:$0xff]   ;;  %v13006_v59 = vld [vmem:[#allocation3 + $0xf88] ss:$16 sps:$4 sm:$0xff]  }
 0x5ec   :  { %9856 = vmatpush1.bf16.msra.mxu0 %v12925_v35  ;;  %10240 = vmatpush1.bf16.msra.mxu1 %v12928_v38  ;;  %v13007_v35 = vld [vmem:[#allocation3 + $0xfa4] ss:$16 sps:$4 sm:$0xff]   ;;  %v13010_v38 = vld [vmem:[#allocation3 + $0xfac] ss:$16 sps:$4 sm:$0xff]  }
 0x5ed   :  { %9858 = vmatprep.subr.bf16.mxu0 %v12929_v39  ;;  %10242 = vmatprep.subr.bf16.mxu1 %v12932_v42  ;;  %v13009_v39 = vld [vmem:[#allocation3 + $0xfa0] ss:$16 sps:$4 sm:$0xff]   ;;  %v13012_v42 = vld [vmem:[#allocation3 + $0xfa8] ss:$16 sps:$4 sm:$0xff]  }
 0x5ef   :  { %3492 = vmatmul.mubr.f32.vlgmr.msra.gmra.mrb[18].mxu0 %v14110_v60  ;;  %3954 = vmatmul.mubr.f32.vlgmr.msra.gmra.mrb[34].mxu1 %v14110_v60  ;;  %v12946_v60 = vld [vmem:[#allocation3 + $0xe48] ss:$16 sps:$4 sm:$0xff]  }
 0x5f0   :  { %9860 = vmatpush1.bf16.msra.mxu0 %v12931_v40  ;;  %10244 = vmatpush1.bf16.msra.mxu1 %v12934_v53  ;;  %v13013_v40 = vld [vmem:[#allocation3 + $0xfc4] ss:$16 sps:$4 sm:$0xff]   ;;  %v13016_v53 = vld [vmem:[#allocation3 + $0xfcc] ss:$16 sps:$4 sm:$0xff]  }
 0x5f1   :  { %9862 = vmatprep.subr.bf16.mxu0 %v12935_v41  ;;  %10246 = vmatprep.subr.bf16.mxu1 %v12938_v28  ;;  %v13015_v41 = vld [vmem:[#allocation3 + $0xfc0] ss:$16 sps:$4 sm:$0xff]   ;;  %v13018_v28 = vld [vmem:[#allocation3 + $0xfc8] ss:$16 sps:$4 sm:$0xff]  }
 0x5f2   :  { %3497 = vmatprep.mubr.f32.mxu0 %v14122_v17  ;;  %3959 = vmatprep.mubr.f32.mxu1 %v14122_v17  ;;  %v12952_v17 = vld [vmem:[#allocation3 + $0xe68] ss:$16 sps:$4 sm:$0xff]  }
 0x5f3   :  { %3498 = vmatmul.mubr.f32.gmra.mrb[20].mxu0 %v14120_v12  ;;  %3960 = vmatmul.mubr.f32.gmra.mrb[36].mxu1 %v14120_v12  ;;  %v12956_v12 = vld [vmem:[#allocation3 + $0xe8c] ss:$16 sps:$4 sm:$0xff]  }
 0x5f4   :  { %9864 = vmatpush1.bf16.msra.mxu0 %v12937_v44  ;;  %10248 = vmatpush1.bf16.msra.mxu1 %v12940_v45  ;;  %v13019_v44 = vld [vmem:[#allocation3 + $0xfe4] ss:$16 sps:$4 sm:$0xff]   ;;  %v13022_v45 = vld [vmem:[#allocation3 + $0xfec] ss:$16 sps:$4 sm:$0xff]  }
 0x5f5   :  { %9866 = vmatprep.subr.bf16.mxu0 %v12941_v47  ;;  %10250 = vmatprep.subr.bf16.mxu1 %v12944_v1  ;;  %v13021_v47 = vld [vmem:[#allocation3 + $0xfe0] ss:$16 sps:$4 sm:$0xff]   ;;  %v13024_v1 = vld [vmem:[#allocation3 + $0xfe8] ss:$16 sps:$4 sm:$0xff]  }
 0x5f6   :  { %3568 = vmatprep.mubr.f32.mxu0 %v14130_v22  ;;  %4030 = vmatprep.mubr.f32.mxu1 %v14130_v22  ;;  %v12964_v22 = vld [vmem:[#allocation3 + $0xea8] ss:$16 sps:$4 sm:$0xff]  }
 0x5f8   :  { %9868 = vmatpush1.bf16.msra.mxu0 %v12943_v50  ;;  %10252 = vmatpush1.bf16.msra.mxu1 %v12946_v60  ;;  %v13025_v50 = vld [vmem:[#allocation3 + $0x1004] ss:$16 sps:$4 sm:$0xff]   ;;  %v13028_v60 = vld [vmem:[#allocation3 + $0x100c] ss:$16 sps:$4 sm:$0xff]  }
 0x5f9   :  { %9870 = vmatprep.subr.bf16.mxu0 %v12947_v36  ;;  %10254 = vmatprep.subr.bf16.mxu1 %v12950_v51  ;;  %v13027_v36 = vld [vmem:[#allocation3 + $0x1000] ss:$16 sps:$4 sm:$0xff]   ;;  %v13030_v51 = vld [vmem:[#allocation3 + $0x1008] ss:$16 sps:$4 sm:$0xff]  }
 0x5fc   :  { %9872 = vmatpush1.bf16.msra.mxu0 %v12949_v52  ;;  %10256 = vmatpush1.bf16.msra.mxu1 %v12952_v17  ;;  %v13031_v52 = vld [vmem:[#allocation3 + $0x1024] ss:$16 sps:$4 sm:$0xff]   ;;  %v13034_v17 = vld [vmem:[#allocation3 + $0x102c] ss:$16 sps:$4 sm:$0xff]  }
 0x5fd   :  { %9874 = vmatprep.subr.bf16.mxu0 %v12953_v54  ;;  %10258 = vmatprep.subr.bf16.mxu1 %v12956_v12  ;;  %v13033_v54 = vld [vmem:[#allocation3 + $0x1020] ss:$16 sps:$4 sm:$0xff]   ;;  %v13036_v12 = vld [vmem:[#allocation3 + $0x1028] ss:$16 sps:$4 sm:$0xff]  }
 0x600   :  { %9876 = vmatpush1.bf16.msra.mxu0 %v12955_v55  ;;  %10260 = vmatpush1.bf16.msra.mxu1 %v12958_v49  ;;  %v13037_v55 = vld [vmem:[#allocation3 + $0x1044] ss:$16 sps:$4 sm:$0xff]   ;;  %v13040_v49 = vld [vmem:[#allocation3 + $0x104c] ss:$16 sps:$4 sm:$0xff]  }
 0x601   :  { %9878 = vmatprep.subr.bf16.mxu0 %v12959_v56  ;;  %10262 = vmatprep.subr.bf16.mxu1 %v12962_v57  ;;  %v13042_v56 = vld [vmem:[#allocation3 + $0x1048] ss:$16 sps:$4 sm:$0xff]   ;;  %v13043_v57 = vld [vmem:[#allocation3 + $0x1064] ss:$16 sps:$4 sm:$0xff]  }
 0x604   :  { %9880 = vmatpush1.bf16.msra.mxu0 %v12961_v58  ;;  %10264 = vmatpush1.bf16.msra.mxu1 %v12964_v22  ;;  %v13045_v58 = vld [vmem:[#allocation3 + $0x1060] ss:$16 sps:$4 sm:$0xff]   ;;  %v13048_v22 = vld [vmem:[#allocation3 + $0x1068] ss:$16 sps:$4 sm:$0xff]  }
 0x605   :  { %9882 = vmatprep.subr.bf16.mxu0 %v12965_v62  ;;  %10266 = vmatprep.subr.bf16.mxu1 %v12968_v3  ;;  %v13049_v62 = vld [vmem:[#allocation3 + $0x1084] ss:$16 sps:$4 sm:$0xff]   ;;  %v13051_v3 = vld [vmem:[#allocation3 + $0x1080] ss:$16 sps:$4 sm:$0xff]  }
 0x608   :  { %9884 = vmatpush1.bf16.msra.mxu0 %v12967_v13  ;;  %10268 = vmatpush1.bf16.msra.mxu1 %v12970_v4  ;;  %v13054_v13 = vld [vmem:[#allocation3 + $0x1088] ss:$16 sps:$4 sm:$0xff]   ;;  %v13055_v4 = vld [vmem:[#allocation3 + $0x10a4] ss:$16 sps:$4 sm:$0xff]  }
 0x609   :  { %9886 = vmatprep.subr.bf16.mxu0 %v12971_v5  ;;  %10270 = vmatprep.subr.bf16.mxu1 %v12974_v6  ;;  %v13057_v5 = vld [vmem:[#allocation3 + $0x10a0] ss:$16 sps:$4 sm:$0xff]   ;;  %v13060_v6 = vld [vmem:[#allocation3 + $0x10a8] ss:$16 sps:$4 sm:$0xff]  }
 0x60c   :  { %9888 = vmatpush1.bf16.msra.mxu0 %v12973_v9  ;;  %10272 = vmatpush1.bf16.msra.mxu1 %v12976_v10  ;;  %v13061_v9 = vld [vmem:[#allocation3 + $0x10c4] ss:$16 sps:$4 sm:$0xff]   ;;  %v13064_v10 = vld [vmem:[#allocation3 + $0x10cc] ss:$16 sps:$4 sm:$0xff]  }
 0x60d   :  { %9890 = vmatprep.subr.bf16.mxu0 %v12977_v11  ;;  %10274 = vmatprep.subr.bf16.mxu1 %v12980_v43  ;;  %v13063_v11 = vld [vmem:[#allocation3 + $0x10c0] ss:$16 sps:$4 sm:$0xff]   ;;  %v13066_v43 = vld [vmem:[#allocation3 + $0x10c8] ss:$16 sps:$4 sm:$0xff]  }
 0x610   :  { %9892 = vmatpush1.bf16.msra.mxu0 %v12979_v15  ;;  %10276 = vmatpush1.bf16.msra.mxu1 %v12982_v16  ;;  %v13067_v15 = vld [vmem:[#allocation3 + $0x10e4] ss:$16 sps:$4 sm:$0xff]   ;;  %v13070_v16 = vld [vmem:[#allocation3 + $0x10ec] ss:$16 sps:$4 sm:$0xff]  }
 0x611   :  { %9894 = vmatprep.subr.bf16.mxu0 %v12983_v7  ;;  %10278 = vmatprep.subr.bf16.mxu1 %v12986_v48  ;;  %v13069_v7 = vld [vmem:[#allocation3 + $0x10e0] ss:$16 sps:$4 sm:$0xff]   ;;  %v13072_v48 = vld [vmem:[#allocation3 + $0x10e8] ss:$16 sps:$4 sm:$0xff]  }
 0x614   :  { %9896 = vmatpush1.bf16.msra.mxu0 %v12985_v20  ;;  %10280 = vmatpush1.bf16.msra.mxu1 %v12988_v21  ;;  %v13073_v20 = vld [vmem:[#allocation3 + $0x1104] ss:$16 sps:$4 sm:$0xff]   ;;  %v13076_v21 = vld [vmem:[#allocation3 + $0x110c] ss:$16 sps:$4 sm:$0xff]  }
 0x615   :  { %9898 = vmatprep.subr.bf16.mxu0 %v12989_v63  ;;  %10282 = vmatprep.subr.bf16.mxu1 %v12992_v61  ;;  %v13075_v63 = vld [vmem:[#allocation3 + $0x1100] ss:$16 sps:$4 sm:$0xff]   ;;  %v13078_v61 = vld [vmem:[#allocation3 + $0x1108] ss:$16 sps:$4 sm:$0xff]  }
 0x618   :  { %9900 = vmatpush1.bf16.msra.mxu0 %v12991_v25  ;;  %10284 = vmatpush1.bf16.msra.mxu1 %v12994_v26  ;;  %v13079_v25 = vld [vmem:[#allocation3 + $0x1124] ss:$16 sps:$4 sm:$0xff]   ;;  %v13082_v26 = vld [vmem:[#allocation3 + $0x112c] ss:$16 sps:$4 sm:$0xff]  }
 0x619   :  { %9902 = vmatprep.subr.bf16.mxu0 %v12995_v29  ;;  %10286 = vmatprep.subr.bf16.mxu1 %v12998_v14  ;;  %v13081_v29 = vld [vmem:[#allocation3 + $0x1120] ss:$16 sps:$4 sm:$0xff]   ;;  %v13084_v14 = vld [vmem:[#allocation3 + $0x1128] ss:$16 sps:$4 sm:$0xff]  }
 0x61c   :  { %9904 = vmatpush1.bf16.msra.mxu0 %v12997_v30  ;;  %10288 = vmatpush1.bf16.msra.mxu1 %v13000_v31  ;;  %v13085_v30 = vld [vmem:[#allocation3 + $0x1144] ss:$16 sps:$4 sm:$0xff]   ;;  %v13088_v31 = vld [vmem:[#allocation3 + $0x114c] ss:$16 sps:$4 sm:$0xff]  }
 0x61d   :  { %9906 = vmatprep.subr.bf16.mxu0 %v13001_v32  ;;  %10290 = vmatprep.subr.bf16.mxu1 %v13004_v33  ;;  %v13087_v32 = vld [vmem:[#allocation3 + $0x1140] ss:$16 sps:$4 sm:$0xff]   ;;  %v13090_v33 = vld [vmem:[#allocation3 + $0x1148] ss:$16 sps:$4 sm:$0xff]  }
 0x620   :  { %9908 = vmatpush1.bf16.msra.mxu0 %v13003_v34  ;;  %10292 = vmatpush1.bf16.msra.mxu1 %v13006_v59  ;;  %v13091_v34 = vld [vmem:[#allocation3 + $0x1164] ss:$16 sps:$4 sm:$0xff]   ;;  %v13094_v59 = vld [vmem:[#allocation3 + $0x116c] ss:$16 sps:$4 sm:$0xff]  }
 0x621   :  { %9910 = vmatprep.subr.bf16.mxu0 %v13007_v35  ;;  %10294 = vmatprep.subr.bf16.mxu1 %v13010_v38  ;;  %v13093_v35 = vld [vmem:[#allocation3 + $0x1160] ss:$16 sps:$4 sm:$0xff]   ;;  %v13096_v38 = vld [vmem:[#allocation3 + $0x1168] ss:$16 sps:$4 sm:$0xff]  }
 0x624   :  { %9912 = vmatpush1.bf16.msra.mxu0 %v13009_v39  ;;  %10296 = vmatpush1.bf16.msra.mxu1 %v13012_v42  ;;  %v13097_v39 = vld [vmem:[#allocation3 + $0x1184] ss:$16 sps:$4 sm:$0xff]   ;;  %v13100_v42 = vld [vmem:[#allocation3 + $0x118c] ss:$16 sps:$4 sm:$0xff]  }
 0x625   :  { %9914 = vmatprep.subr.bf16.mxu0 %v13013_v40  ;;  %10298 = vmatprep.subr.bf16.mxu1 %v13016_v53  ;;  %v13099_v40 = vld [vmem:[#allocation3 + $0x1180] ss:$16 sps:$4 sm:$0xff]   ;;  %v13102_v53 = vld [vmem:[#allocation3 + $0x1188] ss:$16 sps:$4 sm:$0xff]  }
 0x628   :  { %9916 = vmatpush1.bf16.msra.mxu0 %v13015_v41  ;;  %10300 = vmatpush1.bf16.msra.mxu1 %v13018_v28  ;;  %v13103_v41 = vld [vmem:[#allocation3 + $0x11a4] ss:$16 sps:$4 sm:$0xff]   ;;  %v13106_v28 = vld [vmem:[#allocation3 + $0x11ac] ss:$16 sps:$4 sm:$0xff]  }
 0x629   :  { %9918 = vmatprep.subr.bf16.mxu0 %v13019_v44  ;;  %10302 = vmatprep.subr.bf16.mxu1 %v13022_v45  ;;  %v13105_v44 = vld [vmem:[#allocation3 + $0x11a0] ss:$16 sps:$4 sm:$0xff]   ;;  %v13108_v45 = vld [vmem:[#allocation3 + $0x11a8] ss:$16 sps:$4 sm:$0xff]  }
 0x62c   :  { %9920 = vmatpush1.bf16.msra.mxu0 %v13021_v47  ;;  %10304 = vmatpush1.bf16.msra.mxu1 %v13024_v1  ;;  %v13109_v47 = vld [vmem:[#allocation3 + $0x11c4] ss:$16 sps:$4 sm:$0xff]   ;;  %v13112_v1 = vld [vmem:[#allocation3 + $0x11cc] ss:$16 sps:$4 sm:$0xff]  }
 0x62d   :  { %9922 = vmatprep.subr.bf16.mxu0 %v13025_v50  ;;  %10306 = vmatprep.subr.bf16.mxu1 %v13028_v60  ;;  %v13111_v50 = vld [vmem:[#allocation3 + $0x11c0] ss:$16 sps:$4 sm:$0xff]   ;;  %v13114_v60 = vld [vmem:[#allocation3 + $0x11c8] ss:$16 sps:$4 sm:$0xff]  }
 0x62f   :  { %3569 = vmatmul.mubr.f32.vlgmr.msra.gmra.mrb[18].mxu0 %v14126_v18  ;;  %4031 = vmatmul.mubr.f32.vlgmr.msra.gmra.mrb[34].mxu1 %v14126_v18  ;;  %v13039_v18 = vld [vmem:[#allocation3 + $0x1040] ss:$16 sps:$4 sm:$0xff]  }
 0x630   :  { %3574 = vmatprep.mubr.f32.mxu0 %v14138_v27  ;;  %9924 = vmatpush1.bf16.msra.mxu0 %v13027_v36  ;;  %v13115_v36 = vld [vmem:[#allocation3 + $0x11e4] ss:$16 sps:$4 sm:$0xff]  }
 0x631   :  { %4036 = vmatprep.mubr.f32.mxu1 %v14138_v27  ;;  %10308 = vmatpush1.bf16.msra.mxu1 %v13030_v51  ;;  %v13046_v27 = vld [vmem:[#allocation3 + $0x106c] ss:$16 sps:$4 sm:$0xff]  }
 0x632   :  { %9926 = vmatprep.subr.bf16.mxu0 %v13031_v52  ;;  %10310 = vmatprep.subr.bf16.mxu1 %v13034_v17  ;;  %v13118_v51 = vld [vmem:[#allocation3 + $0x11ec] ss:$16 sps:$4 sm:$0xff]   ;;  %v4204_v52 = vld [vmem:[%s15758_s5 + $0x280] sm:$0xff] }
 0x633   :  { %3575 = vmatmul.mubr.f32.gmra.mrb[20].mxu0 %v14134_v24  ;;  %4037 = vmatmul.mubr.f32.gmra.mrb[36].mxu1 %v14134_v24  ;;  %v13052_v24 = vld [vmem:[#allocation3 + $0x108c] ss:$16 sps:$4 sm:$0xff]  }
 0x634   :  { %9928 = vmatpush1.bf16.msra.mxu0 %v13033_v54  ;;  %3645 = vmatprep.mubr.f32.mxu0 %v14132_v23  ;;  %v4205_v17 = vld [vmem:[%s15758_s5 + $0x288] sm:$0xff]  ;;  %v4236_v54 = vld [vmem:[%s15758_s5 + $0x380] sm:$0xff] }
 0x635   :  { %10312 = vmatpush1.bf16.msra.mxu1 %v13036_v12  ;;  %4107 = vmatprep.mubr.f32.mxu1 %v14132_v23  ;;  %v13058_v23 = vld [vmem:[#allocation3 + $0x10ac] ss:$16 sps:$4 sm:$0xff]  }
 0x636   :  { %9930 = vmatprep.subr.bf16.mxu0 %v13037_v55  ;;  %10314 = vmatprep.subr.bf16.mxu1 %v13040_v49  ;;  %v4237_v12 = vld [vmem:[%s15758_s5 + $0x388] sm:$0xff]  ;;  %v13117_v55 = vld [vmem:[#allocation3 + $0x11e0] ss:$16 sps:$4 sm:$0xff]  }
 0x637   :  { %v13120_v49 = vld [vmem:[#allocation3 + $0x11e8] ss:$16 sps:$4 sm:$0xff]  }
 0x638   :  { %9932 = vmatpush1.bf16.msra.mxu0 %v13039_v18  ;;  %v10369_v18 = vpack.c.bf16 %v4205_v17, %v4204_v52  ;;  %v4214_v17 = vld [vmem:[%s15758_s5 + $0x2d0] sm:$0xff] }
 0x639   :  { %10316 = vmatpush1.bf16.msra.mxu1 %v13042_v56  ;;  %9934 = vmatprep.subr.bf16.mxu0 %v13043_v57  ;;  %v10401_v56 = vpack.c.bf16 %v4237_v12, %v4236_v54  ;;  %v4188_v57 = vld [vmem:[%s15758_s5 + $0x200] sm:$0xff]  ;;  %v4215_v54 = vld [vmem:[%s15758_s5 + $0x2d8] sm:$0xff]  ;;  %v4246_v12 = vld [vmem:[%s15758_s5 + $0x3d0] sm:$0xff] }
 0x63a   :  { %10318 = vmatprep.subr.bf16.mxu1 %v13046_v27  ;;  %v4189_v27 = vld [vmem:[%s15758_s5 + $0x208] sm:$0xff] }
 0x63c   :  { %9936 = vmatpush1.bf16.msra.mxu0 %v13045_v58  ;;  %v4220_v58 = vld [vmem:[%s15758_s5 + $0x300] sm:$0xff] }
 0x63d   :  { %10320 = vmatpush1.bf16.msra.mxu1 %v13048_v22  ;;  %9938 = vmatprep.subr.bf16.mxu0 %v13049_v62  ;;  %v4221_v22 = vld [vmem:[%s15758_s5 + $0x308] sm:$0xff]  ;;  %v4206_v62 = vld [vmem:[%s15758_s5 + $0x290] sm:$0xff] }
 0x63e   :  { %10322 = vmatprep.subr.bf16.mxu1 %v13052_v24  ;;  %v4207_v24 = vld [vmem:[%s15758_s5 + $0x298] sm:$0xff] }
 0x640   :  { %9940 = vmatpush1.bf16.msra.mxu0 %v13051_v3  ;;  %v4238_v3 = vld [vmem:[%s15758_s5 + $0x390] sm:$0xff] }
 0x641   :  { %10324 = vmatpush1.bf16.msra.mxu1 %v13054_v13  ;;  %9942 = vmatprep.subr.bf16.mxu0 %v13055_v4  ;;  %v4239_v13 = vld [vmem:[%s15758_s5 + $0x398] sm:$0xff]  ;;  %v10371_v4 = vpack.c.bf16 %v4189_v27, %v4188_v57 }
 0x642   :  { %10326 = vmatprep.subr.bf16.mxu1 %v13058_v23  ;;  %v10403_v23 = vpack.c.bf16 %v4221_v22, %v4220_v58  ;;  %v4230_v58 = vld [vmem:[%s15758_s5 + $0x350] sm:$0xff]  ;;  %v4231_v22 = vld [vmem:[%s15758_s5 + $0x358] sm:$0xff] }
 0x644   :  { %9944 = vmatpush1.bf16.msra.mxu0 %v13057_v5  ;;  %v10373_v5 = vpack.c.bf16 %v4207_v24, %v4206_v62  ;;  %v10423_v62 = vpack.c.bf16 %v4231_v22, %v4230_v58  ;;  %v4216_v24 = vld [vmem:[%s15758_s5 + $0x2e0] sm:$0xff] }
 0x645   :  { %10328 = vmatpush1.bf16.msra.mxu1 %v13060_v6  ;;  %9946 = vmatprep.subr.bf16.mxu0 %v13061_v9  ;;  %v4190_v6 = vld [vmem:[%s15758_s5 + $0x210] sm:$0xff]  ;;  %v4191_v9 = vld [vmem:[%s15758_s5 + $0x218] sm:$0xff] }
 0x646   :  { %10330 = vmatprep.subr.bf16.mxu1 %v13064_v10  ;;  %v10405_v10 = vpack.c.bf16 %v4239_v13, %v4238_v3  ;;  %v4217_v3 = vld [vmem:[%s15758_s5 + $0x2e8] sm:$0xff]  ;;  %v4248_v13 = vld [vmem:[%s15758_s5 + $0x3e0] sm:$0xff] }
 0x648   :  { %9948 = vmatpush1.bf16.msra.mxu0 %v13063_v11  ;;  %v4222_v11 = vld [vmem:[%s15758_s5 + $0x310] sm:$0xff] }
 0x649   :  { %10332 = vmatpush1.bf16.msra.mxu1 %v13066_v43  ;;  %9950 = vmatprep.subr.bf16.mxu0 %v13067_v15  ;;  %v4223_v43 = vld [vmem:[%s15758_s5 + $0x318] sm:$0xff]  ;;  %v10375_v15 = vpack.c.bf16 %v4191_v9, %v4190_v6  ;;  %v4201_v6 = vld [vmem:[%s15758_s5 + $0x268] sm:$0xff] }
 0x64a   :  { %10334 = vmatprep.subr.bf16.mxu1 %v13070_v16  ;;  %v10407_v16 = vpack.c.bf16 %v4223_v43, %v4222_v11  ;;  %v4232_v11 = vld [vmem:[%s15758_s5 + $0x360] sm:$0xff]  ;;  %v4233_v43 = vld [vmem:[%s15758_s5 + $0x368] sm:$0xff] }
 0x64c   :  { %9952 = vmatpush1.bf16.msra.mxu0 %v13069_v7  ;;  %v4240_v7 = vld [vmem:[%s15758_s5 + $0x3a0] sm:$0xff] }
 0x64d   :  { %10336 = vmatpush1.bf16.msra.mxu1 %v13072_v48  ;;  %9954 = vmatprep.subr.bf16.mxu0 %v13073_v20  ;;  %v4241_v20 = vld [vmem:[%s15758_s5 + $0x3a8] sm:$0xff] }
 0x64e   :  { %10338 = vmatprep.subr.bf16.mxu1 %v13076_v21  ;;  %v4193_v21 = vld [vmem:[%s15758_s5 + $0x228] sm:$0xff] }
 0x650   :  { %9956 = vmatpush1.bf16.msra.mxu0 %v13075_v63  ;;  %v10409_v63 = vpack.c.bf16 %v4241_v20, %v4240_v7  ;;  %v4202_v20 = vld [vmem:[%s15758_s5 + $0x270] sm:$0xff] }
 0x651   :  { %10340 = vmatpush1.bf16.msra.mxu1 %v13078_v61  ;;  %9958 = vmatprep.subr.bf16.mxu0 %v13079_v25  ;;  %v4224_v25 = vld [vmem:[%s15758_s5 + $0x320] sm:$0xff] }
 0x652   :  { %10342 = vmatprep.subr.bf16.mxu1 %v13082_v26  ;;  %v4225_v26 = vld [vmem:[%s15758_s5 + $0x328] sm:$0xff] }
 0x654   :  { %9960 = vmatpush1.bf16.msra.mxu0 %v13081_v29  ;;  %v10411_v29 = vpack.c.bf16 %v4225_v26, %v4224_v25  ;;  %v4235_v25 = vld [vmem:[%s15758_s5 + $0x378] sm:$0xff] }
 0x655   :  { %10344 = vmatpush1.bf16.msra.mxu1 %v13084_v14  ;;  %9962 = vmatprep.subr.bf16.mxu0 %v13085_v30  ;;  %v4210_v14 = vld [vmem:[%s15758_s5 + $0x2b0] sm:$0xff]  ;;  %v4211_v30 = vld [vmem:[%s15758_s5 + $0x2b8] sm:$0xff] }
 0x656   :  { %10346 = vmatprep.subr.bf16.mxu1 %v13088_v31  ;;  %v4242_v31 = vld [vmem:[%s15758_s5 + $0x3b0] sm:$0xff] }
 0x658   :  { %9964 = vmatpush1.bf16.msra.mxu0 %v13087_v32  ;;  %v10381_v32 = vpack.c.bf16 %v4211_v30, %v4210_v14 }
 0x659   :  { %10348 = vmatpush1.bf16.msra.mxu1 %v13090_v33  ;;  %9966 = vmatprep.subr.bf16.mxu0 %v13091_v34  ;;  %v4243_v33 = vld [vmem:[%s15758_s5 + $0x3b8] sm:$0xff]  ;;  %v4194_v34 = vld [vmem:[%s15758_s5 + $0x230] sm:$0xff] }
 0x65a   :  { %10350 = vmatprep.subr.bf16.mxu1 %v13094_v59  ;;  %v4195_v59 = vld [vmem:[%s15758_s5 + $0x238] sm:$0xff] }
 0x65c   :  { %9968 = vmatpush1.bf16.msra.mxu0 %v13093_v35  ;;  %v10413_v35 = vpack.c.bf16 %v4243_v33, %v4242_v31 }
 0x65d   :  { %10352 = vmatpush1.bf16.msra.mxu1 %v13096_v38  ;;  %9970 = vmatprep.subr.bf16.mxu0 %v13097_v39  ;;  %v10383_v38 = vpack.c.bf16 %v4195_v59, %v4194_v34  ;;  %v4226_v39 = vld [vmem:[%s15758_s5 + $0x330] sm:$0xff] }
 0x65e   :  { %10354 = vmatprep.subr.bf16.mxu1 %v13100_v42  ;;  %v4227_v42 = vld [vmem:[%s15758_s5 + $0x338] sm:$0xff] }
 0x660   :  { %9972 = vmatpush1.bf16.msra.mxu0 %v13099_v40  ;;  %v10415_v40 = vpack.c.bf16 %v4227_v42, %v4226_v39 }
 0x661   :  { %10356 = vmatpush1.bf16.msra.mxu1 %v13102_v53  ;;  %9974 = vmatprep.subr.bf16.mxu0 %v13103_v41  ;;  %v4212_v53 = vld [vmem:[%s15758_s5 + $0x2c0] sm:$0xff]  ;;  %v4213_v41 = vld [vmem:[%s15758_s5 + $0x2c8] sm:$0xff] }
 0x662   :  { %10358 = vmatprep.subr.bf16.mxu1 %v13106_v28  ;;  %v4244_v28 = vld [vmem:[%s15758_s5 + $0x3c0] sm:$0xff] }
 0x664   :  { %9976 = vmatpush1.bf16.msra.mxu0 %v13105_v44  ;;  %v10385_v44 = vpack.c.bf16 %v4213_v41, %v4212_v53 }
 0x665   :  { %10360 = vmatpush1.bf16.msra.mxu1 %v13108_v45  ;;  %9978 = vmatprep.subr.bf16.mxu0 %v13109_v47  ;;  %v4245_v45 = vld [vmem:[%s15758_s5 + $0x3c8] sm:$0xff]  ;;  %v4196_v47 = vld [vmem:[%s15758_s5 + $0x240] sm:$0xff] }
 0x666   :  { %10362 = vmatprep.subr.bf16.mxu1 %v13112_v1  ;;  %v4197_v1 = vld [vmem:[%s15758_s5 + $0x248] sm:$0xff] }
 0x668   :  { %9980 = vmatpush1.bf16.msra.mxu0 %v13111_v50  ;;  %v10417_v50 = vpack.c.bf16 %v4245_v45, %v4244_v28 }
 0x669   :  { %10364 = vmatpush1.bf16.msra.mxu1 %v13114_v60  ;;  %9982 = vmatprep.subr.bf16.mxu0 %v13115_v36  ;;  %v10387_v60 = vpack.c.bf16 %v4197_v1, %v4196_v47  ;;  %v4228_v36 = vld [vmem:[%s15758_s5 + $0x340] sm:$0xff] }
 0x66a   :  { %10366 = vmatprep.subr.bf16.mxu1 %v13118_v51  ;;  %v4229_v51 = vld [vmem:[%s15758_s5 + $0x348] sm:$0xff] }
 0x66b   :  { %v10419_v52 = vpack.c.bf16 %v4229_v51, %v4228_v36 }
 0x66c   :  { %9984 = vmatpush1.bf16.msra.mxu0 %v13117_v55  ;;  %v10389_v55 = vpack.c.bf16 %v4215_v54, %v4214_v17 }
 0x66d   :  { %10368 = vmatpush1.bf16.msra.mxu1 %v13120_v49  ;;  %10370 = vmatprep.subr.bf16.mxu0 %v10369_v18  ;;  %v4247_v49 = vld [vmem:[%s15758_s5 + $0x3d8] sm:$0xff]  ;;  %v4198_v18 = vld [vmem:[%s15758_s5 + $0x250] sm:$0xff] }
 0x66e   :  { %10402 = vmatprep.subr.bf16.mxu1 %v10401_v56  ;;  %v4199_v56 = vld [vmem:[%s15758_s5 + $0x258] sm:$0xff]  ;;  %v10421_v57 = vpack.c.bf16 %v4247_v49, %v4246_v12 }
 0x66f   :  { %3646 = vmatmul.mubr.f32.vlgmr.msra.gmra.mrb[18].mxu0 %v14128_v19  ;;  %v10391_v27 = vpack.c.bf16 %v4199_v56, %v4198_v18 }
 0x670   :  { %4108 = vmatmul.mubr.f32.vlgmr.msra.gmra.mrb[34].mxu1 %v14128_v19  ;;  %3651 = vmatprep.mubr.f32.mxu0 %v14140_v2  ;;  %v4208_v19 = vld [vmem:[%s15758_s5 + $0x2a0] sm:$0xff] }
 0x671   :  { %4113 = vmatprep.mubr.f32.mxu1 %v14140_v2  ;;  %10372 = vmatpush3.bf16.msra.mxu0 %v10371_v4  ;;  %v4209_v2 = vld [vmem:[%s15758_s5 + $0x2a8] sm:$0xff]  ;;  %v10393_v4 = vpack.c.bf16 %v4217_v3, %v4216_v24 }
 0x672   :  { %10404 = vmatpush3.bf16.msra.mxu1 %v10403_v23  ;;  %10374 = vmatprep.subr.bf16.mxu0 %v10373_v5  ;;  %v10377_v48 = vpack.c.bf16 %v4209_v2, %v4208_v19  ;;  %v4249_v23 = vld [vmem:[%s15758_s5 + $0x3e8] sm:$0xff]  ;;  %v4200_v5 = vld [vmem:[%s15758_s5 + $0x260] sm:$0xff]  ;;  %v4219_v19 = vld [vmem:[%s15758_s5 + $0x2f8] sm:$0xff] }
 0x673   :  { %3652 = vmatmul.mubr.f32.gmra.mrb[20].mxu0 %v14136_v8  ;;  %10406 = vmatprep.subr.bf16.mxu1 %v10405_v10  ;;  %v10425_v9 = vpack.c.bf16 %v4249_v23, %v4248_v13  ;;  %v10395_v10 = vpack.c.bf16 %v4201_v6, %v4200_v5  ;;  %v4250_v2 = vld [vmem:[%s15758_s5 + $0x3f0] sm:$0xff] }
 0x674   :  { %4114 = vmatmul.mubr.f32.gmra.mrb[36].mxu1 %v14136_v8  ;;  %v4192_v8 = vld [vmem:[%s15758_s5 + $0x220] sm:$0xff] }
 0x675   :  { %10376 = vmatpush3.bf16.msra.mxu0 %v10375_v15  ;;  %v10379_v61 = vpack.c.bf16 %v4193_v21, %v4192_v8  ;;  %v10427_v15 = vpack.c.bf16 %v4233_v43, %v4232_v11  ;;  %v4203_v8 = vld [vmem:[%s15758_s5 + $0x278] sm:$0xff] }
 0x676   :  { %10408 = vmatpush3.bf16.msra.mxu1 %v10407_v16  ;;  %10378 = vmatprep.subr.bf16.mxu0 %v10377_v48  ;;  %v4218_v16 = vld [vmem:[%s15758_s5 + $0x2f0] sm:$0xff]  ;;  %v4251_v48 = vld [vmem:[%s15758_s5 + $0x3f8] sm:$0xff] }
 0x677   :  { %10410 = vmatprep.subr.bf16.mxu1 %v10409_v63  ;;  %v10397_v7 = vpack.c.bf16 %v4219_v19, %v4218_v16  ;;  %v10429_v21 = vpack.c.bf16 %v4251_v48, %v4250_v2  ;;  %v10399_v63 = vpack.c.bf16 %v4203_v8, %v4202_v20 }
 0x679   :  { %10380 = vmatpush3.bf16.msra.mxu0 %v10379_v61  ;;  %v4234_v61 = vld [vmem:[%s15758_s5 + $0x370] sm:$0xff] }
 0x67a   :  { %10412 = vmatpush3.bf16.msra.mxu1 %v10411_v29  ;;  %10382 = vmatprep.subr.bf16.mxu0 %v10381_v32  ;;  %v10431_v26 = vpack.c.bf16 %v4235_v25, %v4234_v61 }
 0x67b   :  { %10414 = vmatprep.subr.bf16.mxu1 %v10413_v35 }
 0x67d   :  { %10384 = vmatpush3.bf16.msra.mxu0 %v10383_v38 }
 0x67e   :  { %10416 = vmatpush3.bf16.msra.mxu1 %v10415_v40  ;;  %10386 = vmatprep.subr.bf16.mxu0 %v10385_v44 }
 0x67f   :  { %10418 = vmatprep.subr.bf16.mxu1 %v10417_v50 }
 0x681   :  { %10388 = vmatpush3.bf16.msra.mxu0 %v10387_v60 }
 0x682   :  { %10420 = vmatpush3.bf16.msra.mxu1 %v10419_v52  ;;  %10390 = vmatprep.subr.bf16.mxu0 %v10389_v55 }
 0x683   :  { %10422 = vmatprep.subr.bf16.mxu1 %v10421_v57 }
 0x685   :  { %10392 = vmatpush3.bf16.msra.mxu0 %v10391_v27 }
 0x686   :  { %10424 = vmatpush3.bf16.msra.mxu1 %v10423_v62  ;;  %10394 = vmatprep.subr.bf16.mxu0 %v10393_v4 }
 0x687   :  { %10426 = vmatprep.subr.bf16.mxu1 %v10425_v9 }
 0x689   :  { %10396 = vmatpush3.bf16.msra.mxu0 %v10395_v10 }
 0x68a   :  { %10428 = vmatpush3.bf16.msra.mxu1 %v10427_v15  ;;  %10398 = vmatprep.subr.bf16.mxu0 %v10397_v7 }
 0x68b   :  { %10430 = vmatprep.subr.bf16.mxu1 %v10429_v21 }
 0x68d   :  { %10400 = vmatpush3.bf16.msra.mxu0 %v10399_v63 }
 0x68e   :  { %10432 = vmatpush3.bf16.msra.mxu1 %v10431_v26 }
 0x742   :  { %v14364_v29 = vpop.f32.mrb[18].mxu0 }
 0x743   :  { %v14366_v14 = vpop.f32.mrb[34].mxu1  ;;  %v14368_v30 = vpop.f32.mrb[19].mxu0  ;;  %v4148_v32 = vmul.f32 %v14364_v29, %v14364_v29 }
 0x744   :  { %v14370_v31 = vpop.f32.mrb[35].mxu1  ;;  %v4150_v33 = vmul.f32 %v14366_v14, %v14366_v14  ;;  %v4149_v59 = vmul.f32 %v14368_v30, %v14368_v30 }
 0x745   :  { %v4151_v35 = vmul.f32 %v14370_v31, %v14370_v31 }
 0x746   :  { %v14376_v34 = vpop.f32.mrb[20].mxu0 }
 0x747   :  { %v4120_v38 = vadd.f32 %v14376_v34, %v14364_v29  ;;  %v4152_v39 = vmul.f32 %v14376_v34, %v14376_v34  ;;  %v14386_v42 = vpop.f32.mrb[36].mxu1  ;;  %v14388_v40 = vpop.f32.mrb[21].mxu0 }
 0x748   :  { %v4134_v53 = vadd.f32 %v14386_v42, %v14366_v14  ;;  %v4154_v41 = vmul.f32 %v14386_v42, %v14386_v42  ;;  %v4127_v28 = vadd.f32 %v14388_v40, %v14368_v30  ;;  %v4153_v44 = vmul.f32 %v14388_v40, %v14388_v40  ;;  %v14398_v45 = vpop.f32.mrb[37].mxu1 }
 0x749   :  { %v4121_v47 = vrot.slane %v4120_v38, 4  ;;  %v4156_v1 = vadd.f32 %v4152_v39, %v4148_v32  ;;  %v4141_v50 = vadd.f32 %v14398_v45, %v14370_v31  ;;  %v4155_v60 = vmul.f32 %v14398_v45, %v14398_v45 }
 0x74a   :  { %v4135_v36 = vrot.slane %v4134_v53, 4  ;;  %v4170_v51 = vadd.f32 %v4154_v41, %v4150_v33  ;;  %v4128_v52 = vrot.slane %v4127_v28, 4  ;;  %v4163_v17 = vadd.f32 %v4153_v44, %v4149_v59 }
 0x74b   :  { %v4122_v54 = vadd.f32 %v4121_v47, %v4120_v38  ;;  %v4157_v12 = vrot.slane %v4156_v1, 4  ;;  %v4142_v55 = vrot.slane %v4141_v50, 4  ;;  %v4177_v49 = vadd.f32 %v4155_v60, %v4151_v35 }
 0x74c   :  { %v4136_v18 = vadd.f32 %v4135_v36, %v4134_v53  ;;  %v4171_v56 = vrot.slane %v4170_v51, 4  ;;  %v4129_v57 = vadd.f32 %v4128_v52, %v4127_v28  ;;  %v4164_v27 = vrot.slane %v4163_v17, 4  ;;  %v4410_v52 = vld [vmem:[#allocation7 + $0x38] sm:$0xff] }
 0x74d   :  { %v4123_v58 = vrot.slane %v4122_v54, 2  ;;  %v4158_v22 = vadd.f32 %v4157_v12, %v4156_v1  ;;  %v4143_v62 = vadd.f32 %v4142_v55, %v4141_v50  ;;  %v4178_v24 = vrot.slane %v4177_v49, 4  ;;  %4485 = vmatprep.subr.mxu1 %v4410_v52 }
 0x74e   :  { %v4137_v3 = vrot.slane %v4136_v18, 2  ;;  %v4172_v13 = vadd.f32 %v4171_v56, %v4170_v51  ;;  %v4130_v4 = vrot.slane %v4129_v57, 2  ;;  %v4165_v23 = vadd.f32 %v4164_v27, %v4163_v17  ;;  %v4408_v51 = vld [vmem:[#allocation7 + $0x28] sm:$0xff]  ;;  %v4407_v17 = vld [vmem:[#allocation7 + $0x20] sm:$0xff] }
 0x74f   :  { %v4124_v5 = vadd.f32 %v4123_v58, %v4122_v54  ;;  %v4159_v6 = vrot.slane %v4158_v22, 2  ;;  %v4144_v9 = vrot.slane %v4143_v62, 2  ;;  %v4179_v10 = vadd.f32 %v4178_v24, %v4177_v49  ;;  %4414 = vmatprep.subr.mxu0 %v4408_v51  ;;  %v4409_v54 = vld [vmem:[#allocation7 + $0x30] sm:$0xff] }
 0x750   :  { %v4138_v11 = vadd.f32 %v4137_v3, %v4136_v18  ;;  %v4173_v43 = vrot.slane %v4172_v13, 2  ;;  %v4131_v15 = vadd.f32 %v4130_v4, %v4129_v57  ;;  %v4166_v16 = vrot.slane %v4165_v23, 2 }
 0x751   :  { %v4125_v19 = vrot.slane %v4124_v5, 1  ;;  %v4160_v2 = vadd.f32 %v4159_v6, %v4158_v22  ;;  %v4145_v7 = vadd.f32 %v4144_v9, %v4143_v62  ;;  %v4180_v48 = vrot.slane %v4179_v10, 2 }
 0x752   :  { %v4139_v20 = vrot.slane %v4138_v11, 1  ;;  %v4174_v8 = vadd.f32 %v4173_v43, %v4172_v13  ;;  %v4132_v21 = vrot.slane %v4131_v15, 1  ;;  %v4167_v63 = vadd.f32 %v4166_v16, %v4165_v23 }
 0x753   :  { %v4161_v61 = vrot.slane %v4160_v2, 1  ;;  %v4146_v25 = vrot.slane %v4145_v7, 1  ;;  %v4181_v26 = vadd.f32 %v4180_v48, %v4179_v10  ;;  %v4126_v59 = vadd.f32 %v4125_v19, %v4124_v5 }
 0x754   :  { %v4175_v32 = vrot.slane %v4174_v8, 1  ;;  %v4168_v33 = vrot.slane %v4167_v63, 1  ;;  %v4140_v39 = vadd.f32 %v4139_v20, %v4138_v11  ;;  %v4133_v53 = vadd.f32 %v4132_v21, %v4131_v15 }
 0x755   :  { %v4182_v35 = vrot.slane %v4181_v26, 1  ;;  %v4162_v38 = vadd.f32 %v4161_v61, %v4160_v2  ;;  %v4147_v44 = vadd.f32 %v4146_v25, %v4145_v7 }
 0x756   :  { %v4169_v41 = vadd.f32 %v4168_v33, %v4167_v63  ;;  %v4176_v28 = vadd.f32 %v4175_v32, %v4174_v8 }
 0x757   :  { %v4183_v47 = vadd.f32 %v4182_v35, %v4181_v26  ;;  %v4184_v1 = vsel %vm1331_vm1, %v4126_v59, %v4162_v38 }
 0x758   :  { %v4185_v50 = vsel %vm1331_vm1, %v4133_v53, %v4169_v41  ;;  %v4186_v60 = vsel %vm1331_vm1, %v4140_v39, %v4176_v28 }
 0x759   :  { %4316 = vmatprep.mubr.f32.mxu0 %v4185_v50  ;;  %v4187_v36 = vsel %vm1331_vm1, %v4147_v44, %v4183_v47 }
 0x75a   :  { %4386 = vmatprep.mubr.f32.mxu1 %v4187_v36  ;;  %4317 = vmatmul.mubr.f32.vlgmr.msra.gmra.mrb[22].mxu0 %v4184_v1 }
 0x75b   :  { %4387 = vmatmul.mubr.f32.vlgmr.msra.gmra.mrb[38].mxu1 %v4186_v60  ;;  %4478 = vmatprep.mubr.f32.mxu0 %v13644_v0 }
 0x75c   :  { %4549 = vmatprep.mubr.f32.mxu1 %v13644_v0  ;;  %4415 = vmatpush1.msra.mxu0 %v4407_v17 }
 0x75d   :  { %4486 = vmatpush1.msra.mxu1 %v4409_v54 }
 0x82d   :  { %v8686_v12 = vpop.f32.mrb[22].mxu0 }
 0x82e   :  { %v8721_v55 = vpop.f32.mrb[38].mxu1  ;;  %v8687_v49 = vpop.f32.mrb[23].mxu0 }
 0x82f   :  { %v8688_v18 = vadd.f32 %v8687_v49, %v8686_v12  ;;  %v8722_v56 = vpop.f32.mrb[39].mxu1  ;;  %v13121_v49 = vld [vmem:[%s15755_s2 + $0x4] ss:$8 sps:$4 sm:$0xff]  }
 0x830   :  { %v8723_v57 = vadd.f32 %v8722_v56, %v8721_v55  ;;  %v4620_v56 = vld [vmem:[%s15757_s4 + $0x60] sm:$0xff] }
 0x832   :  { %v4389_v27 = vadd.f32 %v8723_v57, %v8688_v18  ;;  %v13123_v57 = vld [vmem:[%s15755_s2] ss:$8 sps:$4 sm:$0xff]  }
 0x834   :  { %v4392_v58 = vmul.f32 %v4389_v27, %v4389_v27 }
 0x836   :  { %v4394_v22 = vrot.slane %v4392_v58, 7  ;;  %v4621_v58 = vld [vmem:[%s15757_s4 + $0x68] sm:$0xff] }
 0x838   :  { %v4396_v62 = vsub.f32 %v4389_v27, %v4394_v22  ;;  %v13126_v22 = vld [vmem:[%s15755_s2 + $0x10] ss:$8 sps:$4 sm:$0xff]  }
 0x83a   :  { %v4397_v24 = vadd.f32 1e-05, %v4396_v62  ;;  %v13127_v62 = vld [vmem:[%s15755_s2 + $0x24] ss:$8 sps:$4 sm:$0xff]  }
 0x83c   :  { %13555 = vrsqrt.f32 %v4397_v24  ;;  %v13129_v24 = vld [vmem:[%s15755_s2 + $0x20] ss:$8 sps:$4 sm:$0xff]  }
 0x846   :  { %v13556_v3 = vpop.eup %13555 }
 0x847   :  { %v4400_v13 = vrot.slane %v13556_v3, 1  ;;  %v4622_v3 = vld [vmem:[%s15757_s4 + $0x70] sm:$0xff] }
 0x849   :  { %v4402_v4 = vmul.f32 %v4400_v13, %v4389_v27  ;;  %v13124_v27 = vld [vmem:[%s15755_s2 + $0x14] ss:$8 sps:$4 sm:$0xff]  }
 0x84b   :  { %v4404_v23 = vrot.slane %v4402_v4, 7  ;;  %v13132_v4 = vld [vmem:[%s15755_s2 + $0x30] ss:$8 sps:$4 sm:$0xff]  }
 0x84d   :  { %v4406_v5 = vsel %vm1331_vm1, %v4400_v13, %v4404_v23  ;;  %v13130_v13 = vld [vmem:[%s15755_s2 + $0x34] ss:$8 sps:$4 sm:$0xff]   ;;  %v13133_v23 = vld [vmem:[%s15755_s2 + $0x44] ss:$8 sps:$4 sm:$0xff]  }
 0x84e   :  { %8204 = vmatmul.mubr.msk.f32.vlgmr.msra.gmra.mrb[24].mxu0 %vm1559_vm2, %v4406_v5  ;;  %8205 = vmatmul.mubr.msk.f32.vlgmr.msra.gmra.mrb[40].mxu1 %vm1559_vm2, %v4406_v5  ;;  %v13135_v5 = vld [vmem:[%s15755_s2 + $0x40] ss:$8 sps:$4 sm:$0xff]  }
 0x84f   :  { %4696 = vmatprep.mubr.f32.mxu0 %v13644_v0  ;;  %4779 = vmatprep.mubr.f32.mxu1 %v13644_v0 }
 0x921   :  { %v4480_v6 = vpop.f32.mrb[24].mxu0  ;;  %v4551_v9 = vpop.f32.mrb[40].mxu1 }
 0x922   :  { %v4559_v10 = vrot.slane %v4480_v6, %v14036_v46  ;;  %v4583_v11 = vrot.slane %v4480_v6, %v14038_v37  ;;  %v4567_v43 = vrot.slane %v4551_v9, %v14036_v46  ;;  %v4591_v15 = vrot.slane %v4551_v9, %v14038_v37  ;;  %v4482_v16 = vpop.f32.mrb[25].mxu0  ;;  %v4553_v19 = vpop.f32.mrb[41].mxu1  ;;  %v13136_v6 = vld [vmem:[%s15755_s2 + $0x54] ss:$8 sps:$4 sm:$0xff]   ;;  %v13138_v9 = vld [vmem:[%s15755_s2 + $0x50] ss:$8 sps:$4 sm:$0xff]  }
 0x923   :  { %v4563_v2 = vrot.slane %v4482_v16, %v14036_v46  ;;  %v4587_v7 = vrot.slane %v4482_v16, %v14038_v37  ;;  %v4571_v48 = vrot.slane %v4553_v19, %v14036_v46  ;;  %v4595_v20 = vrot.slane %v4553_v19, %v14038_v37  ;;  %v13145_v16 = vld [vmem:[%s15755_s2 + $0x84] ss:$8 sps:$4 sm:$0xff]   ;;  %v13147_v19 = vld [vmem:[%s15755_s2 + $0x80] ss:$8 sps:$4 sm:$0xff]  }
 0x924   :  { %v4572_v8 = vmul.f32 %v4559_v10, %v14364_v29  ;;  %v4576_v21 = vmul.f32 %v4559_v10, %v14376_v34  ;;  %v4574_v63 = vmul.f32 %v4567_v43, %v14366_v14  ;;  %v4578_v61 = vmul.f32 %v4567_v43, %v14386_v42  ;;  %v13139_v10 = vld [vmem:[%s15755_s2 + $0x64] ss:$8 sps:$4 sm:$0xff]   ;;  %v13142_v43 = vld [vmem:[%s15755_s2 + $0x74] ss:$8 sps:$4 sm:$0xff]  }
 0x925   :  { %v4573_v25 = vmul.f32 %v4563_v2, %v14368_v30  ;;  %v4577_v26 = vmul.f32 %v4563_v2, %v14388_v40  ;;  %v4575_v32 = vmul.f32 %v4571_v48, %v14370_v31  ;;  %v4579_v33 = vmul.f32 %v4571_v48, %v14398_v45  ;;  %v13148_v2 = vld [vmem:[%s15755_s2 + $0x94] ss:$8 sps:$4 sm:$0xff]   ;;  %v13151_v48 = vld [vmem:[%s15755_s2 + $0xa4] ss:$8 sps:$4 sm:$0xff]  }
 0x926   :  { %v4596_v59 = vsub.f32 %v4572_v8, %v4583_v11  ;;  %v4600_v35 = vsub.f32 %v4576_v21, %v4583_v11  ;;  %v4598_v38 = vsub.f32 %v4574_v63, %v4591_v15  ;;  %v4602_v39 = vsub.f32 %v4578_v61, %v4591_v15  ;;  %v13141_v11 = vld [vmem:[%s15755_s2 + $0x60] ss:$8 sps:$4 sm:$0xff]   ;;  %v13144_v15 = vld [vmem:[%s15755_s2 + $0x70] ss:$8 sps:$4 sm:$0xff]   ;;  %v13154_v8 = vld [vmem:[%s15755_s2 + $0xb4] ss:$8 sps:$4 sm:$0xff]  }
 0x927   :  { %v4597_v53 = vsub.f32 %v4573_v25, %v4587_v7  ;;  %v4601_v29 = vsub.f32 %v4577_v26, %v4587_v7  ;;  %v4599_v41 = vsub.f32 %v4575_v32, %v4595_v20  ;;  %v4603_v34 = vsub.f32 %v4579_v33, %v4595_v20  ;;  %v13150_v7 = vld [vmem:[%s15755_s2 + $0x90] ss:$8 sps:$4 sm:$0xff]   ;;  %v13153_v20 = vld [vmem:[%s15755_s2 + $0xa0] ss:$8 sps:$4 sm:$0xff]   ;;  %v13157_v63 = vld [vmem:[%s15755_s2 + $0xc4] ss:$8 sps:$4 sm:$0xff]  }
 0x928   :  { %v4604_v28 = vmul.f32 0.01, %v4596_v59  ;;  %v4608_v14 = vmul.f32 0.01, %v4600_v35  ;;  %v4606_v44 = vmul.f32 0.01, %v4598_v38 }
 0x929   :  { %v4610_v42 = vmul.f32 0.01, %v4602_v39  ;;  %v4605_v47 = vmul.f32 0.01, %v4597_v53  ;;  %v4609_v30 = vmul.f32 0.01, %v4601_v29 }
 0x92a   :  { %v4612_v1 = vmax.f32 %v4596_v59, %v4604_v28  ;;  %v4616_v40 = vmax.f32 %v4600_v35, %v4608_v14  ;;  %v4614_v50 = vmax.f32 %v4598_v38, %v4606_v44  ;;  %v4607_v31 = vmul.f32 0.01, %v4599_v41  ;;  %v13156_v21 = vld [vmem:[%s15755_s2 + $0xb0] ss:$8 sps:$4 sm:$0xff]   ;;  %v13159_v61 = vld [vmem:[%s15755_s2 + $0xc0] ss:$8 sps:$4 sm:$0xff]  }
 0x92b   :  { %v4618_v60 = vmax.f32 %v4602_v39, %v4610_v42  ;;  %v4613_v45 = vmax.f32 %v4597_v53, %v4605_v47  ;;  %v4617_v36 = vmax.f32 %v4601_v29, %v4609_v30  ;;  %v4611_v51 = vmul.f32 0.01, %v4603_v34  ;;  %v13160_v25 = vld [vmem:[%s15755_s2 + $0xd4] ss:$8 sps:$4 sm:$0xff]   ;;  %v13162_v26 = vld [vmem:[%s15755_s2 + $0xd0] ss:$8 sps:$4 sm:$0xff]  }
 0x92c   :  { %v4615_v52 = vmax.f32 %v4599_v41, %v4607_v31  ;;  %v10435_v17 = vpack.c.bf16 %v4616_v40, %v4612_v1  ;;  %v13163_v32 = vld [vmem:[%s15755_s2 + $0xe4] ss:$8 sps:$4 sm:$0xff]   ;;  %v13165_v33 = vld [vmem:[%s15755_s2 + $0xe0] ss:$8 sps:$4 sm:$0xff]   ;;  %v13166_v59 = vld [vmem:[%s15755_s2 + $0xf4] ss:$8 sps:$4 sm:$0xff]  }
 0x92d   :  { %v4619_v54 = vmax.f32 %v4603_v34, %v4611_v51  ;;  %v10433_v12 = vpack.c.bf16 %v4617_v36, %v4613_v45  ;;  %v10439_v55 = vpack.c.bf16 %v4618_v60, %v4614_v50  ;;  %v13168_v35 = vld [vmem:[%s15755_s2 + $0xf0] ss:$8 sps:$4 sm:$0xff]   ;;  %v13169_v38 = vld [vmem:[%s15755_s2 + $0x104] ss:$8 sps:$4 sm:$0xff]   ;;  %v13171_v53 = vld [vmem:[%s15755_s2 + $0x100] ss:$8 sps:$4 sm:$0xff]  }
 0x92e   :  { %v13172_v41 = vld [vmem:[%s15755_s2 + $0x114] ss:$8 sps:$4 sm:$0xff]   ;;  %v13174_v14 = vld [vmem:[%s15755_s2 + $0x110] ss:$8 sps:$4 sm:$0xff]   ;;  %v13175_v42 = vld [vmem:[%s15755_s2 + $0x124] ss:$8 sps:$4 sm:$0xff]  }
 0x92f   :  { %10434 = vmatprep.subr.bf16.mxu0 %v10433_v12  ;;  %v10437_v18 = vpack.c.bf16 %v4619_v54, %v4615_v52  ;;  %v13177_v30 = vld [vmem:[%s15755_s2 + $0x120] ss:$8 sps:$4 sm:$0xff]   ;;  %v13178_v1 = vld [vmem:[%s15755_s2 + $0x134] ss:$8 sps:$4 sm:$0xff]   ;;  %v13180_v40 = vld [vmem:[%s15755_s2 + $0x130] ss:$8 sps:$4 sm:$0xff]  }
 0x930   :  { %10436 = vmatpush1.bf16.msra.mxu0 %v10435_v17  ;;  %v13181_v50 = vld [vmem:[%s15755_s2 + $0x144] ss:$8 sps:$4 sm:$0xff]   ;;  %v13183_v31 = vld [vmem:[%s15755_s2 + $0x140] ss:$8 sps:$4 sm:$0xff]   ;;  %v13184_v60 = vld [vmem:[%s15755_s2 + $0x154] ss:$8 sps:$4 sm:$0xff]  }
 0x931   :  { %10438 = vmatprep.subr.bf16.mxu1 %v10437_v18  ;;  %10442 = vmatprep.subr.bf16.mxu0 %v13121_v49  ;;  %v13186_v45 = vld [vmem:[%s15755_s2 + $0x150] ss:$8 sps:$4 sm:$0xff]   ;;  %v13187_v36 = vld [vmem:[%s15755_s2 + $0x164] ss:$8 sps:$4 sm:$0xff]   ;;  %v13189_v51 = vld [vmem:[%s15755_s2 + $0x160] ss:$8 sps:$4 sm:$0xff]  }
 0x932   :  { %10440 = vmatpush1.bf16.msra.mxu1 %v10439_v55  ;;  %v13190_v52 = vld [vmem:[%s15755_s2 + $0x174] ss:$8 sps:$4 sm:$0xff]   ;;  %v13192_v17 = vld [vmem:[%s15755_s2 + $0x170] ss:$8 sps:$4 sm:$0xff]   ;;  %v13193_v54 = vld [vmem:[%s15755_s2 + $0x184] ss:$8 sps:$4 sm:$0xff]  }
 0x933   :  { %8206 = vmatmul.mubr.msk.f32.vlgmr.msra.gmra.mrb[26].mxu0 %vm1775_vm3, %v4620_v56  ;;  %v13195_v12 = vld [vmem:[%s15755_s2 + $0x180] ss:$8 sps:$4 sm:$0xff]   ;;  %v13196_v55 = vld [vmem:[%s15755_s2 + $0x194] ss:$8 sps:$4 sm:$0xff]   ;;  %v13198_v49 = vld [vmem:[%s15755_s2 + $0x190] ss:$8 sps:$4 sm:$0xff]  }
 0x934   :  { %4702 = vmatprep.mubr.f32.mxu0 %v13644_v0  ;;  %10444 = vmatpush1.bf16.msra.mxu0 %v13123_v57  ;;  %v13199_v18 = vld [vmem:[%s15755_s2 + $0x1a4] ss:$8 sps:$4 sm:$0xff]   ;;  %v13202_v57 = vld [vmem:[%s15755_s2 + $0x1b4] ss:$8 sps:$4 sm:$0xff]  }
 0x935   :  { %8209 = vmatmul.mubr.msk.f32.vlgmr.msra.gmra.mrb[42].mxu1 %vm1775_vm3, %v4620_v56  ;;  %10446 = vmatprep.subr.bf16.mxu0 %v13124_v27  ;;  %v13201_v56 = vld [vmem:[%s15755_s2 + $0x1a0] ss:$8 sps:$4 sm:$0xff]   ;;  %v13204_v27 = vld [vmem:[%s15755_s2 + $0x1b0] ss:$8 sps:$4 sm:$0xff]  }
 0x936   :  { %4785 = vmatprep.mubr.f32.mxu1 %v13644_v0 }
 0x937   :  { %8207 = vmatmul.mubr.msk.f32.gmra.mrb[28].mxu0 %vm1775_vm3, %v4621_v58 }
 0x938   :  { %10448 = vmatpush1.bf16.msra.mxu0 %v13126_v22  ;;  %4708 = vmatprep.mubr.f32.mxu0 %v13644_v0  ;;  %v13207_v22 = vld [vmem:[%s15755_s2 + $0x1c0] ss:$8 sps:$4 sm:$0xff]  }
 0x939   :  { %10450 = vmatprep.subr.bf16.mxu0 %v13127_v62  ;;  %8210 = vmatmul.mubr.msk.f32.gmra.mrb[44].mxu1 %vm1775_vm3, %v4621_v58  ;;  %v13205_v58 = vld [vmem:[%s15755_s2 + $0x1c4] ss:$8 sps:$4 sm:$0xff]   ;;  %v13208_v62 = vld [vmem:[%s15755_s2 + $0x1d4] ss:$8 sps:$4 sm:$0xff]  }
 0x93a   :  { %4791 = vmatprep.mubr.f32.mxu1 %v13644_v0 }
 0x93b   :  { %8208 = vmatmul.mubr.msk.f32.gmra.mrb[30].mxu0 %vm1775_vm3, %v4622_v3 }
 0x93c   :  { %10452 = vmatpush1.bf16.msra.mxu0 %v13129_v24  ;;  %v13210_v24 = vld [vmem:[%s15755_s2 + $0x1d0] ss:$8 sps:$4 sm:$0xff]  }
 0x93d   :  { %10454 = vmatprep.subr.bf16.mxu0 %v13130_v13  ;;  %8211 = vmatmul.mubr.msk.f32.gmra.mrb[46].mxu1 %vm1775_vm3, %v4622_v3  ;;  %v13211_v3 = vld [vmem:[%s15755_s2 + $0x1e4] ss:$8 sps:$4 sm:$0xff]   ;;  %v13213_v13 = vld [vmem:[%s15755_s2 + $0x1e0] ss:$8 sps:$4 sm:$0xff]  }
 0x940   :  { %10456 = vmatpush1.bf16.msra.mxu0 %v13132_v4  ;;  %v13214_v4 = vld [vmem:[%s15755_s2 + $0x1f4] ss:$8 sps:$4 sm:$0xff]  }
 0x941   :  { %10458 = vmatprep.subr.bf16.mxu0 %v13133_v23  ;;  %v13216_v23 = vld [vmem:[%s15755_s2 + $0x1f0] ss:$8 sps:$4 sm:$0xff]  }
 0x944   :  { %10460 = vmatpush1.bf16.msra.mxu0 %v13135_v5  ;;  %v13217_v5 = vld [vmem:[%s15755_s2 + $0x204] ss:$8 sps:$4 sm:$0xff]  }
 0x945   :  { %10462 = vmatprep.subr.bf16.mxu0 %v13136_v6 }
 0x948   :  { %10464 = vmatpush1.bf16.msra.mxu0 %v13138_v9  ;;  %v13219_v9 = vld [vmem:[%s15755_s2 + $0x200] ss:$8 sps:$4 sm:$0xff]  }
 0x949   :  { %10466 = vmatprep.subr.bf16.mxu0 %v13139_v10 }
 0x94c   :  { %10468 = vmatpush1.bf16.msra.mxu0 %v13141_v11  ;;  %v13220_v11 = vld [vmem:[%s15755_s2 + $0x214] ss:$8 sps:$4 sm:$0xff]  }
 0x94d   :  { %10470 = vmatprep.subr.bf16.mxu0 %v13142_v43  ;;  %v13222_v43 = vld [vmem:[%s15755_s2 + $0x210] ss:$8 sps:$4 sm:$0xff]  }
 0x950   :  { %10472 = vmatpush1.bf16.msra.mxu0 %v13144_v15  ;;  %v13223_v15 = vld [vmem:[%s15755_s2 + $0x224] ss:$8 sps:$4 sm:$0xff]  }
 0x951   :  { %10474 = vmatprep.subr.bf16.mxu0 %v13145_v16  ;;  %v13225_v16 = vld [vmem:[%s15755_s2 + $0x220] ss:$8 sps:$4 sm:$0xff]  }
 0x954   :  { %10476 = vmatpush1.bf16.msra.mxu0 %v13147_v19  ;;  %v13226_v19 = vld [vmem:[%s15755_s2 + $0x234] ss:$8 sps:$4 sm:$0xff]  }
 0x955   :  { %10478 = vmatprep.subr.bf16.mxu0 %v13148_v2  ;;  %v13228_v2 = vld [vmem:[%s15755_s2 + $0x230] ss:$8 sps:$4 sm:$0xff]  }
 0x958   :  { %10480 = vmatpush1.bf16.msra.mxu0 %v13150_v7  ;;  %v13229_v7 = vld [vmem:[%s15755_s2 + $0x244] ss:$8 sps:$4 sm:$0xff]  }
 0x959   :  { %10482 = vmatprep.subr.bf16.mxu0 %v13151_v48  ;;  %v13231_v48 = vld [vmem:[%s15755_s2 + $0x240] ss:$8 sps:$4 sm:$0xff]  }
 0x95c   :  { %10484 = vmatpush1.bf16.msra.mxu0 %v13153_v20 }
 0x95d   :  { %10486 = vmatprep.subr.bf16.mxu0 %v13154_v8  ;;  %v13232_v8 = vld [vmem:[%s15755_s2 + $0x254] ss:$8 sps:$4 sm:$0xff]  }
 0x960   :  { %10488 = vmatpush1.bf16.msra.mxu0 %v13156_v21 }
 0x961   :  { %10490 = vmatprep.subr.bf16.mxu0 %v13157_v63  ;;  %v13234_v63 = vld [vmem:[%s15755_s2 + $0x250] ss:$8 sps:$4 sm:$0xff]  }
 0x964   :  { %10492 = vmatpush1.bf16.msra.mxu0 %v13159_v61  ;;  %v13235_v61 = vld [vmem:[%s15755_s2 + $0x264] ss:$8 sps:$4 sm:$0xff]  }
 0x965   :  { %10494 = vmatprep.subr.bf16.mxu0 %v13160_v25  ;;  %v13237_v25 = vld [vmem:[%s15755_s2 + $0x260] ss:$8 sps:$4 sm:$0xff]  }
 0x968   :  { %10496 = vmatpush1.bf16.msra.mxu0 %v13162_v26  ;;  %v13238_v26 = vld [vmem:[%s15755_s2 + $0x274] ss:$8 sps:$4 sm:$0xff]  }
 0x969   :  { %10498 = vmatprep.subr.bf16.mxu0 %v13163_v32  ;;  %v13240_v32 = vld [vmem:[%s15755_s2 + $0x270] ss:$8 sps:$4 sm:$0xff]  }
 0x96c   :  { %10500 = vmatpush1.bf16.msra.mxu0 %v13165_v33  ;;  %v13241_v33 = vld [vmem:[%s15755_s2 + $0x284] ss:$8 sps:$4 sm:$0xff]  }
 0x96d   :  { %10502 = vmatprep.subr.bf16.mxu0 %v13166_v59  ;;  %v13243_v59 = vld [vmem:[%s15755_s2 + $0x280] ss:$8 sps:$4 sm:$0xff]  }
 0x970   :  { %10504 = vmatpush1.bf16.msra.mxu0 %v13168_v35  ;;  %v13244_v35 = vld [vmem:[%s15755_s2 + $0x294] ss:$8 sps:$4 sm:$0xff]  }
 0x971   :  { %10506 = vmatprep.subr.bf16.mxu0 %v13169_v38  ;;  %v13246_v38 = vld [vmem:[%s15755_s2 + $0x290] ss:$8 sps:$4 sm:$0xff]  }
 0xa06   :  { %v4698_v39 = vpop.f32.mrb[26].mxu0 }
 0xa07   :  { %v4700_v29 = vpop.f32.mrb[27].mxu0 }
 0xa08   :  { %5462 = vmatprep.mubr.f32.mxu0 %v4700_v29  ;;  %v14555_v34 = vpop.f32.mrb[42].mxu1  ;;  %v13250_v29 = vld [vmem:[%s15755_s2 + $0x2b4] ss:$8 sps:$4 sm:$0xff]  }
 0xa09   :  { %5463 = vmatmul.mubr.f32.vlgmr.msra.gmra.mrb[32].mxu0 %v4698_v39  ;;  %v4783_v28 = vpop.f32.mrb[43].mxu1  ;;  %v13247_v39 = vld [vmem:[%s15755_s2 + $0x2a4] ss:$8 sps:$4 sm:$0xff]  }
 0xa0a   :  { %10508 = vmatpush1.bf16.msra.mxu0 %v13171_v53  ;;  %5533 = vmatprep.mubr.f32.mxu0 %v4783_v28  ;;  %v14560_v44 = vpop.f32.mrb[28].mxu0  ;;  %v13249_v53 = vld [vmem:[%s15755_s2 + $0x2a0] ss:$8 sps:$4 sm:$0xff]  }
 0xa0b   :  { %10510 = vmatprep.subr.bf16.mxu0 %v13172_v41  ;;  %v14565_v47 = vpop.f32.mrb[29].mxu0  ;;  %v13252_v41 = vld [vmem:[%s15755_s2 + $0x2b0] ss:$8 sps:$4 sm:$0xff]   ;;  %v13255_v28 = vld [vmem:[%s15755_s2 + $0x2c0] ss:$8 sps:$4 sm:$0xff]  }
 0xa0c   :  { %v14651_v6 = vpop.f32.mrb[44].mxu1 }
 0xa0d   :  { %v14656_v10 = vpop.f32.mrb[45].mxu1 }
 0xa0e   :  { %10512 = vmatpush1.bf16.msra.mxu0 %v13174_v14  ;;  %v14684_v20 = vpop.f32.mrb[30].mxu0  ;;  %v13256_v14 = vld [vmem:[%s15755_s2 + $0x2d4] ss:$8 sps:$4 sm:$0xff]  }
 0xa0f   :  { %10514 = vmatprep.subr.bf16.mxu0 %v13175_v42  ;;  %v14689_v21 = vpop.f32.mrb[31].mxu0  ;;  %v13258_v42 = vld [vmem:[%s15755_s2 + $0x2d0] ss:$8 sps:$4 sm:$0xff]  }
 0xa12   :  { %10516 = vmatpush1.bf16.msra.mxu0 %v13177_v30  ;;  %v13261_v30 = vld [vmem:[%s15755_s2 + $0x2e0] ss:$8 sps:$4 sm:$0xff]  }
 0xa13   :  { %10518 = vmatprep.subr.bf16.mxu0 %v13178_v1  ;;  %v13262_v1 = vld [vmem:[%s15755_s2 + $0x2f4] ss:$8 sps:$4 sm:$0xff]  }
 0xa16   :  { %10520 = vmatpush1.bf16.msra.mxu0 %v13180_v40  ;;  %v13264_v40 = vld [vmem:[%s15755_s2 + $0x2f0] ss:$8 sps:$4 sm:$0xff]  }
 0xa17   :  { %10522 = vmatprep.subr.bf16.mxu0 %v13181_v50  ;;  %v13265_v50 = vld [vmem:[%s15755_s2 + $0x304] ss:$8 sps:$4 sm:$0xff]  }
 0xa1a   :  { %10524 = vmatpush1.bf16.msra.mxu0 %v13183_v31  ;;  %v13267_v31 = vld [vmem:[%s15755_s2 + $0x300] ss:$8 sps:$4 sm:$0xff]  }
 0xa1b   :  { %10526 = vmatprep.subr.bf16.mxu0 %v13184_v60  ;;  %v13268_v60 = vld [vmem:[%s15755_s2 + $0x314] ss:$8 sps:$4 sm:$0xff]  }
 0xa1e   :  { %10528 = vmatpush1.bf16.msra.mxu0 %v13186_v45  ;;  %v13270_v45 = vld [vmem:[%s15755_s2 + $0x310] ss:$8 sps:$4 sm:$0xff]  }
 0xa1f   :  { %10530 = vmatprep.subr.bf16.mxu0 %v13187_v36  ;;  %v13271_v36 = vld [vmem:[%s15755_s2 + $0x324] ss:$8 sps:$4 sm:$0xff]  }
 0xa22   :  { %10532 = vmatpush1.bf16.msra.mxu0 %v13189_v51  ;;  %v13273_v51 = vld [vmem:[%s15755_s2 + $0x320] ss:$8 sps:$4 sm:$0xff]  }
 0xa23   :  { %10534 = vmatprep.subr.bf16.mxu0 %v13190_v52  ;;  %v13276_v52 = vld [vmem:[%s15755_s2 + $0x330] ss:$8 sps:$4 sm:$0xff]  }
 0xa26   :  { %10536 = vmatpush1.bf16.msra.mxu0 %v13192_v17  ;;  %v13277_v17 = vld [vmem:[%s15755_s2 + $0x344] ss:$8 sps:$4 sm:$0xff]  }
 0xa27   :  { %10538 = vmatprep.subr.bf16.mxu0 %v13193_v54  ;;  %v13279_v54 = vld [vmem:[%s15755_s2 + $0x340] ss:$8 sps:$4 sm:$0xff]  }
 0xa2a   :  { %10540 = vmatpush1.bf16.msra.mxu0 %v13195_v12  ;;  %v13280_v12 = vld [vmem:[%s15755_s2 + $0x354] ss:$8 sps:$4 sm:$0xff]  }
 0xa2b   :  { %10542 = vmatprep.subr.bf16.mxu0 %v13196_v55  ;;  %v13282_v55 = vld [vmem:[%s15755_s2 + $0x350] ss:$8 sps:$4 sm:$0xff]  }
 0xa2e   :  { %10544 = vmatpush1.bf16.msra.mxu0 %v13198_v49  ;;  %v13283_v49 = vld [vmem:[%s15755_s2 + $0x364] ss:$8 sps:$4 sm:$0xff]  }
 0xa2f   :  { %10546 = vmatprep.subr.bf16.mxu0 %v13199_v18  ;;  %v13285_v18 = vld [vmem:[%s15755_s2 + $0x360] ss:$8 sps:$4 sm:$0xff]  }
 0xa32   :  { %10548 = vmatpush1.bf16.msra.mxu0 %v13201_v56  ;;  %v13286_v56 = vld [vmem:[%s15755_s2 + $0x374] ss:$8 sps:$4 sm:$0xff]  }
 0xa33   :  { %10550 = vmatprep.subr.bf16.mxu0 %v13202_v57  ;;  %v13288_v57 = vld [vmem:[%s15755_s2 + $0x370] ss:$8 sps:$4 sm:$0xff]  }
 0xa36   :  { %10552 = vmatpush1.bf16.msra.mxu0 %v13204_v27  ;;  %v13289_v27 = vld [vmem:[%s15755_s2 + $0x384] ss:$8 sps:$4 sm:$0xff]  }
 0xa37   :  { %10554 = vmatprep.subr.bf16.mxu0 %v13205_v58  ;;  %v13291_v58 = vld [vmem:[%s15755_s2 + $0x380] ss:$8 sps:$4 sm:$0xff]  }
 0xa3a   :  { %10556 = vmatpush1.bf16.msra.mxu0 %v13207_v22  ;;  %v13292_v22 = vld [vmem:[%s15755_s2 + $0x394] ss:$8 sps:$4 sm:$0xff]  }
 0xa3b   :  { %10558 = vmatprep.subr.bf16.mxu0 %v13208_v62  ;;  %v13294_v62 = vld [vmem:[%s15755_s2 + $0x390] ss:$8 sps:$4 sm:$0xff]  }
 0xa3e   :  { %10560 = vmatpush1.bf16.msra.mxu0 %v13210_v24  ;;  %v13295_v24 = vld [vmem:[%s15755_s2 + $0x3a4] ss:$8 sps:$4 sm:$0xff]  }
 0xa3f   :  { %10562 = vmatprep.subr.bf16.mxu0 %v13211_v3  ;;  %v13297_v3 = vld [vmem:[%s15755_s2 + $0x3a0] ss:$8 sps:$4 sm:$0xff]  }
 0xa42   :  { %10564 = vmatpush1.bf16.msra.mxu0 %v13213_v13  ;;  %v13298_v13 = vld [vmem:[%s15755_s2 + $0x3b4] ss:$8 sps:$4 sm:$0xff]  }
 0xa43   :  { %10566 = vmatprep.subr.bf16.mxu0 %v13214_v4  ;;  %v13300_v4 = vld [vmem:[%s15755_s2 + $0x3b0] ss:$8 sps:$4 sm:$0xff]  }
 0xa46   :  { %10568 = vmatpush1.bf16.msra.mxu0 %v13216_v23  ;;  %v13301_v23 = vld [vmem:[%s15755_s2 + $0x3c4] ss:$8 sps:$4 sm:$0xff]  }
 0xa47   :  { %10570 = vmatprep.subr.bf16.mxu0 %v13217_v5  ;;  %v13303_v5 = vld [vmem:[%s15755_s2 + $0x3c0] ss:$8 sps:$4 sm:$0xff]  }
 0xa49   :  { %5534 = vmatmul.mubr.f32.vlgmr.msra.gmra.mrb[32].mxu0 %v14555_v34  ;;  %v13253_v34 = vld [vmem:[%s15755_s2 + $0x2c4] ss:$8 sps:$4 sm:$0xff]  }
 0xa4a   :  { %10572 = vmatpush1.bf16.msra.mxu0 %v13219_v9  ;;  %5604 = vmatprep.mubr.f32.mxu0 %v14565_v47  ;;  %v13259_v47 = vld [vmem:[%s15755_s2 + $0x2e4] ss:$8 sps:$4 sm:$0xff]   ;;  %v13304_v9 = vld [vmem:[%s15755_s2 + $0x3d4] ss:$8 sps:$4 sm:$0xff]  }
 0xa4b   :  { %10574 = vmatprep.subr.bf16.mxu0 %v13220_v11  ;;  %v13307_v11 = vld [vmem:[%s15755_s2 + $0x3e4] ss:$8 sps:$4 sm:$0xff]  }
 0xa4e   :  { %10576 = vmatpush1.bf16.msra.mxu0 %v13222_v43  ;;  %v13309_v43 = vld [vmem:[%s15755_s2 + $0x3e0] ss:$8 sps:$4 sm:$0xff]  }
 0xa4f   :  { %10578 = vmatprep.subr.bf16.mxu0 %v13223_v15  ;;  %v13310_v15 = vld [vmem:[%s15755_s2 + $0x3f4] ss:$8 sps:$4 sm:$0xff]  }
 0xa52   :  { %10580 = vmatpush1.bf16.msra.mxu0 %v13225_v16  ;;  %v13312_v16 = vld [vmem:[%s15755_s2 + $0x3f0] ss:$8 sps:$4 sm:$0xff]  }
 0xa53   :  { %10582 = vmatprep.subr.bf16.mxu0 %v13226_v19  ;;  %v14852_v19 = vpop.f32.mrb[46].mxu1 }
 0xa56   :  { %10584 = vmatpush1.bf16.msra.mxu0 %v13228_v2  ;;  %v13313_v2 = vld [vmem:[%s15755_s2 + $0x404] ss:$8 sps:$4 sm:$0xff]  }
 0xa57   :  { %10586 = vmatprep.subr.bf16.mxu0 %v13229_v7  ;;  %v14857_v7 = vpop.f32.mrb[47].mxu1 }
 0xa5a   :  { %10588 = vmatpush1.bf16.msra.mxu0 %v13231_v48  ;;  %v13315_v48 = vld [vmem:[%s15755_s2 + $0x400] ss:$8 sps:$4 sm:$0xff]  }
 0xa5b   :  { %10590 = vmatprep.subr.bf16.mxu0 %v13232_v8  ;;  %v13316_v8 = vld [vmem:[%s15755_s2 + $0x414] ss:$8 sps:$4 sm:$0xff]  }
 0xa5e   :  { %10592 = vmatpush1.bf16.msra.mxu0 %v13234_v63  ;;  %v13318_v63 = vld [vmem:[%s15755_s2 + $0x410] ss:$8 sps:$4 sm:$0xff]  }
 0xa5f   :  { %10594 = vmatprep.subr.bf16.mxu0 %v13235_v61  ;;  %v13319_v61 = vld [vmem:[%s15755_s2 + $0x424] ss:$8 sps:$4 sm:$0xff]  }
 0xa62   :  { %10596 = vmatpush1.bf16.msra.mxu0 %v13237_v25  ;;  %v5868_v25 = vld [vmem:[%s15758_s5 + $0x480] sm:$0xff] }
 0xa63   :  { %10598 = vmatprep.subr.bf16.mxu0 %v13238_v26  ;;  %v5869_v26 = vld [vmem:[%s15758_s5 + $0x488] sm:$0xff] }
 0xa66   :  { %10600 = vmatpush1.bf16.msra.mxu0 %v13240_v32  ;;  %v5852_v32 = vld [vmem:[%s15758_s5 + $0x400] sm:$0xff] }
 0xa67   :  { %10602 = vmatprep.subr.bf16.mxu0 %v13241_v33  ;;  %v5853_v33 = vld [vmem:[%s15758_s5 + $0x408] sm:$0xff] }
 0xa6a   :  { %10604 = vmatpush1.bf16.msra.mxu0 %v13243_v59  ;;  %v5870_v59 = vld [vmem:[%s15758_s5 + $0x490] sm:$0xff] }
 0xa6b   :  { %10606 = vmatprep.subr.bf16.mxu0 %v13244_v35  ;;  %v5871_v35 = vld [vmem:[%s15758_s5 + $0x498] sm:$0xff] }
 0xa6e   :  { %10608 = vmatpush1.bf16.msra.mxu0 %v13246_v38  ;;  %v10827_v38 = vpack.c.bf16 %v5853_v33, %v5852_v32  ;;  %v13378_v32 = vld [vmem:[%s15755_s2 + $0x550] ss:$8 sps:$4 sm:$0xff]   ;;  %v13381_v33 = vld [vmem:[%s15755_s2 + $0x560] ss:$8 sps:$4 sm:$0xff]  }
 0xa6f   :  { %10610 = vmatprep.subr.bf16.mxu0 %v13247_v39  ;;  %v10829_v39 = vpack.c.bf16 %v5871_v35, %v5870_v59  ;;  %v13382_v59 = vld [vmem:[%s15755_s2 + $0x574] ss:$8 sps:$4 sm:$0xff]   ;;  %v13384_v35 = vld [vmem:[%s15755_s2 + $0x570] ss:$8 sps:$4 sm:$0xff]  }
 0xa72   :  { %10612 = vmatpush1.bf16.msra.mxu0 %v13249_v53  ;;  %v5855_v53 = vld [vmem:[%s15758_s5 + $0x418] sm:$0xff] }
 0xa73   :  { %10614 = vmatprep.subr.bf16.mxu0 %v13250_v29  ;;  %v5872_v29 = vld [vmem:[%s15758_s5 + $0x4a0] sm:$0xff] }
 0xa76   :  { %10616 = vmatpush1.bf16.msra.mxu0 %v13252_v41  ;;  %v5873_v41 = vld [vmem:[%s15758_s5 + $0x4a8] sm:$0xff] }
 0xa77   :  { %10618 = vmatprep.subr.bf16.mxu0 %v13253_v34 }
 0xa7a   :  { %10620 = vmatpush1.bf16.msra.mxu0 %v13255_v28  ;;  %v13321_v28 = vld [vmem:[%s15755_s2 + $0x420] ss:$8 sps:$4 sm:$0xff]  }
 0xa7b   :  { %10622 = vmatprep.subr.bf16.mxu0 %v13256_v14  ;;  %v10833_v14 = vpack.c.bf16 %v5873_v41, %v5872_v29  ;;  %v13391_v29 = vld [vmem:[%s15755_s2 + $0x5a4] ss:$8 sps:$4 sm:$0xff]   ;;  %v13393_v41 = vld [vmem:[%s15755_s2 + $0x5a0] ss:$8 sps:$4 sm:$0xff]  }
 0xa7e   :  { %10624 = vmatpush1.bf16.msra.mxu0 %v13258_v42  ;;  %v5856_v42 = vld [vmem:[%s15758_s5 + $0x420] sm:$0xff] }
 0xa7f   :  { %10626 = vmatprep.subr.bf16.mxu0 %v13259_v47  ;;  %v5857_v47 = vld [vmem:[%s15758_s5 + $0x428] sm:$0xff] }
 0xa82   :  { %10628 = vmatpush1.bf16.msra.mxu0 %v13261_v30  ;;  %v13322_v30 = vld [vmem:[%s15755_s2 + $0x434] ss:$8 sps:$4 sm:$0xff]  }
 0xa83   :  { %10630 = vmatprep.subr.bf16.mxu0 %v13262_v1  ;;  %v5874_v1 = vld [vmem:[%s15758_s5 + $0x4b0] sm:$0xff] }
 0xa86   :  { %10632 = vmatpush1.bf16.msra.mxu0 %v13264_v40  ;;  %v5875_v40 = vld [vmem:[%s15758_s5 + $0x4b8] sm:$0xff] }
 0xa87   :  { %10634 = vmatprep.subr.bf16.mxu0 %v13265_v50  ;;  %v10835_v50 = vpack.c.bf16 %v5857_v47, %v5856_v42  ;;  %v13399_v42 = vld [vmem:[%s15755_s2 + $0x5c0] ss:$8 sps:$4 sm:$0xff]   ;;  %v13400_v47 = vld [vmem:[%s15755_s2 + $0x5d4] ss:$8 sps:$4 sm:$0xff]  }
 0xa89   :  { %5605 = vmatmul.mubr.f32.vlgmr.msra.gmra.mrb[32].mxu0 %v14560_v44  ;;  %v13274_v44 = vld [vmem:[%s15755_s2 + $0x334] ss:$8 sps:$4 sm:$0xff]  }
 0xa8a   :  { %10636 = vmatpush1.bf16.msra.mxu0 %v13267_v31  ;;  %5675 = vmatprep.mubr.f32.mxu0 %v14656_v10  ;;  %v13306_v10 = vld [vmem:[%s15755_s2 + $0x3d0] ss:$8 sps:$4 sm:$0xff]  }
 0xa8b   :  { %10638 = vmatprep.subr.bf16.mxu0 %v13268_v60  ;;  %v13324_v31 = vld [vmem:[%s15755_s2 + $0x430] ss:$8 sps:$4 sm:$0xff]   ;;  %v10837_v60 = vpack.c.bf16 %v5875_v40, %v5874_v1  ;;  %v13403_v1 = vld [vmem:[%s15755_s2 + $0x5e4] ss:$8 sps:$4 sm:$0xff]   ;;  %v13405_v40 = vld [vmem:[%s15755_s2 + $0x5e0] ss:$8 sps:$4 sm:$0xff]  }
 0xa8e   :  { %10640 = vmatpush1.bf16.msra.mxu0 %v13270_v45  ;;  %v5858_v45 = vld [vmem:[%s15758_s5 + $0x430] sm:$0xff] }
 0xa8f   :  { %10642 = vmatprep.subr.bf16.mxu0 %v13271_v36  ;;  %v5859_v36 = vld [vmem:[%s15758_s5 + $0x438] sm:$0xff] }
 0xa92   :  { %10644 = vmatpush1.bf16.msra.mxu0 %v13273_v51  ;;  %v13325_v51 = vld [vmem:[%s15755_s2 + $0x444] ss:$8 sps:$4 sm:$0xff]  }
 0xa93   :  { %10646 = vmatprep.subr.bf16.mxu0 %v13274_v44  ;;  %v10839_v44 = vpack.c.bf16 %v5859_v36, %v5858_v45  ;;  %v5877_v45 = vld [vmem:[%s15758_s5 + $0x4c8] sm:$0xff] }
 0xa96   :  { %10648 = vmatpush1.bf16.msra.mxu0 %v13276_v52  ;;  %v13327_v52 = vld [vmem:[%s15755_s2 + $0x440] ss:$8 sps:$4 sm:$0xff]  }
 0xa97   :  { %10650 = vmatprep.subr.bf16.mxu0 %v13277_v17  ;;  %v13328_v17 = vld [vmem:[%s15755_s2 + $0x454] ss:$8 sps:$4 sm:$0xff]  }
 0xa9a   :  { %10652 = vmatpush1.bf16.msra.mxu0 %v13279_v54  ;;  %v13330_v54 = vld [vmem:[%s15755_s2 + $0x450] ss:$8 sps:$4 sm:$0xff]  }
 0xa9b   :  { %10654 = vmatprep.subr.bf16.mxu0 %v13280_v12  ;;  %v13331_v12 = vld [vmem:[%s15755_s2 + $0x464] ss:$8 sps:$4 sm:$0xff]  }
 0xa9e   :  { %10656 = vmatpush1.bf16.msra.mxu0 %v13282_v55  ;;  %v13333_v55 = vld [vmem:[%s15755_s2 + $0x460] ss:$8 sps:$4 sm:$0xff]  }
 0xa9f   :  { %10658 = vmatprep.subr.bf16.mxu0 %v13283_v49  ;;  %v13334_v49 = vld [vmem:[%s15755_s2 + $0x474] ss:$8 sps:$4 sm:$0xff]  }
 0xaa2   :  { %10660 = vmatpush1.bf16.msra.mxu0 %v13285_v18  ;;  %v13336_v18 = vld [vmem:[%s15755_s2 + $0x470] ss:$8 sps:$4 sm:$0xff]  }
 0xaa3   :  { %10662 = vmatprep.subr.bf16.mxu0 %v13286_v56  ;;  %v13337_v56 = vld [vmem:[%s15755_s2 + $0x484] ss:$8 sps:$4 sm:$0xff]  }
 0xaa6   :  { %10664 = vmatpush1.bf16.msra.mxu0 %v13288_v57  ;;  %v13339_v57 = vld [vmem:[%s15755_s2 + $0x480] ss:$8 sps:$4 sm:$0xff]  }
 0xaa7   :  { %10666 = vmatprep.subr.bf16.mxu0 %v13289_v27  ;;  %v13340_v27 = vld [vmem:[%s15755_s2 + $0x494] ss:$8 sps:$4 sm:$0xff]  }
 0xaaa   :  { %10668 = vmatpush1.bf16.msra.mxu0 %v13291_v58  ;;  %v13342_v58 = vld [vmem:[%s15755_s2 + $0x490] ss:$8 sps:$4 sm:$0xff]  }
 0xaab   :  { %10670 = vmatprep.subr.bf16.mxu0 %v13292_v22  ;;  %v13343_v22 = vld [vmem:[%s15755_s2 + $0x4a4] ss:$8 sps:$4 sm:$0xff]  }
 0xaae   :  { %10672 = vmatpush1.bf16.msra.mxu0 %v13294_v62  ;;  %v13345_v62 = vld [vmem:[%s15755_s2 + $0x4a0] ss:$8 sps:$4 sm:$0xff]  }
 0xaaf   :  { %10674 = vmatprep.subr.bf16.mxu0 %v13295_v24  ;;  %v13346_v24 = vld [vmem:[%s15755_s2 + $0x4b4] ss:$8 sps:$4 sm:$0xff]  }
 0xab2   :  { %10676 = vmatpush1.bf16.msra.mxu0 %v13297_v3  ;;  %v13348_v3 = vld [vmem:[%s15755_s2 + $0x4b0] ss:$8 sps:$4 sm:$0xff]  }
 0xab3   :  { %10678 = vmatprep.subr.bf16.mxu0 %v13298_v13  ;;  %v13349_v13 = vld [vmem:[%s15755_s2 + $0x4c4] ss:$8 sps:$4 sm:$0xff]  }
 0xab6   :  { %10680 = vmatpush1.bf16.msra.mxu0 %v13300_v4  ;;  %v13351_v4 = vld [vmem:[%s15755_s2 + $0x4c0] ss:$8 sps:$4 sm:$0xff]  }
 0xab7   :  { %10682 = vmatprep.subr.bf16.mxu0 %v13301_v23  ;;  %v13352_v23 = vld [vmem:[%s15755_s2 + $0x4d4] ss:$8 sps:$4 sm:$0xff]  }
 0xaba   :  { %10684 = vmatpush1.bf16.msra.mxu0 %v13303_v5  ;;  %v13354_v5 = vld [vmem:[%s15755_s2 + $0x4d0] ss:$8 sps:$4 sm:$0xff]  }
 0xabb   :  { %10686 = vmatprep.subr.bf16.mxu0 %v13304_v9  ;;  %v13355_v9 = vld [vmem:[%s15755_s2 + $0x4e4] ss:$8 sps:$4 sm:$0xff]  }
 0xabe   :  { %10688 = vmatpush1.bf16.msra.mxu0 %v13306_v10  ;;  %v13357_v10 = vld [vmem:[%s15755_s2 + $0x4e0] ss:$8 sps:$4 sm:$0xff]  }
 0xabf   :  { %10690 = vmatprep.subr.bf16.mxu0 %v13307_v11  ;;  %v13358_v11 = vld [vmem:[%s15755_s2 + $0x4f4] ss:$8 sps:$4 sm:$0xff]  }
 0xac2   :  { %10692 = vmatpush1.bf16.msra.mxu0 %v13309_v43  ;;  %v13360_v43 = vld [vmem:[%s15755_s2 + $0x4f0] ss:$8 sps:$4 sm:$0xff]  }
 0xac3   :  { %10694 = vmatprep.subr.bf16.mxu0 %v13310_v15  ;;  %v13361_v15 = vld [vmem:[%s15755_s2 + $0x504] ss:$8 sps:$4 sm:$0xff]  }
 0xac6   :  { %10696 = vmatpush1.bf16.msra.mxu0 %v13312_v16  ;;  %v13363_v16 = vld [vmem:[%s15755_s2 + $0x500] ss:$8 sps:$4 sm:$0xff]  }
 0xac7   :  { %10698 = vmatprep.subr.bf16.mxu0 %v13313_v2  ;;  %v13364_v2 = vld [vmem:[%s15755_s2 + $0x514] ss:$8 sps:$4 sm:$0xff]  }
 0xac9   :  { %5676 = vmatmul.mubr.f32.vlgmr.msra.gmra.mrb[32].mxu0 %v14651_v6  ;;  %v10825_v6 = vpack.c.bf16 %v5869_v26, %v5868_v25  ;;  %v13375_v25 = vld [vmem:[%s15755_s2 + $0x540] ss:$8 sps:$4 sm:$0xff]   ;;  %v13376_v26 = vld [vmem:[%s15755_s2 + $0x554] ss:$8 sps:$4 sm:$0xff]  }
 0xaca   :  { %10700 = vmatpush1.bf16.msra.mxu0 %v13315_v48  ;;  %5746 = vmatprep.mubr.f32.mxu0 %v14689_v21  ;;  %v5854_v21 = vld [vmem:[%s15758_s5 + $0x410] sm:$0xff] }
 0xacb   :  { %10702 = vmatprep.subr.bf16.mxu0 %v13316_v8  ;;  %10826 = vmatprep.subr.bf16.mxu1 %v10825_v6  ;;  %v10831_v34 = vpack.c.bf16 %v5855_v53, %v5854_v21  ;;  %v13366_v48 = vld [vmem:[%s15755_s2 + $0x510] ss:$8 sps:$4 sm:$0xff]   ;;  %v13367_v8 = vld [vmem:[%s15755_s2 + $0x524] ss:$8 sps:$4 sm:$0xff]   ;;  %v13388_v21 = vld [vmem:[%s15755_s2 + $0x594] ss:$8 sps:$4 sm:$0xff]  }
 0xacc   :  { %10828 = vmatpush3.bf16.msra.mxu1 %v10827_v38  ;;  %v13379_v6 = vld [vmem:[%s15755_s2 + $0x564] ss:$8 sps:$4 sm:$0xff]   ;;  %v13390_v53 = vld [vmem:[%s15755_s2 + $0x590] ss:$8 sps:$4 sm:$0xff]  }
 0xacd   :  { %10830 = vmatprep.subr.bf16.mxu1 %v10829_v39  ;;  %v13385_v38 = vld [vmem:[%s15755_s2 + $0x584] ss:$8 sps:$4 sm:$0xff]   ;;  %v13387_v39 = vld [vmem:[%s15755_s2 + $0x580] ss:$8 sps:$4 sm:$0xff]  }
 0xace   :  { %10704 = vmatpush1.bf16.msra.mxu0 %v13318_v63  ;;  %v13369_v63 = vld [vmem:[%s15755_s2 + $0x520] ss:$8 sps:$4 sm:$0xff]  }
 0xacf   :  { %10706 = vmatprep.subr.bf16.mxu0 %v13319_v61  ;;  %v13373_v61 = vld [vmem:[%s15755_s2 + $0x544] ss:$8 sps:$4 sm:$0xff]  }
 0xad0   :  { %10832 = vmatpush3.bf16.msra.mxu1 %v10831_v34  ;;  %v13394_v34 = vld [vmem:[%s15755_s2 + $0x5b4] ss:$8 sps:$4 sm:$0xff]  }
 0xad1   :  { %10834 = vmatprep.subr.bf16.mxu1 %v10833_v14  ;;  %v13397_v14 = vld [vmem:[%s15755_s2 + $0x5c4] ss:$8 sps:$4 sm:$0xff]  }
 0xad2   :  { %10708 = vmatpush1.bf16.msra.mxu0 %v13321_v28  ;;  %v13396_v28 = vld [vmem:[%s15755_s2 + $0x5b0] ss:$8 sps:$4 sm:$0xff]  }
 0xad3   :  { %10710 = vmatprep.subr.bf16.mxu0 %v13322_v30  ;;  %v13402_v30 = vld [vmem:[%s15755_s2 + $0x5d0] ss:$8 sps:$4 sm:$0xff]  }
 0xad4   :  { %10836 = vmatpush3.bf16.msra.mxu1 %v10835_v50  ;;  %v13406_v50 = vld [vmem:[%s15755_s2 + $0x5f4] ss:$8 sps:$4 sm:$0xff]  }
 0xad5   :  { %10838 = vmatprep.subr.bf16.mxu1 %v10837_v60  ;;  %v5876_v60 = vld [vmem:[%s15758_s5 + $0x4c0] sm:$0xff] }
 0xad6   :  { %10712 = vmatpush1.bf16.msra.mxu0 %v13324_v31  ;;  %v13408_v31 = vld [vmem:[%s15755_s2 + $0x5f0] ss:$8 sps:$4 sm:$0xff]   ;;  %v10841_v36 = vpack.c.bf16 %v5877_v45, %v5876_v60 }
 0xad7   :  { %10714 = vmatprep.subr.bf16.mxu0 %v13325_v51  ;;  %v5860_v51 = vld [vmem:[%s15758_s5 + $0x440] sm:$0xff] }
 0xad8   :  { %10840 = vmatpush3.bf16.msra.mxu1 %v10839_v44  ;;  %v5861_v44 = vld [vmem:[%s15758_s5 + $0x448] sm:$0xff] }
 0xad9   :  { %10842 = vmatprep.subr.bf16.mxu1 %v10841_v36 }
 0xada   :  { %10716 = vmatpush1.bf16.msra.mxu0 %v13327_v52  ;;  %v10843_v52 = vpack.c.bf16 %v5861_v44, %v5860_v51 }
 0xadb   :  { %10718 = vmatprep.subr.bf16.mxu0 %v13328_v17  ;;  %v5879_v17 = vld [vmem:[%s15758_s5 + $0x4d8] sm:$0xff] }
 0xadc   :  { %10844 = vmatpush3.bf16.msra.mxu1 %v10843_v52 }
 0xade   :  { %10720 = vmatpush1.bf16.msra.mxu0 %v13330_v54 }
 0xadf   :  { %10722 = vmatprep.subr.bf16.mxu0 %v13331_v12  ;;  %v5862_v12 = vld [vmem:[%s15758_s5 + $0x450] sm:$0xff] }
 0xae2   :  { %10724 = vmatpush1.bf16.msra.mxu0 %v13333_v55  ;;  %v5863_v55 = vld [vmem:[%s15758_s5 + $0x458] sm:$0xff] }
 0xae3   :  { %10726 = vmatprep.subr.bf16.mxu0 %v13334_v49  ;;  %v10847_v49 = vpack.c.bf16 %v5863_v55, %v5862_v12 }
 0xae6   :  { %10728 = vmatpush1.bf16.msra.mxu0 %v13336_v18  ;;  %v5880_v18 = vld [vmem:[%s15758_s5 + $0x4e0] sm:$0xff] }
 0xae7   :  { %10730 = vmatprep.subr.bf16.mxu0 %v13337_v56  ;;  %v5881_v56 = vld [vmem:[%s15758_s5 + $0x4e8] sm:$0xff] }
 0xaea   :  { %10732 = vmatpush1.bf16.msra.mxu0 %v13339_v57  ;;  %v10849_v57 = vpack.c.bf16 %v5881_v56, %v5880_v18 }
 0xaeb   :  { %10734 = vmatprep.subr.bf16.mxu0 %v13340_v27  ;;  %v5864_v27 = vld [vmem:[%s15758_s5 + $0x460] sm:$0xff] }
 0xaee   :  { %10736 = vmatpush1.bf16.msra.mxu0 %v13342_v58  ;;  %v5865_v58 = vld [vmem:[%s15758_s5 + $0x468] sm:$0xff] }
 0xaef   :  { %10738 = vmatprep.subr.bf16.mxu0 %v13343_v22  ;;  %v10851_v22 = vpack.c.bf16 %v5865_v58, %v5864_v27 }
 0xaf2   :  { %10740 = vmatpush1.bf16.msra.mxu0 %v13345_v62  ;;  %v5882_v62 = vld [vmem:[%s15758_s5 + $0x4f0] sm:$0xff] }
 0xaf3   :  { %10742 = vmatprep.subr.bf16.mxu0 %v13346_v24  ;;  %v5883_v24 = vld [vmem:[%s15758_s5 + $0x4f8] sm:$0xff] }
 0xaf6   :  { %10744 = vmatpush1.bf16.msra.mxu0 %v13348_v3  ;;  %v5866_v3 = vld [vmem:[%s15758_s5 + $0x470] sm:$0xff] }
 0xaf7   :  { %10746 = vmatprep.subr.bf16.mxu0 %v13349_v13  ;;  %v10853_v13 = vpack.c.bf16 %v5883_v24, %v5882_v62 }
 0xafa   :  { %10748 = vmatpush1.bf16.msra.mxu0 %v13351_v4  ;;  %v5867_v4 = vld [vmem:[%s15758_s5 + $0x478] sm:$0xff] }
 0xafb   :  { %10750 = vmatprep.subr.bf16.mxu0 %v13352_v23  ;;  %v10855_v23 = vpack.c.bf16 %v5867_v4, %v5866_v3 }
 0xafe   :  { %10752 = vmatpush1.bf16.msra.mxu0 %v13354_v5 }
 0xaff   :  { %10754 = vmatprep.subr.bf16.mxu0 %v13355_v9 }
 0xb02   :  { %10756 = vmatpush1.bf16.msra.mxu0 %v13357_v10 }
 0xb03   :  { %10758 = vmatprep.subr.bf16.mxu0 %v13358_v11 }
 0xb06   :  { %10760 = vmatpush1.bf16.msra.mxu0 %v13360_v43 }
 0xb07   :  { %10762 = vmatprep.subr.bf16.mxu0 %v13361_v15 }
 0xb09   :  { %5747 = vmatmul.mubr.f32.vlgmr.msra.gmra.mrb[32].mxu0 %v14684_v20  ;;  %v13370_v20 = vld [vmem:[%s15755_s2 + $0x534] ss:$8 sps:$4 sm:$0xff]  }
 0xb0a   :  { %10764 = vmatpush1.bf16.msra.mxu0 %v13363_v16  ;;  %5817 = vmatprep.mubr.f32.mxu0 %v14857_v7  ;;  %v13372_v7 = vld [vmem:[%s15755_s2 + $0x530] ss:$8 sps:$4 sm:$0xff]  }
 0xb0b   :  { %10766 = vmatprep.subr.bf16.mxu0 %v13364_v2 }
 0xb0e   :  { %10768 = vmatpush1.bf16.msra.mxu0 %v13366_v48 }
 0xb0f   :  { %10770 = vmatprep.subr.bf16.mxu0 %v13367_v8 }
 0xb12   :  { %10772 = vmatpush1.bf16.msra.mxu0 %v13369_v63 }
 0xb13   :  { %10774 = vmatprep.subr.bf16.mxu0 %v13370_v20 }
 0xb16   :  { %10776 = vmatpush1.bf16.msra.mxu0 %v13372_v7 }
 0xb17   :  { %10778 = vmatprep.subr.bf16.mxu0 %v13373_v61 }
 0xb1a   :  { %10780 = vmatpush1.bf16.msra.mxu0 %v13375_v25 }
 0xb1b   :  { %10782 = vmatprep.subr.bf16.mxu0 %v13376_v26 }
 0xb1e   :  { %10784 = vmatpush1.bf16.msra.mxu0 %v13378_v32 }
 0xb1f   :  { %10786 = vmatprep.subr.bf16.mxu0 %v13379_v6 }
 0xb22   :  { %10788 = vmatpush1.bf16.msra.mxu0 %v13381_v33 }
 0xb23   :  { %10790 = vmatprep.subr.bf16.mxu0 %v13382_v59 }
 0xb26   :  { %10792 = vmatpush1.bf16.msra.mxu0 %v13384_v35 }
 0xb27   :  { %10794 = vmatprep.subr.bf16.mxu0 %v13385_v38 }
 0xb2a   :  { %10796 = vmatpush1.bf16.msra.mxu0 %v13387_v39 }
 0xb2b   :  { %10798 = vmatprep.subr.bf16.mxu0 %v13388_v21 }
 0xb2e   :  { %10800 = vmatpush1.bf16.msra.mxu0 %v13390_v53 }
 0xb2f   :  { %10802 = vmatprep.subr.bf16.mxu0 %v13391_v29 }
 0xb32   :  { %10804 = vmatpush1.bf16.msra.mxu0 %v13393_v41 }
 0xb33   :  { %10806 = vmatprep.subr.bf16.mxu0 %v13394_v34 }
 0xb36   :  { %10808 = vmatpush1.bf16.msra.mxu0 %v13396_v28 }
 0xb37   :  { %10810 = vmatprep.subr.bf16.mxu0 %v13397_v14 }
 0xb3a   :  { %10812 = vmatpush1.bf16.msra.mxu0 %v13399_v42  ;;  %v5970_v42 = vld [vmem:[#allocation7 + $0x48] sm:$0xff] }
 0xb3b   :  { %10814 = vmatprep.subr.bf16.mxu0 %v13400_v47  ;;  %v5972_v47 = vld [vmem:[#allocation7 + $0x68] sm:$0xff] }
 0xb3e   :  { %10816 = vmatpush1.bf16.msra.mxu0 %v13402_v30  ;;  %v10857_v30 = vpack.c.bf16 %v5972_v47, %v5970_v42  ;;  %v13448_v42 = vld [vmem:[%s15755_s2 + $0x6d4] ss:$8 sps:$4 sm:$0xff]   ;;  %v13450_v47 = vld [vmem:[%s15755_s2 + $0x6d0] ss:$8 sps:$4 sm:$0xff]  }
 0xb3f   :  { %10818 = vmatprep.subr.bf16.mxu0 %v13403_v1  ;;  %v5969_v1 = vld [vmem:[#allocation7 + $0x40] sm:$0xff] }
 0xb42   :  { %10820 = vmatpush1.bf16.msra.mxu0 %v13405_v40  ;;  %v5971_v40 = vld [vmem:[#allocation7 + $0x60] sm:$0xff] }
 0xb43   :  { %10822 = vmatprep.subr.bf16.mxu0 %v13406_v50  ;;  %v10859_v50 = vpack.c.bf16 %v5971_v40, %v5969_v1  ;;  %v13453_v1 = vld [vmem:[%s15755_s2 + $0x6e0] ss:$8 sps:$4 sm:$0xff]   ;;  %v13454_v40 = vld [vmem:[%s15755_s2 + $0x6f4] ss:$8 sps:$4 sm:$0xff]  }
 0xb46   :  { %10824 = vmatpush1.bf16.msra.mxu0 %v13408_v31 }
 0xb49   :  { %5818 = vmatmul.mubr.f32.vlgmr.msra.gmra.mrb[32].mxu0 %v14852_v19  ;;  %v5878_v19 = vld [vmem:[%s15758_s5 + $0x4d0] sm:$0xff] }
 0xb4a   :  { %v10845_v54 = vpack.c.bf16 %v5879_v17, %v5878_v19  ;;  %9042 = vmatprep.mubr.msk.f32.mxu0 %vm13646_vm4, %v13644_v0 }
 0xb4c   :  { %10846 = vmatprep.subr.bf16.mxu1 %v10845_v54 }
 0xb4d   :  { %10848 = vmatpush3.bf16.msra.mxu1 %v10847_v49 }
 0xb4e   :  { %10850 = vmatprep.subr.bf16.mxu1 %v10849_v57 }
 0xb51   :  { %10852 = vmatpush3.bf16.msra.mxu1 %v10851_v22 }
 0xb52   :  { %10854 = vmatprep.subr.bf16.mxu1 %v10853_v13 }
 0xb55   :  { %10856 = vmatpush3.bf16.msra.mxu1 %v10855_v23 }
 0xb56   :  { %10858 = vmatprep.subr.bf16.mxu1 %v10857_v30  ;;  %v13451_v30 = vld [vmem:[%s15755_s2 + $0x6e4] ss:$8 sps:$4 sm:$0xff]  }
 0xc1c   :  { %v5819_v5 = vpop.f32.mrb[32].mxu0 }
 0xc1d   :  { %v5824_v9 = vrot.slane %v5819_v5, 4  ;;  %v5836_v10 = vmul.f32 %v5819_v5, %v5819_v5  ;;  %v5821_v11 = vpop.f32.mrb[33].mxu0 }
 0xc1e   :  { %v5830_v43 = vrot.slane %v5821_v11, 4  ;;  %v5837_v15 = vmul.f32 %v5821_v11, %v5821_v11 }
 0xc1f   :  { %v5825_v16 = vadd.f32 %v5824_v9, %v5819_v5  ;;  %v5838_v2 = vrot.slane %v5836_v10, 4  ;;  %v13409_v9 = vld [vmem:[%s15755_s2 + $0x604] ss:$8 sps:$4 sm:$0xff]  }
 0xc20   :  { %v5831_v48 = vadd.f32 %v5830_v43, %v5821_v11  ;;  %v5844_v8 = vrot.slane %v5837_v15, 4  ;;  %v6071_v43 = vld [vmem:[%s15757_s4 + $0x78] sm:$0xff] }
 0xc21   :  { %v5826_v63 = vrot.slane %v5825_v16, 2  ;;  %v5839_v20 = vadd.f32 %v5838_v2, %v5836_v10  ;;  %v13415_v2 = vld [vmem:[%s15755_s2 + $0x624] ss:$8 sps:$4 sm:$0xff]  }
 0xc22   :  { %v5832_v7 = vrot.slane %v5831_v48, 2  ;;  %v5845_v61 = vadd.f32 %v5844_v8, %v5837_v15  ;;  %v6072_v15 = vld [vmem:[%s15757_s4 + $0x80] sm:$0xff] }
 0xc23   :  { %v5827_v25 = vadd.f32 %v5826_v63, %v5825_v16  ;;  %v5840_v26 = vrot.slane %v5839_v20, 2  ;;  %v13414_v16 = vld [vmem:[%s15755_s2 + $0x610] ss:$8 sps:$4 sm:$0xff]   ;;  %v13417_v8 = vld [vmem:[%s15755_s2 + $0x620] ss:$8 sps:$4 sm:$0xff]  }
 0xc24   :  { %v5833_v32 = vadd.f32 %v5832_v7, %v5831_v48  ;;  %v5846_v6 = vrot.slane %v5845_v61, 2  ;;  %v6073_v48 = vld [vmem:[%s15757_s4 + $0x88] sm:$0xff]  ;;  %v13418_v63 = vld [vmem:[%s15755_s2 + $0x634] ss:$8 sps:$4 sm:$0xff]  }
 0xc25   :  { %v5841_v33 = vadd.f32 %v5840_v26, %v5839_v20  ;;  %v5828_v38 = vrot.slane %v5827_v25, 1  ;;  %v13420_v20 = vld [vmem:[%s15755_s2 + $0x630] ss:$8 sps:$4 sm:$0xff]   ;;  %v13421_v7 = vld [vmem:[%s15755_s2 + $0x644] ss:$8 sps:$4 sm:$0xff]  }
 0xc26   :  { %v5834_v59 = vrot.slane %v5833_v32, 1  ;;  %v5847_v35 = vadd.f32 %v5846_v6, %v5845_v61  ;;  %v13423_v61 = vld [vmem:[%s15755_s2 + $0x640] ss:$8 sps:$4 sm:$0xff]   ;;  %v13426_v26 = vld [vmem:[%s15755_s2 + $0x650] ss:$8 sps:$4 sm:$0xff]  }
 0xc27   :  { %v5842_v39 = vrot.slane %v5841_v33, 1  ;;  %v5829_v34 = vadd.f32 %v5828_v38, %v5827_v25  ;;  %v13424_v25 = vld [vmem:[%s15755_s2 + $0x654] ss:$8 sps:$4 sm:$0xff]   ;;  %v13429_v6 = vld [vmem:[%s15755_s2 + $0x660] ss:$8 sps:$4 sm:$0xff]  }
 0xc28   :  { %v5848_v21 = vrot.slane %v5847_v35, 1  ;;  %v5835_v29 = vadd.f32 %v5834_v59, %v5833_v32  ;;  %v13427_v32 = vld [vmem:[%s15755_s2 + $0x664] ss:$8 sps:$4 sm:$0xff]   ;;  %v13432_v59 = vld [vmem:[%s15755_s2 + $0x670] ss:$8 sps:$4 sm:$0xff]  }
 0xc29   :  { %v5843_v53 = vadd.f32 %v5842_v39, %v5841_v33  ;;  %v13430_v33 = vld [vmem:[%s15755_s2 + $0x674] ss:$8 sps:$4 sm:$0xff]   ;;  %v13435_v38 = vld [vmem:[%s15755_s2 + $0x680] ss:$8 sps:$4 sm:$0xff]  }
 0xc2a   :  { %v5849_v41 = vadd.f32 %v5848_v21, %v5847_v35  ;;  %v13433_v35 = vld [vmem:[%s15755_s2 + $0x684] ss:$8 sps:$4 sm:$0xff]   ;;  %v13436_v39 = vld [vmem:[%s15755_s2 + $0x694] ss:$8 sps:$4 sm:$0xff]   ;;  %v13438_v21 = vld [vmem:[%s15755_s2 + $0x690] ss:$8 sps:$4 sm:$0xff]  }
 0xc2b   :  { %v5850_v14 = vsel %vm1331_vm1, %v5829_v34, %v5843_v53  ;;  %v13439_v53 = vld [vmem:[%s15755_s2 + $0x6a4] ss:$8 sps:$4 sm:$0xff]   ;;  %v13444_v34 = vld [vmem:[%s15755_s2 + $0x6b0] ss:$8 sps:$4 sm:$0xff]  }
 0xc2c   :  { %v5851_v28 = vsel %vm1331_vm1, %v5835_v29, %v5849_v41  ;;  %v13441_v29 = vld [vmem:[%s15755_s2 + $0x6a0] ss:$8 sps:$4 sm:$0xff]   ;;  %v13442_v41 = vld [vmem:[%s15755_s2 + $0x6b4] ss:$8 sps:$4 sm:$0xff]  }
 0xc2d   :  { %5948 = vmatprep.mubr.f32.mxu1 %v5851_v28  ;;  %v13445_v28 = vld [vmem:[%s15755_s2 + $0x6c4] ss:$8 sps:$4 sm:$0xff]  }
 0xc2e   :  { %5949 = vmatmul.mubr.f32.vlgmr.msra.gmra.mrb[48].mxu1 %v5850_v14  ;;  %v13447_v14 = vld [vmem:[%s15755_s2 + $0x6c0] ss:$8 sps:$4 sm:$0xff]  }
 0xc2f   :  { %6040 = vmatprep.mubr.f32.mxu1 %v13644_v0  ;;  %10860 = vmatpush1.bf16.msra.mxu1 %v10859_v50  ;;  %v13456_v50 = vld [vmem:[%s15755_s2 + $0x6f0] ss:$8 sps:$4 sm:$0xff]  }
 0xd01   :  { %v8756_v31 = vpop.f32.mrb[48].mxu1 }
 0xd02   :  { %v8757_v60 = vpop.f32.mrb[49].mxu1 }
 0xd03   :  { %v8758_v45 = vadd.f32 %v8757_v60, %v8756_v31  ;;  %v13457_v31 = vld [vmem:[%s15755_s2 + $0x704] ss:$8 sps:$4 sm:$0xff]  }
 0xd05   :  { %v5954_v36 = vmul.f32 %v8758_v45, %v8758_v45 }
 0xd07   :  { %v5956_v51 = vrot.slane %v5954_v36, 7 }
 0xd09   :  { %v5958_v44 = vsub.f32 %v8758_v45, %v5956_v51  ;;  %v13460_v51 = vld [vmem:[%s15755_s2 + $0x714] ss:$8 sps:$4 sm:$0xff]  }
 0xd0b   :  { %v5959_v52 = vadd.f32 1e-05, %v5958_v44  ;;  %v13462_v44 = vld [vmem:[%s15755_s2 + $0x710] ss:$8 sps:$4 sm:$0xff]  }
 0xd0d   :  { %13557 = vrsqrt.f32 %v5959_v52 }
 0xd17   :  { %v13558_v19 = vpop.eup %13557 }
 0xd18   :  { %v5962_v17 = vrot.slane %v13558_v19, 1  ;;  %v13463_v19 = vld [vmem:[%s15755_s2 + $0x724] ss:$8 sps:$4 sm:$0xff]  }
 0xd1a   :  { %v5964_v54 = vmul.f32 %v8758_v45, %v5962_v17  ;;  %v13459_v45 = vld [vmem:[%s15755_s2 + $0x700] ss:$8 sps:$4 sm:$0xff]  }
 0xd1c   :  { %v5966_v12 = vrot.slane %v5964_v54, 7  ;;  %v13465_v54 = vld [vmem:[%s15755_s2 + $0x720] ss:$8 sps:$4 sm:$0xff]  }
 0xd1e   :  { %v5968_v55 = vsel %vm1331_vm1, %v5962_v17, %v5966_v12 }
 0xd1f   :  { %8212 = vmatmul.mubr.msk.f32.vlgmr.msra.gmra.mrb[50].mxu1 %vm1775_vm3, %v5968_v55  ;;  %v13466_v55 = vld [vmem:[%s15755_s2 + $0x734] ss:$8 sps:$4 sm:$0xff]  }
 0xd20   :  { %6147 = vmatprep.mubr.f32.mxu1 %v13644_v0 }
 0xdf2   :  { %v6042_v49 = vpop.f32.mrb[50].mxu1 }
 0xdf3   :  { %v6050_v18 = vrot.slane %v6042_v49, %v14036_v46  ;;  %v6044_v56 = vpop.f32.mrb[51].mxu1  ;;  %v6060_v58 = vrot.slane %v6042_v49, %v14038_v37 }
 0xdf4   :  { %v6054_v57 = vrot.slane %v6044_v56, %v14036_v46  ;;  %v6064_v62 = vrot.slane %v6044_v56, %v14038_v37  ;;  %v13469_v56 = vld [vmem:[%s15755_s2 + $0x744] ss:$8 sps:$4 sm:$0xff]  }
 0xdf5   :  { %v6055_v27 = vmul.f32 %v6050_v18, %v5819_v5  ;;  %v13411_v5 = vld [vmem:[%s15755_s2 + $0x600] ss:$8 sps:$4 sm:$0xff]   ;;  %v13468_v18 = vld [vmem:[%s15755_s2 + $0x730] ss:$8 sps:$4 sm:$0xff]  }
 0xdf6   :  { %v6056_v22 = vmul.f32 %v6054_v57, %v5821_v11  ;;  %v13412_v11 = vld [vmem:[%s15755_s2 + $0x614] ss:$8 sps:$4 sm:$0xff]   ;;  %v13471_v57 = vld [vmem:[%s15755_s2 + $0x740] ss:$8 sps:$4 sm:$0xff]  }
 0xdf7   :  { %v6065_v24 = vsub.f32 %v6055_v27, %v6060_v58  ;;  %v13472_v27 = vld [vmem:[%s15755_s2 + $0x754] ss:$8 sps:$4 sm:$0xff]   ;;  %v13474_v58 = vld [vmem:[%s15755_s2 + $0x750] ss:$8 sps:$4 sm:$0xff]  }
 0xdf8   :  { %v6066_v3 = vsub.f32 %v6056_v22, %v6064_v62  ;;  %v13475_v22 = vld [vmem:[%s15755_s2 + $0x764] ss:$8 sps:$4 sm:$0xff]   ;;  %v13477_v62 = vld [vmem:[%s15755_s2 + $0x760] ss:$8 sps:$4 sm:$0xff]  }
 0xdf9   :  { %v6067_v13 = vmul.f32 0.01, %v6065_v24 }
 0xdfa   :  { %v6068_v4 = vmul.f32 0.01, %v6066_v3 }
 0xdfb   :  { %v6069_v10 = vmax.f32 %v6065_v24, %v6067_v13  ;;  %v13478_v24 = vld [vmem:[%s15755_s2 + $0x774] ss:$8 sps:$4 sm:$0xff]   ;;  %v13481_v13 = vld [vmem:[%s15755_s2 + $0x784] ss:$8 sps:$4 sm:$0xff]  }
 0xdfc   :  { %v6070_v23 = vmax.f32 %v6066_v3, %v6068_v4  ;;  %v13480_v3 = vld [vmem:[%s15755_s2 + $0x770] ss:$8 sps:$4 sm:$0xff]   ;;  %v13483_v4 = vld [vmem:[%s15755_s2 + $0x780] ss:$8 sps:$4 sm:$0xff]  }
 0xdfe   :  { %6083 = vmatprep.subr.mxu1 %v6070_v23  ;;  %v13484_v23 = vld [vmem:[%s15755_s2 + $0x794] ss:$8 sps:$4 sm:$0xff]  }
 0xdff   :  { %6084 = vmatpush1.msra.mxu1 %v6069_v10  ;;  %v13487_v10 = vld [vmem:[%s15755_s2 + $0x7a4] ss:$8 sps:$4 sm:$0xff]  }
 0xe00   :  { %8213 = vmatmul.mubr.msk.f32.vlgmr.msra.gmra.mrb[52].mxu1 %vm1559_vm2, %v6071_v43  ;;  %10862 = vmatprep.subr.bf16.mxu1 %v13409_v9  ;;  %v13486_v9 = vld [vmem:[%s15755_s2 + $0x790] ss:$8 sps:$4 sm:$0xff]   ;;  %v13489_v43 = vld [vmem:[%s15755_s2 + $0x7a0] ss:$8 sps:$4 sm:$0xff]  }
 0xe01   :  { %6153 = vmatprep.mubr.f32.mxu1 %v13644_v0  ;;  %10864 = vmatpush1.bf16.msra.mxu1 %v13411_v5  ;;  %v13490_v5 = vld [vmem:[%s15755_s2 + $0x7b4] ss:$8 sps:$4 sm:$0xff]  }
 0xe02   :  { %10866 = vmatprep.subr.bf16.mxu1 %v13412_v11  ;;  %v13492_v11 = vld [vmem:[%s15755_s2 + $0x7b0] ss:$8 sps:$4 sm:$0xff]  }
 0xe04   :  { %8214 = vmatmul.mubr.msk.f32.gmra.mrb[54].mxu1 %vm1559_vm2, %v6072_v15  ;;  %v13493_v15 = vld [vmem:[%s15755_s2 + $0x7c4] ss:$8 sps:$4 sm:$0xff]  }
 0xe05   :  { %6159 = vmatprep.mubr.f32.mxu1 %v13644_v0  ;;  %10868 = vmatpush1.bf16.msra.mxu1 %v13414_v16  ;;  %v13495_v16 = vld [vmem:[%s15755_s2 + $0x7c0] ss:$8 sps:$4 sm:$0xff]  }
 0xe06   :  { %10870 = vmatprep.subr.bf16.mxu1 %v13415_v2  ;;  %v13496_v2 = vld [vmem:[%s15755_s2 + $0x7d4] ss:$8 sps:$4 sm:$0xff]  }
 0xe08   :  { %8215 = vmatmul.mubr.msk.f32.gmra.mrb[56].mxu1 %vm1559_vm2, %v6073_v48  ;;  %v13498_v48 = vld [vmem:[%s15755_s2 + $0x7d0] ss:$8 sps:$4 sm:$0xff]  }
 0xe09   :  { %10872 = vmatpush1.bf16.msra.mxu1 %v13417_v8  ;;  %v13499_v8 = vld [vmem:[%s15755_s2 + $0x7e4] ss:$8 sps:$4 sm:$0xff]  }
 0xe0a   :  { %10874 = vmatprep.subr.bf16.mxu1 %v13418_v63  ;;  %v13501_v63 = vld [vmem:[%s15755_s2 + $0x7e0] ss:$8 sps:$4 sm:$0xff]  }
 0xe0d   :  { %10876 = vmatpush1.bf16.msra.mxu1 %v13420_v20  ;;  %v13502_v20 = vld [vmem:[%s15755_s2 + $0x7f4] ss:$8 sps:$4 sm:$0xff]  }
 0xe0e   :  { %10878 = vmatprep.subr.bf16.mxu1 %v13421_v7  ;;  %v13504_v7 = vld [vmem:[%s15755_s2 + $0x7f0] ss:$8 sps:$4 sm:$0xff]  }
 0xe11   :  { %10880 = vmatpush1.bf16.msra.mxu1 %v13423_v61  ;;  %v13505_v61 = vld [vmem:[%s15755_s2 + $0x804] ss:$8 sps:$4 sm:$0xff]  }
 0xe12   :  { %10882 = vmatprep.subr.bf16.mxu1 %v13424_v25  ;;  %v13507_v25 = vld [vmem:[%s15755_s2 + $0x800] ss:$8 sps:$4 sm:$0xff]  }
 0xe15   :  { %10884 = vmatpush1.bf16.msra.mxu1 %v13426_v26  ;;  %v13508_v26 = vld [vmem:[%s15755_s2 + $0x814] ss:$8 sps:$4 sm:$0xff]  }
 0xe16   :  { %10886 = vmatprep.subr.bf16.mxu1 %v13427_v32  ;;  %v13510_v32 = vld [vmem:[%s15755_s2 + $0x810] ss:$8 sps:$4 sm:$0xff]  }
 0xe19   :  { %10888 = vmatpush1.bf16.msra.mxu1 %v13429_v6  ;;  %v13511_v6 = vld [vmem:[%s15755_s2 + $0x824] ss:$8 sps:$4 sm:$0xff]  }
 0xe1a   :  { %10890 = vmatprep.subr.bf16.mxu1 %v13430_v33  ;;  %v13513_v33 = vld [vmem:[%s15755_s2 + $0x820] ss:$8 sps:$4 sm:$0xff]  }
 0xe1d   :  { %10892 = vmatpush1.bf16.msra.mxu1 %v13432_v59  ;;  %v13514_v59 = vld [vmem:[%s15755_s2 + $0x834] ss:$8 sps:$4 sm:$0xff]  }
 0xe1e   :  { %10894 = vmatprep.subr.bf16.mxu1 %v13433_v35  ;;  %v13516_v35 = vld [vmem:[%s15755_s2 + $0x830] ss:$8 sps:$4 sm:$0xff]  }
 0xe21   :  { %10896 = vmatpush1.bf16.msra.mxu1 %v13435_v38  ;;  %v13517_v38 = vld [vmem:[%s15755_s2 + $0x844] ss:$8 sps:$4 sm:$0xff]  }
 0xe22   :  { %10898 = vmatprep.subr.bf16.mxu1 %v13436_v39  ;;  %v13519_v39 = vld [vmem:[%s15755_s2 + $0x840] ss:$8 sps:$4 sm:$0xff]  }
 0xe25   :  { %10900 = vmatpush1.bf16.msra.mxu1 %v13438_v21  ;;  %v13520_v21 = vld [vmem:[%s15755_s2 + $0x854] ss:$8 sps:$4 sm:$0xff]  }
 0xe26   :  { %10902 = vmatprep.subr.bf16.mxu1 %v13439_v53  ;;  %v13522_v53 = vld [vmem:[%s15755_s2 + $0x850] ss:$8 sps:$4 sm:$0xff]  }
 0xe29   :  { %10904 = vmatpush1.bf16.msra.mxu1 %v13441_v29  ;;  %v13523_v29 = vld [vmem:[%s15755_s2 + $0x864] ss:$8 sps:$4 sm:$0xff]  }
 0xe2a   :  { %10906 = vmatprep.subr.bf16.mxu1 %v13442_v41  ;;  %v13525_v41 = vld [vmem:[%s15755_s2 + $0x860] ss:$8 sps:$4 sm:$0xff]  }
 0xe2d   :  { %10908 = vmatpush1.bf16.msra.mxu1 %v13444_v34  ;;  %v13526_v34 = vld [vmem:[%s15755_s2 + $0x874] ss:$8 sps:$4 sm:$0xff]  }
 0xe2e   :  { %10910 = vmatprep.subr.bf16.mxu1 %v13445_v28  ;;  %v13528_v28 = vld [vmem:[%s15755_s2 + $0x870] ss:$8 sps:$4 sm:$0xff]  }
 0xe31   :  { %10912 = vmatpush1.bf16.msra.mxu1 %v13447_v14  ;;  %v13529_v14 = vld [vmem:[%s15755_s2 + $0x884] ss:$8 sps:$4 sm:$0xff]  }
 0xe32   :  { %10914 = vmatprep.subr.bf16.mxu1 %v13448_v42  ;;  %v13531_v42 = vld [vmem:[%s15755_s2 + $0x880] ss:$8 sps:$4 sm:$0xff]  }
 0xe35   :  { %10916 = vmatpush1.bf16.msra.mxu1 %v13450_v47  ;;  %v13532_v47 = vld [vmem:[%s15755_s2 + $0x894] ss:$8 sps:$4 sm:$0xff]  }
 0xe36   :  { %10918 = vmatprep.subr.bf16.mxu1 %v13451_v30  ;;  %v13534_v30 = vld [vmem:[%s15755_s2 + $0x890] ss:$8 sps:$4 sm:$0xff]  }
 0xe39   :  { %10920 = vmatpush1.bf16.msra.mxu1 %v13453_v1  ;;  %v13535_v1 = vld [vmem:[%s15755_s2 + $0x8a4] ss:$8 sps:$4 sm:$0xff]  }
 0xe3a   :  { %10922 = vmatprep.subr.bf16.mxu1 %v13454_v40  ;;  %v13537_v40 = vld [vmem:[%s15755_s2 + $0x8a0] ss:$8 sps:$4 sm:$0xff]  }
 0xe3d   :  { %10924 = vmatpush1.bf16.msra.mxu1 %v13456_v50  ;;  %v13538_v50 = vld [vmem:[%s15755_s2 + $0x8b4] ss:$8 sps:$4 sm:$0xff]  }
 0xe3e   :  { %10926 = vmatprep.subr.bf16.mxu1 %v13457_v31  ;;  %v13540_v31 = vld [vmem:[%s15755_s2 + $0x8b0] ss:$8 sps:$4 sm:$0xff]  }
 0xed3   :  { %v6149_v60 = vpop.f32.mrb[52].mxu1 }
 0xed4   :  { %v6151_v36 = vpop.f32.mrb[53].mxu1 }
 0xed5   :  { %6530 = vmatprep.mubr.f32.mxu1 %v6151_v36  ;;  %v13544_v36 = vld [vmem:[%s15755_s2 + $0x8d4] ss:$8 sps:$4 sm:$0xff]  }
 0xed6   :  { %6531 = vmatmul.mubr.f32.vlgmr.msra.gmra.mrb[58].mxu1 %v6149_v60  ;;  %v13541_v60 = vld [vmem:[%s15755_s2 + $0x8c4] ss:$8 sps:$4 sm:$0xff]  }
 0xed7   :  { %10928 = vmatpush1.bf16.msra.mxu1 %v13459_v45  ;;  %v15281_v52 = vpop.f32.mrb[54].mxu1  ;;  %v13543_v45 = vld [vmem:[%s15755_s2 + $0x8c0] ss:$8 sps:$4 sm:$0xff]  }
 0xed8   :  { %10930 = vmatprep.subr.bf16.mxu1 %v13460_v51  ;;  %v6157_v17 = vpop.f32.mrb[55].mxu1  ;;  %v13546_v51 = vld [vmem:[%s15755_s2 + $0x8d0] ss:$8 sps:$4 sm:$0xff]  }
 0xed9   :  { %6601 = vmatprep.mubr.f32.mxu1 %v6157_v17  ;;  %v6723_v17 = vld [vmem:[%s15758_s5 + $0x580] sm:$0xff] }
 0xedb   :  { %10932 = vmatpush1.bf16.msra.mxu1 %v13462_v44  ;;  %v15289_v12 = vpop.f32.mrb[56].mxu1  ;;  %v13547_v44 = vld [vmem:[%s15755_s2 + $0x8e4] ss:$8 sps:$4 sm:$0xff]  }
 0xedc   :  { %10934 = vmatprep.subr.bf16.mxu1 %v13463_v19  ;;  %v6163_v49 = vpop.f32.mrb[57].mxu1  ;;  %v13550_v19 = vld [vmem:[%s15755_s2 + $0x8f4] ss:$8 sps:$4 sm:$0xff]  }
 0xedf   :  { %10936 = vmatpush1.bf16.msra.mxu1 %v13465_v54  ;;  %v6724_v54 = vld [vmem:[%s15758_s5 + $0x588] sm:$0xff] }
 0xee0   :  { %10938 = vmatprep.subr.bf16.mxu1 %v13466_v55  ;;  %v13552_v55 = vld [vmem:[%s15755_s2 + $0x8f0] ss:$8 sps:$4 sm:$0xff]  }
 0xee3   :  { %10940 = vmatpush1.bf16.msra.mxu1 %v13468_v18  ;;  %v6707_v18 = vld [vmem:[%s15758_s5 + $0x500] sm:$0xff] }
 0xee4   :  { %10942 = vmatprep.subr.bf16.mxu1 %v13469_v56  ;;  %v6708_v56 = vld [vmem:[%s15758_s5 + $0x508] sm:$0xff] }
 0xee7   :  { %10944 = vmatpush1.bf16.msra.mxu1 %v13471_v57  ;;  %v6725_v57 = vld [vmem:[%s15758_s5 + $0x590] sm:$0xff] }
 0xee8   :  { %10946 = vmatprep.subr.bf16.mxu1 %v13472_v27  ;;  %v6726_v27 = vld [vmem:[%s15758_s5 + $0x598] sm:$0xff] }
 0xeeb   :  { %10948 = vmatpush1.bf16.msra.mxu1 %v13474_v58  ;;  %v11055_v58 = vpack.c.bf16 %v6708_v56, %v6707_v18 }
 0xeec   :  { %10950 = vmatprep.subr.bf16.mxu1 %v13475_v22  ;;  %v11057_v22 = vpack.c.bf16 %v6726_v27, %v6725_v57 }
 0xeef   :  { %10952 = vmatpush1.bf16.msra.mxu1 %v13477_v62  ;;  %v6709_v62 = vld [vmem:[%s15758_s5 + $0x510] sm:$0xff] }
 0xef0   :  { %10954 = vmatprep.subr.bf16.mxu1 %v13478_v24  ;;  %v6710_v24 = vld [vmem:[%s15758_s5 + $0x518] sm:$0xff] }
 0xef3   :  { %10956 = vmatpush1.bf16.msra.mxu1 %v13480_v3  ;;  %v6727_v3 = vld [vmem:[%s15758_s5 + $0x5a0] sm:$0xff] }
 0xef4   :  { %10958 = vmatprep.subr.bf16.mxu1 %v13481_v13  ;;  %v6728_v13 = vld [vmem:[%s15758_s5 + $0x5a8] sm:$0xff] }
 0xef7   :  { %10960 = vmatpush1.bf16.msra.mxu1 %v13483_v4  ;;  %v11059_v4 = vpack.c.bf16 %v6710_v24, %v6709_v62 }
 0xef8   :  { %10962 = vmatprep.subr.bf16.mxu1 %v13484_v23  ;;  %v11061_v23 = vpack.c.bf16 %v6728_v13, %v6727_v3 }
 0xefb   :  { %10964 = vmatpush1.bf16.msra.mxu1 %v13486_v9  ;;  %v6711_v9 = vld [vmem:[%s15758_s5 + $0x520] sm:$0xff] }
 0xefc   :  { %10966 = vmatprep.subr.bf16.mxu1 %v13487_v10  ;;  %v6712_v10 = vld [vmem:[%s15758_s5 + $0x528] sm:$0xff] }
 0xeff   :  { %10968 = vmatpush1.bf16.msra.mxu1 %v13489_v43  ;;  %v6729_v43 = vld [vmem:[%s15758_s5 + $0x5b0] sm:$0xff] }
 0xf00   :  { %10970 = vmatprep.subr.bf16.mxu1 %v13490_v5  ;;  %v11063_v5 = vpack.c.bf16 %v6712_v10, %v6711_v9 }
 0xf03   :  { %10972 = vmatpush1.bf16.msra.mxu1 %v13492_v11 }
 0xf04   :  { %10974 = vmatprep.subr.bf16.mxu1 %v13493_v15  ;;  %v6713_v15 = vld [vmem:[%s15758_s5 + $0x530] sm:$0xff] }
 0xf07   :  { %10976 = vmatpush1.bf16.msra.mxu1 %v13495_v16  ;;  %v6714_v16 = vld [vmem:[%s15758_s5 + $0x538] sm:$0xff] }
 0xf08   :  { %10978 = vmatprep.subr.bf16.mxu1 %v13496_v2  ;;  %v11067_v2 = vpack.c.bf16 %v6714_v16, %v6713_v15  ;;  %v6826_v15 = vld [vmem:[#allocation7 + $0xa0] sm:$0xff] }
 0xf0b   :  { %10980 = vmatpush1.bf16.msra.mxu1 %v13498_v48  ;;  %v6731_v48 = vld [vmem:[%s15758_s5 + $0x5c0] sm:$0xff] }
 0xf0c   :  { %10982 = vmatprep.subr.bf16.mxu1 %v13499_v8  ;;  %v6732_v8 = vld [vmem:[%s15758_s5 + $0x5c8] sm:$0xff] }
 0xf0f   :  { %10984 = vmatpush1.bf16.msra.mxu1 %v13501_v63  ;;  %v11069_v63 = vpack.c.bf16 %v6732_v8, %v6731_v48 }
 0xf10   :  { %10986 = vmatprep.subr.bf16.mxu1 %v13502_v20  ;;  %v6715_v20 = vld [vmem:[%s15758_s5 + $0x540] sm:$0xff] }
 0xf13   :  { %10988 = vmatpush1.bf16.msra.mxu1 %v13504_v7  ;;  %v6716_v7 = vld [vmem:[%s15758_s5 + $0x548] sm:$0xff] }
 0xf14   :  { %10990 = vmatprep.subr.bf16.mxu1 %v13505_v61  ;;  %v11071_v61 = vpack.c.bf16 %v6716_v7, %v6715_v20 }
 0xf16   :  { %6602 = vmatmul.mubr.f32.vlgmr.msra.gmra.mrb[58].mxu1 %v15281_v52  ;;  %v13549_v52 = vld [vmem:[%s15755_s2 + $0x8e0] ss:$8 sps:$4 sm:$0xff]  }
 0xf17   :  { %10992 = vmatpush1.bf16.msra.mxu1 %v13507_v25  ;;  %6672 = vmatprep.mubr.f32.mxu1 %v6163_v49  ;;  %v11053_v49 = vpack.c.bf16 %v6724_v54, %v6723_v17  ;;  %v6733_v25 = vld [vmem:[%s15758_s5 + $0x5d0] sm:$0xff] }
 0xf18   :  { %10994 = vmatprep.subr.bf16.mxu1 %v13508_v26  ;;  %v6734_v26 = vld [vmem:[%s15758_s5 + $0x5d8] sm:$0xff] }
 0xf1b   :  { %10996 = vmatpush1.bf16.msra.mxu1 %v13510_v32  ;;  %v11073_v32 = vpack.c.bf16 %v6734_v26, %v6733_v25 }
 0xf1c   :  { %10998 = vmatprep.subr.bf16.mxu1 %v13511_v6  ;;  %v6717_v6 = vld [vmem:[%s15758_s5 + $0x550] sm:$0xff] }
 0xf1f   :  { %11000 = vmatpush1.bf16.msra.mxu1 %v13513_v33  ;;  %v6718_v33 = vld [vmem:[%s15758_s5 + $0x558] sm:$0xff] }
 0xf20   :  { %11002 = vmatprep.subr.bf16.mxu1 %v13514_v59  ;;  %v11075_v59 = vpack.c.bf16 %v6718_v33, %v6717_v6 }
 0xf23   :  { %11004 = vmatpush1.bf16.msra.mxu1 %v13516_v35  ;;  %v6735_v35 = vld [vmem:[%s15758_s5 + $0x5e0] sm:$0xff] }
 0xf24   :  { %11006 = vmatprep.subr.bf16.mxu1 %v13517_v38  ;;  %v6736_v38 = vld [vmem:[%s15758_s5 + $0x5e8] sm:$0xff] }
 0xf27   :  { %11008 = vmatpush1.bf16.msra.mxu1 %v13519_v39  ;;  %v11077_v39 = vpack.c.bf16 %v6736_v38, %v6735_v35 }
 0xf28   :  { %11010 = vmatprep.subr.bf16.mxu1 %v13520_v21  ;;  %v6719_v21 = vld [vmem:[%s15758_s5 + $0x560] sm:$0xff] }
 0xf2b   :  { %11012 = vmatpush1.bf16.msra.mxu1 %v13522_v53  ;;  %v6720_v53 = vld [vmem:[%s15758_s5 + $0x568] sm:$0xff] }
 0xf2c   :  { %11014 = vmatprep.subr.bf16.mxu1 %v13523_v29  ;;  %v11079_v29 = vpack.c.bf16 %v6720_v53, %v6719_v21 }
 0xf2f   :  { %11016 = vmatpush1.bf16.msra.mxu1 %v13525_v41  ;;  %v6737_v41 = vld [vmem:[%s15758_s5 + $0x5f0] sm:$0xff] }
 0xf30   :  { %11018 = vmatprep.subr.bf16.mxu1 %v13526_v34  ;;  %v6738_v34 = vld [vmem:[%s15758_s5 + $0x5f8] sm:$0xff] }
 0xf33   :  { %11020 = vmatpush1.bf16.msra.mxu1 %v13528_v28  ;;  %v6721_v28 = vld [vmem:[%s15758_s5 + $0x570] sm:$0xff] }
 0xf34   :  { %11022 = vmatprep.subr.bf16.mxu1 %v13529_v14  ;;  %v11081_v14 = vpack.c.bf16 %v6738_v34, %v6737_v41 }
 0xf37   :  { %11024 = vmatpush1.bf16.msra.mxu1 %v13531_v42  ;;  %v6722_v42 = vld [vmem:[%s15758_s5 + $0x578] sm:$0xff] }
 0xf38   :  { %11026 = vmatprep.subr.bf16.mxu1 %v13532_v47  ;;  %v11083_v47 = vpack.c.bf16 %v6722_v42, %v6721_v28 }
 0xf3b   :  { %11028 = vmatpush1.bf16.msra.mxu1 %v13534_v30 }
 0xf3c   :  { %11030 = vmatprep.subr.bf16.mxu1 %v13535_v1 }
 0xf3f   :  { %11032 = vmatpush1.bf16.msra.mxu1 %v13537_v40 }
 0xf40   :  { %11034 = vmatprep.subr.bf16.mxu1 %v13538_v50 }
 0xf43   :  { %11036 = vmatpush1.bf16.msra.mxu1 %v13540_v31 }
 0xf44   :  { %11038 = vmatprep.subr.bf16.mxu1 %v13541_v60 }
 0xf47   :  { %11040 = vmatpush1.bf16.msra.mxu1 %v13543_v45 }
 0xf48   :  { %11042 = vmatprep.subr.bf16.mxu1 %v13544_v36 }
 0xf4b   :  { %11044 = vmatpush1.bf16.msra.mxu1 %v13546_v51 }
 0xf4c   :  { %11046 = vmatprep.subr.bf16.mxu1 %v13547_v44 }
 0xf4f   :  { %11048 = vmatpush1.bf16.msra.mxu1 %v13549_v52 }
 0xf50   :  { %11050 = vmatprep.subr.bf16.mxu1 %v13550_v19 }
 0xf53   :  { %11052 = vmatpush1.bf16.msra.mxu1 %v13552_v55 }
 0xf54   :  { %11054 = vmatprep.subr.bf16.mxu1 %v11053_v49 }
 0xf56   :  { %6673 = vmatmul.mubr.f32.vlgmr.msra.gmra.mrb[58].mxu1 %v15289_v12  ;;  %v6730_v12 = vld [vmem:[%s15758_s5 + $0x5b8] sm:$0xff] }
 0xf57   :  { %11056 = vmatpush3.bf16.msra.mxu1 %v11055_v58  ;;  %v11065_v11 = vpack.c.bf16 %v6730_v12, %v6729_v43  ;;  %v6825_v43 = vld [vmem:[#allocation7 + $0x88] sm:$0xff] }
 0xf58   :  { %11058 = vmatprep.subr.bf16.mxu1 %v11057_v22  ;;  %v6827_v12 = vld [vmem:[#allocation7 + $0xa8] sm:$0xff] }
 0xf5b   :  { %11060 = vmatpush3.bf16.msra.mxu1 %v11059_v4 }
 0xf5c   :  { %11062 = vmatprep.subr.bf16.mxu1 %v11061_v23 }
 0xf5f   :  { %11064 = vmatpush3.bf16.msra.mxu1 %v11063_v5  ;;  %v11085_v5 = vpack.c.bf16 %v6827_v12, %v6825_v43  ;;  %v8530_v43 = vld [vmem:[#allocation5 + $0x90] sm:$0xff]  }
 0xf60   :  { %11066 = vmatprep.subr.bf16.mxu1 %v11065_v11  ;;  %v6824_v11 = vld [vmem:[#allocation7 + $0x80] sm:$0xff] }
 0xf61   :  { %v11087_v16 = vpack.c.bf16 %v6826_v15, %v6824_v11  ;;  %v8531_v11 = vld [vmem:[#allocation5 + $0x98] sm:$0xff]   ;;  %v8540_v15 = vld [vmem:[#allocation5 + $0xe0] sm:$0xff]  }
 0xf63   :  { %11068 = vmatpush3.bf16.msra.mxu1 %v11067_v2 }
 0xf64   :  { %11070 = vmatprep.subr.bf16.mxu1 %v11069_v63 }
 0xf67   :  { %11072 = vmatpush3.bf16.msra.mxu1 %v11071_v61 }
 0xf68   :  { %11074 = vmatprep.subr.bf16.mxu1 %v11073_v32 }
 0xf6b   :  { %11076 = vmatpush3.bf16.msra.mxu1 %v11075_v59 }
 0xf6c   :  { %11078 = vmatprep.subr.bf16.mxu1 %v11077_v39 }
 0xf6f   :  { %11080 = vmatpush3.bf16.msra.mxu1 %v11079_v29 }
 0xf70   :  { %11082 = vmatprep.subr.bf16.mxu1 %v11081_v14 }
 0xf73   :  { %11084 = vmatpush3.bf16.msra.mxu1 %v11083_v47 }
 0xf74   :  { %11086 = vmatprep.subr.bf16.mxu1 %v11085_v5  ;;  %v8539_v5 = vld [vmem:[#allocation5 + $0xd8] sm:$0xff]  }
0x1029   :  { %v6674_v30 = vpop.f32.mrb[58].mxu1 }
0x102a   :  { %v6679_v1 = vrot.slane %v6674_v30, 4  ;;  %v6691_v40 = vmul.f32 %v6674_v30, %v6674_v30  ;;  %v6676_v50 = vpop.f32.mrb[59].mxu1 }
0x102b   :  { %v6685_v31 = vrot.slane %v6676_v50, 4  ;;  %v6692_v60 = vmul.f32 %v6676_v50, %v6676_v50 }
0x102c   :  { %v6680_v45 = vadd.f32 %v6679_v1, %v6674_v30  ;;  %v6693_v36 = vrot.slane %v6691_v40, 4 }
0x102d   :  { %v6686_v51 = vadd.f32 %v6685_v31, %v6676_v50  ;;  %v6699_v44 = vrot.slane %v6692_v60, 4  ;;  %v8520_v31 = vld [vmem:[#allocation5 + $0x40] sm:$0xff]  }
0x102e   :  { %v6681_v52 = vrot.slane %v6680_v45, 2  ;;  %v6694_v19 = vadd.f32 %v6693_v36, %v6691_v40  ;;  %v6926_v40 = vld [vmem:[%s15757_s4 + $0x90] sm:$0xff] }
0x102f   :  { %v6687_v17 = vrot.slane %v6686_v51, 2  ;;  %v6700_v54 = vadd.f32 %v6699_v44, %v6692_v60  ;;  %v8226_v60 = vld [vmem:[#allocation5] sm:$0xff]   ;;  %v8522_v36 = vld [vmem:[#allocation5 + $0x50] sm:$0xff]  }
0x1030   :  { %v6682_v55 = vadd.f32 %v6681_v52, %v6680_v45  ;;  %v6695_v49 = vrot.slane %v6694_v19, 2  ;;  %v8513_v45 = vld [vmem:[#allocation5 + $0x8] sm:$0xff]   ;;  %v8514_v44 = vld [vmem:[#allocation5 + $0x10] sm:$0xff]   ;;  %v8523_v52 = vld [vmem:[#allocation5 + $0x58] sm:$0xff]  }
0x1031   :  { %v6688_v18 = vadd.f32 %v6687_v17, %v6686_v51  ;;  %v6701_v56 = vrot.slane %v6700_v54, 2  ;;  %v6928_v51 = vld [vmem:[%s15757_s4 + $0xa0] sm:$0xff] }
0x1032   :  { %v6696_v57 = vadd.f32 %v6695_v49, %v6694_v19  ;;  %v6683_v22 = vrot.slane %v6682_v55, 1  ;;  %v8515_v19 = vld [vmem:[#allocation5 + $0x18] sm:$0xff]   ;;  %v8524_v17 = vld [vmem:[#allocation5 + $0x60] sm:$0xff]   ;;  %v8517_v49 = vld [vmem:[#allocation5 + $0x28] sm:$0xff]  }
0x1033   :  { %v6689_v27 = vrot.slane %v6688_v18, 1  ;;  %v6702_v58 = vadd.f32 %v6701_v56, %v6700_v54  ;;  %v8516_v54 = vld [vmem:[#allocation5 + $0x20] sm:$0xff]   ;;  %v8518_v56 = vld [vmem:[#allocation5 + $0x30] sm:$0xff]  }
0x1034   :  { %v6697_v62 = vrot.slane %v6696_v57, 1  ;;  %v6684_v23 = vadd.f32 %v6683_v22, %v6682_v55  ;;  %v8525_v55 = vld [vmem:[#allocation5 + $0x68] sm:$0xff]  }
0x1035   :  { %v6703_v24 = vrot.slane %v6702_v58, 1  ;;  %v6690_v13 = vadd.f32 %v6689_v27, %v6688_v18  ;;  %v8526_v18 = vld [vmem:[#allocation5 + $0x70] sm:$0xff]   ;;  %v8519_v27 = vld [vmem:[#allocation5 + $0x38] sm:$0xff]  }
0x1036   :  { %v6698_v3 = vadd.f32 %v6697_v62, %v6696_v57  ;;  %v8527_v57 = vld [vmem:[#allocation5 + $0x78] sm:$0xff]  }
0x1037   :  { %v6704_v4 = vadd.f32 %v6703_v24, %v6702_v58  ;;  %v8536_v58 = vld [vmem:[#allocation5 + $0xc0] sm:$0xff]  }
0x1038   :  { %v6705_v10 = vsel %vm1331_vm1, %v6684_v23, %v6698_v3  ;;  %v8528_v24 = vld [vmem:[#allocation5 + $0x80] sm:$0xff]   ;;  %v8537_v3 = vld [vmem:[#allocation5 + $0xc8] sm:$0xff]  }
0x1039   :  { %v6706_v9 = vsel %vm1331_vm1, %v6690_v13, %v6704_v4  ;;  %v8529_v4 = vld [vmem:[#allocation5 + $0x88] sm:$0xff]  }
0x103a   :  { %6803 = vmatprep.mubr.f32.mxu1 %v6706_v9  ;;  %v8538_v9 = vld [vmem:[#allocation5 + $0xd0] sm:$0xff]  }
0x103b   :  { %6804 = vmatmul.mubr.f32.vlgmr.msra.gmra.mrb[60].mxu1 %v6705_v10 }
0x103c   :  { %6895 = vmatprep.mubr.f32.mxu1 %v13644_v0  ;;  %11088 = vmatpush1.bf16.msra.mxu1 %v11087_v16  ;;  %v8532_v16 = vld [vmem:[#allocation5 + $0xa0] sm:$0xff]  }
0x110e   :  { %v8791_v2 = vpop.f32.mrb[60].mxu1 }
0x110f   :  { %v8792_v48 = vpop.f32.mrb[61].mxu1 }
0x1110   :  { %v8793_v8 = vadd.f32 %v8792_v48, %v8791_v2  ;;  %v8541_v2 = vld [vmem:[#allocation5 + $0xe8] sm:$0xff]  }
0x1111   :  { %v8533_v48 = vld [vmem:[#allocation5 + $0xa8] sm:$0xff]  }
0x1112   :  { %v6809_v63 = vmul.f32 %v8793_v8, %v8793_v8 }
0x1114   :  { %v6811_v20 = vrot.slane %v6809_v63, 7  ;;  %v8534_v63 = vld [vmem:[#allocation5 + $0xb0] sm:$0xff]  }
0x1116   :  { %v6813_v7 = vsub.f32 %v8793_v8, %v6811_v20  ;;  %v8543_v20 = vld [vmem:[#allocation5 + $0xf8] sm:$0xff]  }
0x1118   :  { %v6814_v61 = vadd.f32 1e-05, %v6813_v7  ;;  %v8535_v7 = vld [vmem:[#allocation5 + $0xb8] sm:$0xff]  }
0x111a   :  { %13559 = vrsqrt.f32 %v6814_v61  ;;  %v8552_v61 = vld [vmem:[#allocation5 + $0x140] sm:$0xff]  }
0x1124   :  { %v13560_v25 = vpop.eup %13559 }
0x1125   :  { %v6817_v26 = vrot.slane %v13560_v25, 1  ;;  %v8544_v25 = vld [vmem:[#allocation5 + $0x100] sm:$0xff]  }
0x1127   :  { %v6819_v32 = vmul.f32 %v8793_v8, %v6817_v26  ;;  %v8542_v8 = vld [vmem:[#allocation5 + $0xf0] sm:$0xff]  }
0x1129   :  { %v6821_v6 = vrot.slane %v6819_v32, 7  ;;  %v8545_v32 = vld [vmem:[#allocation5 + $0x108] sm:$0xff]  }
0x112b   :  { %v6823_v33 = vsel %vm1331_vm1, %v6817_v26, %v6821_v6  ;;  %v8553_v26 = vld [vmem:[#allocation5 + $0x148] sm:$0xff]   ;;  %v8554_v6 = vld [vmem:[#allocation5 + $0x150] sm:$0xff]  }
0x112c   :  { %8216 = vmatmul.mubr.msk.f32.vlgmr.msra.gmra.mrb[62].mxu1 %vm1775_vm3, %v6823_v33  ;;  %v8546_v33 = vld [vmem:[#allocation5 + $0x110] sm:$0xff]  }
0x112d   :  { %7002 = vmatprep.mubr.f32.mxu1 %v13644_v0 }
0x11ff   :  { %v6897_v59 = vpop.f32.mrb[62].mxu1 }
0x1200   :  { %v6905_v35 = vrot.slane %v6897_v59, %v14036_v46  ;;  %v6899_v38 = vpop.f32.mrb[63].mxu1  ;;  %v6915_v53 = vrot.slane %v6897_v59, %v14038_v37  ;;  %v8555_v59 = vld [vmem:[#allocation5 + $0x158] sm:$0xff]  }
0x1201   :  { %v6909_v39 = vrot.slane %v6899_v38, %v14036_v46  ;;  %v6919_v41 = vrot.slane %v6899_v38, %v14038_v37  ;;  %v8556_v38 = vld [vmem:[#allocation5 + $0x160] sm:$0xff]  }
0x1202   :  { %v6910_v21 = vmul.f32 %v6905_v35, %v6674_v30  ;;  %v8521_v30 = vld [vmem:[#allocation5 + $0x48] sm:$0xff]   ;;  %v8547_v35 = vld [vmem:[#allocation5 + $0x118] sm:$0xff]  }
0x1203   :  { %v6911_v29 = vmul.f32 %v6909_v39, %v6676_v50  ;;  %v6927_v50 = vld [vmem:[%s15757_s4 + $0x98] sm:$0xff]  ;;  %v8548_v39 = vld [vmem:[#allocation5 + $0x120] sm:$0xff]  }
0x1204   :  { %v6920_v34 = vsub.f32 %v6910_v21, %v6915_v53  ;;  %v8557_v21 = vld [vmem:[#allocation5 + $0x168] sm:$0xff]  }
0x1205   :  { %v6921_v28 = vsub.f32 %v6911_v29, %v6919_v41  ;;  %v8549_v53 = vld [vmem:[#allocation5 + $0x128] sm:$0xff]   ;;  %v8558_v29 = vld [vmem:[#allocation5 + $0x170] sm:$0xff]  }
0x1206   :  { %v6922_v14 = vmul.f32 0.01, %v6920_v34  ;;  %v8550_v41 = vld [vmem:[#allocation5 + $0x130] sm:$0xff]  }
0x1207   :  { %v6923_v42 = vmul.f32 0.01, %v6921_v28 }
0x1208   :  { %v6924_v1 = vmax.f32 %v6920_v34, %v6922_v14  ;;  %v8559_v34 = vld [vmem:[#allocation5 + $0x178] sm:$0xff]   ;;  %v7449_v14 = vld [vmem:[%s15758_s5 + $0x600] sm:$0xff] }
0x1209   :  { %v6925_v47 = vmax.f32 %v6921_v28, %v6923_v42  ;;  %v8551_v28 = vld [vmem:[#allocation5 + $0x138] sm:$0xff]   ;;  %v7450_v42 = vld [vmem:[%s15758_s5 + $0x608] sm:$0xff] }
0x120b   :  { %6938 = vmatprep.subr.mxu1 %v6925_v47  ;;  %v7451_v47 = vld [vmem:[%s15758_s5 + $0x610] sm:$0xff] }
0x120c   :  { %6939 = vmatpush1.msra.mxu1 %v6924_v1  ;;  %v13645_v1 = vmov 0.0|0.0  }
0x120d   :  { %8217 = vmatmul.mubr.msk.f32.vlgmr.msra.gmra.mrb[64].mxu1 %vm1559_vm2, %v6926_v40  ;;  %11090 = vmatprep.subr.bf16.mxu1 %v8520_v31  ;;  %v11186_v40 = vpack.c.bf16 %v7450_v42, %v7449_v14  ;;  %v7452_v31 = vld [vmem:[%s15758_s5 + $0x618] sm:$0xff] }
0x120e   :  { %7008 = vmatprep.mubr.f32.mxu1 %v13644_v0  ;;  %11092 = vmatpush3.bf16.msra.mxu1 %v8226_v60  ;;  %v11189_v60 = vpack.c.bf16 %v7452_v31, %v7451_v47 }
0x120f   :  { %11094 = vmatprep.subr.bf16.mxu1 %v8521_v30  ;;  %11209 = vmatprep.subr.bf16.mxu0 %v13645_v1  ;;  %v7453_v30 = vld [vmem:[%s15758_s5 + $0x620] sm:$0xff] }
0x1211   :  { %8218 = vmatmul.mubr.msk.f32.gmra.mrb[66].mxu1 %vm1559_vm2, %v6927_v50  ;;  %v7454_v50 = vld [vmem:[%s15758_s5 + $0x628] sm:$0xff] }
0x1212   :  { %7014 = vmatprep.mubr.f32.mxu1 %v13644_v0  ;;  %11096 = vmatpush3.bf16.msra.mxu1 %v8513_v45  ;;  %v11192_v45 = vpack.c.bf16 %v7454_v50, %v7453_v30  ;;  %v8576_v30 = vld [vmem:[#allocation5 + $0x200] sm:$0xff]   ;;  %v8577_v50 = vld [vmem:[#allocation5 + $0x208] sm:$0xff]  }
0x1213   :  { %11098 = vmatprep.subr.bf16.mxu1 %v8522_v36  ;;  %v7455_v36 = vld [vmem:[%s15758_s5 + $0x630] sm:$0xff] }
0x1215   :  { %8219 = vmatmul.mubr.msk.f32.gmra.mrb[68].mxu1 %vm1559_vm2, %v6928_v51  ;;  %v7456_v51 = vld [vmem:[%s15758_s5 + $0x638] sm:$0xff] }
0x1216   :  { %11100 = vmatpush3.bf16.msra.mxu1 %v8514_v44  ;;  %v11195_v44 = vpack.c.bf16 %v7456_v51, %v7455_v36  ;;  %v8579_v36 = vld [vmem:[#allocation5 + $0x218] sm:$0xff]   ;;  %v8580_v51 = vld [vmem:[#allocation5 + $0x220] sm:$0xff]  }
0x1217   :  { %11102 = vmatprep.subr.bf16.mxu1 %v8523_v52  ;;  %v7457_v52 = vld [vmem:[%s15758_s5 + $0x640] sm:$0xff] }
0x121a   :  { %11104 = vmatpush3.bf16.msra.mxu1 %v8515_v19  ;;  %v7458_v19 = vld [vmem:[%s15758_s5 + $0x648] sm:$0xff] }
0x121b   :  { %11106 = vmatprep.subr.bf16.mxu1 %v8524_v17  ;;  %v11198_v17 = vpack.c.bf16 %v7458_v19, %v7457_v52 }
0x121e   :  { %11108 = vmatpush3.bf16.msra.mxu1 %v8516_v54  ;;  %v7459_v54 = vld [vmem:[%s15758_s5 + $0x650] sm:$0xff] }
0x121f   :  { %11110 = vmatprep.subr.bf16.mxu1 %v8525_v55  ;;  %v7460_v55 = vld [vmem:[%s15758_s5 + $0x658] sm:$0xff] }
0x1222   :  { %11112 = vmatpush3.bf16.msra.mxu1 %v8517_v49  ;;  %v11201_v49 = vpack.c.bf16 %v7460_v55, %v7459_v54 }
0x1223   :  { %11114 = vmatprep.subr.bf16.mxu1 %v8526_v18  ;;  %v7461_v18 = vld [vmem:[%s15758_s5 + $0x660] sm:$0xff] }
0x1226   :  { %11116 = vmatpush3.bf16.msra.mxu1 %v8518_v56  ;;  %v7462_v56 = vld [vmem:[%s15758_s5 + $0x668] sm:$0xff] }
0x1227   :  { %11118 = vmatprep.subr.bf16.mxu1 %v8527_v57  ;;  %v11204_v57 = vpack.c.bf16 %v7462_v56, %v7461_v18 }
0x122a   :  { %11120 = vmatpush3.bf16.msra.mxu1 %v8519_v27  ;;  %v7463_v27 = vld [vmem:[%s15758_s5 + $0x670] sm:$0xff] }
0x122b   :  { %11122 = vmatprep.subr.bf16.mxu1 %v8536_v58  ;;  %v7464_v58 = vld [vmem:[%s15758_s5 + $0x678] sm:$0xff] }
0x12e0   :  { %v7004_v22 = vpop.f32.mrb[64].mxu1 }
0x12e1   :  { %v7006_v62 = vpop.f32.mrb[65].mxu1 }
0x12e2   :  { %7289 = vmatprep.mubr.f32.mxu1 %v7006_v62 }
0x12e3   :  { %7290 = vmatmul.mubr.f32.vlgmr.msra.gmra.mrb[70].mxu1 %v7004_v22  ;;  %v11207_v22 = vpack.c.bf16 %v7464_v58, %v7463_v27  ;;  %v8568_v27 = vld [vmem:[#allocation5 + $0x1c0] sm:$0xff]  }
0x12e4   :  { %11124 = vmatpush3.bf16.msra.mxu1 %v8528_v24  ;;  %v7010_v13 = vpop.f32.mrb[66].mxu1  ;;  %v8560_v58 = vld [vmem:[#allocation5 + $0x180] sm:$0xff]  }
0x12e5   :  { %11126 = vmatprep.subr.bf16.mxu1 %v8537_v3  ;;  %v7012_v23 = vpop.f32.mrb[67].mxu1 }
0x12e6   :  { %7359 = vmatprep.mubr.f32.mxu1 %v7012_v23 }
0x12e8   :  { %11128 = vmatpush3.bf16.msra.mxu1 %v8529_v4  ;;  %v7016_v10 = vpop.f32.mrb[68].mxu1 }
0x12e9   :  { %11130 = vmatprep.subr.bf16.mxu1 %v8538_v9  ;;  %v7018_v12 = vpop.f32.mrb[69].mxu1 }
0x12ec   :  { %11132 = vmatpush3.bf16.msra.mxu1 %v8530_v43 }
0x12ed   :  { %11134 = vmatprep.subr.bf16.mxu1 %v8539_v5 }
0x12f0   :  { %11136 = vmatpush3.bf16.msra.mxu1 %v8531_v11 }
0x12f1   :  { %11138 = vmatprep.subr.bf16.mxu1 %v8540_v15 }
0x12f4   :  { %11140 = vmatpush3.bf16.msra.mxu1 %v8532_v16 }
0x12f5   :  { %11142 = vmatprep.subr.bf16.mxu1 %v8541_v2 }
0x12f8   :  { %11144 = vmatpush3.bf16.msra.mxu1 %v8533_v48 }
0x12f9   :  { %11146 = vmatprep.subr.bf16.mxu1 %v8542_v8 }
0x12fc   :  { %11148 = vmatpush3.bf16.msra.mxu1 %v8534_v63 }
0x12fd   :  { %11150 = vmatprep.subr.bf16.mxu1 %v8543_v20 }
0x1300   :  { %11152 = vmatpush3.bf16.msra.mxu1 %v8535_v7 }
0x1301   :  { %11154 = vmatprep.subr.bf16.mxu1 %v8552_v61 }
0x1303   :  { %7360 = vmatmul.mubr.f32.vlgmr.msra.gmra.mrb[72].mxu1 %v7010_v13 }
0x1304   :  { %11156 = vmatpush3.bf16.msra.mxu1 %v8544_v25  ;;  %7429 = vmatprep.mubr.f32.mxu1 %v7018_v12 }
0x1305   :  { %11158 = vmatprep.subr.bf16.mxu1 %v8553_v26 }
0x1308   :  { %11160 = vmatpush3.bf16.msra.mxu1 %v8545_v32 }
0x1309   :  { %11162 = vmatprep.subr.bf16.mxu1 %v8554_v6 }
0x130c   :  { %11164 = vmatpush3.bf16.msra.mxu1 %v8546_v33  ;;  %v7550_v33 = vld [vmem:[#allocation7 + $0xc0] sm:$0xff] }
0x130d   :  { %11166 = vmatprep.subr.bf16.mxu1 %v8555_v59  ;;  %v7551_v59 = vld [vmem:[#allocation7 + $0xe0] sm:$0xff] }
0x1310   :  { %11168 = vmatpush3.bf16.msra.mxu1 %v8547_v35  ;;  %v11210_v35 = vpack.c.bf16 %v7551_v59, %v7550_v33 }
0x1311   :  { %11170 = vmatprep.subr.bf16.mxu1 %v8556_v38  ;;  %v7552_v38 = vld [vmem:[#allocation7 + $0x100] sm:$0xff] }
0x1312   :  { %11211 = vmatpush3.bf16.msra.mxu0 %v11210_v35 }
0x1313   :  { %11212 = vmatprep.subr.bf16.mxu0 %v13645_v1 }
0x1314   :  { %11172 = vmatpush3.bf16.msra.mxu1 %v8548_v39  ;;  %v7553_v39 = vld [vmem:[#allocation7 + $0x120] sm:$0xff] }
0x1315   :  { %11174 = vmatprep.subr.bf16.mxu1 %v8557_v21  ;;  %v11213_v21 = vpack.c.bf16 %v7553_v39, %v7552_v38  ;;  %v7991_v38 = vld [vmem:[%s15758_s5 + $0x6a0] sm:$0xff]  ;;  %v7992_v39 = vld [vmem:[%s15758_s5 + $0x6a8] sm:$0xff] }
0x1317   :  { %11214 = vmatpush3.bf16.msra.mxu0 %v11213_v21 }
0x1318   :  { %11176 = vmatpush3.bf16.msra.mxu1 %v8549_v53  ;;  %9045 = vmatprep.subr.mxu0 %v13644_v0 }
0x1319   :  { %11178 = vmatprep.subr.bf16.mxu1 %v8558_v29 }
0x131c   :  { %11180 = vmatpush3.bf16.msra.mxu1 %v8550_v41 }
0x131d   :  { %11182 = vmatprep.subr.bf16.mxu1 %v8559_v34 }
0x1320   :  { %11184 = vmatpush3.bf16.msra.mxu1 %v8551_v28 }
0x1321   :  { %11185 = vmatprep.subr.bf16.mxu1 %v13645_v1 }
0x1323   :  { %7430 = vmatmul.mubr.f32.vlgmr.msra.gmra.mrb[74].mxu1 %v7016_v10 }
0x1324   :  { %11187 = vmatpush3.bf16.msra.mxu1 %v11186_v40  ;;  %9031 = vmatprep.mubr.msk.f32.mxu1 %vm13646_vm4, %v13644_v0 }
0x1325   :  { %11188 = vmatprep.subr.bf16.mxu1 %v13645_v1 }
0x1328   :  { %11190 = vmatpush3.bf16.msra.mxu1 %v11189_v60 }
0x1329   :  { %11191 = vmatprep.subr.bf16.mxu1 %v13645_v1 }
0x132c   :  { %11193 = vmatpush3.bf16.msra.mxu1 %v11192_v45  ;;  %v8578_v45 = vld [vmem:[#allocation5 + $0x210] sm:$0xff]  }
0x132d   :  { %11194 = vmatprep.subr.bf16.mxu1 %v13645_v1 }
0x1330   :  { %11196 = vmatpush3.bf16.msra.mxu1 %v11195_v44  ;;  %v8581_v44 = vld [vmem:[#allocation5 + $0x228] sm:$0xff]  }
0x1331   :  { %11197 = vmatprep.subr.bf16.mxu1 %v13645_v1 }
0x1334   :  { %11199 = vmatpush3.bf16.msra.mxu1 %v11198_v17 }
0x1335   :  { %11200 = vmatprep.subr.bf16.mxu1 %v13645_v1 }
0x1338   :  { %11202 = vmatpush3.bf16.msra.mxu1 %v11201_v49 }
0x1339   :  { %11203 = vmatprep.subr.bf16.mxu1 %v13645_v1 }
0x133c   :  { %11205 = vmatpush3.bf16.msra.mxu1 %v11204_v57  ;;  %v7639_v57 = vld [vmem:[%s15757_s4 + $0xa8] sm:$0xff] }
0x133d   :  { %11206 = vmatprep.subr.bf16.mxu1 %v13645_v1 }
0x1340   :  { %11208 = vmatpush3.bf16.msra.mxu1 %v11207_v22  ;;  %v8569_v22 = vld [vmem:[#allocation5 + $0x1c8] sm:$0xff]  }
0x1341   :  { %11247 = vmatprep.subr.bf16.mxu1 %v13645_v1 }
0x13b6   :  { %v8826_v62 = vpop.f32.mrb[70].mxu1 }
0x13b7   :  { %v8827_v24 = vpop.f32.mrb[71].mxu1 }
0x13b8   :  { %v8828_v3 = vadd.f32 %v8827_v24, %v8826_v62  ;;  %v7640_v62 = vld [vmem:[%s15757_s4 + $0xb0] sm:$0xff]  ;;  %v8561_v24 = vld [vmem:[#allocation5 + $0x188] sm:$0xff]  }
0x13d6   :  { %v8861_v13 = vpop.f32.mrb[72].mxu1 }
0x13d7   :  { %v8862_v4 = vpop.f32.mrb[73].mxu1 }
0x13d8   :  { %v8863_v23 = vadd.f32 %v8862_v4, %v8861_v13  ;;  %v7641_v13 = vld [vmem:[%s15757_s4 + $0xb8] sm:$0xff]  ;;  %v8562_v4 = vld [vmem:[#allocation5 + $0x190] sm:$0xff]  }
0x13da   :  { %v7362_v9 = vadd.f32 %v8863_v23, %v8828_v3  ;;  %v8570_v3 = vld [vmem:[#allocation5 + $0x1d0] sm:$0xff]   ;;  %v8571_v23 = vld [vmem:[#allocation5 + $0x1d8] sm:$0xff]  }
0x13f6   :  { %v8896_v10 = vpop.f32.mrb[74].mxu1 }
0x13f7   :  { %v8897_v43 = vpop.f32.mrb[75].mxu1 }
0x13f8   :  { %v8898_v12 = vadd.f32 %v8897_v43, %v8896_v10  ;;  %v8572_v10 = vld [vmem:[#allocation5 + $0x1e0] sm:$0xff]  }
0x13f9   :  { %v8564_v43 = vld [vmem:[#allocation5 + $0x1a0] sm:$0xff]  }
0x13fa   :  { %v7432_v5 = vadd.f32 %v8898_v12, %v7362_v9  ;;  %v8563_v9 = vld [vmem:[#allocation5 + $0x198] sm:$0xff]   ;;  %v8573_v12 = vld [vmem:[#allocation5 + $0x1e8] sm:$0xff]  }
0x13fc   :  { %v7435_v11 = vrot.slane %v7432_v5, 4  ;;  %v7441_v15 = vmul.f32 %v7432_v5, %v7432_v5 }
0x13fe   :  { %v7436_v16 = vadd.f32 %v7435_v11, %v7432_v5  ;;  %v7442_v2 = vrot.slane %v7441_v15, 4  ;;  %v8574_v11 = vld [vmem:[#allocation5 + $0x1f0] sm:$0xff]  }
0x1400   :  { %v7437_v48 = vrot.slane %v7436_v16, 2  ;;  %v7443_v8 = vadd.f32 %v7442_v2, %v7441_v15  ;;  %v8566_v15 = vld [vmem:[#allocation5 + $0x1b0] sm:$0xff]  }
0x1401   :  { %v8582_v2 = vld [vmem:[#allocation5 + $0x230] sm:$0xff]  }
0x1402   :  { %v7438_v63 = vadd.f32 %v7437_v48, %v7436_v16  ;;  %v7444_v20 = vrot.slane %v7443_v8, 2  ;;  %v8575_v16 = vld [vmem:[#allocation5 + $0x1f8] sm:$0xff]  }
0x1403   :  { %v8567_v48 = vld [vmem:[#allocation5 + $0x1b8] sm:$0xff]  }
0x1404   :  { %v7439_v7 = vrot.slane %v7438_v63, 1  ;;  %v7445_v61 = vadd.f32 %v7444_v20, %v7443_v8  ;;  %v8583_v8 = vld [vmem:[#allocation5 + $0x238] sm:$0xff]   ;;  %v7987_v20 = vld [vmem:[%s15758_s5 + $0x680] sm:$0xff] }
0x1406   :  { %v7446_v25 = vrot.slane %v7445_v61, 1  ;;  %v7440_v26 = vadd.f32 %v7439_v7, %v7438_v63  ;;  %v7988_v7 = vld [vmem:[%s15758_s5 + $0x688] sm:$0xff] }
0x1408   :  { %v7447_v32 = vadd.f32 %v7446_v25, %v7445_v61  ;;  %v11272_v25 = vpack.c.bf16 %v7988_v7, %v7987_v20 }
0x140a   :  { %v7448_v6 = vsel %vm1331_vm1, %v7440_v26, %v7447_v32  ;;  %v7989_v32 = vld [vmem:[%s15758_s5 + $0x690] sm:$0xff] }
0x140b   :  { %9032 = vmatmul.mubr.f32.vlgmr.msra.gmra.mrb[76].mxu1 %v7448_v6  ;;  %v7990_v6 = vld [vmem:[%s15758_s5 + $0x698] sm:$0xff] }
0x140c   :  { %9088 = vmatprep.mubr.msk.f32.mxu1 %vm13646_vm4, %v13644_v0  ;;  %11249 = vmatpush3.bf16.msra.mxu1 %v8576_v30  ;;  %v11275_v59 = vpack.c.bf16 %v7990_v6, %v7989_v32 }
0x140d   :  { %11250 = vmatprep.subr.bf16.mxu1 %v13645_v1 }
0x1410   :  { %11252 = vmatpush3.bf16.msra.mxu1 %v8577_v50  ;;  %v8001_v50 = vld [vmem:[%s15758_s5 + $0x6f0] sm:$0xff] }
0x1411   :  { %11253 = vmatprep.subr.bf16.mxu1 %v13645_v1 }
0x1414   :  { %11255 = vmatpush3.bf16.msra.mxu1 %v8578_v45  ;;  %v8002_v45 = vld [vmem:[%s15758_s5 + $0x6f8] sm:$0xff] }
0x1415   :  { %11256 = vmatprep.subr.bf16.mxu1 %v13645_v1 }
0x1418   :  { %11258 = vmatpush3.bf16.msra.mxu1 %v8579_v36  ;;  %v11293_v36 = vpack.c.bf16 %v8002_v45, %v8001_v50 }
0x1419   :  { %11259 = vmatprep.subr.bf16.mxu1 %v13645_v1 }
0x141c   :  { %11261 = vmatpush3.bf16.msra.mxu1 %v8580_v51 }
0x141d   :  { %11262 = vmatprep.subr.bf16.mxu1 %v13645_v1 }
0x1420   :  { %11264 = vmatpush3.bf16.msra.mxu1 %v8581_v44 }
0x1421   :  { %11265 = vmatprep.subr.bf16.mxu1 %v13645_v1 }
0x1424   :  { %11267 = vmatpush3.bf16.msra.mxu1 %v8582_v2 }
0x1425   :  { %11268 = vmatprep.subr.bf16.mxu1 %v13645_v1 }
0x1428   :  { %11270 = vmatpush3.bf16.msra.mxu1 %v8583_v8 }
0x1429   :  { %11295 = vmatprep.subr.bf16.mxu1 %v13645_v1 }
0x14de   :  { %v7531_v53 = vpop.f32.mrb[76].mxu1 }
0x14df   :  { %v7535_v29 = vmul.f32 %v7531_v53, %v7531_v53  ;;  %v9033_v41 = vpop.f32.mrb[77].mxu1 }
0x14e0   :  { %v7994_v41 = vld [vmem:[%s15758_s5 + $0x6b8] sm:$0xff] }
0x14e1   :  { %v7537_v34 = vrot.slane %v7535_v29, 7  ;;  %v7993_v29 = vld [vmem:[%s15758_s5 + $0x6b0] sm:$0xff] }
0x14e3   :  { %v7539_v28 = vsub.f32 %v7531_v53, %v7537_v34  ;;  %v11281_v34 = vpack.c.bf16 %v7994_v41, %v7993_v29 }
0x14e5   :  { %v7540_v14 = vadd.f32 1e-05, %v7539_v28  ;;  %v7996_v28 = vld [vmem:[%s15758_s5 + $0x6c8] sm:$0xff] }
0x14e7   :  { %13561 = vrsqrt.f32 %v7540_v14 }
0x14f1   :  { %v13562_v42 = vpop.eup %13561 }
0x14f2   :  { %v7543_v47 = vrot.slane %v13562_v42, 1  ;;  %v7997_v42 = vld [vmem:[%s15758_s5 + $0x6d0] sm:$0xff] }
0x14f4   :  { %v7545_v40 = vmul.f32 %v7543_v47, %v7531_v53  ;;  %v11278_v53 = vpack.c.bf16 %v7992_v39, %v7991_v38 }
0x14f6   :  { %v7547_v31 = vrot.slane %v7545_v40, 7 }
0x14f8   :  { %v7549_v60 = vsel %vm1331_vm1, %v7543_v47, %v7547_v31  ;;  %v7998_v47 = vld [vmem:[%s15758_s5 + $0x6d8] sm:$0xff]  ;;  %v7999_v31 = vld [vmem:[%s15758_s5 + $0x6e0] sm:$0xff] }
0x14f9   :  { %9043 = vmatmul.mubr.msk.f32.vlgmr.msra.gmra.mrb[34].mxu0 %vm85_vm0, %v7549_v60  ;;  %v11287_v40 = vpack.c.bf16 %v7998_v47, %v7997_v42  ;;  %v8000_v60 = vld [vmem:[%s15758_s5 + $0x6e8] sm:$0xff] }
0x14fa   :  { %9047 = vmatprep.mubr.msk.f32.mxu0 %vm13646_vm4, %v13644_v0  ;;  %v11290_v30 = vpack.c.bf16 %v8000_v60, %v7999_v31 }
0x15cc   :  { %v7623_v52 = vpop.f32.mrb[34].mxu0 }
0x15cd   :  { %v7630_v19 = vrot.slane %v7623_v52, %v14036_v46  ;;  %v9044_v17 = vpop.f32.mrb[35].mxu0  ;;  %v7635_v55 = vrot.slane %v7623_v52, %v14038_v37 }
0x15cf   :  { %v7631_v54 = vmul.f32 %v7630_v19, %v7432_v5  ;;  %v8565_v5 = vld [vmem:[#allocation5 + $0x1a8] sm:$0xff]  }
0x15d1   :  { %v7636_v49 = vsub.f32 %v7631_v54, %v7635_v55 }
0x15d3   :  { %v7637_v18 = vmul.f32 0.01, %v7636_v49 }
0x15d5   :  { %v7638_v56 = vmax.f32 %v7636_v49, %v7637_v18 }
0x15d7   :  { %9046 = vmatpush3.msra.mxu0 %v7638_v56 }
0x15d8   :  { %9048 = vmatmul.mubr.msk.f32.vlgmr.msra.gmra.mrb[36].mxu0 %vm1559_vm2, %v7639_v57  ;;  %11216 = vmatprep.subr.bf16.mxu0 %v8568_v27 }
0x15d9   :  { %9050 = vmatprep.mubr.msk.f32.mxu0 %vm13646_vm4, %v13644_v0  ;;  %11218 = vmatpush3.bf16.msra.mxu0 %v8560_v58 }
0x15da   :  { %11220 = vmatprep.subr.bf16.mxu0 %v8569_v22 }
0x15dc   :  { %9051 = vmatmul.mubr.msk.f32.gmra.mrb[38].mxu0 %vm1559_vm2, %v7640_v62 }
0x15dd   :  { %9053 = vmatprep.mubr.msk.f32.mxu0 %vm13646_vm4, %v13644_v0  ;;  %11222 = vmatpush3.bf16.msra.mxu0 %v8561_v24 }
0x15de   :  { %11224 = vmatprep.subr.bf16.mxu0 %v8570_v3 }
0x15e0   :  { %9054 = vmatmul.mubr.msk.f32.gmra.mrb[40].mxu0 %vm1559_vm2, %v7641_v13 }
0x15e1   :  { %11226 = vmatpush3.bf16.msra.mxu0 %v8562_v4 }
0x15e2   :  { %11228 = vmatprep.subr.bf16.mxu0 %v8571_v23 }
0x15e5   :  { %11230 = vmatpush3.bf16.msra.mxu0 %v8563_v9  ;;  %v8088_v9 = vld [vmem:[#allocation7 + $0x140] sm:$0xff] }
0x15e6   :  { %11232 = vmatprep.subr.bf16.mxu0 %v8572_v10  ;;  %v8089_v10 = vld [vmem:[#allocation7 + $0x160] sm:$0xff] }
0x15e9   :  { %11234 = vmatpush3.bf16.msra.mxu0 %v8564_v43  ;;  %v11296_v43 = vpack.c.bf16 %v8089_v10, %v8088_v9 }
0x15ea   :  { %11236 = vmatprep.subr.bf16.mxu0 %v8573_v12  ;;  %v8090_v12 = vld [vmem:[#allocation7 + $0x180] sm:$0xff] }
0x15ed   :  { %11238 = vmatpush3.bf16.msra.mxu0 %v8565_v5  ;;  %v8091_v5 = vld [vmem:[#allocation7 + $0x1a0] sm:$0xff] }
0x15ee   :  { %11240 = vmatprep.subr.bf16.mxu0 %v8574_v11  ;;  %v11299_v11 = vpack.c.bf16 %v8091_v5, %v8090_v12 }
0x15f1   :  { %11242 = vmatpush3.bf16.msra.mxu0 %v8566_v15 }
0x15f2   :  { %11244 = vmatprep.subr.bf16.mxu0 %v8575_v16 }
0x15f5   :  { %11246 = vmatpush3.bf16.msra.mxu0 %v8567_v48 }
0x15f6   :  { %11271 = vmatprep.subr.bf16.mxu0 %v13645_v1 }
0x16ab   :  { %v7717_v63 = vpop.f32.mrb[36].mxu0 }
0x16ac   :  { %v9049_v61 = vpop.f32.mrb[37].mxu0 }
0x16af   :  { %v7722_v26 = vpop.f32.mrb[38].mxu0 }
0x16b0   :  { %7897 = vmatprep.mubr.f32.mxu0 %v7722_v26  ;;  %v9052_v33 = vpop.f32.mrb[39].mxu0 }
0x16b1   :  { %7898 = vmatmul.mubr.f32.vlgmr.msra.gmra.mrb[42].mxu0 %v7717_v63 }
0x16b2   :  { %11273 = vmatpush3.bf16.msra.mxu0 %v11272_v25  ;;  %9123 = vmatprep.mubr.msk.f32.mxu0 %vm13646_vm4, %v13644_v0 }
0x16b3   :  { %v7727_v35 = vpop.f32.mrb[40].mxu0  ;;  %11274 = vmatprep.subr.bf16.mxu0 %v13645_v1 }
0x16b4   :  { %9089 = vmatmul.mubr.f32.vlgmr.msra.gmra.mrb[78].mxu1 %v7727_v35  ;;  %v9055_v21 = vpop.f32.mrb[41].mxu0 }
0x16b5   :  { %9134 = vmatprep.mubr.msk.f32.mxu1 %vm13646_vm4, %v13644_v0  ;;  %v7995_v0 = vld [vmem:[%s15758_s5 + $0x6c0] sm:$0xff]  ;;  %11297 = vmatpush3.bf16.msra.mxu1 %v11296_v43 }
0x16b6   :  { %11276 = vmatpush3.bf16.msra.mxu0 %v11275_v59  ;;  %v11284_v14 = vpack.c.bf16 %v7996_v28, %v7995_v0  ;;  %11298 = vmatprep.subr.bf16.mxu1 %v13645_v1 }
0x16b7   :  { %11277 = vmatprep.subr.bf16.mxu0 %v13645_v1 }
0x16b9   :  { %11300 = vmatpush3.bf16.msra.mxu1 %v11299_v11 }
0x16ba   :  { %11279 = vmatpush3.bf16.msra.mxu0 %v11278_v53 }
0x16bb   :  { %11280 = vmatprep.subr.bf16.mxu0 %v13645_v1 }
0x16be   :  { %11282 = vmatpush3.bf16.msra.mxu0 %v11281_v34 }
0x16bf   :  { %11283 = vmatprep.subr.bf16.mxu0 %v13645_v1 }
0x16c2   :  { %11285 = vmatpush3.bf16.msra.mxu0 %v11284_v14 }
0x16c3   :  { %11286 = vmatprep.subr.bf16.mxu0 %v13645_v1 }
0x16c6   :  { %11288 = vmatpush3.bf16.msra.mxu0 %v11287_v40 }
0x16c7   :  { %11289 = vmatprep.subr.bf16.mxu0 %v13645_v1 }
0x16ca   :  { %11291 = vmatpush3.bf16.msra.mxu0 %v11290_v30 }
0x16cb   :  { %11292 = vmatprep.subr.bf16.mxu0 %v13645_v1 }
0x16ce   :  { %11294 = vmatpush3.bf16.msra.mxu0 %v11293_v36 }
0x1784   :  { %v8957_v51 = vpop.f32.mrb[42].mxu0 }
0x1785   :  { %v8958_v44 = vpop.f32.mrb[43].mxu0 }
0x1786   :  { %v8959_v52 = vadd.f32 %v8958_v44, %v8957_v51 }
0x1787   :  { %v7969_v19 = vpop.f32.mrb[78].mxu1 }
0x1788   :  { %v7970_v17 = vadd.f32 %v8959_v52, %v7969_v19  ;;  %v9090_v54 = vpop.f32.mrb[79].mxu1 }
0x178a   :  { %v7973_v55 = vrot.slane %v7970_v17, 4  ;;  %v7979_v49 = vmul.f32 %v7970_v17, %v7970_v17 }
0x178c   :  { %v7974_v18 = vadd.f32 %v7973_v55, %v7970_v17  ;;  %v7980_v56 = vrot.slane %v7979_v49, 4 }
0x178e   :  { %v7975_v57 = vrot.slane %v7974_v18, 2  ;;  %v7981_v27 = vadd.f32 %v7980_v56, %v7979_v49 }
0x1790   :  { %v7976_v58 = vadd.f32 %v7975_v57, %v7974_v18  ;;  %v7982_v22 = vrot.slane %v7981_v27, 2 }
0x1792   :  { %v7977_v62 = vrot.slane %v7976_v58, 1  ;;  %v7983_v24 = vadd.f32 %v7982_v22, %v7981_v27 }
0x1794   :  { %v7984_v3 = vrot.slane %v7983_v24, 1  ;;  %v7978_v13 = vadd.f32 %v7977_v62, %v7976_v58 }
0x1796   :  { %v7985_v4 = vadd.f32 %v7984_v3, %v7983_v24 }
0x1798   :  { %v7986_v23 = vsel %vm1331_vm1, %v7978_v13, %v7985_v4 }
0x1799   :  { %9124 = vmatmul.mubr.f32.vlgmr.msra.gmra.mrb[44].mxu0 %v7986_v23 }
0x186c   :  { %v8069_v15 = vpop.f32.mrb[44].mxu0 }
0x186d   :  { %v8073_v16 = vmul.f32 %v8069_v15, %v8069_v15  ;;  %v9125_v2 = vpop.f32.mrb[45].mxu0 }
0x186f   :  { %v8075_v48 = vrot.slane %v8073_v16, 7 }
0x1871   :  { %v8077_v8 = vsub.f32 %v8069_v15, %v8075_v48 }
0x1873   :  { %v8078_v63 = vadd.f32 1e-05, %v8077_v8 }
0x1875   :  { %13563 = vrsqrt.f32 %v8078_v63 }
0x187f   :  { %v13564_v20 = vpop.eup %13563 }
0x1880   :  { %v8081_v7 = vrot.slane %v13564_v20, 1 }
0x1882   :  { %v8083_v61 = vmul.f32 %v8081_v7, %v8069_v15 }
0x1884   :  { %v8085_v25 = vrot.slane %v8083_v61, 7 }
0x1886   :  { %v8087_v26 = vsel %vm1331_vm1, %v8081_v7, %v8085_v25 }
0x1887   :  { %9135 = vmatmul.mubr.msk.f32.vlgmr.msra.gmra.mrb[80].mxu1 %vm85_vm0, %v8087_v26 }
0x195a   :  { %v8161_v1 = vpop.f32.mrb[80].mxu1 }
0x195b   :  { %v8168_v32 = vrot.slane %v8161_v1, %v14036_v46  ;;  %v9136_v6 = vpop.f32.mrb[81].mxu1  ;;  %v8173_v59 = vrot.slane %v8161_v1, %v14038_v37 }
0x195d   :  { %v8169_v33 = vmul.f32 %v8168_v32, %v7970_v17 }
0x195f   :  { %v8174_v35 = vsub.f32 %v8169_v33, %v8173_v59 }
0x1961   :  { %v8175_v38 = vmul.f32 0.01, %v8174_v35 }
0x1963   :  { %v8176_v39 = vmax.f32 %v8174_v35, %v8175_v38 }
0x1965   :  { %8177 = vst [vmem:[%s15760_s7] sm:$0xff] %v8176_v39 }
0x1966   :  { %8182 = vsyncpa [#allocation4], 1 }
0x1967   :  { %8183 = vsyncpa [#allocation6], 1 }

</bundles_post_ra>
